<compile_context>
chip_gen: v7x
topology: tpu7x:2x2x1
jax: 0.10.0
libtpu: 0.0.40
codegen_flags: <defaults>
</compile_context>

<pallas_src>
import jax
import jax.numpy as jnp
from jax.experimental import pallas as pl
from jax.experimental.pallas import tpu as pltpu


# ----------------------------- Pallas kernels ------------------------------

def _conv_matmul_kernel(x_ref, w_ref, b_ref, o_ref):
    """Fused (tm, K) x (K, N) matmul + bias + ReLU with f32 accumulation."""
    acc = jnp.dot(x_ref[...], w_ref[...], preferred_element_type=jnp.float32)
    acc = jnp.maximum(acc + b_ref[...], 0.0)
    o_ref[...] = acc.astype(o_ref.dtype)


def _pick_grid_m(M, target_tile=2048):
    """Pick a >=2-way row split (v7x dual TensorCore) with 8-aligned tiles."""
    g = max(2, -(-M // target_tile))          # cdiv, at least 2 grid steps
    while g > 1 and (M % g != 0 or (M // g) % 8 != 0):
        g -= 1
    return g


def conv_matmul(x, w, b):
    """x: (M, K) bf16, w: (K, N) bf16, b: (N,) f32 -> ReLU(x @ w + b) bf16."""
    M, K = x.shape
    _, N = w.shape
    g = _pick_grid_m(M)
    tm = M // g
    return pl.pallas_call(
        _conv_matmul_kernel,
        out_shape=jax.ShapeDtypeStruct((M, N), jnp.bfloat16),
        grid_spec=pltpu.PrefetchScalarGridSpec(
            num_scalar_prefetch=0,
            grid=(g,),
            in_specs=[
                pl.BlockSpec((tm, K), lambda i: (i, 0)),
                pl.BlockSpec((K, N), lambda i: (0, 0)),
                pl.BlockSpec((1, N), lambda i: (0, 0)),
            ],
            out_specs=pl.BlockSpec((tm, N), lambda i: (i, 0)),
        ),
        compiler_params=pltpu.CompilerParams(
            dimension_semantics=("parallel",),
            vmem_limit_bytes=32 * 1024 * 1024),
    )(x, w, b.reshape(1, N).astype(jnp.float32))


def _head_kernel(feat_ref, wf_ref, bf_ref, out_ref):
    """Fused final 1x1 conv (C -> 1) + spatial soft-argmax.

    feat_ref: (B, H, W, C) bf16, wf_ref: (1, C) f32, bf_ref: (1, 1) f32,
    out_ref:  (B, 2) f32  (column 0 = x, column 1 = y, normalized coords).
    """
    B, H, W, C = feat_ref.shape
    wf = wf_ref[...]                                          # (1, C) f32
    col = jax.lax.broadcasted_iota(jnp.int32, (1, 2), 1)      # output column id
    xs = (jax.lax.broadcasted_iota(jnp.int32, (H, W), 1).astype(jnp.float32)
          * (2.0 / (W - 1)) - 1.0)                            # x grid, in-kernel
    ys = (jax.lax.broadcasted_iota(jnp.int32, (H, W), 0).astype(jnp.float32)
          * (2.0 / (H - 1)) - 1.0)                            # y grid, in-kernel
    for bidx in range(B):                                     # B is tiny; unrolled
        feat = feat_ref[bidx].astype(jnp.float32)             # (H, W, C)
        logit = jnp.sum(feat * wf, axis=-1) + bf_ref[...]     # (H, W)
        m = jnp.max(jnp.max(logit, axis=1, keepdims=True), axis=0, keepdims=True)
        e = jnp.exp(logit - m)
        s = jnp.sum(jnp.sum(e, axis=1, keepdims=True), axis=0, keepdims=True)
        wts = e * pl.reciprocal(s, approx=True)               # softmax weights
        xp = jnp.sum(jnp.sum(wts * xs, axis=1, keepdims=True),
                     axis=0, keepdims=True)                   # (1, 1)
        yp = jnp.sum(jnp.sum(wts * ys, axis=1, keepdims=True),
                     axis=0, keepdims=True)                   # (1, 1)
        out_ref[pl.ds(bidx, 1), :] = jnp.where(col == 0, xp, yp)


def head_pallas(feat, wf, bf):
    """feat: (B, H, W, C) bf16 -> (B, 2) aim point."""
    B, H, W, C = feat.shape
    return pl.pallas_call(
        _head_kernel,
        out_shape=jax.ShapeDtypeStruct((B, 2), jnp.float32),
        grid_spec=pltpu.PrefetchScalarGridSpec(
            num_scalar_prefetch=0,
            grid=(1,),
            in_specs=[
                pl.BlockSpec((B, H, W, C), lambda i: (0, 0, 0, 0)),
                pl.BlockSpec((1, C), lambda i: (0, 0)),
                pl.BlockSpec((1, 1), lambda i: (0, 0)),
            ],
            out_specs=pl.BlockSpec((B, 2), lambda i: (0, 0)),
        ),
        compiler_params=pltpu.CompilerParams(
            dimension_semantics=("arbitrary",),
            vmem_limit_bytes=32 * 1024 * 1024),
    )(feat, wf.astype(jnp.float32), bf.reshape(1, 1).astype(jnp.float32))


# ------------------------------ JAX glue -----------------------------------

def im2col(x, k=5, stride=2, pad=2):
    """x: (B, H, W, C) -> ((B*Ho*Wo, k*k*C), (B, Ho, Wo)). Patch order (ky,kx,c)."""
    B, H, W, C = x.shape
    Ho = (H + 2 * pad - k) // stride + 1
    Wo = (W + 2 * pad - k) // stride + 1
    xp = jnp.pad(x, ((0, 0), (pad, pad), (pad, pad), (0, 0)))
    cols = []
    for ky in range(k):
        for kx in range(k):
            cols.append(xp[:, ky:ky + stride * Ho:stride,
                           kx:kx + stride * Wo:stride, :])
    p = jnp.stack(cols, axis=3)                   # (B, Ho, Wo, k*k, C)
    return p.reshape(B * Ho * Wo, k * k * C), (B, Ho, Wo)


def init_params(key, channels=(16, 32, 64, 128), in_ch=3):
    """Deterministic synthetic parameters matching Planner.__init__ shapes."""
    params = []
    h = in_ch
    eps = 1e-5
    bn_scale = 1.0 / jnp.sqrt(1.0 + eps)   # eval-mode BN with default stats
    for c in channels:
        key, k1, k2 = jax.random.split(key, 3)
        w = jax.random.normal(k1, (c, h, 5, 5), jnp.float32) * 0.1   # (O,I,kh,kw)
        b = jax.random.normal(k2, (c,), jnp.float32) * 0.1
        w = w * bn_scale                                             # fold BN
        w_mat = jnp.transpose(w, (2, 3, 1, 0)).reshape(5 * 5 * h, c)
        params.append((w_mat.astype(jnp.bfloat16), b))
        h = c
    key, k1, k2 = jax.random.split(key, 3)
    wf = jax.random.normal(k1, (1, h), jnp.float32) * 0.1            # final 1x1
    bf = jax.random.normal(k2, (1,), jnp.float32) * 0.1
    params.append((wf, bf))
    return params


def planner_forward(img_nchw, params):
    """img_nchw: (B, 3, H, W) float32 -> (B, 2) aim point."""
    x = jnp.transpose(img_nchw, (0, 2, 3, 1)).astype(jnp.bfloat16)   # NHWC bf16
    for w_mat, b in params[:-1]:                                     # 4 conv blocks
        cols, (B, Ho, Wo) = im2col(x)
        y = conv_matmul(cols, w_mat, b)                              # Pallas kernel
        x = y.reshape(B, Ho, Wo, w_mat.shape[1])
    wf, bf = params[-1]
    return head_pallas(x, wf, bf)                                    # fused 1x1 + argmax


# ------------------------- pure-JAX reference check -------------------------

def reference_forward(img_nchw, params, channels=(16, 32, 64, 128), in_ch=3):
    """Pure-JAX reference using the same bf16 rounding points as the kernels."""
    x = jnp.transpose(img_nchw, (0, 2, 3, 1)).astype(jnp.bfloat16)   # NHWC bf16
    h = in_ch
    for (w_mat, b), c in zip(params[:-1], channels):
        w = w_mat.astype(jnp.float32).reshape(5, 5, h, c)            # HWIO
        y = jax.lax.conv_general_dilated(
            x.astype(jnp.float32), w, (2, 2), ((2, 2), (2, 2)),
            dimension_numbers=("NHWC", "HWIO", "NHWC"))
        y = jnp.maximum(y + b[None, None, None, :], 0.0)
        x = y.astype(jnp.bfloat16)
        h = c
    wf, bf = params[-1]
    logit = jnp.sum(x.astype(jnp.float32) * wf.reshape(1, 1, 1, h), axis=-1) + bf
    B, H, W = logit.shape
    xs = jnp.linspace(-1.0, 1.0, W)
    ys = jnp.linspace(-1.0, 1.0, H)
    wts = jax.nn.softmax(logit.reshape(B, -1), axis=-1).reshape(B, H, W)
    xp = jnp.sum(wts.sum(axis=1) * xs, axis=1)
    yp = jnp.sum(wts.sum(axis=2) * ys, axis=1)
    return jnp.stack([xp, yp], axis=1)


# --------------------------------- main -------------------------------------

if __name__ == "__main__":
    key = jax.random.PRNGKey(0)
    kp, kx = jax.random.split(key)
    params = init_params(kp)
    img = jax.random.normal(kx, (2, 3, 96, 128), jnp.float32)

    fwd = jax.jit(lambda im: planner_forward(im, params))
    out = jax.block_until_ready(fwd(img))

    ref = reference_forward(img, params)
    assert out.shape == (2, 2), out.shape
    assert bool(jnp.all(jnp.isfinite(out)))
    # Tolerance reflects deliberate bf16 inputs (f32 accumulation) per perf review.
    assert bool(jnp.allclose(out, ref, atol=5e-3, rtol=5e-3)), (out, ref)
    print("KERNEL_OK")
</pallas_src>

<mosaic_0001>
module attributes {stable_mosaic.version = 11 : i64} {
  func.func @_conv_matmul_kernel(%arg0: i32, %arg1: memref<2048x75xbf16, #tpu.memory_space<vmem>>, %arg2: memref<75x16xbf16, #tpu.memory_space<vmem>>, %arg3: memref<1x16xf32, #tpu.memory_space<vmem>>, %arg4: memref<2048x16xbf16, #tpu.memory_space<vmem>>) attributes {dimension_semantics = [#tpu.dimension_semantics<parallel>], iteration_bounds = array<i64: 3>, scalar_prefetch = 0 : i64, scratch_operands = 0 : i64, tpu.core_type = #tpu.core_type<tc>, window_params = [{transform_indices = @transform_0, window_bounds = array<i64: 2048, 75>}, {pipeline_mode = #tpu.pipeline_mode<synchronous>, transform_indices = @transform_1, window_bounds = array<i64: 75, 16>}, {pipeline_mode = #tpu.pipeline_mode<synchronous>, transform_indices = @transform_2, window_bounds = array<i64: 1, 16>}, {transform_indices = @transform_3, window_bounds = array<i64: 2048, 16>}]} {
    %c0 = arith.constant 0 : index
    %c0_0 = arith.constant 0 : index
    %0 = vector.load %arg1[%c0, %c0_0] : memref<2048x75xbf16, #tpu.memory_space<vmem>>, vector<2048x75xbf16>
    %c0_1 = arith.constant 0 : index
    %c0_2 = arith.constant 0 : index
    %1 = vector.load %arg2[%c0_1, %c0_2] : memref<75x16xbf16, #tpu.memory_space<vmem>>, vector<75x16xbf16>
    %cst = arith.constant dense<0.000000e+00> : vector<2048x16xf32>
    %2 = tpu.matmul %0, %1, %cst {dimension_numbers = #tpu.dot_dimension_numbers<[1], [0], [0], [1], [0, 0, 1, 1], [], []>} : vector<2048x75xbf16>, vector<75x16xbf16>, vector<2048x16xf32> -> vector<2048x16xf32>
    %c0_3 = arith.constant 0 : index
    %c0_4 = arith.constant 0 : index
    %3 = vector.load %arg3[%c0_3, %c0_4] : memref<1x16xf32, #tpu.memory_space<vmem>>, vector<1x16xf32>
    %4 = vector.broadcast %3 : vector<1x16xf32> to vector<2048x16xf32>
    %5 = arith.addf %2, %4 : vector<2048x16xf32>
    %cst_5 = arith.constant 0.000000e+00 : f32
    %6 = vector.broadcast %cst_5 : f32 to vector<2048x16xf32>
    %7 = arith.maximumf %5, %6 : vector<2048x16xf32>
    %8 = arith.truncf %7 : vector<2048x16xf32> to vector<2048x16xbf16>
    %c0_6 = arith.constant 0 : index
    %c0_7 = arith.constant 0 : index
    %9 = vector.load %arg4[%c0_6, %c0_7] : memref<2048x16xbf16, #tpu.memory_space<vmem>>, vector<2048x16xbf16>
    tpu.vector_store %arg4[%c0_6, %c0_7], %8 {strides = array<i32>} : memref<2048x16xbf16, #tpu.memory_space<vmem>>, vector<2048x16xbf16>,
    return
  }
  func.func @transform_0(%arg0: i32) -> (i32, i32) {
    %c0_i32 = arith.constant 0 : i32
    %c0_i32_0 = arith.constant 0 : i32
    return %arg0, %c0_i32 : i32, i32
  }
  func.func @transform_1(%arg0: i32) -> (i32, i32) {
    %c0_i32 = arith.constant 0 : i32
    %c0_i32_0 = arith.constant 0 : i32
    %c0_i32_1 = arith.constant 0 : i32
    return %c0_i32, %c0_i32_0 : i32, i32
  }
  func.func @transform_2(%arg0: i32) -> (i32, i32) {
    %c0_i32 = arith.constant 0 : i32
    %c0_i32_0 = arith.constant 0 : i32
    %c0_i32_1 = arith.constant 0 : i32
    return %c0_i32, %c0_i32_0 : i32, i32
  }
  func.func @transform_3(%arg0: i32) -> (i32, i32) {
    %c0_i32 = arith.constant 0 : i32
    %c0_i32_0 = arith.constant 0 : i32
    return %arg0, %c0_i32 : i32, i32
  }
}

module attributes {stable_mosaic.version = 11 : i64} {
  func.func @_conv_matmul_kernel(%arg0: i32, %arg1: memref<768x400xbf16, #tpu.memory_space<vmem>>, %arg2: memref<400x32xbf16, #tpu.memory_space<vmem>>, %arg3: memref<1x32xf32, #tpu.memory_space<vmem>>, %arg4: memref<768x32xbf16, #tpu.memory_space<vmem>>) attributes {dimension_semantics = [#tpu.dimension_semantics<parallel>], iteration_bounds = array<i64: 2>, scalar_prefetch = 0 : i64, scratch_operands = 0 : i64, tpu.core_type = #tpu.core_type<tc>, window_params = [{transform_indices = @transform_0, window_bounds = array<i64: 768, 400>}, {pipeline_mode = #tpu.pipeline_mode<synchronous>, transform_indices = @transform_1, window_bounds = array<i64: 400, 32>}, {pipeline_mode = #tpu.pipeline_mode<synchronous>, transform_indices = @transform_2, window_bounds = array<i64: 1, 32>}, {transform_indices = @transform_3, window_bounds = array<i64: 768, 32>}]} {
    %c0 = arith.constant 0 : index
    %c0_0 = arith.constant 0 : index
    %0 = vector.load %arg1[%c0, %c0_0] : memref<768x400xbf16, #tpu.memory_space<vmem>>, vector<768x400xbf16>
    %c0_1 = arith.constant 0 : index
    %c0_2 = arith.constant 0 : index
    %1 = vector.load %arg2[%c0_1, %c0_2] : memref<400x32xbf16, #tpu.memory_space<vmem>>, vector<400x32xbf16>
    %cst = arith.constant dense<0.000000e+00> : vector<768x32xf32>
    %2 = tpu.matmul %0, %1, %cst {dimension_numbers = #tpu.dot_dimension_numbers<[1], [0], [0], [1], [0, 0, 1, 1], [], []>} : vector<768x400xbf16>, vector<400x32xbf16>, vector<768x32xf32> -> vector<768x32xf32>
    %c0_3 = arith.constant 0 : index
    %c0_4 = arith.constant 0 : index
    %3 = vector.load %arg3[%c0_3, %c0_4] : memref<1x32xf32, #tpu.memory_space<vmem>>, vector<1x32xf32>
    %4 = vector.broadcast %3 : vector<1x32xf32> to vector<768x32xf32>
    %5 = arith.addf %2, %4 : vector<768x32xf32>
    %cst_5 = arith.constant 0.000000e+00 : f32
    %6 = vector.broadcast %cst_5 : f32 to vector<768x32xf32>
    %7 = arith.maximumf %5, %6 : vector<768x32xf32>
    %8 = arith.truncf %7 : vector<768x32xf32> to vector<768x32xbf16>
    %c0_6 = arith.constant 0 : index
    %c0_7 = arith.constant 0 : index
    %9 = vector.load %arg4[%c0_6, %c0_7] : memref<768x32xbf16, #tpu.memory_space<vmem>>, vector<768x32xbf16>
    tpu.vector_store %arg4[%c0_6, %c0_7], %8 {strides = array<i32>} : memref<768x32xbf16, #tpu.memory_space<vmem>>, vector<768x32xbf16>,
    return
  }
  func.func @transform_0(%arg0: i32) -> (i32, i32) {
    %c0_i32 = arith.constant 0 : i32
    %c0_i32_0 = arith.constant 0 : i32
    return %arg0, %c0_i32 : i32, i32
  }
  func.func @transform_1(%arg0: i32) -> (i32, i32) {
    %c0_i32 = arith.constant 0 : i32
    %c0_i32_0 = arith.constant 0 : i32
    %c0_i32_1 = arith.constant 0 : i32
    return %c0_i32, %c0_i32_0 : i32, i32
  }
  func.func @transform_2(%arg0: i32) -> (i32, i32) {
    %c0_i32 = arith.constant 0 : i32
    %c0_i32_0 = arith.constant 0 : i32
    %c0_i32_1 = arith.constant 0 : i32
    return %c0_i32, %c0_i32_0 : i32, i32
  }
  func.func @transform_3(%arg0: i32) -> (i32, i32) {
    %c0_i32 = arith.constant 0 : i32
    %c0_i32_0 = arith.constant 0 : i32
    return %arg0, %c0_i32 : i32, i32
  }
}

module attributes {stable_mosaic.version = 11 : i64} {
  func.func @_conv_matmul_kernel(%arg0: i32, %arg1: memref<192x800xbf16, #tpu.memory_space<vmem>>, %arg2: memref<800x64xbf16, #tpu.memory_space<vmem>>, %arg3: memref<1x64xf32, #tpu.memory_space<vmem>>, %arg4: memref<192x64xbf16, #tpu.memory_space<vmem>>) attributes {dimension_semantics = [#tpu.dimension_semantics<parallel>], iteration_bounds = array<i64: 2>, scalar_prefetch = 0 : i64, scratch_operands = 0 : i64, tpu.core_type = #tpu.core_type<tc>, window_params = [{transform_indices = @transform_0, window_bounds = array<i64: 192, 800>}, {pipeline_mode = #tpu.pipeline_mode<synchronous>, transform_indices = @transform_1, window_bounds = array<i64: 800, 64>}, {pipeline_mode = #tpu.pipeline_mode<synchronous>, transform_indices = @transform_2, window_bounds = array<i64: 1, 64>}, {transform_indices = @transform_3, window_bounds = array<i64: 192, 64>}]} {
    %c0 = arith.constant 0 : index
    %c0_0 = arith.constant 0 : index
    %0 = vector.load %arg1[%c0, %c0_0] : memref<192x800xbf16, #tpu.memory_space<vmem>>, vector<192x800xbf16>
    %c0_1 = arith.constant 0 : index
    %c0_2 = arith.constant 0 : index
    %1 = vector.load %arg2[%c0_1, %c0_2] : memref<800x64xbf16, #tpu.memory_space<vmem>>, vector<800x64xbf16>
    %cst = arith.constant dense<0.000000e+00> : vector<192x64xf32>
    %2 = tpu.matmul %0, %1, %cst {dimension_numbers = #tpu.dot_dimension_numbers<[1], [0], [0], [1], [0, 0, 1, 1], [], []>} : vector<192x800xbf16>, vector<800x64xbf16>, vector<192x64xf32> -> vector<192x64xf32>
    %c0_3 = arith.constant 0 : index
    %c0_4 = arith.constant 0 : index
    %3 = vector.load %arg3[%c0_3, %c0_4] : memref<1x64xf32, #tpu.memory_space<vmem>>, vector<1x64xf32>
    %4 = vector.broadcast %3 : vector<1x64xf32> to vector<192x64xf32>
    %5 = arith.addf %2, %4 : vector<192x64xf32>
    %cst_5 = arith.constant 0.000000e+00 : f32
    %6 = vector.broadcast %cst_5 : f32 to vector<192x64xf32>
    %7 = arith.maximumf %5, %6 : vector<192x64xf32>
    %8 = arith.truncf %7 : vector<192x64xf32> to vector<192x64xbf16>
    %c0_6 = arith.constant 0 : index
    %c0_7 = arith.constant 0 : index
    %9 = vector.load %arg4[%c0_6, %c0_7] : memref<192x64xbf16, #tpu.memory_space<vmem>>, vector<192x64xbf16>
    tpu.vector_store %arg4[%c0_6, %c0_7], %8 {strides = array<i32>} : memref<192x64xbf16, #tpu.memory_space<vmem>>, vector<192x64xbf16>,
    return
  }
  func.func @transform_0(%arg0: i32) -> (i32, i32) {
    %c0_i32 = arith.constant 0 : i32
    %c0_i32_0 = arith.constant 0 : i32
    return %arg0, %c0_i32 : i32, i32
  }
  func.func @transform_1(%arg0: i32) -> (i32, i32) {
    %c0_i32 = arith.constant 0 : i32
    %c0_i32_0 = arith.constant 0 : i32
    %c0_i32_1 = arith.constant 0 : i32
    return %c0_i32, %c0_i32_0 : i32, i32
  }
  func.func @transform_2(%arg0: i32) -> (i32, i32) {
    %c0_i32 = arith.constant 0 : i32
    %c0_i32_0 = arith.constant 0 : i32
    %c0_i32_1 = arith.constant 0 : i32
    return %c0_i32, %c0_i32_0 : i32, i32
  }
  func.func @transform_3(%arg0: i32) -> (i32, i32) {
    %c0_i32 = arith.constant 0 : i32
    %c0_i32_0 = arith.constant 0 : i32
    return %arg0, %c0_i32 : i32, i32
  }
}

module attributes {stable_mosaic.version = 11 : i64} {
  func.func @_conv_matmul_kernel(%arg0: i32, %arg1: memref<48x1600xbf16, #tpu.memory_space<vmem>>, %arg2: memref<1600x128xbf16, #tpu.memory_space<vmem>>, %arg3: memref<1x128xf32, #tpu.memory_space<vmem>>, %arg4: memref<48x128xbf16, #tpu.memory_space<vmem>>) attributes {dimension_semantics = [#tpu.dimension_semantics<parallel>], iteration_bounds = array<i64: 2>, scalar_prefetch = 0 : i64, scratch_operands = 0 : i64, tpu.core_type = #tpu.core_type<tc>, window_params = [{transform_indices = @transform_0, window_bounds = array<i64: 48, 1600>}, {pipeline_mode = #tpu.pipeline_mode<synchronous>, transform_indices = @transform_1, window_bounds = array<i64: 1600, 128>}, {pipeline_mode = #tpu.pipeline_mode<synchronous>, transform_indices = @transform_2, window_bounds = array<i64: 1, 128>}, {transform_indices = @transform_3, window_bounds = array<i64: 48, 128>}]} {
    %c0 = arith.constant 0 : index
    %c0_0 = arith.constant 0 : index
    %0 = vector.load %arg1[%c0, %c0_0] : memref<48x1600xbf16, #tpu.memory_space<vmem>>, vector<48x1600xbf16>
    %c0_1 = arith.constant 0 : index
    %c0_2 = arith.constant 0 : index
    %1 = vector.load %arg2[%c0_1, %c0_2] : memref<1600x128xbf16, #tpu.memory_space<vmem>>, vector<1600x128xbf16>
    %cst = arith.constant dense<0.000000e+00> : vector<48x128xf32>
    %2 = tpu.matmul %0, %1, %cst {dimension_numbers = #tpu.dot_dimension_numbers<[1], [0], [0], [1], [0, 0, 1, 1], [], []>} : vector<48x1600xbf16>, vector<1600x128xbf16>, vector<48x128xf32> -> vector<48x128xf32>
    %c0_3 = arith.constant 0 : index
    %c0_4 = arith.constant 0 : index
    %3 = vector.load %arg3[%c0_3, %c0_4] : memref<1x128xf32, #tpu.memory_space<vmem>>, vector<1x128xf32>
    %4 = vector.broadcast %3 : vector<1x128xf32> to vector<48x128xf32>
    %5 = arith.addf %2, %4 : vector<48x128xf32>
    %cst_5 = arith.constant 0.000000e+00 : f32
    %6 = vector.broadcast %cst_5 : f32 to vector<48x128xf32>
    %7 = arith.maximumf %5, %6 : vector<48x128xf32>
    %8 = arith.truncf %7 : vector<48x128xf32> to vector<48x128xbf16>
    %c0_6 = arith.constant 0 : index
    %c0_7 = arith.constant 0 : index
    %9 = vector.load %arg4[%c0_6, %c0_7] : memref<48x128xbf16, #tpu.memory_space<vmem>>, vector<48x128xbf16>
    tpu.vector_store %arg4[%c0_6, %c0_7], %8 {strides = array<i32>} : memref<48x128xbf16, #tpu.memory_space<vmem>>, vector<48x128xbf16>,
    return
  }
  func.func @transform_0(%arg0: i32) -> (i32, i32) {
    %c0_i32 = arith.constant 0 : i32
    %c0_i32_0 = arith.constant 0 : i32
    return %arg0, %c0_i32 : i32, i32
  }
  func.func @transform_1(%arg0: i32) -> (i32, i32) {
    %c0_i32 = arith.constant 0 : i32
    %c0_i32_0 = arith.constant 0 : i32
    %c0_i32_1 = arith.constant 0 : i32
    return %c0_i32, %c0_i32_0 : i32, i32
  }
  func.func @transform_2(%arg0: i32) -> (i32, i32) {
    %c0_i32 = arith.constant 0 : i32
    %c0_i32_0 = arith.constant 0 : i32
    %c0_i32_1 = arith.constant 0 : i32
    return %c0_i32, %c0_i32_0 : i32, i32
  }
  func.func @transform_3(%arg0: i32) -> (i32, i32) {
    %c0_i32 = arith.constant 0 : i32
    %c0_i32_0 = arith.constant 0 : i32
    return %arg0, %c0_i32 : i32, i32
  }
}

module attributes {stable_mosaic.version = 11 : i64} {
  func.func @_head_kernel(%arg0: i32, %arg1: memref<2x6x8x128xbf16, #tpu.memory_space<vmem>>, %arg2: memref<1x128xf32, #tpu.memory_space<vmem>>, %arg3: memref<1x1xf32, #tpu.memory_space<vmem>>, %arg4: memref<2x2xf32, #tpu.memory_space<vmem>>) attributes {dimension_semantics = [#tpu.dimension_semantics<arbitrary>], iteration_bounds = array<i64: 1>, scalar_prefetch = 0 : i64, scratch_operands = 0 : i64, tpu.core_type = #tpu.core_type<tc>, window_params = [{pipeline_mode = #tpu.pipeline_mode<synchronous>, transform_indices = @transform_0, window_bounds = array<i64: 2, 6, 8, 128>}, {pipeline_mode = #tpu.pipeline_mode<synchronous>, transform_indices = @transform_1, window_bounds = array<i64: 1, 128>}, {pipeline_mode = #tpu.pipeline_mode<synchronous>, transform_indices = @transform_2, window_bounds = array<i64: 1, 1>}, {pipeline_mode = #tpu.pipeline_mode<synchronous>, transform_indices = @transform_3, window_bounds = array<i64: 2, 2>}]} {
    %c0 = arith.constant 0 : index
    %c0_0 = arith.constant 0 : index
    %0 = vector.load %arg2[%c0, %c0_0] : memref<1x128xf32, #tpu.memory_space<vmem>>, vector<1x128xf32>
    %1 = tpu.iota {dimensions = array<i32: 1>} : vector<1x2xi32>
    %2 = tpu.iota {dimensions = array<i32: 1>} : vector<6x8xi32>
    %3 = arith.sitofp %2 : vector<6x8xi32> to vector<6x8xf32>
    %cst = arith.constant 0.285714298 : f32
    %4 = vector.broadcast %cst : f32 to vector<6x8xf32>
    %5 = arith.mulf %3, %4 : vector<6x8xf32>
    %cst_1 = arith.constant 1.000000e+00 : f32
    %6 = vector.broadcast %cst_1 : f32 to vector<6x8xf32>
    %7 = arith.subf %5, %6 : vector<6x8xf32>
    %8 = tpu.iota {dimensions = array<i32: 0>} : vector<6x8xi32>
    %9 = arith.sitofp %8 : vector<6x8xi32> to vector<6x8xf32>
    %cst_2 = arith.constant 4.000000e-01 : f32
    %10 = vector.broadcast %cst_2 : f32 to vector<6x8xf32>
    %11 = arith.mulf %9, %10 : vector<6x8xf32>
    %cst_3 = arith.constant 1.000000e+00 : f32
    %12 = vector.broadcast %cst_3 : f32 to vector<6x8xf32>
    %13 = arith.subf %11, %12 : vector<6x8xf32>
    %c0_4 = arith.constant 0 : index
    %c0_5 = arith.constant 0 : index
    %c0_6 = arith.constant 0 : index
    %c0_7 = arith.constant 0 : index
    %14 = vector.load %arg1[%c0_4, %c0_5, %c0_6, %c0_7] : memref<2x6x8x128xbf16, #tpu.memory_space<vmem>>, vector<1x6x8x128xbf16>
    %15 = vector.shape_cast %14 : vector<1x6x8x128xbf16> to vector<6x8x128xbf16>
    %16 = arith.extf %15 : vector<6x8x128xbf16> to vector<6x8x128xf32>
    %17 = vector.shape_cast %0 : vector<1x128xf32> to vector<1x1x128xf32>
    %18 = vector.broadcast %17 : vector<1x1x128xf32> to vector<6x8x128xf32>
    %19 = arith.mulf %16, %18 : vector<6x8x128xf32>
    %cst_8 = arith.constant dense<0.000000e+00> : vector<6x8xf32>
    %20 = vector.multi_reduction <add>, %19, %cst_8 [2] : vector<6x8x128xf32> to vector<6x8xf32>
    %c0_9 = arith.constant 0 : index
    %c0_10 = arith.constant 0 : index
    %21 = vector.load %arg3[%c0_9, %c0_10] : memref<1x1xf32, #tpu.memory_space<vmem>>, vector<1x1xf32>
    %22 = vector.broadcast %21 : vector<1x1xf32> to vector<6x8xf32>
    %23 = arith.addf %20, %22 : vector<6x8xf32>
    %cst_11 = arith.constant dense<0xFF800000> : vector<6xf32>
    %24 = vector.multi_reduction <maximumf>, %23, %cst_11 [1] : vector<6x8xf32> to vector<6xf32>
    %25 = vector.shape_cast %24 : vector<6xf32> to vector<6x1xf32>
    %cst_12 = arith.constant dense<0xFF800000> : vector<1xf32>
    %26 = vector.multi_reduction <maximumf>, %25, %cst_12 [0] : vector<6x1xf32> to vector<1xf32>
    %27 = vector.shape_cast %26 : vector<1xf32> to vector<1x1xf32>
    %28 = vector.broadcast %27 : vector<1x1xf32> to vector<6x8xf32>
    %29 = arith.subf %23, %28 : vector<6x8xf32>
    %30 = math.exp %29 : vector<6x8xf32>
    %cst_13 = arith.constant dense<0.000000e+00> : vector<6xf32>
    %31 = vector.multi_reduction <add>, %30, %cst_13 [1] : vector<6x8xf32> to vector<6xf32>
    %32 = vector.shape_cast %31 : vector<6xf32> to vector<6x1xf32>
    %cst_14 = arith.constant dense<0.000000e+00> : vector<1xf32>
    %33 = vector.multi_reduction <add>, %32, %cst_14 [0] : vector<6x1xf32> to vector<1xf32>
    %34 = vector.shape_cast %33 : vector<1xf32> to vector<1x1xf32>
    %35 = tpu.reciprocal %34 {approx = true} : vector<1x1xf32> -> vector<1x1xf32>
    %36 = vector.broadcast %35 : vector<1x1xf32> to vector<6x8xf32>
    %37 = arith.mulf %30, %36 : vector<6x8xf32>
    %38 = arith.mulf %37, %7 : vector<6x8xf32>
    %cst_15 = arith.constant dense<0.000000e+00> : vector<6xf32>
    %39 = vector.multi_reduction <add>, %38, %cst_15 [1] : vector<6x8xf32> to vector<6xf32>
    %40 = vector.shape_cast %39 : vector<6xf32> to vector<6x1xf32>
    %cst_16 = arith.constant dense<0.000000e+00> : vector<1xf32>
    %41 = vector.multi_reduction <add>, %40, %cst_16 [0] : vector<6x1xf32> to vector<1xf32>
    %42 = vector.shape_cast %41 : vector<1xf32> to vector<1x1xf32>
    %43 = arith.mulf %37, %13 : vector<6x8xf32>
    %cst_17 = arith.constant dense<0.000000e+00> : vector<6xf32>
    %44 = vector.multi_reduction <add>, %43, %cst_17 [1] : vector<6x8xf32> to vector<6xf32>
    %45 = vector.shape_cast %44 : vector<6xf32> to vector<6x1xf32>
    %cst_18 = arith.constant dense<0.000000e+00> : vector<1xf32>
    %46 = vector.multi_reduction <add>, %45, %cst_18 [0] : vector<6x1xf32> to vector<1xf32>
    %47 = vector.shape_cast %46 : vector<1xf32> to vector<1x1xf32>
    %c0_i32 = arith.constant 0 : i32
    %48 = vector.broadcast %c0_i32 : i32 to vector<1x2xi32>
    %49 = arith.cmpi eq, %1, %48 : vector<1x2xi32>
    %50 = vector.shape_cast %42 : vector<1x1xf32> to vector<1x1xf32>
    %51 = vector.broadcast %50 : vector<1x1xf32> to vector<1x2xf32>
    %52 = vector.shape_cast %47 : vector<1x1xf32> to vector<1x1xf32>
    %53 = vector.broadcast %52 : vector<1x1xf32> to vector<1x2xf32>
    %54 = arith.select %49, %51, %53 : vector<1x2xi1>, vector<1x2xf32>
    %c0_19 = arith.constant 0 : index
    %c0_20 = arith.constant 0 : index
    %55 = vector.load %arg4[%c0_19, %c0_20] : memref<2x2xf32, #tpu.memory_space<vmem>>, vector<1x2xf32>
    tpu.vector_store %arg4[%c0_19, %c0_20], %54 {strides = array<i32>} : memref<2x2xf32, #tpu.memory_space<vmem>>, vector<1x2xf32>,
    %c1 = arith.constant 1 : index
    %c0_21 = arith.constant 0 : index
    %c0_22 = arith.constant 0 : index
    %c0_23 = arith.constant 0 : index
    %56 = vector.load %arg1[%c1, %c0_21, %c0_22, %c0_23] : memref<2x6x8x128xbf16, #tpu.memory_space<vmem>>, vector<1x6x8x128xbf16>
    %57 = vector.shape_cast %56 : vector<1x6x8x128xbf16> to vector<6x8x128xbf16>
    %58 = arith.extf %57 : vector<6x8x128xbf16> to vector<6x8x128xf32>
    %59 = vector.shape_cast %0 : vector<1x128xf32> to vector<1x1x128xf32>
    %60 = vector.broadcast %59 : vector<1x1x128xf32> to vector<6x8x128xf32>
    %61 = arith.mulf %58, %60 : vector<6x8x128xf32>
    %cst_24 = arith.constant dense<0.000000e+00> : vector<6x8xf32>
    %62 = vector.multi_reduction <add>, %61, %cst_24 [2] : vector<6x8x128xf32> to vector<6x8xf32>
    %c0_25 = arith.constant 0 : index
    %c0_26 = arith.constant 0 : index
    %63 = vector.load %arg3[%c0_25, %c0_26] : memref<1x1xf32, #tpu.memory_space<vmem>>, vector<1x1xf32>
    %64 = vector.broadcast %63 : vector<1x1xf32> to vector<6x8xf32>
    %65 = arith.addf %62, %64 : vector<6x8xf32>
    %cst_27 = arith.constant dense<0xFF800000> : vector<6xf32>
    %66 = vector.multi_reduction <maximumf>, %65, %cst_27 [1] : vector<6x8xf32> to vector<6xf32>
    %67 = vector.shape_cast %66 : vector<6xf32> to vector<6x1xf32>
    %cst_28 = arith.constant dense<0xFF800000> : vector<1xf32>
    %68 = vector.multi_reduction <maximumf>, %67, %cst_28 [0] : vector<6x1xf32> to vector<1xf32>
    %69 = vector.shape_cast %68 : vector<1xf32> to vector<1x1xf32>
    %70 = vector.broadcast %69 : vector<1x1xf32> to vector<6x8xf32>
    %71 = arith.subf %65, %70 : vector<6x8xf32>
    %72 = math.exp %71 : vector<6x8xf32>
    %cst_29 = arith.constant dense<0.000000e+00> : vector<6xf32>
    %73 = vector.multi_reduction <add>, %72, %cst_29 [1] : vector<6x8xf32> to vector<6xf32>
    %74 = vector.shape_cast %73 : vector<6xf32> to vector<6x1xf32>
    %cst_30 = arith.constant dense<0.000000e+00> : vector<1xf32>
    %75 = vector.multi_reduction <add>, %74, %cst_30 [0] : vector<6x1xf32> to vector<1xf32>
    %76 = vector.shape_cast %75 : vector<1xf32> to vector<1x1xf32>
    %77 = tpu.reciprocal %76 {approx = true} : vector<1x1xf32> -> vector<1x1xf32>
    %78 = vector.broadcast %77 : vector<1x1xf32> to vector<6x8xf32>
    %79 = arith.mulf %72, %78 : vector<6x8xf32>
    %80 = arith.mulf %79, %7 : vector<6x8xf32>
    %cst_31 = arith.constant dense<0.000000e+00> : vector<6xf32>
    %81 = vector.multi_reduction <add>, %80, %cst_31 [1] : vector<6x8xf32> to vector<6xf32>
    %82 = vector.shape_cast %81 : vector<6xf32> to vector<6x1xf32>
    %cst_32 = arith.constant dense<0.000000e+00> : vector<1xf32>
    %83 = vector.multi_reduction <add>, %82, %cst_32 [0] : vector<6x1xf32> to vector<1xf32>
    %84 = vector.shape_cast %83 : vector<1xf32> to vector<1x1xf32>
    %85 = arith.mulf %79, %13 : vector<6x8xf32>
    %cst_33 = arith.constant dense<0.000000e+00> : vector<6xf32>
    %86 = vector.multi_reduction <add>, %85, %cst_33 [1] : vector<6x8xf32> to vector<6xf32>
    %87 = vector.shape_cast %86 : vector<6xf32> to vector<6x1xf32>
    %cst_34 = arith.constant dense<0.000000e+00> : vector<1xf32>
    %88 = vector.multi_reduction <add>, %87, %cst_34 [0] : vector<6x1xf32> to vector<1xf32>
    %89 = vector.shape_cast %88 : vector<1xf32> to vector<1x1xf32>
    %c0_i32_35 = arith.constant 0 : i32
    %90 = vector.broadcast %c0_i32_35 : i32 to vector<1x2xi32>
    %91 = arith.cmpi eq, %1, %90 : vector<1x2xi32>
    %92 = vector.shape_cast %84 : vector<1x1xf32> to vector<1x1xf32>
    %93 = vector.broadcast %92 : vector<1x1xf32> to vector<1x2xf32>
    %94 = vector.shape_cast %89 : vector<1x1xf32> to vector<1x1xf32>
    %95 = vector.broadcast %94 : vector<1x1xf32> to vector<1x2xf32>
    %96 = arith.select %91, %93, %95 : vector<1x2xi1>, vector<1x2xf32>
    %c1_36 = arith.constant 1 : index
    %c0_37 = arith.constant 0 : index
    %97 = vector.load %arg4[%c1_36, %c0_37] : memref<2x2xf32, #tpu.memory_space<vmem>>, vector<1x2xf32>
    tpu.vector_store %arg4[%c1_36, %c0_37], %96 {strides = array<i32>} : memref<2x2xf32, #tpu.memory_space<vmem>>, vector<1x2xf32>,
    return
  }
  func.func @transform_0(%arg0: i32) -> (i32, i32, i32, i32) {
    %c0_i32 = arith.constant 0 : i32
    %c0_i32_0 = arith.constant 0 : i32
    %c0_i32_1 = arith.constant 0 : i32
    %c0_i32_2 = arith.constant 0 : i32
    %c0_i32_3 = arith.constant 0 : i32
    return %c0_i32, %c0_i32_0, %c0_i32_1, %c0_i32_2 : i32, i32, i32, i32
  }
  func.func @transform_1(%arg0: i32) -> (i32, i32) {
    %c0_i32 = arith.constant 0 : i32
    %c0_i32_0 = arith.constant 0 : i32
    %c0_i32_1 = arith.constant 0 : i32
    return %c0_i32, %c0_i32_0 : i32, i32
  }
  func.func @transform_2(%arg0: i32) -> (i32, i32) {
    %c0_i32 = arith.constant 0 : i32
    %c0_i32_0 = arith.constant 0 : i32
    %c0_i32_1 = arith.constant 0 : i32
    return %c0_i32, %c0_i32_0 : i32, i32
  }
  func.func @transform_3(%arg0: i32) -> (i32, i32) {
    %c0_i32 = arith.constant 0 : i32
    %c0_i32_0 = arith.constant 0 : i32
    %c0_i32_1 = arith.constant 0 : i32
    return %c0_i32, %c0_i32_0 : i32, i32
  }
}

</mosaic_0001>

<bundles_post_ra>
// kernel: _lambda_.5
= control target key start
LH: loop header
LB: loop body
LE: loop exit
PB: predicated region body
PF: predicated region fallthrough
CT: control target
= control target key end

     0   :  { %s5526_s12 = smov 0   ;;  %s6608_s0 = inlined_call_operand.vmem [shape: bf16[6144,75], index: 0, kind: input, shape index: {}]   ;;  %s6609_s1 = inlined_call_operand.vmem [shape: bf16[75,16], index: 1, kind: input, shape index: {}]   ;;  %s6610_s2 = inlined_call_operand.vmem [shape: f32[1,16], index: 2, kind: input, shape index: {}]   ;;  %s6611_s3 = inlined_call_operand.vmem [shape: bf16[6144,16], index: 3, kind: output, shape index: {}]  }
   0x1 LB: > { %s4159_s13 = sadd.s32 4294967295, %s5503_s12   ;;  %p4163_p0 = scmp.ge.s32.totalorder %s5503_s12, 1  ;;  %s5503_s12 = sphi %s5526_s12, %s13_s12  }
   0x2   : > { %p138_p1 = scmp.lt.s32.totalorder %s5503_s12, 4 }
   0x4   : > { %p139_p2 = pnand %p4163_p0, %p138_p1 }
   0x5   : > { %v5362_v0 = vld [vmem:[%s6609_s1] sm:$0xff] (!%p139_p2)   ;;  %v5363_v1 = vld [vmem:[%s6609_s1 + $0x8] sm:$0xff] (!%p139_p2)   ;;  %vm1502_vm0 = vcmask (!%p139_p2), 1044480   ;;  %v5364_v2 = vld [vmem:[%s6609_s1 + $0x10] sm:$0xff] (!%p139_p2)   ;;  %s4164_s20 = sshll.u32 (!%p139_p2), %s4159_s13, 8  ;;  %vm1503_vm1 = vcmask (!%p139_p2), 1045504  }
   0x6   : > { %142 = sbr.rel (%p139_p2) target bundleno = 496 (0x1f0), region = 32  ;;  %5077 = vmatprep.subr.bf16.mxu0 (!%p139_p2), %v5362_v0  ;;  %5343 = vmatprep.subr.bf16.mxu1 (!%p139_p2), %v5362_v0  ;;  %v5505_v3 = vmov (!%p139_p2), 65535   ;;  %p163_p3 = scmp.lt.s32.totalorder (!%p139_p2), %s4164_s20, 767  ;;  %v5365_v5 = vld [vmem:[%s6609_s1 + $0x18] sm:$0xff] (!%p139_p2)   ;;  %v5366_v6 = vld [vmem:[%s6609_s1 + $0x20] sm:$0x3f] (!%p139_p2)  }
   0x7   : > { %5078 = vmatpush3.bf16.msra.mxu0 (!%p139_p2), %v5362_v0  ;;  %5348 = vmatpush3.bf16.msra.mxu1 (!%p139_p2), %v5362_v0  ;;  %v1504_v4 = vsel (!%p139_p2), %vm1502_vm0, 4294967295, %v5505_v3  ;;  %vm1117_vm2 = vcmask (!%p139_p2), 613376   ;;  %vm3846_vm3 = vcmask (!%p139_p2), 125952  }
   0x8   : > { %5079 = vmatprep.subr.bf16.mxu0 (!%p139_p2), %v5363_v1  ;;  %5344 = vmatprep.subr.bf16.mxu1 (!%p139_p2), %v5363_v1  ;;  %v1505_v7 = vsel (!%p139_p2), %vm1503_vm1, %v1504_v4, 0 }
   0x9   : > { %v1507_v8 = vand.u32 (!%p139_p2), %v5366_v6, %v1505_v7 }
   0xb   : > { %5080 = vmatpush3.bf16.msra.mxu0 (!%p139_p2), %v5363_v1  ;;  %5349 = vmatpush3.bf16.msra.mxu1 (!%p139_p2), %v5363_v1 }
   0xc   : > { %5081 = vmatprep.subr.bf16.mxu0 (!%p139_p2), %v5364_v2  ;;  %5345 = vmatprep.subr.bf16.mxu1 (!%p139_p2), %v5364_v2 }
   0xd   : > { %s6613_s20 = smov (!%p163_p3, %s4164_s20), 767 }
   0xe   : > { %s4165_s25 = sshll.u32 %s6613_s20, 2 }
   0xf   : > { %5082 = vmatpush3.bf16.msra.mxu0 %v5364_v2  ;;  %5350 = vmatpush3.bf16.msra.mxu1 %v5364_v2  ;;  %s5557_s28 = scalar_lea.vmem %s6608_s0, %s4165_s25  ;;  %s5799_s6 = scalar_lea.vmem %s6611_s3, %s4165_s25 }
  0x10   : > { %5083 = vmatprep.subr.bf16.mxu0 %v5365_v5  ;;  %5346 = vmatprep.subr.bf16.mxu1 %v5365_v5  ;;  %v5367_v9 = vld [vmem:[%s5557_s28] sm:$0xff]   ;;  %v5369_v11 = vld [vmem:[%s5557_s28 + $0x8] sm:$0xff]   ;;  %v5371_v13 = vld [vmem:[%s5557_s28 + $0x10] sm:$0xff]  }
  0x11   : > { %v5368_v10 = vld [vmem:[%s5557_s28 + $0x200] sm:$0xff]   ;;  %5087 = vmatprep.mubr.msk.bf16.mxu0 %vm1117_vm2, %v5367_v9  ;;  %v5370_v12 = vld [vmem:[%s5557_s28 + $0x208] sm:$0xff]   ;;  %v5372_v14 = vld [vmem:[%s5557_s28 + $0x210] sm:$0xff]  }
  0x12   : > { %5215 = vmatprep.mubr.msk.bf16.mxu1 %vm1117_vm2, %v5368_v10  ;;  %v5373_v15 = vld [vmem:[%s5557_s28 + $0x18] sm:$0xff]   ;;  %v5375_v17 = vld [vmem:[%s5557_s28 + $0x20] sm:$0xff]   ;;  %v5377_v19 = vld [vmem:[%s5557_s28 + $0x28] sm:$0xff]  }
  0x13   : > { %5084 = vmatpush3.bf16.msra.mxu0 %v5365_v5  ;;  %5351 = vmatpush3.bf16.msra.mxu1 %v5365_v5  ;;  %v5374_v16 = vld [vmem:[%s5557_s28 + $0x218] sm:$0xff]   ;;  %v5376_v18 = vld [vmem:[%s5557_s28 + $0x220] sm:$0xff]   ;;  %v5378_v20 = vld [vmem:[%s5557_s28 + $0x228] sm:$0xff]  }
  0x14   : > { %5085 = vmatprep.subr.bf16.mxu0 %v1507_v8  ;;  %5347 = vmatprep.subr.bf16.mxu1 %v1507_v8  ;;  %v5379_v21 = vld [vmem:[%s5557_s28 + $0x30] sm:$0xff]   ;;  %v5381_v23 = vld [vmem:[%s5557_s28 + $0x38] sm:$0xff]   ;;  %v5383_v25 = vld [vmem:[%s5557_s28 + $0x40] sm:$0xff]  }
  0x15   : > { %v5380_v22 = vld [vmem:[%s5557_s28 + $0x230] sm:$0xff]   ;;  %v5382_v24 = vld [vmem:[%s5557_s28 + $0x238] sm:$0xff]   ;;  %v5384_v26 = vld [vmem:[%s5557_s28 + $0x240] sm:$0xff]  }
  0x16   : > { %v5385_v27 = vld [vmem:[%s5557_s28 + $0x48] sm:$0xff]   ;;  %v5387_v29 = vld [vmem:[%s5557_s28 + $0x50] sm:$0xff]   ;;  %v5389_v31 = vld [vmem:[%s5557_s28 + $0x58] sm:$0xff]  }
  0x17   : > { %5086 = vmatpush3.bf16.msra.mxu0 %v1507_v8  ;;  %5352 = vmatpush3.bf16.msra.mxu1 %v1507_v8  ;;  %v5386_v28 = vld [vmem:[%s5557_s28 + $0x248] sm:$0xff]   ;;  %v5388_v30 = vld [vmem:[%s5557_s28 + $0x250] sm:$0xff]   ;;  %v5390_v32 = vld [vmem:[%s5557_s28 + $0x258] sm:$0xff]  }
  0x18   : > { %v5391_v33 = vld [vmem:[%s5557_s28 + $0x60] sm:$0xff]   ;;  %v5393_v35 = vld [vmem:[%s5557_s28 + $0x68] sm:$0xff]   ;;  %v5395_v37 = vld [vmem:[%s5557_s28 + $0x70] sm:$0xff]  }
  0x19   : > { %v5392_v34 = vld [vmem:[%s5557_s28 + $0x260] sm:$0xff]   ;;  %v5394_v36 = vld [vmem:[%s5557_s28 + $0x268] sm:$0xff]   ;;  %v5396_v38 = vld [vmem:[%s5557_s28 + $0x270] sm:$0xff]  }
  0x1a   : > { %5088 = vmatmul.mubr.msk.bf16.vlgmr.msra.gmra.mrb[0].mxu0 %vm1117_vm2, %v5369_v11  ;;  %5216 = vmatmul.mubr.msk.bf16.vlgmr.msra.gmra.mrb[0].mxu1 %vm1117_vm2, %v5370_v12  ;;  %v5397_v39 = vld [vmem:[%s5557_s28 + $0x78] sm:$0xff]   ;;  %v5399_v41 = vld [vmem:[%s5557_s28 + $0x80] sm:$0xff]   ;;  %v5401_v43 = vld [vmem:[%s5557_s28 + $0x88] sm:$0xff]  }
  0x1b   : > { %5091 = vmatprep.mubr.msk.bf16.mxu0 %vm1117_vm2, %v5371_v13  ;;  %5219 = vmatprep.mubr.msk.bf16.mxu1 %vm1117_vm2, %v5372_v14  ;;  %v5398_v40 = vld [vmem:[%s5557_s28 + $0x278] sm:$0xff]   ;;  %v5400_v42 = vld [vmem:[%s5557_s28 + $0x280] sm:$0xff]   ;;  %v5402_v44 = vld [vmem:[%s5557_s28 + $0x288] sm:$0xff]  }
  0x1c   : > { %v5403_v45 = vld [vmem:[%s5557_s28 + $0x90] sm:$0xff]   ;;  %v5405_v47 = vld [vmem:[%s5557_s28 + $0x98] sm:$0xff]   ;;  %v5407_v49 = vld [vmem:[%s5557_s28 + $0xa0] sm:$0xff]  }
  0x1d   : > { %v5404_v46 = vld [vmem:[%s5557_s28 + $0x290] sm:$0xff]   ;;  %v5406_v48 = vld [vmem:[%s5557_s28 + $0x298] sm:$0xff]   ;;  %v5408_v50 = vld [vmem:[%s5557_s28 + $0x2a0] sm:$0xff]  }
  0x1e   : > { %v5409_v51 = vld [vmem:[%s5557_s28 + $0xa8] sm:$0xff]   ;;  %v5411_v53 = vld [vmem:[%s5557_s28 + $0xb0] sm:$0xff]   ;;  %v5413_v55 = vld [vmem:[%s5557_s28 + $0xb8] sm:$0xff]  }
  0x1f   : > { %v5410_v52 = vld [vmem:[%s5557_s28 + $0x2a8] sm:$0xff]   ;;  %v5412_v54 = vld [vmem:[%s5557_s28 + $0x2b0] sm:$0xff]   ;;  %v5414_v56 = vld [vmem:[%s5557_s28 + $0x2b8] sm:$0xff]  }
  0x20   : > { %v5415_v57 = vld [vmem:[%s5557_s28 + $0xc0] sm:$0xff]   ;;  %v5417_v59 = vld [vmem:[%s5557_s28 + $0xc8] sm:$0xff]   ;;  %v5419_v61 = vld [vmem:[%s5557_s28 + $0xd0] sm:$0xff]  }
  0x21   : > { %v5416_v58 = vld [vmem:[%s5557_s28 + $0x2c0] sm:$0xff]   ;;  %v5418_v60 = vld [vmem:[%s5557_s28 + $0x2c8] sm:$0xff]   ;;  %v5420_v62 = vld [vmem:[%s5557_s28 + $0x2d0] sm:$0xff]  }
  0x22   : > { %5092 = vmatmul.mubr.msk.bf16.gmra.mrb[4].mxu0 %vm1117_vm2, %v5373_v15  ;;  %5220 = vmatmul.mubr.msk.bf16.gmra.mrb[4].mxu1 %vm1117_vm2, %v5374_v16  ;;  %v5421_v63 = vld [vmem:[%s5557_s28 + $0xd8] sm:$0xff]   ;;  %v5423_v1 = vld [vmem:[%s5557_s28 + $0xe0] sm:$0xff]   ;;  %v5425_v3 = vld [vmem:[%s5557_s28 + $0xe8] sm:$0xff]  }
  0x23   : > { %5095 = vmatprep.mubr.msk.bf16.mxu0 %vm1117_vm2, %v5375_v17  ;;  %5223 = vmatprep.mubr.msk.bf16.mxu1 %vm1117_vm2, %v5376_v18  ;;  %v5422_v0 = vld [vmem:[%s5557_s28 + $0x2d8] sm:$0xff]   ;;  %v5424_v2 = vld [vmem:[%s5557_s28 + $0x2e0] sm:$0xff]   ;;  %v5426_v4 = vld [vmem:[%s5557_s28 + $0x2e8] sm:$0xff]  }
  0x24   : > { %v5427_v5 = vld [vmem:[%s5557_s28 + $0xf0] sm:$0xff]   ;;  %v5429_v7 = vld [vmem:[%s5557_s28 + $0xf8] sm:$0xff]   ;;  %v5431_v9 = vld [vmem:[%s5557_s28 + $0x100] sm:$0xff]  }
  0x25   : > { %v5428_v6 = vld [vmem:[%s5557_s28 + $0x2f0] sm:$0xff]   ;;  %v5430_v8 = vld [vmem:[%s5557_s28 + $0x2f8] sm:$0xff]   ;;  %v5432_v10 = vld [vmem:[%s5557_s28 + $0x300] sm:$0xff]  }
  0x26   : > { %v5433_v11 = vld [vmem:[%s5557_s28 + $0x108] sm:$0xff]   ;;  %v5435_v13 = vld [vmem:[%s5557_s28 + $0x110] sm:$0xff]   ;;  %v5437_v15 = vld [vmem:[%s5557_s28 + $0x118] sm:$0xff]  }
  0x27   : > { %v5434_v12 = vld [vmem:[%s5557_s28 + $0x308] sm:$0xff]   ;;  %v5436_v14 = vld [vmem:[%s5557_s28 + $0x310] sm:$0xff]   ;;  %v5438_v16 = vld [vmem:[%s5557_s28 + $0x318] sm:$0xff]  }
  0x28   : > { %v5439_v17 = vld [vmem:[%s5557_s28 + $0x120] sm:$0xff]  }
  0x29   : > { %v5440_v18 = vld [vmem:[%s5557_s28 + $0x320] sm:$0xff]  }
  0x2a   : > { %5096 = vmatmul.mubr.msk.bf16.gmra.mrb[8].mxu0 %vm1117_vm2, %v5377_v19  ;;  %5224 = vmatmul.mubr.msk.bf16.gmra.mrb[8].mxu1 %vm1117_vm2, %v5378_v20  ;;  %v5441_v19 = vld [vmem:[%s5557_s28 + $0x128] sm:$0xff]  }
  0x2b   : > { %5099 = vmatprep.mubr.msk.bf16.mxu0 %vm1117_vm2, %v5379_v21  ;;  %5227 = vmatprep.mubr.msk.bf16.mxu1 %vm1117_vm2, %v5380_v22  ;;  %v5442_v20 = vld [vmem:[%s5557_s28 + $0x328] sm:$0xff]   ;;  %v5443_v21 = vld [vmem:[%s5557_s28 + $0x130] sm:$0xff]  }
  0x2c   : > { %v5444_v22 = vld [vmem:[%s5557_s28 + $0x330] sm:$0xff]  }
  0x32   : > { %5100 = vmatmul.mubr.msk.bf16.gmra.mrb[12].mxu0 %vm1117_vm2, %v5381_v23  ;;  %5228 = vmatmul.mubr.msk.bf16.gmra.mrb[12].mxu1 %vm1117_vm2, %v5382_v24  ;;  %v5445_v23 = vld [vmem:[%s5557_s28 + $0x138] sm:$0xff]  }
  0x33   : > { %5103 = vmatprep.mubr.msk.bf16.mxu0 %vm1117_vm2, %v5383_v25  ;;  %5231 = vmatprep.mubr.msk.bf16.mxu1 %vm1117_vm2, %v5384_v26  ;;  %v5446_v24 = vld [vmem:[%s5557_s28 + $0x338] sm:$0xff]   ;;  %v5447_v25 = vld [vmem:[%s5557_s28 + $0x140] sm:$0xff]  }
  0x34   : > { %v5448_v26 = vld [vmem:[%s5557_s28 + $0x340] sm:$0xff]  }
  0x3a   : > { %5104 = vmatmul.mubr.msk.bf16.gmra.mrb[16].mxu0 %vm1117_vm2, %v5385_v27  ;;  %5232 = vmatmul.mubr.msk.bf16.gmra.mrb[16].mxu1 %vm1117_vm2, %v5386_v28  ;;  %v5449_v27 = vld [vmem:[%s5557_s28 + $0x148] sm:$0xff]  }
  0x3b   : > { %5107 = vmatprep.mubr.msk.bf16.mxu0 %vm1117_vm2, %v5387_v29  ;;  %5235 = vmatprep.mubr.msk.bf16.mxu1 %vm1117_vm2, %v5388_v30  ;;  %v5450_v28 = vld [vmem:[%s5557_s28 + $0x348] sm:$0xff]   ;;  %v5451_v29 = vld [vmem:[%s5557_s28 + $0x150] sm:$0xff]  }
  0x3c   : > { %v5452_v30 = vld [vmem:[%s5557_s28 + $0x350] sm:$0xff]  }
  0x42   : > { %5108 = vmatmul.mubr.msk.bf16.gmra.mrb[20].mxu0 %vm1117_vm2, %v5389_v31  ;;  %5236 = vmatmul.mubr.msk.bf16.gmra.mrb[20].mxu1 %vm1117_vm2, %v5390_v32  ;;  %v5453_v31 = vld [vmem:[%s5557_s28 + $0x158] sm:$0xff]  }
  0x43   : > { %5111 = vmatprep.mubr.msk.bf16.mxu0 %vm1117_vm2, %v5391_v33  ;;  %5239 = vmatprep.mubr.msk.bf16.mxu1 %vm1117_vm2, %v5392_v34  ;;  %v5454_v32 = vld [vmem:[%s5557_s28 + $0x358] sm:$0xff]   ;;  %v5455_v33 = vld [vmem:[%s5557_s28 + $0x160] sm:$0xff]  }
  0x44   : > { %v5456_v34 = vld [vmem:[%s5557_s28 + $0x360] sm:$0xff]  }
  0x4a   : > { %5112 = vmatmul.mubr.msk.bf16.gmra.mrb[24].mxu0 %vm1117_vm2, %v5393_v35  ;;  %5240 = vmatmul.mubr.msk.bf16.gmra.mrb[24].mxu1 %vm1117_vm2, %v5394_v36  ;;  %v5457_v35 = vld [vmem:[%s5557_s28 + $0x168] sm:$0xff]  }
  0x4b   : > { %5115 = vmatprep.mubr.msk.bf16.mxu0 %vm1117_vm2, %v5395_v37  ;;  %5243 = vmatprep.mubr.msk.bf16.mxu1 %vm1117_vm2, %v5396_v38  ;;  %v5458_v36 = vld [vmem:[%s5557_s28 + $0x368] sm:$0xff]   ;;  %v5459_v37 = vld [vmem:[%s5557_s28 + $0x170] sm:$0xff]  }
  0x4c   : > { %v5460_v38 = vld [vmem:[%s5557_s28 + $0x370] sm:$0xff]  }
  0x52   : > { %5116 = vmatmul.mubr.msk.bf16.gmra.mrb[28].mxu0 %vm1117_vm2, %v5397_v39  ;;  %5244 = vmatmul.mubr.msk.bf16.gmra.mrb[28].mxu1 %vm1117_vm2, %v5398_v40  ;;  %v5461_v39 = vld [vmem:[%s5557_s28 + $0x178] sm:$0xff]  }
  0x53   : > { %5119 = vmatprep.mubr.msk.bf16.mxu0 %vm1117_vm2, %v5399_v41  ;;  %5247 = vmatprep.mubr.msk.bf16.mxu1 %vm1117_vm2, %v5400_v42  ;;  %v5462_v40 = vld [vmem:[%s5557_s28 + $0x378] sm:$0xff]   ;;  %v5463_v41 = vld [vmem:[%s5557_s28 + $0x180] sm:$0xff]  }
  0x54   : > { %v5464_v42 = vld [vmem:[%s5557_s28 + $0x380] sm:$0xff]  }
  0x5a   : > { %5120 = vmatmul.mubr.msk.bf16.gmra.mrb[32].mxu0 %vm1117_vm2, %v5401_v43  ;;  %5248 = vmatmul.mubr.msk.bf16.gmra.mrb[32].mxu1 %vm1117_vm2, %v5402_v44  ;;  %v5465_v43 = vld [vmem:[%s5557_s28 + $0x188] sm:$0xff]  }
  0x5b   : > { %5123 = vmatprep.mubr.msk.bf16.mxu0 %vm1117_vm2, %v5403_v45  ;;  %5251 = vmatprep.mubr.msk.bf16.mxu1 %vm1117_vm2, %v5404_v46  ;;  %v5466_v44 = vld [vmem:[%s5557_s28 + $0x388] sm:$0xff]   ;;  %v5467_v45 = vld [vmem:[%s5557_s28 + $0x190] sm:$0xff]  }
  0x5c   : > { %v5468_v46 = vld [vmem:[%s5557_s28 + $0x390] sm:$0xff]  }
  0x62   : > { %5124 = vmatmul.mubr.msk.bf16.gmra.mrb[36].mxu0 %vm1117_vm2, %v5405_v47  ;;  %5252 = vmatmul.mubr.msk.bf16.gmra.mrb[36].mxu1 %vm1117_vm2, %v5406_v48  ;;  %v5469_v47 = vld [vmem:[%s5557_s28 + $0x198] sm:$0xff]  }
  0x63   : > { %5127 = vmatprep.mubr.msk.bf16.mxu0 %vm1117_vm2, %v5407_v49  ;;  %5255 = vmatprep.mubr.msk.bf16.mxu1 %vm1117_vm2, %v5408_v50  ;;  %v5470_v48 = vld [vmem:[%s5557_s28 + $0x398] sm:$0xff]   ;;  %v5471_v49 = vld [vmem:[%s5557_s28 + $0x1a0] sm:$0xff]  }
  0x64   : > { %v5472_v50 = vld [vmem:[%s5557_s28 + $0x3a0] sm:$0xff]  }
  0x6a   : > { %5128 = vmatmul.mubr.msk.bf16.gmra.mrb[40].mxu0 %vm1117_vm2, %v5409_v51  ;;  %5256 = vmatmul.mubr.msk.bf16.gmra.mrb[40].mxu1 %vm1117_vm2, %v5410_v52  ;;  %v5473_v51 = vld [vmem:[%s5557_s28 + $0x1a8] sm:$0xff]  }
  0x6b   : > { %5131 = vmatprep.mubr.msk.bf16.mxu0 %vm1117_vm2, %v5411_v53  ;;  %5259 = vmatprep.mubr.msk.bf16.mxu1 %vm1117_vm2, %v5412_v54  ;;  %v5474_v52 = vld [vmem:[%s5557_s28 + $0x3a8] sm:$0xff]   ;;  %v5475_v53 = vld [vmem:[%s5557_s28 + $0x1b0] sm:$0xff]  }
  0x6c   : > { %v5476_v54 = vld [vmem:[%s5557_s28 + $0x3b0] sm:$0xff]  }
  0x72   : > { %5132 = vmatmul.mubr.msk.bf16.gmra.mrb[44].mxu0 %vm1117_vm2, %v5413_v55  ;;  %5260 = vmatmul.mubr.msk.bf16.gmra.mrb[44].mxu1 %vm1117_vm2, %v5414_v56  ;;  %v5780_v55 = vld [vmem:[%s6610_s2] ss:$0 sm:$0xff] }
  0x73   : > { %5135 = vmatprep.mubr.msk.bf16.mxu0 %vm1117_vm2, %v5415_v57  ;;  %5263 = vmatprep.mubr.msk.bf16.mxu1 %vm1117_vm2, %v5416_v58 }
  0x7a   : > { %5136 = vmatmul.mubr.msk.bf16.gmra.mrb[48].mxu0 %vm1117_vm2, %v5417_v59  ;;  %5264 = vmatmul.mubr.msk.bf16.gmra.mrb[48].mxu1 %vm1117_vm2, %v5418_v60 }
  0x7b   : > { %5139 = vmatprep.mubr.msk.bf16.mxu0 %vm1117_vm2, %v5419_v61  ;;  %5267 = vmatprep.mubr.msk.bf16.mxu1 %vm1117_vm2, %v5420_v62  ;;  %v5477_v62 = vld [vmem:[%s5557_s28 + $0x1b8] sm:$0xff]  }
  0x82   : > { %5140 = vmatmul.mubr.msk.bf16.gmra.mrb[52].mxu0 %vm1117_vm2, %v5421_v63  ;;  %5268 = vmatmul.mubr.msk.bf16.gmra.mrb[52].mxu1 %vm1117_vm2, %v5422_v0  ;;  %v5478_v63 = vld [vmem:[%s5557_s28 + $0x3b8] sm:$0xff]  }
  0x83   : > { %5143 = vmatprep.mubr.msk.bf16.mxu0 %vm1117_vm2, %v5423_v1  ;;  %5271 = vmatprep.mubr.msk.bf16.mxu1 %vm1117_vm2, %v5424_v2 }
  0x8a   : > { %5144 = vmatmul.mubr.msk.bf16.gmra.mrb[56].mxu0 %vm1117_vm2, %v5425_v3  ;;  %5272 = vmatmul.mubr.msk.bf16.gmra.mrb[56].mxu1 %vm1117_vm2, %v5426_v4  ;;  %v5479_v4 = vld [vmem:[%s5557_s28 + $0x1c0] sm:$0xff]  }
  0x8b   : > { %5147 = vmatprep.mubr.msk.bf16.mxu0 %vm1117_vm2, %v5427_v5  ;;  %5275 = vmatprep.mubr.msk.bf16.mxu1 %vm1117_vm2, %v5428_v6  ;;  %v5480_v5 = vld [vmem:[%s5557_s28 + $0x3c0] sm:$0xff]  }
  0x92   : > { %5148 = vmatmul.mubr.msk.bf16.gmra.mrb[60].mxu0 %vm1117_vm2, %v5429_v7  ;;  %5276 = vmatmul.mubr.msk.bf16.gmra.mrb[60].mxu1 %vm1117_vm2, %v5430_v8 }
  0x93   : > { %5151 = vmatprep.mubr.msk.bf16.mxu0 %vm1117_vm2, %v5431_v9  ;;  %5279 = vmatprep.mubr.msk.bf16.mxu1 %vm1117_vm2, %v5432_v10 }
  0x9a   : > { %5152 = vmatmul.mubr.msk.bf16.gmra.mrb[64].mxu0 %vm1117_vm2, %v5433_v11  ;;  %5280 = vmatmul.mubr.msk.bf16.gmra.mrb[64].mxu1 %vm1117_vm2, %v5434_v12 }
  0x9b   : > { %5155 = vmatprep.mubr.msk.bf16.mxu0 %vm1117_vm2, %v5435_v13  ;;  %5283 = vmatprep.mubr.msk.bf16.mxu1 %vm1117_vm2, %v5436_v14 }
  0xa2   : > { %5156 = vmatmul.mubr.msk.bf16.gmra.mrb[68].mxu0 %vm1117_vm2, %v5437_v15  ;;  %5284 = vmatmul.mubr.msk.bf16.gmra.mrb[68].mxu1 %vm1117_vm2, %v5438_v16 }
  0xa3   : > { %5159 = vmatprep.mubr.msk.bf16.mxu0 %vm1117_vm2, %v5439_v17  ;;  %5287 = vmatprep.mubr.msk.bf16.mxu1 %vm1117_vm2, %v5440_v18 }
  0xaa   : > { %5160 = vmatmul.mubr.msk.bf16.gmra.mrb[72].mxu0 %vm1117_vm2, %v5441_v19  ;;  %5288 = vmatmul.mubr.msk.bf16.gmra.mrb[72].mxu1 %vm1117_vm2, %v5442_v20 }
  0xab   : > { %5163 = vmatprep.mubr.msk.bf16.mxu0 %vm1117_vm2, %v5443_v21  ;;  %5291 = vmatprep.mubr.msk.bf16.mxu1 %vm1117_vm2, %v5444_v22 }
  0xb2   : > { %5164 = vmatmul.mubr.msk.bf16.gmra.mrb[76].mxu0 %vm1117_vm2, %v5445_v23  ;;  %5292 = vmatmul.mubr.msk.bf16.gmra.mrb[76].mxu1 %vm1117_vm2, %v5446_v24 }
  0xb3   : > { %5167 = vmatprep.mubr.msk.bf16.mxu0 %vm1117_vm2, %v5447_v25  ;;  %5295 = vmatprep.mubr.msk.bf16.mxu1 %vm1117_vm2, %v5448_v26 }
  0xba   : > { %5168 = vmatmul.mubr.msk.bf16.gmra.mrb[80].mxu0 %vm1117_vm2, %v5449_v27  ;;  %5296 = vmatmul.mubr.msk.bf16.gmra.mrb[80].mxu1 %vm1117_vm2, %v5450_v28 }
  0xbb   : > { %5171 = vmatprep.mubr.msk.bf16.mxu0 %vm1117_vm2, %v5451_v29  ;;  %5299 = vmatprep.mubr.msk.bf16.mxu1 %vm1117_vm2, %v5452_v30 }
  0xc2   : > { %5172 = vmatmul.mubr.msk.bf16.gmra.mrb[84].mxu0 %vm1117_vm2, %v5453_v31  ;;  %5300 = vmatmul.mubr.msk.bf16.gmra.mrb[84].mxu1 %vm1117_vm2, %v5454_v32 }
  0xc3   : > { %5175 = vmatprep.mubr.msk.bf16.mxu0 %vm1117_vm2, %v5455_v33  ;;  %5303 = vmatprep.mubr.msk.bf16.mxu1 %vm1117_vm2, %v5456_v34  ;;  %v5481_v34 = vld [vmem:[%s5557_s28 + $0x1c8] sm:$0xff]  }
  0xca   : > { %5176 = vmatmul.mubr.msk.bf16.gmra.mrb[88].mxu0 %vm1117_vm2, %v5457_v35  ;;  %5304 = vmatmul.mubr.msk.bf16.gmra.mrb[88].mxu1 %vm1117_vm2, %v5458_v36  ;;  %v5482_v35 = vld [vmem:[%s5557_s28 + $0x3c8] sm:$0xff]  }
  0xcb   : > { %5179 = vmatprep.mubr.msk.bf16.mxu0 %vm1117_vm2, %v5459_v37  ;;  %5307 = vmatprep.mubr.msk.bf16.mxu1 %vm1117_vm2, %v5460_v38 }
  0xd2   : > { %5180 = vmatmul.mubr.msk.bf16.gmra.mrb[92].mxu0 %vm1117_vm2, %v5461_v39  ;;  %5308 = vmatmul.mubr.msk.bf16.gmra.mrb[92].mxu1 %vm1117_vm2, %v5462_v40  ;;  %v5483_v40 = vld [vmem:[%s5557_s28 + $0x1d0] sm:$0xff]  }
  0xd3   : > { %5183 = vmatprep.mubr.msk.bf16.mxu0 %vm1117_vm2, %v5463_v41  ;;  %5311 = vmatprep.mubr.msk.bf16.mxu1 %vm1117_vm2, %v5464_v42  ;;  %v5484_v41 = vld [vmem:[%s5557_s28 + $0x3d0] sm:$0xff]  }
  0xda   : > { %5184 = vmatmul.mubr.msk.bf16.gmra.mrb[96].mxu0 %vm1117_vm2, %v5465_v43  ;;  %5312 = vmatmul.mubr.msk.bf16.gmra.mrb[96].mxu1 %vm1117_vm2, %v5466_v44 }
  0xdb   : > { %5187 = vmatprep.mubr.msk.bf16.mxu0 %vm1117_vm2, %v5467_v45  ;;  %5315 = vmatprep.mubr.msk.bf16.mxu1 %vm1117_vm2, %v5468_v46 }
  0xe2   : > { %5188 = vmatmul.mubr.msk.bf16.gmra.mrb[100].mxu0 %vm1117_vm2, %v5469_v47  ;;  %5316 = vmatmul.mubr.msk.bf16.gmra.mrb[100].mxu1 %vm1117_vm2, %v5470_v48 }
  0xe3   : > { %5191 = vmatprep.mubr.msk.bf16.mxu0 %vm1117_vm2, %v5471_v49  ;;  %5319 = vmatprep.mubr.msk.bf16.mxu1 %vm1117_vm2, %v5472_v50 }
  0xea   : > { %5192 = vmatmul.mubr.msk.bf16.gmra.mrb[104].mxu0 %vm1117_vm2, %v5473_v51  ;;  %5320 = vmatmul.mubr.msk.bf16.gmra.mrb[104].mxu1 %vm1117_vm2, %v5474_v52 }
  0xeb   : > { %5195 = vmatprep.mubr.msk.bf16.mxu0 %vm1117_vm2, %v5475_v53  ;;  %5323 = vmatprep.mubr.msk.bf16.mxu1 %vm1117_vm2, %v5476_v54 }
  0xed   : > { %v5089_v56 = vpop.f32.mrb[0].mxu0  ;;  %v5217_v57 = vpop.f32.mrb[0].mxu1 }
  0xee   : > { %v1552_v58 = vadd.f32 %v5089_v56, %v5780_v55  ;;  %v2064_v59 = vadd.f32 %v5217_v57, %v5780_v55  ;;  %v1543_v60 = vpop.f32.mrb[1].mxu0  ;;  %v2055_v61 = vpop.f32.mrb[1].mxu1 }
  0xef   : > { %v1544_v0 = vadd.f32 %v5780_v55, %v1543_v60  ;;  %v2056_v1 = vadd.f32 %v5780_v55, %v2055_v61  ;;  %v5090_v2 = vpop.f32.mrb[2].mxu0  ;;  %v5218_v3 = vpop.f32.mrb[2].mxu1 }
  0xf0   : > { %v2568_v6 = vmax.f32 %v1552_v58, 0.0  ;;  %v2696_v7 = vmax.f32 %v2064_v59, 0.0  ;;  %v1555_v8 = vadd.f32 %v5090_v2, %v5780_v55  ;;  %v2067_v9 = vadd.f32 %v5218_v3, %v5780_v55  ;;  %v1546_v10 = vpop.f32.mrb[3].mxu0  ;;  %v2058_v11 = vpop.f32.mrb[3].mxu1 }
  0xf1   : > { %v2566_v12 = vmax.f32 %v1544_v0, 0.0  ;;  %v2694_v13 = vmax.f32 %v2056_v1, 0.0  ;;  %v1547_v14 = vadd.f32 %v5780_v55, %v1546_v10  ;;  %v2059_v15 = vadd.f32 %v5780_v55, %v2058_v11 }
  0xf2   : > { %v4690_v16 = vpack.c.bf16 %v2568_v6, %v2568_v6  ;;  %v4818_v17 = vpack.c.bf16 %v2696_v7, %v2696_v7  ;;  %v2569_v18 = vmax.f32 %v1555_v8, 0.0  ;;  %v2697_v19 = vmax.f32 %v2067_v9, 0.0  ;;  %5196 = vmatmul.mubr.msk.bf16.gmra.mrb[108].mxu0 %vm1117_vm2, %v5477_v62  ;;  %5324 = vmatmul.mubr.msk.bf16.gmra.mrb[108].mxu1 %vm1117_vm2, %v5478_v63  ;;  %v5485_v7 = vld [vmem:[%s5557_s28 + $0x1d8] sm:$0xff]  }
  0xf3   : > { %v4688_v20 = vpack.c.bf16 %v2566_v12, %v2566_v12  ;;  %v4816_v21 = vpack.c.bf16 %v2694_v13, %v2694_v13  ;;  %v2567_v22 = vmax.f32 %v1547_v14, 0.0  ;;  %v2695_v23 = vmax.f32 %v2059_v15, 0.0  ;;  %5199 = vmatprep.mubr.msk.bf16.mxu0 %vm1117_vm2, %v5479_v4  ;;  %5327 = vmatprep.mubr.msk.bf16.mxu1 %vm1117_vm2, %v5480_v5  ;;  %v5486_v8 = vld [vmem:[%s5557_s28 + $0x3d8] sm:$0xff]   ;;  %v5487_v13 = vld [vmem:[%s5557_s28 + $0x1e0] sm:$0xff]  }
  0xf4   : > { %3849 = vst.msk [vmem:[%s5799_s6 + $0x8] sm:$0xf] %vm3846_vm3, %v4690_v16  ;;  %3977 = vst.msk [vmem:[%s5799_s6 + $0x208] sm:$0xf] %vm3846_vm3, %v4818_v17  ;;  %v4691_v24 = vpack.c.bf16 %v2569_v18, %v2569_v18  ;;  %v4819_v25 = vpack.c.bf16 %v2697_v19, %v2697_v19  ;;  %v5488_v14 = vld [vmem:[%s5557_s28 + $0x3e0] sm:$0xff]  }
  0xf5   : > { %3847 = vst.msk [vmem:[%s5799_s6] sm:$0xf] %vm3846_vm3, %v4688_v20  ;;  %3975 = vst.msk [vmem:[%s5799_s6 + $0x200] sm:$0xf] %vm3846_vm3, %v4816_v21  ;;  %v4689_v26 = vpack.c.bf16 %v2567_v22, %v2567_v22  ;;  %v4817_v27 = vpack.c.bf16 %v2695_v23, %v2695_v23  ;;  %v5093_v28 = vpop.f32.mrb[4].mxu0  ;;  %v5221_v29 = vpop.f32.mrb[4].mxu1 }
  0xf6   : > { %3850 = vst.msk [vmem:[%s5799_s6 + $0xc] sm:$0xf] %vm3846_vm3, %v4691_v24  ;;  %3978 = vst.msk [vmem:[%s5799_s6 + $0x20c] sm:$0xf] %vm3846_vm3, %v4819_v25  ;;  %v1568_v30 = vadd.f32 %v5093_v28, %v5780_v55  ;;  %v2080_v31 = vadd.f32 %v5221_v29, %v5780_v55  ;;  %v1559_v32 = vpop.f32.mrb[5].mxu0  ;;  %v2071_v33 = vpop.f32.mrb[5].mxu1 }
  0xf7   : > { %3848 = vst.msk [vmem:[%s5799_s6 + $0x4] sm:$0xf] %vm3846_vm3, %v4689_v26  ;;  %3976 = vst.msk [vmem:[%s5799_s6 + $0x204] sm:$0xf] %vm3846_vm3, %v4817_v27  ;;  %v1560_v36 = vadd.f32 %v5780_v55, %v1559_v32  ;;  %v2072_v37 = vadd.f32 %v5780_v55, %v2071_v33  ;;  %v5094_v38 = vpop.f32.mrb[6].mxu0  ;;  %v5222_v39 = vpop.f32.mrb[6].mxu1 }
  0xf8   : > { %v2572_v42 = vmax.f32 %v1568_v30, 0.0  ;;  %v2700_v43 = vmax.f32 %v2080_v31, 0.0  ;;  %v1571_v44 = vadd.f32 %v5094_v38, %v5780_v55  ;;  %v2083_v45 = vadd.f32 %v5222_v39, %v5780_v55  ;;  %v1562_v46 = vpop.f32.mrb[7].mxu0  ;;  %v2074_v47 = vpop.f32.mrb[7].mxu1 }
  0xf9   : > { %v2570_v48 = vmax.f32 %v1560_v36, 0.0  ;;  %v2698_v49 = vmax.f32 %v2072_v37, 0.0  ;;  %v1563_v50 = vadd.f32 %v5780_v55, %v1562_v46  ;;  %v2075_v51 = vadd.f32 %v5780_v55, %v2074_v47 }
  0xfa   : > { %v4694_v52 = vpack.c.bf16 %v2572_v42, %v2572_v42  ;;  %v4822_v53 = vpack.c.bf16 %v2700_v43, %v2700_v43  ;;  %v2573_v54 = vmax.f32 %v1571_v44, 0.0  ;;  %v2701_v56 = vmax.f32 %v2083_v45, 0.0  ;;  %5200 = vmatmul.mubr.msk.bf16.gmra.mrb[112].mxu0 %vm1117_vm2, %v5481_v34  ;;  %5328 = vmatmul.mubr.msk.bf16.gmra.mrb[112].mxu1 %vm1117_vm2, %v5482_v35  ;;  %v5489_v43 = vld [vmem:[%s5557_s28 + $0x1e8] sm:$0xff]  }
  0xfb   : > { %v4692_v57 = vpack.c.bf16 %v2570_v48, %v2570_v48  ;;  %v4820_v58 = vpack.c.bf16 %v2698_v49, %v2698_v49  ;;  %v2571_v59 = vmax.f32 %v1563_v50, 0.0  ;;  %v2699_v60 = vmax.f32 %v2075_v51, 0.0  ;;  %5203 = vmatprep.mubr.msk.bf16.mxu0 %vm1117_vm2, %v5483_v40  ;;  %5331 = vmatprep.mubr.msk.bf16.mxu1 %vm1117_vm2, %v5484_v41  ;;  %v5490_v44 = vld [vmem:[%s5557_s28 + $0x3e8] sm:$0xff]   ;;  %v5491_v49 = vld [vmem:[%s5557_s28 + $0x1f0] sm:$0xff]  }
  0xfc   : > { %3853 = vst.msk [vmem:[%s5799_s6 + $0x18] sm:$0xf] %vm3846_vm3, %v4694_v52  ;;  %3981 = vst.msk [vmem:[%s5799_s6 + $0x218] sm:$0xf] %vm3846_vm3, %v4822_v53  ;;  %v4695_v61 = vpack.c.bf16 %v2573_v54, %v2573_v54  ;;  %v4823_v62 = vpack.c.bf16 %v2701_v56, %v2701_v56  ;;  %v5492_v50 = vld [vmem:[%s5557_s28 + $0x3f0] sm:$0xff]  }
  0xfd   : > { %3851 = vst.msk [vmem:[%s5799_s6 + $0x10] sm:$0xf] %vm3846_vm3, %v4692_v57  ;;  %3979 = vst.msk [vmem:[%s5799_s6 + $0x210] sm:$0xf] %vm3846_vm3, %v4820_v58  ;;  %v4693_v63 = vpack.c.bf16 %v2571_v59, %v2571_v59  ;;  %v4821_v0 = vpack.c.bf16 %v2699_v60, %v2699_v60  ;;  %v5097_v1 = vpop.f32.mrb[8].mxu0  ;;  %v5225_v2 = vpop.f32.mrb[8].mxu1 }
  0xfe   : > { %3854 = vst.msk [vmem:[%s5799_s6 + $0x1c] sm:$0xf] %vm3846_vm3, %v4695_v61  ;;  %3982 = vst.msk [vmem:[%s5799_s6 + $0x21c] sm:$0xf] %vm3846_vm3, %v4823_v62  ;;  %v1584_v3 = vadd.f32 %v5097_v1, %v5780_v55  ;;  %v2096_v4 = vadd.f32 %v5225_v2, %v5780_v55  ;;  %v1575_v5 = vpop.f32.mrb[9].mxu0  ;;  %v2087_v6 = vpop.f32.mrb[9].mxu1 }
  0xff   : > { %3852 = vst.msk [vmem:[%s5799_s6 + $0x14] sm:$0xf] %vm3846_vm3, %v4693_v63  ;;  %3980 = vst.msk [vmem:[%s5799_s6 + $0x214] sm:$0xf] %vm3846_vm3, %v4821_v0  ;;  %v1576_v9 = vadd.f32 %v5780_v55, %v1575_v5  ;;  %v2088_v10 = vadd.f32 %v5780_v55, %v2087_v6  ;;  %v5098_v11 = vpop.f32.mrb[10].mxu0  ;;  %v5226_v12 = vpop.f32.mrb[10].mxu1 }
 0x100   : > { %v2576_v15 = vmax.f32 %v1584_v3, 0.0  ;;  %v2704_v16 = vmax.f32 %v2096_v4, 0.0  ;;  %v1587_v17 = vadd.f32 %v5098_v11, %v5780_v55  ;;  %v2099_v18 = vadd.f32 %v5226_v12, %v5780_v55  ;;  %v1578_v19 = vpop.f32.mrb[11].mxu0  ;;  %v2090_v20 = vpop.f32.mrb[11].mxu1 }
 0x101   : > { %v2574_v21 = vmax.f32 %v1576_v9, 0.0  ;;  %v2702_v22 = vmax.f32 %v2088_v10, 0.0  ;;  %v1579_v23 = vadd.f32 %v5780_v55, %v1578_v19  ;;  %v2091_v24 = vadd.f32 %v5780_v55, %v2090_v20 }
 0x102   : > { %v4698_v25 = vpack.c.bf16 %v2576_v15, %v2576_v15  ;;  %v4826_v26 = vpack.c.bf16 %v2704_v16, %v2704_v16  ;;  %v2577_v27 = vmax.f32 %v1587_v17, 0.0  ;;  %v2705_v28 = vmax.f32 %v2099_v18, 0.0  ;;  %5204 = vmatmul.mubr.msk.bf16.gmra.mrb[116].mxu0 %vm1117_vm2, %v5485_v7  ;;  %5332 = vmatmul.mubr.msk.bf16.gmra.mrb[116].mxu1 %vm1117_vm2, %v5486_v8  ;;  %v5493_v16 = vld [vmem:[%s5557_s28 + $0x1f8] sm:$0xff]  }
 0x103   : > { %v4696_v29 = vpack.c.bf16 %v2574_v21, %v2574_v21  ;;  %v4824_v30 = vpack.c.bf16 %v2702_v22, %v2702_v22  ;;  %v2575_v31 = vmax.f32 %v1579_v23, 0.0  ;;  %v2703_v32 = vmax.f32 %v2091_v24, 0.0  ;;  %5207 = vmatprep.mubr.msk.bf16.mxu0 %vm1117_vm2, %v5487_v13  ;;  %5335 = vmatprep.mubr.msk.bf16.mxu1 %vm1117_vm2, %v5488_v14  ;;  %v5494_v17 = vld [vmem:[%s5557_s28 + $0x3f8] sm:$0xff]  }
 0x104   : > { %3857 = vst.msk [vmem:[%s5799_s6 + $0x28] sm:$0xf] %vm3846_vm3, %v4698_v25  ;;  %3985 = vst.msk [vmem:[%s5799_s6 + $0x228] sm:$0xf] %vm3846_vm3, %v4826_v26  ;;  %v4699_v33 = vpack.c.bf16 %v2577_v27, %v2577_v27  ;;  %v4827_v34 = vpack.c.bf16 %v2705_v28, %v2705_v28 }
 0x105   : > { %3855 = vst.msk [vmem:[%s5799_s6 + $0x20] sm:$0xf] %vm3846_vm3, %v4696_v29  ;;  %3983 = vst.msk [vmem:[%s5799_s6 + $0x220] sm:$0xf] %vm3846_vm3, %v4824_v30  ;;  %v4697_v35 = vpack.c.bf16 %v2575_v31, %v2575_v31  ;;  %v4825_v36 = vpack.c.bf16 %v2703_v32, %v2703_v32  ;;  %v5101_v37 = vpop.f32.mrb[12].mxu0  ;;  %v5229_v38 = vpop.f32.mrb[12].mxu1 }
 0x106   : > { %3858 = vst.msk [vmem:[%s5799_s6 + $0x2c] sm:$0xf] %vm3846_vm3, %v4699_v33  ;;  %3986 = vst.msk [vmem:[%s5799_s6 + $0x22c] sm:$0xf] %vm3846_vm3, %v4827_v34  ;;  %v1600_v39 = vadd.f32 %v5101_v37, %v5780_v55  ;;  %v2112_v40 = vadd.f32 %v5229_v38, %v5780_v55  ;;  %v1591_v41 = vpop.f32.mrb[13].mxu0  ;;  %v2103_v42 = vpop.f32.mrb[13].mxu1 }
 0x107   : > { %3856 = vst.msk [vmem:[%s5799_s6 + $0x24] sm:$0xf] %vm3846_vm3, %v4697_v35  ;;  %3984 = vst.msk [vmem:[%s5799_s6 + $0x224] sm:$0xf] %vm3846_vm3, %v4825_v36  ;;  %v1592_v45 = vadd.f32 %v5780_v55, %v1591_v41  ;;  %v2104_v46 = vadd.f32 %v5780_v55, %v2103_v42  ;;  %v5102_v47 = vpop.f32.mrb[14].mxu0  ;;  %v5230_v48 = vpop.f32.mrb[14].mxu1 }
 0x108   : > { %v2580_v51 = vmax.f32 %v1600_v39, 0.0  ;;  %v2708_v52 = vmax.f32 %v2112_v40, 0.0  ;;  %v1603_v53 = vadd.f32 %v5102_v47, %v5780_v55  ;;  %v2115_v54 = vadd.f32 %v5230_v48, %v5780_v55  ;;  %v1594_v56 = vpop.f32.mrb[15].mxu0  ;;  %v2106_v57 = vpop.f32.mrb[15].mxu1 }
 0x109   : > { %v2578_v58 = vmax.f32 %v1592_v45, 0.0  ;;  %v2706_v59 = vmax.f32 %v2104_v46, 0.0  ;;  %v1595_v60 = vadd.f32 %v5780_v55, %v1594_v56  ;;  %v2107_v61 = vadd.f32 %v5780_v55, %v2106_v57 }
 0x10a   : > { %v4702_v62 = vpack.c.bf16 %v2580_v51, %v2580_v51  ;;  %v4830_v63 = vpack.c.bf16 %v2708_v52, %v2708_v52  ;;  %v2581_v0 = vmax.f32 %v1603_v53, 0.0  ;;  %v2709_v1 = vmax.f32 %v2115_v54, 0.0  ;;  %5208 = vmatmul.mubr.msk.bf16.gmra.mrb[120].mxu0 %vm1117_vm2, %v5489_v43  ;;  %5336 = vmatmul.mubr.msk.bf16.gmra.mrb[120].mxu1 %vm1117_vm2, %v5490_v44 }
 0x10b   : > { %v4700_v2 = vpack.c.bf16 %v2578_v58, %v2578_v58  ;;  %v4828_v3 = vpack.c.bf16 %v2706_v59, %v2706_v59  ;;  %v2579_v4 = vmax.f32 %v1595_v60, 0.0  ;;  %v2707_v5 = vmax.f32 %v2107_v61, 0.0  ;;  %5211 = vmatprep.mubr.msk.bf16.mxu0 %vm1117_vm2, %v5491_v49  ;;  %5339 = vmatprep.mubr.msk.bf16.mxu1 %vm1117_vm2, %v5492_v50 }
 0x10c   : > { %3861 = vst.msk [vmem:[%s5799_s6 + $0x38] sm:$0xf] %vm3846_vm3, %v4702_v62  ;;  %3989 = vst.msk [vmem:[%s5799_s6 + $0x238] sm:$0xf] %vm3846_vm3, %v4830_v63  ;;  %v4703_v6 = vpack.c.bf16 %v2581_v0, %v2581_v0  ;;  %v4831_v7 = vpack.c.bf16 %v2709_v1, %v2709_v1 }
 0x10d   : > { %3859 = vst.msk [vmem:[%s5799_s6 + $0x30] sm:$0xf] %vm3846_vm3, %v4700_v2  ;;  %3987 = vst.msk [vmem:[%s5799_s6 + $0x230] sm:$0xf] %vm3846_vm3, %v4828_v3  ;;  %v4701_v8 = vpack.c.bf16 %v2579_v4, %v2579_v4  ;;  %v4829_v9 = vpack.c.bf16 %v2707_v5, %v2707_v5  ;;  %v5105_v10 = vpop.f32.mrb[16].mxu0  ;;  %v5233_v11 = vpop.f32.mrb[16].mxu1 }
 0x10e   : > { %3862 = vst.msk [vmem:[%s5799_s6 + $0x3c] sm:$0xf] %vm3846_vm3, %v4703_v6  ;;  %3990 = vst.msk [vmem:[%s5799_s6 + $0x23c] sm:$0xf] %vm3846_vm3, %v4831_v7  ;;  %v1616_v12 = vadd.f32 %v5105_v10, %v5780_v55  ;;  %v2128_v13 = vadd.f32 %v5233_v11, %v5780_v55  ;;  %v1607_v14 = vpop.f32.mrb[17].mxu0  ;;  %v2119_v15 = vpop.f32.mrb[17].mxu1 }
 0x10f   : > { %3860 = vst.msk [vmem:[%s5799_s6 + $0x34] sm:$0xf] %vm3846_vm3, %v4701_v8  ;;  %3988 = vst.msk [vmem:[%s5799_s6 + $0x234] sm:$0xf] %vm3846_vm3, %v4829_v9  ;;  %v1608_v18 = vadd.f32 %v5780_v55, %v1607_v14  ;;  %v2120_v19 = vadd.f32 %v5780_v55, %v2119_v15  ;;  %v5106_v20 = vpop.f32.mrb[18].mxu0  ;;  %v5234_v21 = vpop.f32.mrb[18].mxu1 }
 0x110   : > { %v2584_v22 = vmax.f32 %v1616_v12, 0.0  ;;  %v2712_v23 = vmax.f32 %v2128_v13, 0.0  ;;  %v1619_v24 = vadd.f32 %v5106_v20, %v5780_v55  ;;  %v2131_v25 = vadd.f32 %v5234_v21, %v5780_v55  ;;  %v1610_v26 = vpop.f32.mrb[19].mxu0  ;;  %v2122_v27 = vpop.f32.mrb[19].mxu1 }
 0x111   : > { %v2582_v28 = vmax.f32 %v1608_v18, 0.0  ;;  %v2710_v29 = vmax.f32 %v2120_v19, 0.0  ;;  %v1611_v30 = vadd.f32 %v5780_v55, %v1610_v26  ;;  %v2123_v31 = vadd.f32 %v5780_v55, %v2122_v27 }
 0x112   : > { %v4706_v32 = vpack.c.bf16 %v2584_v22, %v2584_v22  ;;  %v4834_v33 = vpack.c.bf16 %v2712_v23, %v2712_v23  ;;  %v2585_v34 = vmax.f32 %v1619_v24, 0.0  ;;  %v2713_v35 = vmax.f32 %v2131_v25, 0.0  ;;  %5212 = vmatmul.mubr.msk.bf16.gmra.mrb[124].mxu0 %vm1117_vm2, %v5493_v16  ;;  %5340 = vmatmul.mubr.msk.bf16.gmra.mrb[124].mxu1 %vm1117_vm2, %v5494_v17 }
 0x113   : > { %v4704_v36 = vpack.c.bf16 %v2582_v28, %v2582_v28  ;;  %v4832_v37 = vpack.c.bf16 %v2710_v29, %v2710_v29  ;;  %v2583_v38 = vmax.f32 %v1611_v30, 0.0  ;;  %v2711_v39 = vmax.f32 %v2123_v31, 0.0 }
 0x114   : > { %3865 = vst.msk [vmem:[%s5799_s6 + $0x48] sm:$0xf] %vm3846_vm3, %v4706_v32  ;;  %3993 = vst.msk [vmem:[%s5799_s6 + $0x248] sm:$0xf] %vm3846_vm3, %v4834_v33  ;;  %v4707_v40 = vpack.c.bf16 %v2585_v34, %v2585_v34  ;;  %v4835_v41 = vpack.c.bf16 %v2713_v35, %v2713_v35 }
 0x115   : > { %3863 = vst.msk [vmem:[%s5799_s6 + $0x40] sm:$0xf] %vm3846_vm3, %v4704_v36  ;;  %3991 = vst.msk [vmem:[%s5799_s6 + $0x240] sm:$0xf] %vm3846_vm3, %v4832_v37  ;;  %v4705_v42 = vpack.c.bf16 %v2583_v38, %v2583_v38  ;;  %v4833_v43 = vpack.c.bf16 %v2711_v39, %v2711_v39  ;;  %v5109_v44 = vpop.f32.mrb[20].mxu0  ;;  %v5237_v45 = vpop.f32.mrb[20].mxu1 }
 0x116   : > { %3866 = vst.msk [vmem:[%s5799_s6 + $0x4c] sm:$0xf] %vm3846_vm3, %v4707_v40  ;;  %3994 = vst.msk [vmem:[%s5799_s6 + $0x24c] sm:$0xf] %vm3846_vm3, %v4835_v41  ;;  %v1632_v46 = vadd.f32 %v5109_v44, %v5780_v55  ;;  %v2144_v47 = vadd.f32 %v5237_v45, %v5780_v55  ;;  %v1623_v48 = vpop.f32.mrb[21].mxu0  ;;  %v2135_v49 = vpop.f32.mrb[21].mxu1 }
 0x117   : > { %3864 = vst.msk [vmem:[%s5799_s6 + $0x44] sm:$0xf] %vm3846_vm3, %v4705_v42  ;;  %3992 = vst.msk [vmem:[%s5799_s6 + $0x244] sm:$0xf] %vm3846_vm3, %v4833_v43  ;;  %v1624_v50 = vadd.f32 %v5780_v55, %v1623_v48  ;;  %v2136_v51 = vadd.f32 %v5780_v55, %v2135_v49  ;;  %v5110_v52 = vpop.f32.mrb[22].mxu0  ;;  %v5238_v53 = vpop.f32.mrb[22].mxu1 }
 0x118   : > { %v2588_v54 = vmax.f32 %v1632_v46, 0.0  ;;  %v2716_v56 = vmax.f32 %v2144_v47, 0.0  ;;  %v1635_v57 = vadd.f32 %v5110_v52, %v5780_v55  ;;  %v2147_v58 = vadd.f32 %v5238_v53, %v5780_v55  ;;  %v1626_v59 = vpop.f32.mrb[23].mxu0  ;;  %v2138_v60 = vpop.f32.mrb[23].mxu1 }
 0x119   : > { %v2586_v61 = vmax.f32 %v1624_v50, 0.0  ;;  %v2714_v62 = vmax.f32 %v2136_v51, 0.0  ;;  %v1627_v63 = vadd.f32 %v5780_v55, %v1626_v59  ;;  %v2139_v0 = vadd.f32 %v5780_v55, %v2138_v60 }
 0x11a   : > { %v4710_v1 = vpack.c.bf16 %v2588_v54, %v2588_v54  ;;  %v4838_v2 = vpack.c.bf16 %v2716_v56, %v2716_v56  ;;  %v2589_v3 = vmax.f32 %v1635_v57, 0.0  ;;  %v2717_v4 = vmax.f32 %v2147_v58, 0.0 }
 0x11b   : > { %v4708_v5 = vpack.c.bf16 %v2586_v61, %v2586_v61  ;;  %v4836_v6 = vpack.c.bf16 %v2714_v62, %v2714_v62  ;;  %v2587_v7 = vmax.f32 %v1627_v63, 0.0  ;;  %v2715_v8 = vmax.f32 %v2139_v0, 0.0 }
 0x11c   : > { %3869 = vst.msk [vmem:[%s5799_s6 + $0x58] sm:$0xf] %vm3846_vm3, %v4710_v1  ;;  %3997 = vst.msk [vmem:[%s5799_s6 + $0x258] sm:$0xf] %vm3846_vm3, %v4838_v2  ;;  %v4711_v9 = vpack.c.bf16 %v2589_v3, %v2589_v3  ;;  %v4839_v10 = vpack.c.bf16 %v2717_v4, %v2717_v4 }
 0x11d   : > { %3867 = vst.msk [vmem:[%s5799_s6 + $0x50] sm:$0xf] %vm3846_vm3, %v4708_v5  ;;  %3995 = vst.msk [vmem:[%s5799_s6 + $0x250] sm:$0xf] %vm3846_vm3, %v4836_v6  ;;  %v4709_v11 = vpack.c.bf16 %v2587_v7, %v2587_v7  ;;  %v4837_v12 = vpack.c.bf16 %v2715_v8, %v2715_v8  ;;  %v5113_v13 = vpop.f32.mrb[24].mxu0  ;;  %v5241_v14 = vpop.f32.mrb[24].mxu1 }
 0x11e   : > { %3870 = vst.msk [vmem:[%s5799_s6 + $0x5c] sm:$0xf] %vm3846_vm3, %v4711_v9  ;;  %3998 = vst.msk [vmem:[%s5799_s6 + $0x25c] sm:$0xf] %vm3846_vm3, %v4839_v10  ;;  %v1648_v15 = vadd.f32 %v5113_v13, %v5780_v55  ;;  %v2160_v16 = vadd.f32 %v5241_v14, %v5780_v55  ;;  %v1639_v17 = vpop.f32.mrb[25].mxu0  ;;  %v2151_v18 = vpop.f32.mrb[25].mxu1 }
 0x11f   : > { %3868 = vst.msk [vmem:[%s5799_s6 + $0x54] sm:$0xf] %vm3846_vm3, %v4709_v11  ;;  %3996 = vst.msk [vmem:[%s5799_s6 + $0x254] sm:$0xf] %vm3846_vm3, %v4837_v12  ;;  %v1640_v19 = vadd.f32 %v5780_v55, %v1639_v17  ;;  %v2152_v20 = vadd.f32 %v5780_v55, %v2151_v18  ;;  %v5114_v21 = vpop.f32.mrb[26].mxu0  ;;  %v5242_v22 = vpop.f32.mrb[26].mxu1 }
 0x120   : > { %v2592_v23 = vmax.f32 %v1648_v15, 0.0  ;;  %v2720_v24 = vmax.f32 %v2160_v16, 0.0  ;;  %v1651_v25 = vadd.f32 %v5114_v21, %v5780_v55  ;;  %v2163_v26 = vadd.f32 %v5242_v22, %v5780_v55  ;;  %v1642_v27 = vpop.f32.mrb[27].mxu0  ;;  %v2154_v28 = vpop.f32.mrb[27].mxu1 }
 0x121   : > { %v2590_v29 = vmax.f32 %v1640_v19, 0.0  ;;  %v2718_v30 = vmax.f32 %v2152_v20, 0.0  ;;  %v1643_v31 = vadd.f32 %v5780_v55, %v1642_v27  ;;  %v2155_v32 = vadd.f32 %v5780_v55, %v2154_v28 }
 0x122   : > { %v4714_v33 = vpack.c.bf16 %v2592_v23, %v2592_v23  ;;  %v4842_v34 = vpack.c.bf16 %v2720_v24, %v2720_v24  ;;  %v2593_v35 = vmax.f32 %v1651_v25, 0.0  ;;  %v2721_v36 = vmax.f32 %v2163_v26, 0.0 }
 0x123   : > { %v4712_v37 = vpack.c.bf16 %v2590_v29, %v2590_v29  ;;  %v4840_v38 = vpack.c.bf16 %v2718_v30, %v2718_v30  ;;  %v2591_v39 = vmax.f32 %v1643_v31, 0.0  ;;  %v2719_v40 = vmax.f32 %v2155_v32, 0.0 }
 0x124   : > { %3873 = vst.msk [vmem:[%s5799_s6 + $0x68] sm:$0xf] %vm3846_vm3, %v4714_v33  ;;  %4001 = vst.msk [vmem:[%s5799_s6 + $0x268] sm:$0xf] %vm3846_vm3, %v4842_v34  ;;  %v4715_v41 = vpack.c.bf16 %v2593_v35, %v2593_v35  ;;  %v4843_v42 = vpack.c.bf16 %v2721_v36, %v2721_v36 }
 0x125   : > { %3871 = vst.msk [vmem:[%s5799_s6 + $0x60] sm:$0xf] %vm3846_vm3, %v4712_v37  ;;  %3999 = vst.msk [vmem:[%s5799_s6 + $0x260] sm:$0xf] %vm3846_vm3, %v4840_v38  ;;  %v4713_v43 = vpack.c.bf16 %v2591_v39, %v2591_v39  ;;  %v4841_v44 = vpack.c.bf16 %v2719_v40, %v2719_v40  ;;  %v5117_v45 = vpop.f32.mrb[28].mxu0  ;;  %v5245_v46 = vpop.f32.mrb[28].mxu1 }
 0x126   : > { %3874 = vst.msk [vmem:[%s5799_s6 + $0x6c] sm:$0xf] %vm3846_vm3, %v4715_v41  ;;  %4002 = vst.msk [vmem:[%s5799_s6 + $0x26c] sm:$0xf] %vm3846_vm3, %v4843_v42  ;;  %v1664_v47 = vadd.f32 %v5117_v45, %v5780_v55  ;;  %v2176_v48 = vadd.f32 %v5245_v46, %v5780_v55  ;;  %v1655_v49 = vpop.f32.mrb[29].mxu0  ;;  %v2167_v50 = vpop.f32.mrb[29].mxu1 }
 0x127   : > { %3872 = vst.msk [vmem:[%s5799_s6 + $0x64] sm:$0xf] %vm3846_vm3, %v4713_v43  ;;  %4000 = vst.msk [vmem:[%s5799_s6 + $0x264] sm:$0xf] %vm3846_vm3, %v4841_v44  ;;  %v1656_v51 = vadd.f32 %v5780_v55, %v1655_v49  ;;  %v2168_v52 = vadd.f32 %v5780_v55, %v2167_v50  ;;  %v5118_v53 = vpop.f32.mrb[30].mxu0  ;;  %v5246_v54 = vpop.f32.mrb[30].mxu1 }
 0x128   : > { %v2596_v56 = vmax.f32 %v1664_v47, 0.0  ;;  %v2724_v57 = vmax.f32 %v2176_v48, 0.0  ;;  %v1667_v58 = vadd.f32 %v5118_v53, %v5780_v55  ;;  %v2179_v59 = vadd.f32 %v5246_v54, %v5780_v55  ;;  %v1658_v60 = vpop.f32.mrb[31].mxu0  ;;  %v2170_v61 = vpop.f32.mrb[31].mxu1 }
 0x129   : > { %v2594_v62 = vmax.f32 %v1656_v51, 0.0  ;;  %v2722_v63 = vmax.f32 %v2168_v52, 0.0  ;;  %v1659_v0 = vadd.f32 %v5780_v55, %v1658_v60  ;;  %v2171_v1 = vadd.f32 %v5780_v55, %v2170_v61 }
 0x12a   : > { %v4718_v2 = vpack.c.bf16 %v2596_v56, %v2596_v56  ;;  %v4846_v3 = vpack.c.bf16 %v2724_v57, %v2724_v57  ;;  %v2597_v4 = vmax.f32 %v1667_v58, 0.0  ;;  %v2725_v5 = vmax.f32 %v2179_v59, 0.0 }
 0x12b   : > { %v4716_v6 = vpack.c.bf16 %v2594_v62, %v2594_v62  ;;  %v4844_v7 = vpack.c.bf16 %v2722_v63, %v2722_v63  ;;  %v2595_v8 = vmax.f32 %v1659_v0, 0.0  ;;  %v2723_v9 = vmax.f32 %v2171_v1, 0.0 }
 0x12c   : > { %3877 = vst.msk [vmem:[%s5799_s6 + $0x78] sm:$0xf] %vm3846_vm3, %v4718_v2  ;;  %4005 = vst.msk [vmem:[%s5799_s6 + $0x278] sm:$0xf] %vm3846_vm3, %v4846_v3  ;;  %v4719_v10 = vpack.c.bf16 %v2597_v4, %v2597_v4  ;;  %v4847_v11 = vpack.c.bf16 %v2725_v5, %v2725_v5 }
 0x12d   : > { %3875 = vst.msk [vmem:[%s5799_s6 + $0x70] sm:$0xf] %vm3846_vm3, %v4716_v6  ;;  %4003 = vst.msk [vmem:[%s5799_s6 + $0x270] sm:$0xf] %vm3846_vm3, %v4844_v7  ;;  %v4717_v12 = vpack.c.bf16 %v2595_v8, %v2595_v8  ;;  %v4845_v13 = vpack.c.bf16 %v2723_v9, %v2723_v9  ;;  %v5121_v14 = vpop.f32.mrb[32].mxu0  ;;  %v5249_v15 = vpop.f32.mrb[32].mxu1 }
 0x12e   : > { %3878 = vst.msk [vmem:[%s5799_s6 + $0x7c] sm:$0xf] %vm3846_vm3, %v4719_v10  ;;  %4006 = vst.msk [vmem:[%s5799_s6 + $0x27c] sm:$0xf] %vm3846_vm3, %v4847_v11  ;;  %v1680_v16 = vadd.f32 %v5121_v14, %v5780_v55  ;;  %v2192_v17 = vadd.f32 %v5249_v15, %v5780_v55  ;;  %v1671_v18 = vpop.f32.mrb[33].mxu0  ;;  %v2183_v19 = vpop.f32.mrb[33].mxu1 }
 0x12f   : > { %3876 = vst.msk [vmem:[%s5799_s6 + $0x74] sm:$0xf] %vm3846_vm3, %v4717_v12  ;;  %4004 = vst.msk [vmem:[%s5799_s6 + $0x274] sm:$0xf] %vm3846_vm3, %v4845_v13  ;;  %v1672_v20 = vadd.f32 %v5780_v55, %v1671_v18  ;;  %v2184_v21 = vadd.f32 %v5780_v55, %v2183_v19  ;;  %v5122_v22 = vpop.f32.mrb[34].mxu0  ;;  %v5250_v23 = vpop.f32.mrb[34].mxu1 }
 0x130   : > { %v2600_v24 = vmax.f32 %v1680_v16, 0.0  ;;  %v2728_v25 = vmax.f32 %v2192_v17, 0.0  ;;  %v1683_v26 = vadd.f32 %v5122_v22, %v5780_v55  ;;  %v2195_v27 = vadd.f32 %v5250_v23, %v5780_v55  ;;  %v1674_v28 = vpop.f32.mrb[35].mxu0  ;;  %v2186_v29 = vpop.f32.mrb[35].mxu1 }
 0x131   : > { %v2598_v30 = vmax.f32 %v1672_v20, 0.0  ;;  %v2726_v31 = vmax.f32 %v2184_v21, 0.0  ;;  %v1675_v32 = vadd.f32 %v5780_v55, %v1674_v28  ;;  %v2187_v33 = vadd.f32 %v5780_v55, %v2186_v29 }
 0x132   : > { %v4722_v34 = vpack.c.bf16 %v2600_v24, %v2600_v24  ;;  %v4850_v35 = vpack.c.bf16 %v2728_v25, %v2728_v25  ;;  %v2601_v36 = vmax.f32 %v1683_v26, 0.0  ;;  %v2729_v37 = vmax.f32 %v2195_v27, 0.0 }
 0x133   : > { %v4720_v38 = vpack.c.bf16 %v2598_v30, %v2598_v30  ;;  %v4848_v39 = vpack.c.bf16 %v2726_v31, %v2726_v31  ;;  %v2599_v40 = vmax.f32 %v1675_v32, 0.0  ;;  %v2727_v41 = vmax.f32 %v2187_v33, 0.0 }
 0x134   : > { %3881 = vst.msk [vmem:[%s5799_s6 + $0x88] sm:$0xf] %vm3846_vm3, %v4722_v34  ;;  %4009 = vst.msk [vmem:[%s5799_s6 + $0x288] sm:$0xf] %vm3846_vm3, %v4850_v35  ;;  %v4723_v42 = vpack.c.bf16 %v2601_v36, %v2601_v36  ;;  %v4851_v43 = vpack.c.bf16 %v2729_v37, %v2729_v37 }
 0x135   : > { %3879 = vst.msk [vmem:[%s5799_s6 + $0x80] sm:$0xf] %vm3846_vm3, %v4720_v38  ;;  %4007 = vst.msk [vmem:[%s5799_s6 + $0x280] sm:$0xf] %vm3846_vm3, %v4848_v39  ;;  %v4721_v44 = vpack.c.bf16 %v2599_v40, %v2599_v40  ;;  %v4849_v45 = vpack.c.bf16 %v2727_v41, %v2727_v41  ;;  %v5125_v46 = vpop.f32.mrb[36].mxu0  ;;  %v5253_v47 = vpop.f32.mrb[36].mxu1 }
 0x136   : > { %3882 = vst.msk [vmem:[%s5799_s6 + $0x8c] sm:$0xf] %vm3846_vm3, %v4723_v42  ;;  %4010 = vst.msk [vmem:[%s5799_s6 + $0x28c] sm:$0xf] %vm3846_vm3, %v4851_v43  ;;  %v1696_v48 = vadd.f32 %v5125_v46, %v5780_v55  ;;  %v2208_v49 = vadd.f32 %v5253_v47, %v5780_v55  ;;  %v1687_v50 = vpop.f32.mrb[37].mxu0  ;;  %v2199_v51 = vpop.f32.mrb[37].mxu1 }
 0x137   : > { %3880 = vst.msk [vmem:[%s5799_s6 + $0x84] sm:$0xf] %vm3846_vm3, %v4721_v44  ;;  %4008 = vst.msk [vmem:[%s5799_s6 + $0x284] sm:$0xf] %vm3846_vm3, %v4849_v45  ;;  %v1688_v52 = vadd.f32 %v5780_v55, %v1687_v50  ;;  %v2200_v53 = vadd.f32 %v5780_v55, %v2199_v51  ;;  %v5126_v54 = vpop.f32.mrb[38].mxu0  ;;  %v5254_v56 = vpop.f32.mrb[38].mxu1 }
 0x138   : > { %v2604_v57 = vmax.f32 %v1696_v48, 0.0  ;;  %v2732_v58 = vmax.f32 %v2208_v49, 0.0  ;;  %v1699_v59 = vadd.f32 %v5126_v54, %v5780_v55  ;;  %v2211_v60 = vadd.f32 %v5254_v56, %v5780_v55  ;;  %v1690_v61 = vpop.f32.mrb[39].mxu0  ;;  %v2202_v62 = vpop.f32.mrb[39].mxu1 }
 0x139   : > { %v2602_v63 = vmax.f32 %v1688_v52, 0.0  ;;  %v2730_v0 = vmax.f32 %v2200_v53, 0.0  ;;  %v1691_v1 = vadd.f32 %v5780_v55, %v1690_v61  ;;  %v2203_v2 = vadd.f32 %v5780_v55, %v2202_v62 }
 0x13a   : > { %v4726_v3 = vpack.c.bf16 %v2604_v57, %v2604_v57  ;;  %v4854_v4 = vpack.c.bf16 %v2732_v58, %v2732_v58  ;;  %v2605_v5 = vmax.f32 %v1699_v59, 0.0  ;;  %v2733_v6 = vmax.f32 %v2211_v60, 0.0 }
 0x13b   : > { %v4724_v7 = vpack.c.bf16 %v2602_v63, %v2602_v63  ;;  %v4852_v8 = vpack.c.bf16 %v2730_v0, %v2730_v0  ;;  %v2603_v9 = vmax.f32 %v1691_v1, 0.0  ;;  %v2731_v10 = vmax.f32 %v2203_v2, 0.0 }
 0x13c   : > { %3885 = vst.msk [vmem:[%s5799_s6 + $0x98] sm:$0xf] %vm3846_vm3, %v4726_v3  ;;  %4013 = vst.msk [vmem:[%s5799_s6 + $0x298] sm:$0xf] %vm3846_vm3, %v4854_v4  ;;  %v4727_v11 = vpack.c.bf16 %v2605_v5, %v2605_v5  ;;  %v4855_v12 = vpack.c.bf16 %v2733_v6, %v2733_v6 }
 0x13d   : > { %3883 = vst.msk [vmem:[%s5799_s6 + $0x90] sm:$0xf] %vm3846_vm3, %v4724_v7  ;;  %4011 = vst.msk [vmem:[%s5799_s6 + $0x290] sm:$0xf] %vm3846_vm3, %v4852_v8  ;;  %v4725_v13 = vpack.c.bf16 %v2603_v9, %v2603_v9  ;;  %v4853_v14 = vpack.c.bf16 %v2731_v10, %v2731_v10  ;;  %v5129_v15 = vpop.f32.mrb[40].mxu0  ;;  %v5257_v16 = vpop.f32.mrb[40].mxu1 }
 0x13e   : > { %3886 = vst.msk [vmem:[%s5799_s6 + $0x9c] sm:$0xf] %vm3846_vm3, %v4727_v11  ;;  %4014 = vst.msk [vmem:[%s5799_s6 + $0x29c] sm:$0xf] %vm3846_vm3, %v4855_v12  ;;  %v1712_v17 = vadd.f32 %v5129_v15, %v5780_v55  ;;  %v2224_v18 = vadd.f32 %v5257_v16, %v5780_v55  ;;  %v1703_v19 = vpop.f32.mrb[41].mxu0  ;;  %v2215_v20 = vpop.f32.mrb[41].mxu1 }
 0x13f   : > { %3884 = vst.msk [vmem:[%s5799_s6 + $0x94] sm:$0xf] %vm3846_vm3, %v4725_v13  ;;  %4012 = vst.msk [vmem:[%s5799_s6 + $0x294] sm:$0xf] %vm3846_vm3, %v4853_v14  ;;  %v1704_v21 = vadd.f32 %v5780_v55, %v1703_v19  ;;  %v2216_v22 = vadd.f32 %v5780_v55, %v2215_v20  ;;  %v5130_v23 = vpop.f32.mrb[42].mxu0  ;;  %v5258_v24 = vpop.f32.mrb[42].mxu1 }
 0x140   : > { %v2608_v25 = vmax.f32 %v1712_v17, 0.0  ;;  %v2736_v26 = vmax.f32 %v2224_v18, 0.0  ;;  %v1715_v27 = vadd.f32 %v5130_v23, %v5780_v55  ;;  %v2227_v28 = vadd.f32 %v5258_v24, %v5780_v55  ;;  %v1706_v29 = vpop.f32.mrb[43].mxu0  ;;  %v2218_v30 = vpop.f32.mrb[43].mxu1  ;;  %v6114_v17 = vld [vmem:[%s6610_s2] ss:$0 sm:$0xff] }
 0x141   : > { %v2606_v31 = vmax.f32 %v1704_v21, 0.0  ;;  %v2734_v32 = vmax.f32 %v2216_v22, 0.0  ;;  %v1707_v33 = vadd.f32 %v5780_v55, %v1706_v29  ;;  %v2219_v34 = vadd.f32 %v5780_v55, %v2218_v30 }
 0x142   : > { %v4730_v35 = vpack.c.bf16 %v2608_v25, %v2608_v25  ;;  %v4858_v36 = vpack.c.bf16 %v2736_v26, %v2736_v26  ;;  %v2609_v37 = vmax.f32 %v1715_v27, 0.0  ;;  %v2737_v38 = vmax.f32 %v2227_v28, 0.0 }
 0x143   : > { %v4728_v39 = vpack.c.bf16 %v2606_v31, %v2606_v31  ;;  %v4856_v40 = vpack.c.bf16 %v2734_v32, %v2734_v32  ;;  %v2607_v41 = vmax.f32 %v1707_v33, 0.0  ;;  %v2735_v42 = vmax.f32 %v2219_v34, 0.0 }
 0x144   : > { %3889 = vst.msk [vmem:[%s5799_s6 + $0xa8] sm:$0xf] %vm3846_vm3, %v4730_v35  ;;  %4017 = vst.msk [vmem:[%s5799_s6 + $0x2a8] sm:$0xf] %vm3846_vm3, %v4858_v36  ;;  %v4731_v43 = vpack.c.bf16 %v2609_v37, %v2609_v37  ;;  %v4859_v44 = vpack.c.bf16 %v2737_v38, %v2737_v38 }
 0x145   : > { %3887 = vst.msk [vmem:[%s5799_s6 + $0xa0] sm:$0xf] %vm3846_vm3, %v4728_v39  ;;  %4015 = vst.msk [vmem:[%s5799_s6 + $0x2a0] sm:$0xf] %vm3846_vm3, %v4856_v40  ;;  %v4729_v45 = vpack.c.bf16 %v2607_v41, %v2607_v41  ;;  %v4857_v46 = vpack.c.bf16 %v2735_v42, %v2735_v42  ;;  %v5133_v47 = vpop.f32.mrb[44].mxu0  ;;  %v5261_v48 = vpop.f32.mrb[44].mxu1 }
 0x146   : > { %3890 = vst.msk [vmem:[%s5799_s6 + $0xac] sm:$0xf] %vm3846_vm3, %v4731_v43  ;;  %4018 = vst.msk [vmem:[%s5799_s6 + $0x2ac] sm:$0xf] %vm3846_vm3, %v4859_v44  ;;  %v1728_v49 = vadd.f32 %v5133_v47, %v5780_v55  ;;  %v2240_v50 = vadd.f32 %v5261_v48, %v5780_v55  ;;  %v1719_v51 = vpop.f32.mrb[45].mxu0  ;;  %v2231_v52 = vpop.f32.mrb[45].mxu1 }
 0x147   : > { %3888 = vst.msk [vmem:[%s5799_s6 + $0xa4] sm:$0xf] %vm3846_vm3, %v4729_v45  ;;  %4016 = vst.msk [vmem:[%s5799_s6 + $0x2a4] sm:$0xf] %vm3846_vm3, %v4857_v46  ;;  %v1720_v53 = vadd.f32 %v5780_v55, %v1719_v51  ;;  %v2232_v54 = vadd.f32 %v5780_v55, %v2231_v52  ;;  %v5134_v56 = vpop.f32.mrb[46].mxu0  ;;  %v5262_v57 = vpop.f32.mrb[46].mxu1 }
 0x148   : > { %v2612_v58 = vmax.f32 %v1728_v49, 0.0  ;;  %v2740_v59 = vmax.f32 %v2240_v50, 0.0  ;;  %v1731_v60 = vadd.f32 %v5134_v56, %v5780_v55  ;;  %v2243_v61 = vadd.f32 %v5262_v57, %v5780_v55  ;;  %v1722_v62 = vpop.f32.mrb[47].mxu0  ;;  %v2234_v63 = vpop.f32.mrb[47].mxu1 }
 0x149   : > { %v2610_v0 = vmax.f32 %v1720_v53, 0.0  ;;  %v2738_v1 = vmax.f32 %v2232_v54, 0.0  ;;  %v1723_v2 = vadd.f32 %v5780_v55, %v1722_v62  ;;  %v2235_v3 = vadd.f32 %v5780_v55, %v2234_v63 }
 0x14a   : > { %v4734_v4 = vpack.c.bf16 %v2612_v58, %v2612_v58  ;;  %v4862_v5 = vpack.c.bf16 %v2740_v59, %v2740_v59  ;;  %v2613_v6 = vmax.f32 %v1731_v60, 0.0  ;;  %v2741_v7 = vmax.f32 %v2243_v61, 0.0 }
 0x14b   : > { %v4732_v8 = vpack.c.bf16 %v2610_v0, %v2610_v0  ;;  %v4860_v9 = vpack.c.bf16 %v2738_v1, %v2738_v1  ;;  %v2611_v10 = vmax.f32 %v1723_v2, 0.0  ;;  %v2739_v11 = vmax.f32 %v2235_v3, 0.0 }
 0x14c   : > { %3893 = vst.msk [vmem:[%s5799_s6 + $0xb8] sm:$0xf] %vm3846_vm3, %v4734_v4  ;;  %4021 = vst.msk [vmem:[%s5799_s6 + $0x2b8] sm:$0xf] %vm3846_vm3, %v4862_v5  ;;  %v4735_v12 = vpack.c.bf16 %v2613_v6, %v2613_v6  ;;  %v4863_v13 = vpack.c.bf16 %v2741_v7, %v2741_v7 }
 0x14d   : > { %3891 = vst.msk [vmem:[%s5799_s6 + $0xb0] sm:$0xf] %vm3846_vm3, %v4732_v8  ;;  %4019 = vst.msk [vmem:[%s5799_s6 + $0x2b0] sm:$0xf] %vm3846_vm3, %v4860_v9  ;;  %v4733_v55 = vpack.c.bf16 %v2611_v10, %v2611_v10  ;;  %v4861_v14 = vpack.c.bf16 %v2739_v11, %v2739_v11  ;;  %v5137_v15 = vpop.f32.mrb[48].mxu0  ;;  %v5265_v16 = vpop.f32.mrb[48].mxu1 }
 0x14e   : > { %3894 = vst.msk [vmem:[%s5799_s6 + $0xbc] sm:$0xf] %vm3846_vm3, %v4735_v12  ;;  %4022 = vst.msk [vmem:[%s5799_s6 + $0x2bc] sm:$0xf] %vm3846_vm3, %v4863_v13  ;;  %v1744_v18 = vadd.f32 %v6114_v17, %v5137_v15  ;;  %v2256_v19 = vadd.f32 %v6114_v17, %v5265_v16  ;;  %v1735_v20 = vpop.f32.mrb[49].mxu0  ;;  %v2247_v21 = vpop.f32.mrb[49].mxu1 }
 0x14f   : > { %3892 = vst.msk [vmem:[%s5799_s6 + $0xb4] sm:$0xf] %vm3846_vm3, %v4733_v55  ;;  %4020 = vst.msk [vmem:[%s5799_s6 + $0x2b4] sm:$0xf] %vm3846_vm3, %v4861_v14  ;;  %v1736_v22 = vadd.f32 %v6114_v17, %v1735_v20  ;;  %v2248_v23 = vadd.f32 %v6114_v17, %v2247_v21  ;;  %v5138_v24 = vpop.f32.mrb[50].mxu0  ;;  %v5266_v25 = vpop.f32.mrb[50].mxu1 }
 0x150   : > { %v2616_v26 = vmax.f32 %v1744_v18, 0.0  ;;  %v2744_v27 = vmax.f32 %v2256_v19, 0.0  ;;  %v1747_v28 = vadd.f32 %v6114_v17, %v5138_v24  ;;  %v2259_v29 = vadd.f32 %v6114_v17, %v5266_v25  ;;  %v1738_v30 = vpop.f32.mrb[51].mxu0  ;;  %v2250_v31 = vpop.f32.mrb[51].mxu1 }
 0x151   : > { %v2614_v32 = vmax.f32 %v1736_v22, 0.0  ;;  %v2742_v33 = vmax.f32 %v2248_v23, 0.0  ;;  %v1739_v34 = vadd.f32 %v6114_v17, %v1738_v30  ;;  %v2251_v35 = vadd.f32 %v6114_v17, %v2250_v31 }
 0x152   : > { %v4738_v36 = vpack.c.bf16 %v2616_v26, %v2616_v26  ;;  %v4866_v37 = vpack.c.bf16 %v2744_v27, %v2744_v27  ;;  %v2617_v38 = vmax.f32 %v1747_v28, 0.0  ;;  %v2745_v39 = vmax.f32 %v2259_v29, 0.0 }
 0x153   : > { %v4736_v40 = vpack.c.bf16 %v2614_v32, %v2614_v32  ;;  %v4864_v41 = vpack.c.bf16 %v2742_v33, %v2742_v33  ;;  %v2615_v42 = vmax.f32 %v1739_v34, 0.0  ;;  %v2743_v43 = vmax.f32 %v2251_v35, 0.0 }
 0x154   : > { %3897 = vst.msk [vmem:[%s5799_s6 + $0xc8] sm:$0xf] %vm3846_vm3, %v4738_v36  ;;  %4025 = vst.msk [vmem:[%s5799_s6 + $0x2c8] sm:$0xf] %vm3846_vm3, %v4866_v37  ;;  %v4739_v44 = vpack.c.bf16 %v2617_v38, %v2617_v38  ;;  %v4867_v45 = vpack.c.bf16 %v2745_v39, %v2745_v39 }
 0x155   : > { %3895 = vst.msk [vmem:[%s5799_s6 + $0xc0] sm:$0xf] %vm3846_vm3, %v4736_v40  ;;  %4023 = vst.msk [vmem:[%s5799_s6 + $0x2c0] sm:$0xf] %vm3846_vm3, %v4864_v41  ;;  %v4737_v46 = vpack.c.bf16 %v2615_v42, %v2615_v42  ;;  %v4865_v47 = vpack.c.bf16 %v2743_v43, %v2743_v43  ;;  %v5141_v48 = vpop.f32.mrb[52].mxu0  ;;  %v5269_v49 = vpop.f32.mrb[52].mxu1 }
 0x156   : > { %3898 = vst.msk [vmem:[%s5799_s6 + $0xcc] sm:$0xf] %vm3846_vm3, %v4739_v44  ;;  %4026 = vst.msk [vmem:[%s5799_s6 + $0x2cc] sm:$0xf] %vm3846_vm3, %v4867_v45  ;;  %v1760_v50 = vadd.f32 %v6114_v17, %v5141_v48  ;;  %v2272_v51 = vadd.f32 %v6114_v17, %v5269_v49  ;;  %v1751_v52 = vpop.f32.mrb[53].mxu0  ;;  %v2263_v53 = vpop.f32.mrb[53].mxu1 }
 0x157   : > { %3896 = vst.msk [vmem:[%s5799_s6 + $0xc4] sm:$0xf] %vm3846_vm3, %v4737_v46  ;;  %4024 = vst.msk [vmem:[%s5799_s6 + $0x2c4] sm:$0xf] %vm3846_vm3, %v4865_v47  ;;  %v1752_v54 = vadd.f32 %v6114_v17, %v1751_v52  ;;  %v2264_v56 = vadd.f32 %v6114_v17, %v2263_v53  ;;  %v5142_v57 = vpop.f32.mrb[54].mxu0  ;;  %v5270_v58 = vpop.f32.mrb[54].mxu1 }
 0x158   : > { %v2620_v59 = vmax.f32 %v1760_v50, 0.0  ;;  %v2748_v60 = vmax.f32 %v2272_v51, 0.0  ;;  %v1763_v61 = vadd.f32 %v6114_v17, %v5142_v57  ;;  %v2275_v62 = vadd.f32 %v6114_v17, %v5270_v58  ;;  %v1754_v63 = vpop.f32.mrb[55].mxu0  ;;  %v2266_v0 = vpop.f32.mrb[55].mxu1 }
 0x159   : > { %v2618_v1 = vmax.f32 %v1752_v54, 0.0  ;;  %v2746_v2 = vmax.f32 %v2264_v56, 0.0  ;;  %v1755_v3 = vadd.f32 %v6114_v17, %v1754_v63  ;;  %v2267_v4 = vadd.f32 %v6114_v17, %v2266_v0 }
 0x15a   : > { %v4742_v5 = vpack.c.bf16 %v2620_v59, %v2620_v59  ;;  %v4870_v6 = vpack.c.bf16 %v2748_v60, %v2748_v60  ;;  %v2621_v7 = vmax.f32 %v1763_v61, 0.0  ;;  %v2749_v8 = vmax.f32 %v2275_v62, 0.0 }
 0x15b   : > { %v4740_v9 = vpack.c.bf16 %v2618_v1, %v2618_v1  ;;  %v4868_v10 = vpack.c.bf16 %v2746_v2, %v2746_v2  ;;  %v2619_v11 = vmax.f32 %v1755_v3, 0.0  ;;  %v2747_v12 = vmax.f32 %v2267_v4, 0.0 }
 0x15c   : > { %3901 = vst.msk [vmem:[%s5799_s6 + $0xd8] sm:$0xf] %vm3846_vm3, %v4742_v5  ;;  %4029 = vst.msk [vmem:[%s5799_s6 + $0x2d8] sm:$0xf] %vm3846_vm3, %v4870_v6  ;;  %v4743_v13 = vpack.c.bf16 %v2621_v7, %v2621_v7  ;;  %v4871_v55 = vpack.c.bf16 %v2749_v8, %v2749_v8 }
 0x15d   : > { %3899 = vst.msk [vmem:[%s5799_s6 + $0xd0] sm:$0xf] %vm3846_vm3, %v4740_v9  ;;  %4027 = vst.msk [vmem:[%s5799_s6 + $0x2d0] sm:$0xf] %vm3846_vm3, %v4868_v10  ;;  %v4741_v14 = vpack.c.bf16 %v2619_v11, %v2619_v11  ;;  %v4869_v15 = vpack.c.bf16 %v2747_v12, %v2747_v12  ;;  %v5145_v16 = vpop.f32.mrb[56].mxu0  ;;  %v5273_v18 = vpop.f32.mrb[56].mxu1 }
 0x15e   : > { %3902 = vst.msk [vmem:[%s5799_s6 + $0xdc] sm:$0xf] %vm3846_vm3, %v4743_v13  ;;  %4030 = vst.msk [vmem:[%s5799_s6 + $0x2dc] sm:$0xf] %vm3846_vm3, %v4871_v55  ;;  %v1776_v19 = vadd.f32 %v6114_v17, %v5145_v16  ;;  %v2288_v20 = vadd.f32 %v6114_v17, %v5273_v18  ;;  %v1767_v21 = vpop.f32.mrb[57].mxu0  ;;  %v2279_v22 = vpop.f32.mrb[57].mxu1 }
 0x15f   : > { %3900 = vst.msk [vmem:[%s5799_s6 + $0xd4] sm:$0xf] %vm3846_vm3, %v4741_v14  ;;  %4028 = vst.msk [vmem:[%s5799_s6 + $0x2d4] sm:$0xf] %vm3846_vm3, %v4869_v15  ;;  %v1768_v23 = vadd.f32 %v6114_v17, %v1767_v21  ;;  %v2280_v24 = vadd.f32 %v6114_v17, %v2279_v22  ;;  %v5146_v25 = vpop.f32.mrb[58].mxu0  ;;  %v5274_v26 = vpop.f32.mrb[58].mxu1 }
 0x160   : > { %v2624_v27 = vmax.f32 %v1776_v19, 0.0  ;;  %v2752_v28 = vmax.f32 %v2288_v20, 0.0  ;;  %v1779_v29 = vadd.f32 %v6114_v17, %v5146_v25  ;;  %v2291_v30 = vadd.f32 %v6114_v17, %v5274_v26  ;;  %v1770_v31 = vpop.f32.mrb[59].mxu0  ;;  %v2282_v32 = vpop.f32.mrb[59].mxu1 }
 0x161   : > { %v2622_v33 = vmax.f32 %v1768_v23, 0.0  ;;  %v2750_v34 = vmax.f32 %v2280_v24, 0.0  ;;  %v1771_v35 = vadd.f32 %v6114_v17, %v1770_v31  ;;  %v2283_v36 = vadd.f32 %v6114_v17, %v2282_v32 }
 0x162   : > { %v4746_v37 = vpack.c.bf16 %v2624_v27, %v2624_v27  ;;  %v4874_v38 = vpack.c.bf16 %v2752_v28, %v2752_v28  ;;  %v2625_v39 = vmax.f32 %v1779_v29, 0.0  ;;  %v2753_v40 = vmax.f32 %v2291_v30, 0.0 }
 0x163   : > { %v4744_v41 = vpack.c.bf16 %v2622_v33, %v2622_v33  ;;  %v4872_v42 = vpack.c.bf16 %v2750_v34, %v2750_v34  ;;  %v2623_v43 = vmax.f32 %v1771_v35, 0.0  ;;  %v2751_v44 = vmax.f32 %v2283_v36, 0.0 }
 0x164   : > { %3905 = vst.msk [vmem:[%s5799_s6 + $0xe8] sm:$0xf] %vm3846_vm3, %v4746_v37  ;;  %4033 = vst.msk [vmem:[%s5799_s6 + $0x2e8] sm:$0xf] %vm3846_vm3, %v4874_v38  ;;  %v4747_v45 = vpack.c.bf16 %v2625_v39, %v2625_v39  ;;  %v4875_v46 = vpack.c.bf16 %v2753_v40, %v2753_v40 }
 0x165   : > { %3903 = vst.msk [vmem:[%s5799_s6 + $0xe0] sm:$0xf] %vm3846_vm3, %v4744_v41  ;;  %4031 = vst.msk [vmem:[%s5799_s6 + $0x2e0] sm:$0xf] %vm3846_vm3, %v4872_v42  ;;  %v4745_v47 = vpack.c.bf16 %v2623_v43, %v2623_v43  ;;  %v4873_v48 = vpack.c.bf16 %v2751_v44, %v2751_v44  ;;  %v5149_v49 = vpop.f32.mrb[60].mxu0  ;;  %v5277_v50 = vpop.f32.mrb[60].mxu1 }
 0x166   : > { %3906 = vst.msk [vmem:[%s5799_s6 + $0xec] sm:$0xf] %vm3846_vm3, %v4747_v45  ;;  %4034 = vst.msk [vmem:[%s5799_s6 + $0x2ec] sm:$0xf] %vm3846_vm3, %v4875_v46  ;;  %v1792_v51 = vadd.f32 %v6114_v17, %v5149_v49  ;;  %v2304_v52 = vadd.f32 %v6114_v17, %v5277_v50  ;;  %v1783_v53 = vpop.f32.mrb[61].mxu0  ;;  %v2295_v54 = vpop.f32.mrb[61].mxu1 }
 0x167   : > { %3904 = vst.msk [vmem:[%s5799_s6 + $0xe4] sm:$0xf] %vm3846_vm3, %v4745_v47  ;;  %4032 = vst.msk [vmem:[%s5799_s6 + $0x2e4] sm:$0xf] %vm3846_vm3, %v4873_v48  ;;  %v1784_v56 = vadd.f32 %v6114_v17, %v1783_v53  ;;  %v2296_v57 = vadd.f32 %v6114_v17, %v2295_v54  ;;  %v5150_v58 = vpop.f32.mrb[62].mxu0  ;;  %v5278_v59 = vpop.f32.mrb[62].mxu1 }
 0x168   : > { %v2628_v60 = vmax.f32 %v1792_v51, 0.0  ;;  %v2756_v61 = vmax.f32 %v2304_v52, 0.0  ;;  %v1795_v62 = vadd.f32 %v6114_v17, %v5150_v58  ;;  %v2307_v63 = vadd.f32 %v6114_v17, %v5278_v59  ;;  %v1786_v0 = vpop.f32.mrb[63].mxu0  ;;  %v2298_v1 = vpop.f32.mrb[63].mxu1 }
 0x169   : > { %v2626_v2 = vmax.f32 %v1784_v56, 0.0  ;;  %v2754_v3 = vmax.f32 %v2296_v57, 0.0  ;;  %v1787_v4 = vadd.f32 %v6114_v17, %v1786_v0  ;;  %v2299_v5 = vadd.f32 %v6114_v17, %v2298_v1 }
 0x16a   : > { %v4750_v6 = vpack.c.bf16 %v2628_v60, %v2628_v60  ;;  %v4878_v7 = vpack.c.bf16 %v2756_v61, %v2756_v61  ;;  %v2629_v8 = vmax.f32 %v1795_v62, 0.0  ;;  %v2757_v9 = vmax.f32 %v2307_v63, 0.0 }
 0x16b   : > { %v4748_v10 = vpack.c.bf16 %v2626_v2, %v2626_v2  ;;  %v4876_v11 = vpack.c.bf16 %v2754_v3, %v2754_v3  ;;  %v2627_v12 = vmax.f32 %v1787_v4, 0.0  ;;  %v2755_v13 = vmax.f32 %v2299_v5, 0.0 }
 0x16c   : > { %3909 = vst.msk [vmem:[%s5799_s6 + $0xf8] sm:$0xf] %vm3846_vm3, %v4750_v6  ;;  %4037 = vst.msk [vmem:[%s5799_s6 + $0x2f8] sm:$0xf] %vm3846_vm3, %v4878_v7  ;;  %v4751_v55 = vpack.c.bf16 %v2629_v8, %v2629_v8  ;;  %v4879_v14 = vpack.c.bf16 %v2757_v9, %v2757_v9 }
 0x16d   : > { %3907 = vst.msk [vmem:[%s5799_s6 + $0xf0] sm:$0xf] %vm3846_vm3, %v4748_v10  ;;  %4035 = vst.msk [vmem:[%s5799_s6 + $0x2f0] sm:$0xf] %vm3846_vm3, %v4876_v11  ;;  %v4749_v15 = vpack.c.bf16 %v2627_v12, %v2627_v12  ;;  %v4877_v16 = vpack.c.bf16 %v2755_v13, %v2755_v13  ;;  %v5153_v18 = vpop.f32.mrb[64].mxu0  ;;  %v5281_v19 = vpop.f32.mrb[64].mxu1 }
 0x16e   : > { %3910 = vst.msk [vmem:[%s5799_s6 + $0xfc] sm:$0xf] %vm3846_vm3, %v4751_v55  ;;  %4038 = vst.msk [vmem:[%s5799_s6 + $0x2fc] sm:$0xf] %vm3846_vm3, %v4879_v14  ;;  %v1808_v20 = vadd.f32 %v6114_v17, %v5153_v18  ;;  %v2320_v21 = vadd.f32 %v6114_v17, %v5281_v19  ;;  %v1799_v22 = vpop.f32.mrb[65].mxu0  ;;  %v2311_v23 = vpop.f32.mrb[65].mxu1 }
 0x16f   : > { %3908 = vst.msk [vmem:[%s5799_s6 + $0xf4] sm:$0xf] %vm3846_vm3, %v4749_v15  ;;  %4036 = vst.msk [vmem:[%s5799_s6 + $0x2f4] sm:$0xf] %vm3846_vm3, %v4877_v16  ;;  %v1800_v24 = vadd.f32 %v6114_v17, %v1799_v22  ;;  %v2312_v25 = vadd.f32 %v6114_v17, %v2311_v23  ;;  %v5154_v26 = vpop.f32.mrb[66].mxu0  ;;  %v5282_v27 = vpop.f32.mrb[66].mxu1 }
 0x170   : > { %v2632_v28 = vmax.f32 %v1808_v20, 0.0  ;;  %v2760_v29 = vmax.f32 %v2320_v21, 0.0  ;;  %v1811_v30 = vadd.f32 %v6114_v17, %v5154_v26  ;;  %v2323_v31 = vadd.f32 %v6114_v17, %v5282_v27  ;;  %v1802_v32 = vpop.f32.mrb[67].mxu0  ;;  %v2314_v33 = vpop.f32.mrb[67].mxu1 }
 0x171   : > { %v2630_v34 = vmax.f32 %v1800_v24, 0.0  ;;  %v2758_v35 = vmax.f32 %v2312_v25, 0.0  ;;  %v1803_v36 = vadd.f32 %v6114_v17, %v1802_v32  ;;  %v2315_v37 = vadd.f32 %v6114_v17, %v2314_v33 }
 0x172   : > { %v4754_v38 = vpack.c.bf16 %v2632_v28, %v2632_v28  ;;  %v4882_v39 = vpack.c.bf16 %v2760_v29, %v2760_v29  ;;  %v2633_v40 = vmax.f32 %v1811_v30, 0.0  ;;  %v2761_v41 = vmax.f32 %v2323_v31, 0.0 }
 0x173   : > { %v4752_v42 = vpack.c.bf16 %v2630_v34, %v2630_v34  ;;  %v4880_v43 = vpack.c.bf16 %v2758_v35, %v2758_v35  ;;  %v2631_v44 = vmax.f32 %v1803_v36, 0.0  ;;  %v2759_v45 = vmax.f32 %v2315_v37, 0.0 }
 0x174   : > { %3913 = vst.msk [vmem:[%s5799_s6 + $0x108] sm:$0xf] %vm3846_vm3, %v4754_v38  ;;  %4041 = vst.msk [vmem:[%s5799_s6 + $0x308] sm:$0xf] %vm3846_vm3, %v4882_v39  ;;  %v4755_v46 = vpack.c.bf16 %v2633_v40, %v2633_v40  ;;  %v4883_v47 = vpack.c.bf16 %v2761_v41, %v2761_v41 }
 0x175   : > { %3911 = vst.msk [vmem:[%s5799_s6 + $0x100] sm:$0xf] %vm3846_vm3, %v4752_v42  ;;  %4039 = vst.msk [vmem:[%s5799_s6 + $0x300] sm:$0xf] %vm3846_vm3, %v4880_v43  ;;  %v4753_v48 = vpack.c.bf16 %v2631_v44, %v2631_v44  ;;  %v4881_v49 = vpack.c.bf16 %v2759_v45, %v2759_v45  ;;  %v5157_v50 = vpop.f32.mrb[68].mxu0  ;;  %v5285_v51 = vpop.f32.mrb[68].mxu1 }
 0x176   : > { %3914 = vst.msk [vmem:[%s5799_s6 + $0x10c] sm:$0xf] %vm3846_vm3, %v4755_v46  ;;  %4042 = vst.msk [vmem:[%s5799_s6 + $0x30c] sm:$0xf] %vm3846_vm3, %v4883_v47  ;;  %v1824_v52 = vadd.f32 %v6114_v17, %v5157_v50  ;;  %v2336_v53 = vadd.f32 %v6114_v17, %v5285_v51  ;;  %v1815_v54 = vpop.f32.mrb[69].mxu0  ;;  %v2327_v56 = vpop.f32.mrb[69].mxu1 }
 0x177   : > { %3912 = vst.msk [vmem:[%s5799_s6 + $0x104] sm:$0xf] %vm3846_vm3, %v4753_v48  ;;  %4040 = vst.msk [vmem:[%s5799_s6 + $0x304] sm:$0xf] %vm3846_vm3, %v4881_v49  ;;  %v1816_v57 = vadd.f32 %v6114_v17, %v1815_v54  ;;  %v2328_v58 = vadd.f32 %v6114_v17, %v2327_v56  ;;  %v5158_v59 = vpop.f32.mrb[70].mxu0  ;;  %v5286_v60 = vpop.f32.mrb[70].mxu1 }
 0x178   : > { %v2636_v61 = vmax.f32 %v1824_v52, 0.0  ;;  %v2764_v62 = vmax.f32 %v2336_v53, 0.0  ;;  %v1827_v63 = vadd.f32 %v6114_v17, %v5158_v59  ;;  %v2339_v0 = vadd.f32 %v6114_v17, %v5286_v60  ;;  %v1818_v1 = vpop.f32.mrb[71].mxu0  ;;  %v2330_v2 = vpop.f32.mrb[71].mxu1 }
 0x179   : > { %v2634_v3 = vmax.f32 %v1816_v57, 0.0  ;;  %v2762_v4 = vmax.f32 %v2328_v58, 0.0  ;;  %v1819_v5 = vadd.f32 %v6114_v17, %v1818_v1  ;;  %v2331_v6 = vadd.f32 %v6114_v17, %v2330_v2 }
 0x17a   : > { %v4758_v7 = vpack.c.bf16 %v2636_v61, %v2636_v61  ;;  %v4886_v8 = vpack.c.bf16 %v2764_v62, %v2764_v62  ;;  %v2637_v9 = vmax.f32 %v1827_v63, 0.0  ;;  %v2765_v10 = vmax.f32 %v2339_v0, 0.0 }
 0x17b   : > { %v4756_v11 = vpack.c.bf16 %v2634_v3, %v2634_v3  ;;  %v4884_v12 = vpack.c.bf16 %v2762_v4, %v2762_v4  ;;  %v2635_v13 = vmax.f32 %v1819_v5, 0.0  ;;  %v2763_v55 = vmax.f32 %v2331_v6, 0.0 }
 0x17c   : > { %3917 = vst.msk [vmem:[%s5799_s6 + $0x118] sm:$0xf] %vm3846_vm3, %v4758_v7  ;;  %4045 = vst.msk [vmem:[%s5799_s6 + $0x318] sm:$0xf] %vm3846_vm3, %v4886_v8  ;;  %v4759_v14 = vpack.c.bf16 %v2637_v9, %v2637_v9  ;;  %v4887_v15 = vpack.c.bf16 %v2765_v10, %v2765_v10 }
 0x17d   : > { %3915 = vst.msk [vmem:[%s5799_s6 + $0x110] sm:$0xf] %vm3846_vm3, %v4756_v11  ;;  %4043 = vst.msk [vmem:[%s5799_s6 + $0x310] sm:$0xf] %vm3846_vm3, %v4884_v12  ;;  %v4757_v16 = vpack.c.bf16 %v2635_v13, %v2635_v13  ;;  %v4885_v18 = vpack.c.bf16 %v2763_v55, %v2763_v55  ;;  %v5161_v19 = vpop.f32.mrb[72].mxu0  ;;  %v5289_v20 = vpop.f32.mrb[72].mxu1 }
 0x17e   : > { %3918 = vst.msk [vmem:[%s5799_s6 + $0x11c] sm:$0xf] %vm3846_vm3, %v4759_v14  ;;  %4046 = vst.msk [vmem:[%s5799_s6 + $0x31c] sm:$0xf] %vm3846_vm3, %v4887_v15  ;;  %v1840_v21 = vadd.f32 %v6114_v17, %v5161_v19  ;;  %v2352_v22 = vadd.f32 %v6114_v17, %v5289_v20  ;;  %v1831_v23 = vpop.f32.mrb[73].mxu0  ;;  %v2343_v24 = vpop.f32.mrb[73].mxu1 }
 0x17f   : > { %3916 = vst.msk [vmem:[%s5799_s6 + $0x114] sm:$0xf] %vm3846_vm3, %v4757_v16  ;;  %4044 = vst.msk [vmem:[%s5799_s6 + $0x314] sm:$0xf] %vm3846_vm3, %v4885_v18  ;;  %v1832_v25 = vadd.f32 %v6114_v17, %v1831_v23  ;;  %v2344_v26 = vadd.f32 %v6114_v17, %v2343_v24  ;;  %v5162_v27 = vpop.f32.mrb[74].mxu0  ;;  %v5290_v28 = vpop.f32.mrb[74].mxu1 }
 0x180   : > { %v2640_v29 = vmax.f32 %v1840_v21, 0.0  ;;  %v2768_v30 = vmax.f32 %v2352_v22, 0.0  ;;  %v1843_v31 = vadd.f32 %v6114_v17, %v5162_v27  ;;  %v2355_v32 = vadd.f32 %v6114_v17, %v5290_v28  ;;  %v1834_v33 = vpop.f32.mrb[75].mxu0  ;;  %v2346_v34 = vpop.f32.mrb[75].mxu1 }
 0x181   : > { %v2638_v35 = vmax.f32 %v1832_v25, 0.0  ;;  %v2766_v36 = vmax.f32 %v2344_v26, 0.0  ;;  %v1835_v37 = vadd.f32 %v6114_v17, %v1834_v33  ;;  %v2347_v38 = vadd.f32 %v6114_v17, %v2346_v34 }
 0x182   : > { %v4762_v39 = vpack.c.bf16 %v2640_v29, %v2640_v29  ;;  %v4890_v40 = vpack.c.bf16 %v2768_v30, %v2768_v30  ;;  %v2641_v41 = vmax.f32 %v1843_v31, 0.0  ;;  %v2769_v42 = vmax.f32 %v2355_v32, 0.0 }
 0x183   : > { %v4760_v43 = vpack.c.bf16 %v2638_v35, %v2638_v35  ;;  %v4888_v44 = vpack.c.bf16 %v2766_v36, %v2766_v36  ;;  %v2639_v45 = vmax.f32 %v1835_v37, 0.0  ;;  %v2767_v46 = vmax.f32 %v2347_v38, 0.0 }
 0x184   : > { %3921 = vst.msk [vmem:[%s5799_s6 + $0x128] sm:$0xf] %vm3846_vm3, %v4762_v39  ;;  %4049 = vst.msk [vmem:[%s5799_s6 + $0x328] sm:$0xf] %vm3846_vm3, %v4890_v40  ;;  %v4763_v47 = vpack.c.bf16 %v2641_v41, %v2641_v41  ;;  %v4891_v48 = vpack.c.bf16 %v2769_v42, %v2769_v42 }
 0x185   : > { %3919 = vst.msk [vmem:[%s5799_s6 + $0x120] sm:$0xf] %vm3846_vm3, %v4760_v43  ;;  %4047 = vst.msk [vmem:[%s5799_s6 + $0x320] sm:$0xf] %vm3846_vm3, %v4888_v44  ;;  %v4761_v49 = vpack.c.bf16 %v2639_v45, %v2639_v45  ;;  %v4889_v50 = vpack.c.bf16 %v2767_v46, %v2767_v46  ;;  %v5165_v51 = vpop.f32.mrb[76].mxu0  ;;  %v5293_v52 = vpop.f32.mrb[76].mxu1 }
 0x186   : > { %3922 = vst.msk [vmem:[%s5799_s6 + $0x12c] sm:$0xf] %vm3846_vm3, %v4763_v47  ;;  %4050 = vst.msk [vmem:[%s5799_s6 + $0x32c] sm:$0xf] %vm3846_vm3, %v4891_v48  ;;  %v1856_v53 = vadd.f32 %v6114_v17, %v5165_v51  ;;  %v2368_v54 = vadd.f32 %v6114_v17, %v5293_v52  ;;  %v1847_v56 = vpop.f32.mrb[77].mxu0  ;;  %v2359_v57 = vpop.f32.mrb[77].mxu1 }
 0x187   : > { %3920 = vst.msk [vmem:[%s5799_s6 + $0x124] sm:$0xf] %vm3846_vm3, %v4761_v49  ;;  %4048 = vst.msk [vmem:[%s5799_s6 + $0x324] sm:$0xf] %vm3846_vm3, %v4889_v50  ;;  %v1848_v58 = vadd.f32 %v6114_v17, %v1847_v56  ;;  %v2360_v59 = vadd.f32 %v6114_v17, %v2359_v57  ;;  %v5166_v60 = vpop.f32.mrb[78].mxu0  ;;  %v5294_v61 = vpop.f32.mrb[78].mxu1 }
 0x188   : > { %v2644_v62 = vmax.f32 %v1856_v53, 0.0  ;;  %v2772_v63 = vmax.f32 %v2368_v54, 0.0  ;;  %v1859_v0 = vadd.f32 %v6114_v17, %v5166_v60  ;;  %v2371_v1 = vadd.f32 %v6114_v17, %v5294_v61  ;;  %v1850_v2 = vpop.f32.mrb[79].mxu0  ;;  %v2362_v3 = vpop.f32.mrb[79].mxu1 }
 0x189   : > { %v2642_v4 = vmax.f32 %v1848_v58, 0.0  ;;  %v2770_v5 = vmax.f32 %v2360_v59, 0.0  ;;  %v1851_v6 = vadd.f32 %v6114_v17, %v1850_v2  ;;  %v2363_v7 = vadd.f32 %v6114_v17, %v2362_v3 }
 0x18a   : > { %v4766_v8 = vpack.c.bf16 %v2644_v62, %v2644_v62  ;;  %v4894_v9 = vpack.c.bf16 %v2772_v63, %v2772_v63  ;;  %v2645_v10 = vmax.f32 %v1859_v0, 0.0  ;;  %v2773_v11 = vmax.f32 %v2371_v1, 0.0 }
 0x18b   : > { %v4764_v12 = vpack.c.bf16 %v2642_v4, %v2642_v4  ;;  %v4892_v13 = vpack.c.bf16 %v2770_v5, %v2770_v5  ;;  %v2643_v55 = vmax.f32 %v1851_v6, 0.0  ;;  %v2771_v14 = vmax.f32 %v2363_v7, 0.0 }
 0x18c   : > { %3925 = vst.msk [vmem:[%s5799_s6 + $0x138] sm:$0xf] %vm3846_vm3, %v4766_v8  ;;  %4053 = vst.msk [vmem:[%s5799_s6 + $0x338] sm:$0xf] %vm3846_vm3, %v4894_v9  ;;  %v4767_v15 = vpack.c.bf16 %v2645_v10, %v2645_v10  ;;  %v4895_v16 = vpack.c.bf16 %v2773_v11, %v2773_v11 }
 0x18d   : > { %3923 = vst.msk [vmem:[%s5799_s6 + $0x130] sm:$0xf] %vm3846_vm3, %v4764_v12  ;;  %4051 = vst.msk [vmem:[%s5799_s6 + $0x330] sm:$0xf] %vm3846_vm3, %v4892_v13  ;;  %v4765_v18 = vpack.c.bf16 %v2643_v55, %v2643_v55  ;;  %v4893_v19 = vpack.c.bf16 %v2771_v14, %v2771_v14  ;;  %v5169_v20 = vpop.f32.mrb[80].mxu0  ;;  %v5297_v21 = vpop.f32.mrb[80].mxu1 }
 0x18e   : > { %3926 = vst.msk [vmem:[%s5799_s6 + $0x13c] sm:$0xf] %vm3846_vm3, %v4767_v15  ;;  %4054 = vst.msk [vmem:[%s5799_s6 + $0x33c] sm:$0xf] %vm3846_vm3, %v4895_v16  ;;  %v1872_v22 = vadd.f32 %v6114_v17, %v5169_v20  ;;  %v2384_v23 = vadd.f32 %v6114_v17, %v5297_v21  ;;  %v1863_v24 = vpop.f32.mrb[81].mxu0  ;;  %v2375_v25 = vpop.f32.mrb[81].mxu1 }
 0x18f   : > { %3924 = vst.msk [vmem:[%s5799_s6 + $0x134] sm:$0xf] %vm3846_vm3, %v4765_v18  ;;  %4052 = vst.msk [vmem:[%s5799_s6 + $0x334] sm:$0xf] %vm3846_vm3, %v4893_v19  ;;  %v1864_v26 = vadd.f32 %v6114_v17, %v1863_v24  ;;  %v2376_v27 = vadd.f32 %v6114_v17, %v2375_v25  ;;  %v5170_v28 = vpop.f32.mrb[82].mxu0  ;;  %v5298_v29 = vpop.f32.mrb[82].mxu1 }
 0x190   : > { %v2648_v30 = vmax.f32 %v1872_v22, 0.0  ;;  %v2776_v31 = vmax.f32 %v2384_v23, 0.0  ;;  %v1875_v32 = vadd.f32 %v6114_v17, %v5170_v28  ;;  %v2387_v33 = vadd.f32 %v6114_v17, %v5298_v29  ;;  %v1866_v34 = vpop.f32.mrb[83].mxu0  ;;  %v2378_v35 = vpop.f32.mrb[83].mxu1 }
 0x191   : > { %v2646_v36 = vmax.f32 %v1864_v26, 0.0  ;;  %v2774_v37 = vmax.f32 %v2376_v27, 0.0  ;;  %v1867_v38 = vadd.f32 %v6114_v17, %v1866_v34  ;;  %v2379_v39 = vadd.f32 %v6114_v17, %v2378_v35 }
 0x192   : > { %v4770_v40 = vpack.c.bf16 %v2648_v30, %v2648_v30  ;;  %v4898_v41 = vpack.c.bf16 %v2776_v31, %v2776_v31  ;;  %v2649_v42 = vmax.f32 %v1875_v32, 0.0  ;;  %v2777_v43 = vmax.f32 %v2387_v33, 0.0 }
 0x193   : > { %v4768_v44 = vpack.c.bf16 %v2646_v36, %v2646_v36  ;;  %v4896_v45 = vpack.c.bf16 %v2774_v37, %v2774_v37  ;;  %v2647_v46 = vmax.f32 %v1867_v38, 0.0  ;;  %v2775_v47 = vmax.f32 %v2379_v39, 0.0 }
 0x194   : > { %3929 = vst.msk [vmem:[%s5799_s6 + $0x148] sm:$0xf] %vm3846_vm3, %v4770_v40  ;;  %4057 = vst.msk [vmem:[%s5799_s6 + $0x348] sm:$0xf] %vm3846_vm3, %v4898_v41  ;;  %v4771_v48 = vpack.c.bf16 %v2649_v42, %v2649_v42  ;;  %v4899_v49 = vpack.c.bf16 %v2777_v43, %v2777_v43 }
 0x195   : > { %3927 = vst.msk [vmem:[%s5799_s6 + $0x140] sm:$0xf] %vm3846_vm3, %v4768_v44  ;;  %4055 = vst.msk [vmem:[%s5799_s6 + $0x340] sm:$0xf] %vm3846_vm3, %v4896_v45  ;;  %v4769_v50 = vpack.c.bf16 %v2647_v46, %v2647_v46  ;;  %v4897_v51 = vpack.c.bf16 %v2775_v47, %v2775_v47  ;;  %v5173_v52 = vpop.f32.mrb[84].mxu0  ;;  %v5301_v53 = vpop.f32.mrb[84].mxu1 }
 0x196   : > { %3930 = vst.msk [vmem:[%s5799_s6 + $0x14c] sm:$0xf] %vm3846_vm3, %v4771_v48  ;;  %4058 = vst.msk [vmem:[%s5799_s6 + $0x34c] sm:$0xf] %vm3846_vm3, %v4899_v49  ;;  %v1888_v54 = vadd.f32 %v6114_v17, %v5173_v52  ;;  %v2400_v56 = vadd.f32 %v6114_v17, %v5301_v53  ;;  %v1879_v57 = vpop.f32.mrb[85].mxu0  ;;  %v2391_v58 = vpop.f32.mrb[85].mxu1 }
 0x197   : > { %3928 = vst.msk [vmem:[%s5799_s6 + $0x144] sm:$0xf] %vm3846_vm3, %v4769_v50  ;;  %4056 = vst.msk [vmem:[%s5799_s6 + $0x344] sm:$0xf] %vm3846_vm3, %v4897_v51  ;;  %v1880_v59 = vadd.f32 %v6114_v17, %v1879_v57  ;;  %v2392_v60 = vadd.f32 %v6114_v17, %v2391_v58  ;;  %v5174_v61 = vpop.f32.mrb[86].mxu0  ;;  %v5302_v62 = vpop.f32.mrb[86].mxu1 }
 0x198   : > { %v2652_v63 = vmax.f32 %v1888_v54, 0.0  ;;  %v2780_v0 = vmax.f32 %v2400_v56, 0.0  ;;  %v1891_v1 = vadd.f32 %v6114_v17, %v5174_v61  ;;  %v2403_v2 = vadd.f32 %v6114_v17, %v5302_v62  ;;  %v1882_v3 = vpop.f32.mrb[87].mxu0  ;;  %v2394_v4 = vpop.f32.mrb[87].mxu1 }
 0x199   : > { %v2650_v5 = vmax.f32 %v1880_v59, 0.0  ;;  %v2778_v6 = vmax.f32 %v2392_v60, 0.0  ;;  %v1883_v7 = vadd.f32 %v6114_v17, %v1882_v3  ;;  %v2395_v8 = vadd.f32 %v6114_v17, %v2394_v4 }
 0x19a   : > { %v4774_v9 = vpack.c.bf16 %v2652_v63, %v2652_v63  ;;  %v4902_v10 = vpack.c.bf16 %v2780_v0, %v2780_v0  ;;  %v2653_v11 = vmax.f32 %v1891_v1, 0.0  ;;  %v2781_v12 = vmax.f32 %v2403_v2, 0.0 }
 0x19b   : > { %v4772_v13 = vpack.c.bf16 %v2650_v5, %v2650_v5  ;;  %v4900_v55 = vpack.c.bf16 %v2778_v6, %v2778_v6  ;;  %v2651_v14 = vmax.f32 %v1883_v7, 0.0  ;;  %v2779_v15 = vmax.f32 %v2395_v8, 0.0 }
 0x19c   : > { %3933 = vst.msk [vmem:[%s5799_s6 + $0x158] sm:$0xf] %vm3846_vm3, %v4774_v9  ;;  %4061 = vst.msk [vmem:[%s5799_s6 + $0x358] sm:$0xf] %vm3846_vm3, %v4902_v10  ;;  %v4775_v16 = vpack.c.bf16 %v2653_v11, %v2653_v11  ;;  %v4903_v18 = vpack.c.bf16 %v2781_v12, %v2781_v12 }
 0x19d   : > { %3931 = vst.msk [vmem:[%s5799_s6 + $0x150] sm:$0xf] %vm3846_vm3, %v4772_v13  ;;  %4059 = vst.msk [vmem:[%s5799_s6 + $0x350] sm:$0xf] %vm3846_vm3, %v4900_v55  ;;  %v4773_v19 = vpack.c.bf16 %v2651_v14, %v2651_v14  ;;  %v4901_v20 = vpack.c.bf16 %v2779_v15, %v2779_v15  ;;  %v5177_v21 = vpop.f32.mrb[88].mxu0  ;;  %v5305_v22 = vpop.f32.mrb[88].mxu1 }
 0x19e   : > { %3934 = vst.msk [vmem:[%s5799_s6 + $0x15c] sm:$0xf] %vm3846_vm3, %v4775_v16  ;;  %4062 = vst.msk [vmem:[%s5799_s6 + $0x35c] sm:$0xf] %vm3846_vm3, %v4903_v18  ;;  %v1904_v23 = vadd.f32 %v6114_v17, %v5177_v21  ;;  %v2416_v24 = vadd.f32 %v6114_v17, %v5305_v22  ;;  %v1895_v25 = vpop.f32.mrb[89].mxu0  ;;  %v2407_v26 = vpop.f32.mrb[89].mxu1 }
 0x19f   : > { %3932 = vst.msk [vmem:[%s5799_s6 + $0x154] sm:$0xf] %vm3846_vm3, %v4773_v19  ;;  %4060 = vst.msk [vmem:[%s5799_s6 + $0x354] sm:$0xf] %vm3846_vm3, %v4901_v20  ;;  %v1896_v27 = vadd.f32 %v6114_v17, %v1895_v25  ;;  %v2408_v28 = vadd.f32 %v6114_v17, %v2407_v26  ;;  %v5178_v29 = vpop.f32.mrb[90].mxu0  ;;  %v5306_v30 = vpop.f32.mrb[90].mxu1 }
 0x1a0   : > { %v2656_v31 = vmax.f32 %v1904_v23, 0.0  ;;  %v2784_v32 = vmax.f32 %v2416_v24, 0.0  ;;  %v1907_v33 = vadd.f32 %v6114_v17, %v5178_v29  ;;  %v2419_v34 = vadd.f32 %v6114_v17, %v5306_v30  ;;  %v1898_v35 = vpop.f32.mrb[91].mxu0  ;;  %v2410_v36 = vpop.f32.mrb[91].mxu1 }
 0x1a1   : > { %v2654_v37 = vmax.f32 %v1896_v27, 0.0  ;;  %v2782_v38 = vmax.f32 %v2408_v28, 0.0  ;;  %v1899_v39 = vadd.f32 %v6114_v17, %v1898_v35  ;;  %v2411_v40 = vadd.f32 %v6114_v17, %v2410_v36 }
 0x1a2   : > { %v4778_v41 = vpack.c.bf16 %v2656_v31, %v2656_v31  ;;  %v4906_v42 = vpack.c.bf16 %v2784_v32, %v2784_v32  ;;  %v2657_v43 = vmax.f32 %v1907_v33, 0.0  ;;  %v2785_v44 = vmax.f32 %v2419_v34, 0.0 }
 0x1a3   : > { %v4776_v45 = vpack.c.bf16 %v2654_v37, %v2654_v37  ;;  %v4904_v46 = vpack.c.bf16 %v2782_v38, %v2782_v38  ;;  %v2655_v47 = vmax.f32 %v1899_v39, 0.0  ;;  %v2783_v48 = vmax.f32 %v2411_v40, 0.0 }
 0x1a4   : > { %3937 = vst.msk [vmem:[%s5799_s6 + $0x168] sm:$0xf] %vm3846_vm3, %v4778_v41  ;;  %4065 = vst.msk [vmem:[%s5799_s6 + $0x368] sm:$0xf] %vm3846_vm3, %v4906_v42  ;;  %v4779_v49 = vpack.c.bf16 %v2657_v43, %v2657_v43  ;;  %v4907_v50 = vpack.c.bf16 %v2785_v44, %v2785_v44 }
 0x1a5   : > { %3935 = vst.msk [vmem:[%s5799_s6 + $0x160] sm:$0xf] %vm3846_vm3, %v4776_v45  ;;  %4063 = vst.msk [vmem:[%s5799_s6 + $0x360] sm:$0xf] %vm3846_vm3, %v4904_v46  ;;  %v4777_v51 = vpack.c.bf16 %v2655_v47, %v2655_v47  ;;  %v4905_v52 = vpack.c.bf16 %v2783_v48, %v2783_v48  ;;  %v5181_v53 = vpop.f32.mrb[92].mxu0  ;;  %v5309_v54 = vpop.f32.mrb[92].mxu1 }
 0x1a6   : > { %3938 = vst.msk [vmem:[%s5799_s6 + $0x16c] sm:$0xf] %vm3846_vm3, %v4779_v49  ;;  %4066 = vst.msk [vmem:[%s5799_s6 + $0x36c] sm:$0xf] %vm3846_vm3, %v4907_v50  ;;  %v1920_v56 = vadd.f32 %v6114_v17, %v5181_v53  ;;  %v2432_v57 = vadd.f32 %v6114_v17, %v5309_v54  ;;  %v1911_v58 = vpop.f32.mrb[93].mxu0  ;;  %v2423_v59 = vpop.f32.mrb[93].mxu1 }
 0x1a7   : > { %3936 = vst.msk [vmem:[%s5799_s6 + $0x164] sm:$0xf] %vm3846_vm3, %v4777_v51  ;;  %4064 = vst.msk [vmem:[%s5799_s6 + $0x364] sm:$0xf] %vm3846_vm3, %v4905_v52  ;;  %v1912_v60 = vadd.f32 %v6114_v17, %v1911_v58  ;;  %v2424_v61 = vadd.f32 %v6114_v17, %v2423_v59  ;;  %v5182_v62 = vpop.f32.mrb[94].mxu0  ;;  %v5310_v63 = vpop.f32.mrb[94].mxu1 }
 0x1a8   : > { %v2660_v0 = vmax.f32 %v1920_v56, 0.0  ;;  %v2788_v1 = vmax.f32 %v2432_v57, 0.0  ;;  %v1923_v2 = vadd.f32 %v6114_v17, %v5182_v62  ;;  %v2435_v3 = vadd.f32 %v6114_v17, %v5310_v63  ;;  %v1914_v4 = vpop.f32.mrb[95].mxu0  ;;  %v2426_v5 = vpop.f32.mrb[95].mxu1  ;;  %v6431_v56 = vld [vmem:[%s6610_s2] ss:$0 sm:$0xff] }
 0x1a9   : > { %v2658_v6 = vmax.f32 %v1912_v60, 0.0  ;;  %v2786_v7 = vmax.f32 %v2424_v61, 0.0  ;;  %v1915_v8 = vadd.f32 %v6114_v17, %v1914_v4  ;;  %v2427_v9 = vadd.f32 %v6114_v17, %v2426_v5 }
 0x1aa   : > { %v4782_v10 = vpack.c.bf16 %v2660_v0, %v2660_v0  ;;  %v4910_v11 = vpack.c.bf16 %v2788_v1, %v2788_v1  ;;  %v2661_v12 = vmax.f32 %v1923_v2, 0.0  ;;  %v2789_v13 = vmax.f32 %v2435_v3, 0.0 }
 0x1ab   : > { %v4780_v55 = vpack.c.bf16 %v2658_v6, %v2658_v6  ;;  %v4908_v14 = vpack.c.bf16 %v2786_v7, %v2786_v7  ;;  %v2659_v15 = vmax.f32 %v1915_v8, 0.0  ;;  %v2787_v16 = vmax.f32 %v2427_v9, 0.0 }
 0x1ac   : > { %3941 = vst.msk [vmem:[%s5799_s6 + $0x178] sm:$0xf] %vm3846_vm3, %v4782_v10  ;;  %4069 = vst.msk [vmem:[%s5799_s6 + $0x378] sm:$0xf] %vm3846_vm3, %v4910_v11  ;;  %v4783_v18 = vpack.c.bf16 %v2661_v12, %v2661_v12  ;;  %v4911_v19 = vpack.c.bf16 %v2789_v13, %v2789_v13 }
 0x1ad   : > { %3939 = vst.msk [vmem:[%s5799_s6 + $0x170] sm:$0xf] %vm3846_vm3, %v4780_v55  ;;  %4067 = vst.msk [vmem:[%s5799_s6 + $0x370] sm:$0xf] %vm3846_vm3, %v4908_v14  ;;  %v4781_v20 = vpack.c.bf16 %v2659_v15, %v2659_v15  ;;  %v4909_v21 = vpack.c.bf16 %v2787_v16, %v2787_v16  ;;  %v5185_v22 = vpop.f32.mrb[96].mxu0  ;;  %v5313_v23 = vpop.f32.mrb[96].mxu1 }
 0x1ae   : > { %3942 = vst.msk [vmem:[%s5799_s6 + $0x17c] sm:$0xf] %vm3846_vm3, %v4783_v18  ;;  %4070 = vst.msk [vmem:[%s5799_s6 + $0x37c] sm:$0xf] %vm3846_vm3, %v4911_v19  ;;  %v1936_v24 = vadd.f32 %v6114_v17, %v5185_v22  ;;  %v2448_v25 = vadd.f32 %v6114_v17, %v5313_v23  ;;  %v1927_v26 = vpop.f32.mrb[97].mxu0  ;;  %v2439_v27 = vpop.f32.mrb[97].mxu1 }
 0x1af   : > { %3940 = vst.msk [vmem:[%s5799_s6 + $0x174] sm:$0xf] %vm3846_vm3, %v4781_v20  ;;  %4068 = vst.msk [vmem:[%s5799_s6 + $0x374] sm:$0xf] %vm3846_vm3, %v4909_v21  ;;  %v1928_v28 = vadd.f32 %v6114_v17, %v1927_v26  ;;  %v2440_v29 = vadd.f32 %v6114_v17, %v2439_v27  ;;  %v5186_v30 = vpop.f32.mrb[98].mxu0  ;;  %v5314_v31 = vpop.f32.mrb[98].mxu1 }
 0x1b0   : > { %v2664_v32 = vmax.f32 %v1936_v24, 0.0  ;;  %v2792_v33 = vmax.f32 %v2448_v25, 0.0  ;;  %v1939_v34 = vadd.f32 %v6114_v17, %v5186_v30  ;;  %v2451_v35 = vadd.f32 %v6114_v17, %v5314_v31  ;;  %v1930_v36 = vpop.f32.mrb[99].mxu0  ;;  %v2442_v37 = vpop.f32.mrb[99].mxu1 }
 0x1b1   : > { %v2662_v38 = vmax.f32 %v1928_v28, 0.0  ;;  %v2790_v39 = vmax.f32 %v2440_v29, 0.0  ;;  %v1931_v40 = vadd.f32 %v6114_v17, %v1930_v36  ;;  %v2443_v41 = vadd.f32 %v6114_v17, %v2442_v37 }
 0x1b2   : > { %v4786_v42 = vpack.c.bf16 %v2664_v32, %v2664_v32  ;;  %v4914_v43 = vpack.c.bf16 %v2792_v33, %v2792_v33  ;;  %v2665_v44 = vmax.f32 %v1939_v34, 0.0  ;;  %v2793_v45 = vmax.f32 %v2451_v35, 0.0 }
 0x1b3   : > { %v4784_v46 = vpack.c.bf16 %v2662_v38, %v2662_v38  ;;  %v4912_v47 = vpack.c.bf16 %v2790_v39, %v2790_v39  ;;  %v2663_v48 = vmax.f32 %v1931_v40, 0.0  ;;  %v2791_v49 = vmax.f32 %v2443_v41, 0.0 }
 0x1b4   : > { %3945 = vst.msk [vmem:[%s5799_s6 + $0x188] sm:$0xf] %vm3846_vm3, %v4786_v42  ;;  %4073 = vst.msk [vmem:[%s5799_s6 + $0x388] sm:$0xf] %vm3846_vm3, %v4914_v43  ;;  %v4787_v50 = vpack.c.bf16 %v2665_v44, %v2665_v44  ;;  %v4915_v51 = vpack.c.bf16 %v2793_v45, %v2793_v45 }
 0x1b5   : > { %3943 = vst.msk [vmem:[%s5799_s6 + $0x180] sm:$0xf] %vm3846_vm3, %v4784_v46  ;;  %4071 = vst.msk [vmem:[%s5799_s6 + $0x380] sm:$0xf] %vm3846_vm3, %v4912_v47  ;;  %v4785_v17 = vpack.c.bf16 %v2663_v48, %v2663_v48  ;;  %v4913_v52 = vpack.c.bf16 %v2791_v49, %v2791_v49  ;;  %v5189_v53 = vpop.f32.mrb[100].mxu0  ;;  %v5317_v54 = vpop.f32.mrb[100].mxu1 }
 0x1b6   : > { %3946 = vst.msk [vmem:[%s5799_s6 + $0x18c] sm:$0xf] %vm3846_vm3, %v4787_v50  ;;  %4074 = vst.msk [vmem:[%s5799_s6 + $0x38c] sm:$0xf] %vm3846_vm3, %v4915_v51  ;;  %v1952_v57 = vadd.f32 %v6431_v56, %v5189_v53  ;;  %v2464_v58 = vadd.f32 %v6431_v56, %v5317_v54  ;;  %v1943_v59 = vpop.f32.mrb[101].mxu0  ;;  %v2455_v60 = vpop.f32.mrb[101].mxu1 }
 0x1b7   : > { %3944 = vst.msk [vmem:[%s5799_s6 + $0x184] sm:$0xf] %vm3846_vm3, %v4785_v17  ;;  %4072 = vst.msk [vmem:[%s5799_s6 + $0x384] sm:$0xf] %vm3846_vm3, %v4913_v52  ;;  %v1944_v61 = vadd.f32 %v6431_v56, %v1943_v59  ;;  %v2456_v62 = vadd.f32 %v6431_v56, %v2455_v60  ;;  %v5190_v63 = vpop.f32.mrb[102].mxu0  ;;  %v5318_v0 = vpop.f32.mrb[102].mxu1 }
 0x1b8   : > { %v2668_v1 = vmax.f32 %v1952_v57, 0.0  ;;  %v2796_v2 = vmax.f32 %v2464_v58, 0.0  ;;  %v1955_v3 = vadd.f32 %v6431_v56, %v5190_v63  ;;  %v2467_v4 = vadd.f32 %v6431_v56, %v5318_v0  ;;  %v1946_v5 = vpop.f32.mrb[103].mxu0  ;;  %v2458_v6 = vpop.f32.mrb[103].mxu1 }
 0x1b9   : > { %v2666_v7 = vmax.f32 %v1944_v61, 0.0  ;;  %v2794_v8 = vmax.f32 %v2456_v62, 0.0  ;;  %v1947_v9 = vadd.f32 %v6431_v56, %v1946_v5  ;;  %v2459_v10 = vadd.f32 %v6431_v56, %v2458_v6 }
 0x1ba   : > { %v4790_v11 = vpack.c.bf16 %v2668_v1, %v2668_v1  ;;  %v4918_v12 = vpack.c.bf16 %v2796_v2, %v2796_v2  ;;  %v2669_v13 = vmax.f32 %v1955_v3, 0.0  ;;  %v2797_v55 = vmax.f32 %v2467_v4, 0.0 }
 0x1bb   : > { %v4788_v14 = vpack.c.bf16 %v2666_v7, %v2666_v7  ;;  %v4916_v15 = vpack.c.bf16 %v2794_v8, %v2794_v8  ;;  %v2667_v16 = vmax.f32 %v1947_v9, 0.0  ;;  %v2795_v18 = vmax.f32 %v2459_v10, 0.0 }
 0x1bc   : > { %3949 = vst.msk [vmem:[%s5799_s6 + $0x198] sm:$0xf] %vm3846_vm3, %v4790_v11  ;;  %4077 = vst.msk [vmem:[%s5799_s6 + $0x398] sm:$0xf] %vm3846_vm3, %v4918_v12  ;;  %v4791_v19 = vpack.c.bf16 %v2669_v13, %v2669_v13  ;;  %v4919_v20 = vpack.c.bf16 %v2797_v55, %v2797_v55 }
 0x1bd   : > { %3947 = vst.msk [vmem:[%s5799_s6 + $0x190] sm:$0xf] %vm3846_vm3, %v4788_v14  ;;  %4075 = vst.msk [vmem:[%s5799_s6 + $0x390] sm:$0xf] %vm3846_vm3, %v4916_v15  ;;  %v4789_v21 = vpack.c.bf16 %v2667_v16, %v2667_v16  ;;  %v4917_v22 = vpack.c.bf16 %v2795_v18, %v2795_v18  ;;  %v5193_v23 = vpop.f32.mrb[104].mxu0  ;;  %v5321_v24 = vpop.f32.mrb[104].mxu1 }
 0x1be   : > { %3950 = vst.msk [vmem:[%s5799_s6 + $0x19c] sm:$0xf] %vm3846_vm3, %v4791_v19  ;;  %4078 = vst.msk [vmem:[%s5799_s6 + $0x39c] sm:$0xf] %vm3846_vm3, %v4919_v20  ;;  %v1968_v25 = vadd.f32 %v6431_v56, %v5193_v23  ;;  %v2480_v26 = vadd.f32 %v6431_v56, %v5321_v24  ;;  %v1959_v27 = vpop.f32.mrb[105].mxu0  ;;  %v2471_v28 = vpop.f32.mrb[105].mxu1 }
 0x1bf   : > { %3948 = vst.msk [vmem:[%s5799_s6 + $0x194] sm:$0xf] %vm3846_vm3, %v4789_v21  ;;  %4076 = vst.msk [vmem:[%s5799_s6 + $0x394] sm:$0xf] %vm3846_vm3, %v4917_v22  ;;  %v1960_v29 = vadd.f32 %v6431_v56, %v1959_v27  ;;  %v2472_v30 = vadd.f32 %v6431_v56, %v2471_v28  ;;  %v5194_v31 = vpop.f32.mrb[106].mxu0  ;;  %v5322_v32 = vpop.f32.mrb[106].mxu1 }
 0x1c0   : > { %v2672_v33 = vmax.f32 %v1968_v25, 0.0  ;;  %v2800_v34 = vmax.f32 %v2480_v26, 0.0  ;;  %v1971_v35 = vadd.f32 %v6431_v56, %v5194_v31  ;;  %v2483_v36 = vadd.f32 %v6431_v56, %v5322_v32  ;;  %v1962_v37 = vpop.f32.mrb[107].mxu0  ;;  %v2474_v38 = vpop.f32.mrb[107].mxu1 }
 0x1c1   : > { %v2670_v39 = vmax.f32 %v1960_v29, 0.0  ;;  %v2798_v40 = vmax.f32 %v2472_v30, 0.0  ;;  %v1963_v41 = vadd.f32 %v6431_v56, %v1962_v37  ;;  %v2475_v42 = vadd.f32 %v6431_v56, %v2474_v38 }
 0x1c2   : > { %v4794_v43 = vpack.c.bf16 %v2672_v33, %v2672_v33  ;;  %v4922_v44 = vpack.c.bf16 %v2800_v34, %v2800_v34  ;;  %v2673_v45 = vmax.f32 %v1971_v35, 0.0  ;;  %v2801_v46 = vmax.f32 %v2483_v36, 0.0 }
 0x1c3   : > { %v4792_v47 = vpack.c.bf16 %v2670_v39, %v2670_v39  ;;  %v4920_v48 = vpack.c.bf16 %v2798_v40, %v2798_v40  ;;  %v2671_v49 = vmax.f32 %v1963_v41, 0.0  ;;  %v2799_v50 = vmax.f32 %v2475_v42, 0.0 }
 0x1c4   : > { %3953 = vst.msk [vmem:[%s5799_s6 + $0x1a8] sm:$0xf] %vm3846_vm3, %v4794_v43  ;;  %4081 = vst.msk [vmem:[%s5799_s6 + $0x3a8] sm:$0xf] %vm3846_vm3, %v4922_v44  ;;  %v4795_v51 = vpack.c.bf16 %v2673_v45, %v2673_v45  ;;  %v4923_v17 = vpack.c.bf16 %v2801_v46, %v2801_v46 }
 0x1c5   : > { %3951 = vst.msk [vmem:[%s5799_s6 + $0x1a0] sm:$0xf] %vm3846_vm3, %v4792_v47  ;;  %4079 = vst.msk [vmem:[%s5799_s6 + $0x3a0] sm:$0xf] %vm3846_vm3, %v4920_v48  ;;  %v4793_v52 = vpack.c.bf16 %v2671_v49, %v2671_v49  ;;  %v4921_v53 = vpack.c.bf16 %v2799_v50, %v2799_v50  ;;  %v5197_v54 = vpop.f32.mrb[108].mxu0  ;;  %v5325_v57 = vpop.f32.mrb[108].mxu1 }
 0x1c6   : > { %3954 = vst.msk [vmem:[%s5799_s6 + $0x1ac] sm:$0xf] %vm3846_vm3, %v4795_v51  ;;  %4082 = vst.msk [vmem:[%s5799_s6 + $0x3ac] sm:$0xf] %vm3846_vm3, %v4923_v17  ;;  %v1984_v58 = vadd.f32 %v6431_v56, %v5197_v54  ;;  %v2496_v59 = vadd.f32 %v6431_v56, %v5325_v57  ;;  %v1975_v60 = vpop.f32.mrb[109].mxu0  ;;  %v2487_v61 = vpop.f32.mrb[109].mxu1 }
 0x1c7   : > { %3952 = vst.msk [vmem:[%s5799_s6 + $0x1a4] sm:$0xf] %vm3846_vm3, %v4793_v52  ;;  %4080 = vst.msk [vmem:[%s5799_s6 + $0x3a4] sm:$0xf] %vm3846_vm3, %v4921_v53  ;;  %v1976_v62 = vadd.f32 %v6431_v56, %v1975_v60  ;;  %v2488_v63 = vadd.f32 %v6431_v56, %v2487_v61  ;;  %v5198_v0 = vpop.f32.mrb[110].mxu0  ;;  %v5326_v1 = vpop.f32.mrb[110].mxu1 }
 0x1c8   : > { %v2676_v2 = vmax.f32 %v1984_v58, 0.0  ;;  %v2804_v3 = vmax.f32 %v2496_v59, 0.0  ;;  %v1987_v4 = vadd.f32 %v6431_v56, %v5198_v0  ;;  %v2499_v5 = vadd.f32 %v6431_v56, %v5326_v1  ;;  %v1978_v6 = vpop.f32.mrb[111].mxu0  ;;  %v2490_v7 = vpop.f32.mrb[111].mxu1 }
 0x1c9   : > { %v2674_v8 = vmax.f32 %v1976_v62, 0.0  ;;  %v2802_v9 = vmax.f32 %v2488_v63, 0.0  ;;  %v1979_v10 = vadd.f32 %v6431_v56, %v1978_v6  ;;  %v2491_v11 = vadd.f32 %v6431_v56, %v2490_v7 }
 0x1ca   : > { %v4798_v12 = vpack.c.bf16 %v2676_v2, %v2676_v2  ;;  %v4926_v13 = vpack.c.bf16 %v2804_v3, %v2804_v3  ;;  %v2677_v55 = vmax.f32 %v1987_v4, 0.0  ;;  %v2805_v14 = vmax.f32 %v2499_v5, 0.0 }
 0x1cb   : > { %v4796_v15 = vpack.c.bf16 %v2674_v8, %v2674_v8  ;;  %v4924_v16 = vpack.c.bf16 %v2802_v9, %v2802_v9  ;;  %v2675_v18 = vmax.f32 %v1979_v10, 0.0  ;;  %v2803_v19 = vmax.f32 %v2491_v11, 0.0 }
 0x1cc   : > { %3957 = vst.msk [vmem:[%s5799_s6 + $0x1b8] sm:$0xf] %vm3846_vm3, %v4798_v12  ;;  %4085 = vst.msk [vmem:[%s5799_s6 + $0x3b8] sm:$0xf] %vm3846_vm3, %v4926_v13  ;;  %v4799_v20 = vpack.c.bf16 %v2677_v55, %v2677_v55  ;;  %v4927_v21 = vpack.c.bf16 %v2805_v14, %v2805_v14 }
 0x1cd   : > { %3955 = vst.msk [vmem:[%s5799_s6 + $0x1b0] sm:$0xf] %vm3846_vm3, %v4796_v15  ;;  %4083 = vst.msk [vmem:[%s5799_s6 + $0x3b0] sm:$0xf] %vm3846_vm3, %v4924_v16  ;;  %v4797_v22 = vpack.c.bf16 %v2675_v18, %v2675_v18  ;;  %v4925_v23 = vpack.c.bf16 %v2803_v19, %v2803_v19  ;;  %v5201_v24 = vpop.f32.mrb[112].mxu0  ;;  %v5329_v25 = vpop.f32.mrb[112].mxu1 }
 0x1ce   : > { %3958 = vst.msk [vmem:[%s5799_s6 + $0x1bc] sm:$0xf] %vm3846_vm3, %v4799_v20  ;;  %4086 = vst.msk [vmem:[%s5799_s6 + $0x3bc] sm:$0xf] %vm3846_vm3, %v4927_v21  ;;  %v2000_v26 = vadd.f32 %v6431_v56, %v5201_v24  ;;  %v2512_v27 = vadd.f32 %v6431_v56, %v5329_v25  ;;  %v1991_v28 = vpop.f32.mrb[113].mxu0  ;;  %v2503_v29 = vpop.f32.mrb[113].mxu1 }
 0x1cf   : > { %3956 = vst.msk [vmem:[%s5799_s6 + $0x1b4] sm:$0xf] %vm3846_vm3, %v4797_v22  ;;  %4084 = vst.msk [vmem:[%s5799_s6 + $0x3b4] sm:$0xf] %vm3846_vm3, %v4925_v23  ;;  %v1992_v30 = vadd.f32 %v6431_v56, %v1991_v28  ;;  %v2504_v31 = vadd.f32 %v6431_v56, %v2503_v29  ;;  %v5202_v32 = vpop.f32.mrb[114].mxu0  ;;  %v5330_v33 = vpop.f32.mrb[114].mxu1 }
 0x1d0   : > { %v2680_v34 = vmax.f32 %v2000_v26, 0.0  ;;  %v2808_v35 = vmax.f32 %v2512_v27, 0.0  ;;  %v2003_v36 = vadd.f32 %v6431_v56, %v5202_v32  ;;  %v2515_v37 = vadd.f32 %v6431_v56, %v5330_v33  ;;  %v1994_v38 = vpop.f32.mrb[115].mxu0  ;;  %v2506_v39 = vpop.f32.mrb[115].mxu1 }
 0x1d1   : > { %v2678_v40 = vmax.f32 %v1992_v30, 0.0  ;;  %v2806_v41 = vmax.f32 %v2504_v31, 0.0  ;;  %v1995_v42 = vadd.f32 %v6431_v56, %v1994_v38  ;;  %v2507_v43 = vadd.f32 %v6431_v56, %v2506_v39 }
 0x1d2   : > { %v4802_v44 = vpack.c.bf16 %v2680_v34, %v2680_v34  ;;  %v4930_v45 = vpack.c.bf16 %v2808_v35, %v2808_v35  ;;  %v2681_v46 = vmax.f32 %v2003_v36, 0.0  ;;  %v2809_v47 = vmax.f32 %v2515_v37, 0.0 }
 0x1d3   : > { %v4800_v48 = vpack.c.bf16 %v2678_v40, %v2678_v40  ;;  %v4928_v49 = vpack.c.bf16 %v2806_v41, %v2806_v41  ;;  %v2679_v50 = vmax.f32 %v1995_v42, 0.0  ;;  %v2807_v51 = vmax.f32 %v2507_v43, 0.0 }
 0x1d4   : > { %3961 = vst.msk [vmem:[%s5799_s6 + $0x1c8] sm:$0xf] %vm3846_vm3, %v4802_v44  ;;  %4089 = vst.msk [vmem:[%s5799_s6 + $0x3c8] sm:$0xf] %vm3846_vm3, %v4930_v45  ;;  %v4803_v17 = vpack.c.bf16 %v2681_v46, %v2681_v46  ;;  %v4931_v52 = vpack.c.bf16 %v2809_v47, %v2809_v47 }
 0x1d5   : > { %3959 = vst.msk [vmem:[%s5799_s6 + $0x1c0] sm:$0xf] %vm3846_vm3, %v4800_v48  ;;  %4087 = vst.msk [vmem:[%s5799_s6 + $0x3c0] sm:$0xf] %vm3846_vm3, %v4928_v49  ;;  %v4801_v53 = vpack.c.bf16 %v2679_v50, %v2679_v50  ;;  %v4929_v54 = vpack.c.bf16 %v2807_v51, %v2807_v51  ;;  %v5205_v57 = vpop.f32.mrb[116].mxu0  ;;  %v5333_v58 = vpop.f32.mrb[116].mxu1 }
 0x1d6   : > { %3962 = vst.msk [vmem:[%s5799_s6 + $0x1cc] sm:$0xf] %vm3846_vm3, %v4803_v17  ;;  %4090 = vst.msk [vmem:[%s5799_s6 + $0x3cc] sm:$0xf] %vm3846_vm3, %v4931_v52  ;;  %v2016_v59 = vadd.f32 %v6431_v56, %v5205_v57  ;;  %v2528_v60 = vadd.f32 %v6431_v56, %v5333_v58  ;;  %v2007_v61 = vpop.f32.mrb[117].mxu0  ;;  %v2519_v62 = vpop.f32.mrb[117].mxu1 }
 0x1d7   : > { %3960 = vst.msk [vmem:[%s5799_s6 + $0x1c4] sm:$0xf] %vm3846_vm3, %v4801_v53  ;;  %4088 = vst.msk [vmem:[%s5799_s6 + $0x3c4] sm:$0xf] %vm3846_vm3, %v4929_v54  ;;  %v2008_v63 = vadd.f32 %v6431_v56, %v2007_v61  ;;  %v2520_v0 = vadd.f32 %v6431_v56, %v2519_v62  ;;  %v5206_v1 = vpop.f32.mrb[118].mxu0  ;;  %v5334_v2 = vpop.f32.mrb[118].mxu1 }
 0x1d8   : > { %v2684_v3 = vmax.f32 %v2016_v59, 0.0  ;;  %v2812_v4 = vmax.f32 %v2528_v60, 0.0  ;;  %v2019_v5 = vadd.f32 %v6431_v56, %v5206_v1  ;;  %v2531_v6 = vadd.f32 %v6431_v56, %v5334_v2  ;;  %v2010_v7 = vpop.f32.mrb[119].mxu0  ;;  %v2522_v8 = vpop.f32.mrb[119].mxu1 }
 0x1d9   : > { %v2682_v9 = vmax.f32 %v2008_v63, 0.0  ;;  %v2810_v10 = vmax.f32 %v2520_v0, 0.0  ;;  %v2011_v11 = vadd.f32 %v6431_v56, %v2010_v7  ;;  %v2523_v12 = vadd.f32 %v6431_v56, %v2522_v8 }
 0x1da   : > { %v4806_v13 = vpack.c.bf16 %v2684_v3, %v2684_v3  ;;  %v4934_v55 = vpack.c.bf16 %v2812_v4, %v2812_v4  ;;  %v2685_v14 = vmax.f32 %v2019_v5, 0.0  ;;  %v2813_v15 = vmax.f32 %v2531_v6, 0.0 }
 0x1db   : > { %v4804_v16 = vpack.c.bf16 %v2682_v9, %v2682_v9  ;;  %v4932_v18 = vpack.c.bf16 %v2810_v10, %v2810_v10  ;;  %v2683_v19 = vmax.f32 %v2011_v11, 0.0  ;;  %v2811_v20 = vmax.f32 %v2523_v12, 0.0 }
 0x1dc   : > { %3965 = vst.msk [vmem:[%s5799_s6 + $0x1d8] sm:$0xf] %vm3846_vm3, %v4806_v13  ;;  %4093 = vst.msk [vmem:[%s5799_s6 + $0x3d8] sm:$0xf] %vm3846_vm3, %v4934_v55  ;;  %v4807_v21 = vpack.c.bf16 %v2685_v14, %v2685_v14  ;;  %v4935_v22 = vpack.c.bf16 %v2813_v15, %v2813_v15 }
 0x1dd   : > { %3963 = vst.msk [vmem:[%s5799_s6 + $0x1d0] sm:$0xf] %vm3846_vm3, %v4804_v16  ;;  %4091 = vst.msk [vmem:[%s5799_s6 + $0x3d0] sm:$0xf] %vm3846_vm3, %v4932_v18  ;;  %v4805_v23 = vpack.c.bf16 %v2683_v19, %v2683_v19  ;;  %v4933_v24 = vpack.c.bf16 %v2811_v20, %v2811_v20  ;;  %v5209_v25 = vpop.f32.mrb[120].mxu0  ;;  %v5337_v26 = vpop.f32.mrb[120].mxu1 }
 0x1de   : > { %3966 = vst.msk [vmem:[%s5799_s6 + $0x1dc] sm:$0xf] %vm3846_vm3, %v4807_v21  ;;  %4094 = vst.msk [vmem:[%s5799_s6 + $0x3dc] sm:$0xf] %vm3846_vm3, %v4935_v22  ;;  %v2032_v27 = vadd.f32 %v6431_v56, %v5209_v25  ;;  %v2544_v28 = vadd.f32 %v6431_v56, %v5337_v26  ;;  %v2023_v29 = vpop.f32.mrb[121].mxu0  ;;  %v2535_v30 = vpop.f32.mrb[121].mxu1 }
 0x1df   : > { %3964 = vst.msk [vmem:[%s5799_s6 + $0x1d4] sm:$0xf] %vm3846_vm3, %v4805_v23  ;;  %4092 = vst.msk [vmem:[%s5799_s6 + $0x3d4] sm:$0xf] %vm3846_vm3, %v4933_v24  ;;  %v2024_v31 = vadd.f32 %v6431_v56, %v2023_v29  ;;  %v2536_v32 = vadd.f32 %v6431_v56, %v2535_v30  ;;  %v5210_v33 = vpop.f32.mrb[122].mxu0  ;;  %v5338_v34 = vpop.f32.mrb[122].mxu1 }
 0x1e0   : > { %v2688_v35 = vmax.f32 %v2032_v27, 0.0  ;;  %v2816_v36 = vmax.f32 %v2544_v28, 0.0  ;;  %v2035_v37 = vadd.f32 %v6431_v56, %v5210_v33  ;;  %v2547_v38 = vadd.f32 %v6431_v56, %v5338_v34  ;;  %v2026_v39 = vpop.f32.mrb[123].mxu0  ;;  %v2538_v40 = vpop.f32.mrb[123].mxu1 }
 0x1e1   : > { %v2686_v41 = vmax.f32 %v2024_v31, 0.0  ;;  %v2814_v42 = vmax.f32 %v2536_v32, 0.0  ;;  %v2027_v43 = vadd.f32 %v6431_v56, %v2026_v39  ;;  %v2539_v44 = vadd.f32 %v6431_v56, %v2538_v40 }
 0x1e2   : > { %v4810_v45 = vpack.c.bf16 %v2688_v35, %v2688_v35  ;;  %v4938_v46 = vpack.c.bf16 %v2816_v36, %v2816_v36  ;;  %v2689_v47 = vmax.f32 %v2035_v37, 0.0  ;;  %v2817_v48 = vmax.f32 %v2547_v38, 0.0 }
 0x1e3   : > { %v4808_v49 = vpack.c.bf16 %v2686_v41, %v2686_v41  ;;  %v4936_v50 = vpack.c.bf16 %v2814_v42, %v2814_v42  ;;  %v2687_v51 = vmax.f32 %v2027_v43, 0.0  ;;  %v2815_v17 = vmax.f32 %v2539_v44, 0.0 }
 0x1e4   : > { %3969 = vst.msk [vmem:[%s5799_s6 + $0x1e8] sm:$0xf] %vm3846_vm3, %v4810_v45  ;;  %4097 = vst.msk [vmem:[%s5799_s6 + $0x3e8] sm:$0xf] %vm3846_vm3, %v4938_v46  ;;  %v4811_v52 = vpack.c.bf16 %v2689_v47, %v2689_v47  ;;  %v4939_v53 = vpack.c.bf16 %v2817_v48, %v2817_v48 }
 0x1e5   : > { %3967 = vst.msk [vmem:[%s5799_s6 + $0x1e0] sm:$0xf] %vm3846_vm3, %v4808_v49  ;;  %4095 = vst.msk [vmem:[%s5799_s6 + $0x3e0] sm:$0xf] %vm3846_vm3, %v4936_v50  ;;  %v4809_v54 = vpack.c.bf16 %v2687_v51, %v2687_v51  ;;  %v4937_v57 = vpack.c.bf16 %v2815_v17, %v2815_v17  ;;  %v5213_v58 = vpop.f32.mrb[124].mxu0  ;;  %v5341_v59 = vpop.f32.mrb[124].mxu1 }
 0x1e6   : > { %3970 = vst.msk [vmem:[%s5799_s6 + $0x1ec] sm:$0xf] %vm3846_vm3, %v4811_v52  ;;  %4098 = vst.msk [vmem:[%s5799_s6 + $0x3ec] sm:$0xf] %vm3846_vm3, %v4939_v53  ;;  %v2048_v60 = vadd.f32 %v6431_v56, %v5213_v58  ;;  %v2560_v61 = vadd.f32 %v6431_v56, %v5341_v59  ;;  %v2039_v62 = vpop.f32.mrb[125].mxu0  ;;  %v2551_v63 = vpop.f32.mrb[125].mxu1 }
 0x1e7   : > { %3968 = vst.msk [vmem:[%s5799_s6 + $0x1e4] sm:$0xf] %vm3846_vm3, %v4809_v54  ;;  %4096 = vst.msk [vmem:[%s5799_s6 + $0x3e4] sm:$0xf] %vm3846_vm3, %v4937_v57  ;;  %v2040_v0 = vadd.f32 %v6431_v56, %v2039_v62  ;;  %v2552_v1 = vadd.f32 %v6431_v56, %v2551_v63  ;;  %v5214_v2 = vpop.f32.mrb[126].mxu0  ;;  %v5342_v3 = vpop.f32.mrb[126].mxu1 }
 0x1e8   : > { %v2692_v4 = vmax.f32 %v2048_v60, 0.0  ;;  %v2820_v5 = vmax.f32 %v2560_v61, 0.0  ;;  %v2051_v6 = vadd.f32 %v6431_v56, %v5214_v2  ;;  %v2563_v7 = vadd.f32 %v6431_v56, %v5342_v3  ;;  %v2042_v8 = vpop.f32.mrb[127].mxu0  ;;  %v2554_v9 = vpop.f32.mrb[127].mxu1 }
 0x1e9   : > { %v2690_v10 = vmax.f32 %v2040_v0, 0.0  ;;  %v2818_v11 = vmax.f32 %v2552_v1, 0.0  ;;  %v2043_v12 = vadd.f32 %v6431_v56, %v2042_v8  ;;  %v2555_v13 = vadd.f32 %v6431_v56, %v2554_v9 }
 0x1ea   : > { %v4814_v55 = vpack.c.bf16 %v2692_v4, %v2692_v4  ;;  %v4942_v14 = vpack.c.bf16 %v2820_v5, %v2820_v5  ;;  %v2693_v15 = vmax.f32 %v2051_v6, 0.0  ;;  %v2821_v16 = vmax.f32 %v2563_v7, 0.0 }
 0x1eb   : > { %v4812_v18 = vpack.c.bf16 %v2690_v10, %v2690_v10  ;;  %v4940_v19 = vpack.c.bf16 %v2818_v11, %v2818_v11  ;;  %v2691_v20 = vmax.f32 %v2043_v12, 0.0  ;;  %v2819_v21 = vmax.f32 %v2555_v13, 0.0 }
 0x1ec   : > { %3973 = vst.msk [vmem:[%s5799_s6 + $0x1f8] sm:$0xf] %vm3846_vm3, %v4814_v55  ;;  %4101 = vst.msk [vmem:[%s5799_s6 + $0x3f8] sm:$0xf] %vm3846_vm3, %v4942_v14  ;;  %v4815_v22 = vpack.c.bf16 %v2693_v15, %v2693_v15  ;;  %v4943_v23 = vpack.c.bf16 %v2821_v16, %v2821_v16 }
 0x1ed   : > { %3971 = vst.msk [vmem:[%s5799_s6 + $0x1f0] sm:$0xf] %vm3846_vm3, %v4812_v18  ;;  %4099 = vst.msk [vmem:[%s5799_s6 + $0x3f0] sm:$0xf] %vm3846_vm3, %v4940_v19  ;;  %v4813_v56 = vpack.c.bf16 %v2691_v20, %v2691_v20  ;;  %v4941_v24 = vpack.c.bf16 %v2819_v21, %v2819_v21 }
 0x1ee   : > { %3974 = vst.msk [vmem:[%s5799_s6 + $0x1fc] sm:$0xf] %vm3846_vm3, %v4815_v22  ;;  %4102 = vst.msk [vmem:[%s5799_s6 + $0x3fc] sm:$0xf] %vm3846_vm3, %v4943_v23 }
 0x1ef   : > { %3972 = vst.msk [vmem:[%s5799_s6 + $0x1f4] sm:$0xf] %vm3846_vm3, %v4813_v56  ;;  %4100 = vst.msk [vmem:[%s5799_s6 + $0x3f4] sm:$0xf] %vm3846_vm3, %v4941_v24 }
 0x1f0 PF: > { %s13_s12 = sadd.s32 1, %s5503_s12  }
 0x1f1   : > { %p10_p4 = scmp.ge.s32.totalorder %s13_s12, 5  }
 0x1f3   :  { %12 = sbr.rel (!%p10_p4) target bundleno = 1 (0x1), region = 62 }

// kernel: _lambda_.6
= control target key start
LH: loop header
LB: loop body
LE: loop exit
PB: predicated region body
PF: predicated region fallthrough
CT: control target
= control target key end

     0   :  { %s4114_s12 = smov 0   ;;  %s4891_s0 = inlined_call_operand.vmem [shape: bf16[1536,400], index: 0, kind: input, shape index: {}]   ;;  %s4892_s1 = inlined_call_operand.vmem [shape: bf16[400,32], index: 1, kind: input, shape index: {}]   ;;  %s4893_s2 = inlined_call_operand.vmem [shape: f32[1,32], index: 2, kind: input, shape index: {}]   ;;  %s4894_s3 = inlined_call_operand.vmem [shape: bf16[1536,32], index: 3, kind: output, shape index: {}]  }
   0x1 LB: > { %s3101_s13 = sadd.s32 4294967295, %s4091_s12   ;;  %p3105_p0 = scmp.ge.s32.totalorder %s4091_s12, 1  ;;  %s4091_s12 = sphi %s4114_s12, %s13_s12  }
   0x2   : > { %p139_p1 = scmp.lt.s32.totalorder %s4091_s12, 3 }
   0x4   : > { %p140_p2 = pnand %p3105_p0, %p139_p1 }
   0x5   : > { %v3771_v0 = vld [vmem:[%s4892_s1] sm:$0xff] (!%p140_p2)   ;;  %v4093_v1 = vmov (!%p140_p2), 0   ;;  %v3772_v2 = vld [vmem:[%s4892_s1 + $0x8] sm:$0xff] (!%p140_p2)   ;;  %v3773_v3 = vld [vmem:[%s4892_s1 + $0x10] sm:$0xff] (!%p140_p2)   ;;  %s164_s22 = smul.u32 (!%p140_p2), 96, %s3101_s13  ;;  %vm1489_vm0 = vcmask (!%p140_p2), 130048  }
   0x6   : > { %143 = sbr.rel (%p140_p2) target bundleno = 669 (0x29d), region = 32  ;;  %1634 = vmatprep.subr.bf16.mxu1 (!%p140_p2), %v4093_v1  ;;  %2051 = vmatprep.subr.bf16.mxu0 (!%p140_p2), %v4093_v1  ;;  %v3778_v4 = vld [vmem:[%s4892_s1 + $0x80] sm:$0xff] (!%p140_p2)   ;;  %v3780_v5 = vld [vmem:[%s4892_s1 + $0x88] sm:$0xff] (!%p140_p2)   ;;  %v3774_v6 = vld [vmem:[%s4892_s1 + $0x18] sm:$0xff] (!%p140_p2)   ;;  %vm2948_vm1 = vcmask (!%p140_p2), 257024  }
   0x7   : > { %1635 = vmatpush1.bf16.msra.mxu1 (!%p140_p2), %v3771_v0  ;;  %2052 = vmatpush1.bf16.msra.mxu0 (!%p140_p2), %v3778_v4  ;;  %p165_p3 = scmp.lt.s32.totalorder (!%p140_p2), %s164_s22, 191  ;;  %v3782_v7 = vld [vmem:[%s4892_s1 + $0x90] sm:$0xff] (!%p140_p2)   ;;  %v3775_v8 = vld [vmem:[%s4892_s1 + $0x20] sm:$0xff] (!%p140_p2)   ;;  %v3784_v9 = vld [vmem:[%s4892_s1 + $0x98] sm:$0xff] (!%p140_p2)  }
   0x8   : > { %1636 = vmatprep.subr.bf16.mxu1 (!%p140_p2), %v4093_v1  ;;  %2053 = vmatprep.subr.bf16.mxu0 (!%p140_p2), %v4093_v1  ;;  %v3776_v10 = vld [vmem:[%s4892_s1 + $0x28] sm:$0xff] (!%p140_p2)   ;;  %v3786_v11 = vld [vmem:[%s4892_s1 + $0xa0] sm:$0xff] (!%p140_p2)   ;;  %v3777_v12 = vld [vmem:[%s4892_s1 + $0x30] sm:$0xff] (!%p140_p2)  }
   0x9   : > { %v3779_v13 = vld [vmem:[%s4892_s1 + $0x38] sm:$0xff] (!%p140_p2)   ;;  %v3788_v14 = vld [vmem:[%s4892_s1 + $0xa8] sm:$0xff] (!%p140_p2)   ;;  %v3790_v17 = vld [vmem:[%s4892_s1 + $0xb0] sm:$0xff] (!%p140_p2)  }
   0xa   : > { %v3781_v18 = vld [vmem:[%s4892_s1 + $0x40] sm:$0xff] (!%p140_p2)   ;;  %v3792_v19 = vld [vmem:[%s4892_s1 + $0xb8] sm:$0xff] (!%p140_p2)   ;;  %v3783_v20 = vld [vmem:[%s4892_s1 + $0x48] sm:$0xff] (!%p140_p2)  }
   0xb   : > { %1637 = vmatpush1.bf16.msra.mxu1 (!%p140_p2), %v3772_v2  ;;  %2054 = vmatpush1.bf16.msra.mxu0 (!%p140_p2), %v3780_v5  ;;  %v3794_v21 = vld [vmem:[%s4892_s1 + $0xc0] sm:$0xff] (!%p140_p2)   ;;  %v3785_v22 = vld [vmem:[%s4892_s1 + $0x50] sm:$0xff] (!%p140_p2)   ;;  %v3787_v25 = vld [vmem:[%s4892_s1 + $0x58] sm:$0xff] (!%p140_p2)  }
   0xc   : > { %1638 = vmatprep.subr.bf16.mxu1 (!%p140_p2), %v4093_v1  ;;  %2055 = vmatprep.subr.bf16.mxu0 (!%p140_p2), %v4093_v1  ;;  %v3789_v26 = vld [vmem:[%s4892_s1 + $0x60] sm:$0xff] (!%p140_p2)   ;;  %v3791_v29 = vld [vmem:[%s4892_s1 + $0x68] sm:$0xff] (!%p140_p2)   ;;  %v3793_v30 = vld [vmem:[%s4892_s1 + $0x70] sm:$0xff] (!%p140_p2)  }
   0xd   : > { %s4896_s22 = smov (!%p165_p3, %s164_s22), 191  ;;  %v3795_v33 = vld [vmem:[%s4892_s1 + $0x78] sm:$0xff]  }
   0xe   : > { %s3473_s8 = sshll.u32 %s4896_s22, 4  ;;  %s3108_s21 = sshll.u32 %s4896_s22, 2 }
   0xf   : > { %1639 = vmatpush1.bf16.msra.mxu1 %v3773_v3  ;;  %2056 = vmatpush1.bf16.msra.mxu0 %v3782_v7  ;;  %s4176_s16 = scalar_lea.vmem %s4891_s0, %s3473_s8  ;;  %s4400_s22 = scalar_lea.vmem %s4894_s3, %s3108_s21 }
  0x10   : > { %1640 = vmatprep.subr.bf16.mxu1 %v4093_v1  ;;  %2057 = vmatprep.subr.bf16.mxu0 %v4093_v1  ;;  %v3798_v15 = vld [vmem:[%s4176_s16 + $0xc] ss:$16 sps:$4 sm:$0xff]   ;;  %v3801_v16 = vld [vmem:[%s4176_s16 + $0x4] ss:$16 sps:$4 sm:$0xff]   ;;  %v3796_v23 = vld [vmem:[%s4176_s16 + $0x8] ss:$16 sps:$4 sm:$0xff]  }
  0x11   : > { %3327 = vmatprep.mubr.msk.bf16.mxu0 %vm1489_vm0, %v3798_v15  ;;  %1666 = vmatprep.mubr.bf16.mxu1 %v3801_v16  ;;  %v3802_v24 = vld [vmem:[%s4176_s16 + $0x2c] ss:$16 sps:$4 sm:$0xff]   ;;  %v3806_v27 = vld [vmem:[%s4176_s16 + $0x28] ss:$16 sps:$4 sm:$0xff]   ;;  %v3799_v34 = vld [vmem:[%s4176_s16] ss:$16 sps:$4 sm:$0xff]  }
  0x12   : > { %v3808_v28 = vld [vmem:[%s4176_s16 + $0x4c] ss:$16 sps:$4 sm:$0xff]   ;;  %v3812_v31 = vld [vmem:[%s4176_s16 + $0x48] ss:$16 sps:$4 sm:$0xff]   ;;  %v3804_v35 = vld [vmem:[%s4176_s16 + $0x24] ss:$16 sps:$4 sm:$0xff]  }
  0x13   : > { %1641 = vmatpush1.bf16.msra.mxu1 %v3774_v6  ;;  %2058 = vmatpush1.bf16.msra.mxu0 %v3784_v9  ;;  %v3814_v32 = vld [vmem:[%s4176_s16 + $0x6c] ss:$16 sps:$4 sm:$0xff]   ;;  %v3818_v36 = vld [vmem:[%s4176_s16 + $0x68] ss:$16 sps:$4 sm:$0xff]   ;;  %v3807_v38 = vld [vmem:[%s4176_s16 + $0x20] ss:$16 sps:$4 sm:$0xff]  }
  0x14   : > { %1642 = vmatprep.subr.bf16.mxu1 %v4093_v1  ;;  %2059 = vmatprep.subr.bf16.mxu0 %v4093_v1  ;;  %v3820_v37 = vld [vmem:[%s4176_s16 + $0x8c] ss:$16 sps:$4 sm:$0xff]   ;;  %v3810_v39 = vld [vmem:[%s4176_s16 + $0x44] ss:$16 sps:$4 sm:$0xff]   ;;  %v3824_v40 = vld [vmem:[%s4176_s16 + $0x88] ss:$16 sps:$4 sm:$0xff]  }
  0x15   : > { %v3826_v41 = vld [vmem:[%s4176_s16 + $0xac] ss:$16 sps:$4 sm:$0xff]   ;;  %v3813_v42 = vld [vmem:[%s4176_s16 + $0x40] ss:$16 sps:$4 sm:$0xff]   ;;  %v3816_v43 = vld [vmem:[%s4176_s16 + $0x64] ss:$16 sps:$4 sm:$0xff]  }
  0x16   : > { %v3830_v44 = vld [vmem:[%s4176_s16 + $0xa8] ss:$16 sps:$4 sm:$0xff]   ;;  %v3832_v45 = vld [vmem:[%s4176_s16 + $0xcc] ss:$16 sps:$4 sm:$0xff]   ;;  %v3819_v46 = vld [vmem:[%s4176_s16 + $0x60] ss:$16 sps:$4 sm:$0xff]  }
  0x17   : > { %1643 = vmatpush1.bf16.msra.mxu1 %v3775_v8  ;;  %2060 = vmatpush1.bf16.msra.mxu0 %v3786_v11  ;;  %v3822_v47 = vld [vmem:[%s4176_s16 + $0x84] ss:$16 sps:$4 sm:$0xff]   ;;  %v3836_v48 = vld [vmem:[%s4176_s16 + $0xc8] ss:$16 sps:$4 sm:$0xff]   ;;  %v3838_v49 = vld [vmem:[%s4176_s16 + $0xec] ss:$16 sps:$4 sm:$0xff]  }
  0x18   : > { %1644 = vmatprep.subr.bf16.mxu1 %v4093_v1  ;;  %2061 = vmatprep.subr.bf16.mxu0 %v4093_v1  ;;  %v3825_v50 = vld [vmem:[%s4176_s16 + $0x80] ss:$16 sps:$4 sm:$0xff]   ;;  %v3828_v51 = vld [vmem:[%s4176_s16 + $0xa4] ss:$16 sps:$4 sm:$0xff]   ;;  %v3842_v52 = vld [vmem:[%s4176_s16 + $0xe8] ss:$16 sps:$4 sm:$0xff]  }
  0x19   : > { %v3844_v53 = vld [vmem:[%s4176_s16 + $0x10c] ss:$16 sps:$4 sm:$0xff]   ;;  %v3831_v54 = vld [vmem:[%s4176_s16 + $0xa0] ss:$16 sps:$4 sm:$0xff]   ;;  %v3834_v55 = vld [vmem:[%s4176_s16 + $0xc4] ss:$16 sps:$4 sm:$0xff]  }
  0x1a   : > { %v3848_v56 = vld [vmem:[%s4176_s16 + $0x108] ss:$16 sps:$4 sm:$0xff]   ;;  %v3850_v57 = vld [vmem:[%s4176_s16 + $0x12c] ss:$16 sps:$4 sm:$0xff]   ;;  %v3837_v58 = vld [vmem:[%s4176_s16 + $0xc0] ss:$16 sps:$4 sm:$0xff]  }
  0x1b   : > { %1645 = vmatpush1.bf16.msra.mxu1 %v3776_v10  ;;  %2062 = vmatpush1.bf16.msra.mxu0 %v3788_v14  ;;  %v3840_v59 = vld [vmem:[%s4176_s16 + $0xe4] ss:$16 sps:$4 sm:$0xff]   ;;  %v3854_v60 = vld [vmem:[%s4176_s16 + $0x128] ss:$16 sps:$4 sm:$0xff]   ;;  %v3856_v61 = vld [vmem:[%s4176_s16 + $0x14c] ss:$16 sps:$4 sm:$0xff]  }
  0x1c   : > { %1646 = vmatprep.subr.bf16.mxu1 %v4093_v1  ;;  %2063 = vmatprep.subr.bf16.mxu0 %v4093_v1  ;;  %v3843_v62 = vld [vmem:[%s4176_s16 + $0xe0] ss:$16 sps:$4 sm:$0xff]   ;;  %v3846_v63 = vld [vmem:[%s4176_s16 + $0x104] ss:$16 sps:$4 sm:$0xff]   ;;  %v3860_v0 = vld [vmem:[%s4176_s16 + $0x148] ss:$16 sps:$4 sm:$0xff]  }
  0x1d   : > { %v3849_v2 = vld [vmem:[%s4176_s16 + $0x100] ss:$16 sps:$4 sm:$0xff]   ;;  %v3852_v3 = vld [vmem:[%s4176_s16 + $0x124] ss:$16 sps:$4 sm:$0xff]   ;;  %v3866_v4 = vld [vmem:[%s4176_s16 + $0x168] ss:$16 sps:$4 sm:$0xff]  }
  0x1e   : > { %v3868_v5 = vld [vmem:[%s4176_s16 + $0x18c] ss:$16 sps:$4 sm:$0xff]   ;;  %v3855_v6 = vld [vmem:[%s4176_s16 + $0x120] ss:$16 sps:$4 sm:$0xff]   ;;  %v3858_v7 = vld [vmem:[%s4176_s16 + $0x144] ss:$16 sps:$4 sm:$0xff]  }
  0x1f   : > { %1647 = vmatpush1.bf16.msra.mxu1 %v3777_v12  ;;  %2064 = vmatpush1.bf16.msra.mxu0 %v3790_v17  ;;  %v3872_v8 = vld [vmem:[%s4176_s16 + $0x188] ss:$16 sps:$4 sm:$0xff]   ;;  %v3874_v9 = vld [vmem:[%s4176_s16 + $0x1ac] ss:$16 sps:$4 sm:$0xff]   ;;  %v3861_v10 = vld [vmem:[%s4176_s16 + $0x140] ss:$16 sps:$4 sm:$0xff]  }
  0x20   : > { %1648 = vmatprep.subr.bf16.mxu1 %v4093_v1  ;;  %2065 = vmatprep.subr.bf16.mxu0 %v4093_v1  ;;  %v3864_v11 = vld [vmem:[%s4176_s16 + $0x164] ss:$16 sps:$4 sm:$0xff]   ;;  %v3878_v12 = vld [vmem:[%s4176_s16 + $0x1a8] ss:$16 sps:$4 sm:$0xff]   ;;  %v3867_v14 = vld [vmem:[%s4176_s16 + $0x160] ss:$16 sps:$4 sm:$0xff]  }
  0x21   : > { %v3870_v15 = vld [vmem:[%s4176_s16 + $0x184] ss:$16 sps:$4 sm:$0xff]   ;;  %v3884_v16 = vld [vmem:[%s4176_s16 + $0x1c8] ss:$16 sps:$4 sm:$0xff]   ;;  %v3886_v17 = vld [vmem:[%s4176_s16 + $0x1ec] ss:$16 sps:$4 sm:$0xff]  }
  0x23   : > { %1649 = vmatpush1.bf16.msra.mxu1 %v3779_v13  ;;  %2066 = vmatpush1.bf16.msra.mxu0 %v3792_v19  ;;  %v3880_v13 = vld [vmem:[%s4176_s16 + $0x1cc] ss:$16 sps:$4 sm:$0xff]   ;;  %v3876_v19 = vld [vmem:[%s4176_s16 + $0x1a4] ss:$16 sps:$4 sm:$0xff]  }
  0x24   : > { %1650 = vmatprep.subr.bf16.mxu1 %v4093_v1  ;;  %2067 = vmatprep.subr.bf16.mxu0 %v4093_v1 }
  0x27   : > { %1651 = vmatpush1.bf16.msra.mxu1 %v3781_v18  ;;  %2068 = vmatpush1.bf16.msra.mxu0 %v3794_v21  ;;  %v3873_v18 = vld [vmem:[%s4176_s16 + $0x180] ss:$16 sps:$4 sm:$0xff]   ;;  %v3892_v21 = vld [vmem:[%s4176_s16 + $0x20c] ss:$16 sps:$4 sm:$0xff]  }
  0x28   : > { %1652 = vmatprep.subr.bf16.mxu1 %v4093_v1 }
  0x2a   : > { %2084 = vmatmul.mubr.bf16.vlgmr.msra.gmra.mrb[0].mxu0 %v3796_v23  ;;  %v3882_v23 = vld [vmem:[%s4176_s16 + $0x1c4] ss:$16 sps:$4 sm:$0xff]  }
  0x2b   : > { %1653 = vmatpush1.bf16.msra.mxu1 %v3783_v20  ;;  %3328 = vmatprep.mubr.msk.bf16.mxu0 %vm1489_vm0, %v3802_v24  ;;  %v3890_v20 = vld [vmem:[%s4176_s16 + $0x1e8] ss:$16 sps:$4 sm:$0xff]  }
  0x2c   : > { %1654 = vmatprep.subr.bf16.mxu1 %v4093_v1  ;;  %v3896_v24 = vld [vmem:[%s4176_s16 + $0x208] ss:$16 sps:$4 sm:$0xff]  }
  0x2f   : > { %1655 = vmatpush1.bf16.msra.mxu1 %v3785_v22  ;;  %v3879_v22 = vld [vmem:[%s4176_s16 + $0x1a0] ss:$16 sps:$4 sm:$0xff]  }
  0x30   : > { %1656 = vmatprep.subr.bf16.mxu1 %v4093_v1 }
  0x32   : > { %2092 = vmatmul.mubr.bf16.gmra.mrb[4].mxu0 %v3806_v27  ;;  %v3888_v27 = vld [vmem:[%s4176_s16 + $0x1e4] ss:$16 sps:$4 sm:$0xff]  }
  0x33   : > { %1657 = vmatpush1.bf16.msra.mxu1 %v3787_v25  ;;  %3329 = vmatprep.mubr.msk.bf16.mxu0 %vm1489_vm0, %v3808_v28  ;;  %v3898_v25 = vld [vmem:[%s4176_s16 + $0x22c] ss:$16 sps:$4 sm:$0xff]   ;;  %v3902_v28 = vld [vmem:[%s4176_s16 + $0x228] ss:$16 sps:$4 sm:$0xff]  }
  0x34   : > { %1658 = vmatprep.subr.bf16.mxu1 %v4093_v1 }
  0x37   : > { %1659 = vmatpush1.bf16.msra.mxu1 %v3789_v26  ;;  %v3885_v26 = vld [vmem:[%s4176_s16 + $0x1c0] ss:$16 sps:$4 sm:$0xff]  }
  0x38   : > { %1660 = vmatprep.subr.bf16.mxu1 %v4093_v1 }
  0x3a   : > { %2100 = vmatmul.mubr.bf16.gmra.mrb[8].mxu0 %v3812_v31  ;;  %v3894_v31 = vld [vmem:[%s4176_s16 + $0x204] ss:$16 sps:$4 sm:$0xff]  }
  0x3b   : > { %1661 = vmatpush1.bf16.msra.mxu1 %v3791_v29  ;;  %3330 = vmatprep.mubr.msk.bf16.mxu0 %vm1489_vm0, %v3814_v32  ;;  %v3904_v29 = vld [vmem:[%s4176_s16 + $0x24c] ss:$16 sps:$4 sm:$0xff]   ;;  %v3908_v32 = vld [vmem:[%s4176_s16 + $0x248] ss:$16 sps:$4 sm:$0xff]  }
  0x3c   : > { %1662 = vmatprep.subr.bf16.mxu1 %v4093_v1 }
  0x3f   : > { %1663 = vmatpush1.bf16.msra.mxu1 %v3793_v30  ;;  %v3891_v30 = vld [vmem:[%s4176_s16 + $0x1e0] ss:$16 sps:$4 sm:$0xff]  }
  0x40   : > { %1664 = vmatprep.subr.bf16.mxu1 %v4093_v1  ;;  %v3862_v1 = vld [vmem:[%s4176_s16 + $0x16c] ss:$16 sps:$4 sm:$0xff]  }
  0x42   : > { %2108 = vmatmul.mubr.bf16.gmra.mrb[12].mxu0 %v3818_v36  ;;  %v3914_v36 = vld [vmem:[%s4176_s16 + $0x268] ss:$16 sps:$4 sm:$0xff]  }
  0x43   : > { %1665 = vmatpush1.bf16.msra.mxu1 %v3795_v33  ;;  %3331 = vmatprep.mubr.msk.bf16.mxu0 %vm1489_vm0, %v3820_v37  ;;  %v3910_v33 = vld [vmem:[%s4176_s16 + $0x26c] ss:$16 sps:$4 sm:$0xff]  }
  0x44   : > { %v3916_v37 = vld [vmem:[%s4176_s16 + $0x28c] ss:$16 sps:$4 sm:$0xff]  }
  0x46   : > { %1667 = vmatmul.mubr.bf16.vlgmr.msra.gmra.mrb[0].mxu1 %v3799_v34  ;;  %v3897_v34 = vld [vmem:[%s4176_s16 + $0x200] ss:$16 sps:$4 sm:$0xff]  }
  0x47   : > { %1674 = vmatprep.mubr.bf16.mxu1 %v3804_v35  ;;  %v3900_v35 = vld [vmem:[%s4176_s16 + $0x224] ss:$16 sps:$4 sm:$0xff]  }
  0x4a   : > { %2116 = vmatmul.mubr.bf16.gmra.mrb[16].mxu0 %v3824_v40  ;;  %v3920_v40 = vld [vmem:[%s4176_s16 + $0x288] ss:$16 sps:$4 sm:$0xff]  }
  0x4b   : > { %3332 = vmatprep.mubr.msk.bf16.mxu0 %vm1489_vm0, %v3826_v41  ;;  %v3922_v41 = vld [vmem:[%s4176_s16 + $0x2ac] ss:$16 sps:$4 sm:$0xff]  }
  0x4e   : > { %1675 = vmatmul.mubr.bf16.gmra.mrb[4].mxu1 %v3807_v38  ;;  %v3903_v38 = vld [vmem:[%s4176_s16 + $0x220] ss:$16 sps:$4 sm:$0xff]  }
  0x4f   : > { %1682 = vmatprep.mubr.bf16.mxu1 %v3810_v39  ;;  %v3906_v39 = vld [vmem:[%s4176_s16 + $0x244] ss:$16 sps:$4 sm:$0xff]  }
  0x52   : > { %2124 = vmatmul.mubr.bf16.gmra.mrb[20].mxu0 %v3830_v44  ;;  %v3926_v44 = vld [vmem:[%s4176_s16 + $0x2a8] ss:$16 sps:$4 sm:$0xff]  }
  0x53   : > { %3333 = vmatprep.mubr.msk.bf16.mxu0 %vm1489_vm0, %v3832_v45  ;;  %v3928_v45 = vld [vmem:[%s4176_s16 + $0x2cc] ss:$16 sps:$4 sm:$0xff]  }
  0x56   : > { %1683 = vmatmul.mubr.bf16.gmra.mrb[8].mxu1 %v3813_v42  ;;  %v3909_v42 = vld [vmem:[%s4176_s16 + $0x240] ss:$16 sps:$4 sm:$0xff]  }
  0x57   : > { %1690 = vmatprep.mubr.bf16.mxu1 %v3816_v43  ;;  %v3912_v43 = vld [vmem:[%s4176_s16 + $0x264] ss:$16 sps:$4 sm:$0xff]  }
  0x5a   : > { %2132 = vmatmul.mubr.bf16.gmra.mrb[24].mxu0 %v3836_v48  ;;  %v3932_v48 = vld [vmem:[%s4176_s16 + $0x2c8] ss:$16 sps:$4 sm:$0xff]  }
  0x5b   : > { %3334 = vmatprep.mubr.msk.bf16.mxu0 %vm1489_vm0, %v3838_v49  ;;  %v3934_v49 = vld [vmem:[%s4176_s16 + $0x2ec] ss:$16 sps:$4 sm:$0xff]  }
  0x5e   : > { %1691 = vmatmul.mubr.bf16.gmra.mrb[12].mxu1 %v3819_v46  ;;  %v3915_v46 = vld [vmem:[%s4176_s16 + $0x260] ss:$16 sps:$4 sm:$0xff]  }
  0x5f   : > { %1698 = vmatprep.mubr.bf16.mxu1 %v3822_v47  ;;  %v3918_v47 = vld [vmem:[%s4176_s16 + $0x284] ss:$16 sps:$4 sm:$0xff]  }
  0x62   : > { %2140 = vmatmul.mubr.bf16.gmra.mrb[28].mxu0 %v3842_v52  ;;  %v3938_v52 = vld [vmem:[%s4176_s16 + $0x2e8] ss:$16 sps:$4 sm:$0xff]  }
  0x63   : > { %3335 = vmatprep.mubr.msk.bf16.mxu0 %vm1489_vm0, %v3844_v53  ;;  %v3940_v53 = vld [vmem:[%s4176_s16 + $0x30c] ss:$16 sps:$4 sm:$0xff]  }
  0x66   : > { %1699 = vmatmul.mubr.bf16.gmra.mrb[16].mxu1 %v3825_v50  ;;  %v3921_v50 = vld [vmem:[%s4176_s16 + $0x280] ss:$16 sps:$4 sm:$0xff]  }
  0x67   : > { %1706 = vmatprep.mubr.bf16.mxu1 %v3828_v51  ;;  %v3924_v51 = vld [vmem:[%s4176_s16 + $0x2a4] ss:$16 sps:$4 sm:$0xff]  }
  0x6a   : > { %2148 = vmatmul.mubr.bf16.gmra.mrb[32].mxu0 %v3848_v56  ;;  %v3944_v56 = vld [vmem:[%s4176_s16 + $0x308] ss:$16 sps:$4 sm:$0xff]  }
  0x6b   : > { %3336 = vmatprep.mubr.msk.bf16.mxu0 %vm1489_vm0, %v3850_v57  ;;  %v3946_v57 = vld [vmem:[%s4176_s16 + $0x32c] ss:$16 sps:$4 sm:$0xff]  }
  0x6e   : > { %1707 = vmatmul.mubr.bf16.gmra.mrb[20].mxu1 %v3831_v54  ;;  %v3927_v54 = vld [vmem:[%s4176_s16 + $0x2a0] ss:$16 sps:$4 sm:$0xff]  }
  0x6f   : > { %1714 = vmatprep.mubr.bf16.mxu1 %v3834_v55  ;;  %v3930_v55 = vld [vmem:[%s4176_s16 + $0x2c4] ss:$16 sps:$4 sm:$0xff]  }
  0x72   : > { %2156 = vmatmul.mubr.bf16.gmra.mrb[36].mxu0 %v3854_v60  ;;  %v3950_v60 = vld [vmem:[%s4176_s16 + $0x328] ss:$16 sps:$4 sm:$0xff]  }
  0x73   : > { %3337 = vmatprep.mubr.msk.bf16.mxu0 %vm1489_vm0, %v3856_v61  ;;  %v3952_v61 = vld [vmem:[%s4176_s16 + $0x34c] ss:$16 sps:$4 sm:$0xff]  }
  0x76   : > { %1715 = vmatmul.mubr.bf16.gmra.mrb[24].mxu1 %v3837_v58  ;;  %v3933_v58 = vld [vmem:[%s4176_s16 + $0x2c0] ss:$16 sps:$4 sm:$0xff]  }
  0x77   : > { %1722 = vmatprep.mubr.bf16.mxu1 %v3840_v59  ;;  %v3936_v59 = vld [vmem:[%s4176_s16 + $0x2e4] ss:$16 sps:$4 sm:$0xff]  }
  0x7a   : > { %2164 = vmatmul.mubr.bf16.gmra.mrb[40].mxu0 %v3860_v0  ;;  %v3956_v0 = vld [vmem:[%s4176_s16 + $0x348] ss:$16 sps:$4 sm:$0xff]  }
  0x7b   : > { %3338 = vmatprep.mubr.msk.bf16.mxu0 %vm1489_vm0, %v3862_v1  ;;  %v3958_v1 = vld [vmem:[%s4176_s16 + $0x36c] ss:$16 sps:$4 sm:$0xff]  }
  0x7e   : > { %1723 = vmatmul.mubr.bf16.gmra.mrb[28].mxu1 %v3843_v62  ;;  %v3939_v62 = vld [vmem:[%s4176_s16 + $0x2e0] ss:$16 sps:$4 sm:$0xff]  }
  0x7f   : > { %1730 = vmatprep.mubr.bf16.mxu1 %v3846_v63  ;;  %v3942_v63 = vld [vmem:[%s4176_s16 + $0x304] ss:$16 sps:$4 sm:$0xff]  }
  0x82   : > { %2172 = vmatmul.mubr.bf16.gmra.mrb[44].mxu0 %v3866_v4 }
  0x83   : > { %3339 = vmatprep.mubr.msk.bf16.mxu0 %vm1489_vm0, %v3868_v5 }
  0x86   : > { %1731 = vmatmul.mubr.bf16.gmra.mrb[32].mxu1 %v3849_v2  ;;  %v3945_v2 = vld [vmem:[%s4176_s16 + $0x300] ss:$16 sps:$4 sm:$0xff]  }
  0x87   : > { %1738 = vmatprep.mubr.bf16.mxu1 %v3852_v3  ;;  %v3948_v3 = vld [vmem:[%s4176_s16 + $0x324] ss:$16 sps:$4 sm:$0xff]  }
  0x8a   : > { %2180 = vmatmul.mubr.bf16.gmra.mrb[48].mxu0 %v3872_v8  ;;  %v3964_v8 = vld [vmem:[%s4176_s16 + $0x38c] ss:$16 sps:$4 sm:$0xff]  }
  0x8b   : > { %3340 = vmatprep.mubr.msk.bf16.mxu0 %vm1489_vm0, %v3874_v9 }
  0x8e   : > { %1739 = vmatmul.mubr.bf16.gmra.mrb[36].mxu1 %v3855_v6  ;;  %v3962_v6 = vld [vmem:[%s4176_s16 + $0x368] ss:$16 sps:$4 sm:$0xff]  }
  0x8f   : > { %1746 = vmatprep.mubr.bf16.mxu1 %v3858_v7 }
  0x92   : > { %2188 = vmatmul.mubr.bf16.gmra.mrb[52].mxu0 %v3878_v12 }
  0x93   : > { %3341 = vmatprep.mubr.msk.bf16.mxu0 %vm1489_vm0, %v3880_v13 }
  0x96   : > { %1747 = vmatmul.mubr.bf16.gmra.mrb[40].mxu1 %v3861_v10  ;;  %v3951_v10 = vld [vmem:[%s4176_s16 + $0x320] ss:$16 sps:$4 sm:$0xff]  }
  0x97   : > { %1754 = vmatprep.mubr.bf16.mxu1 %v3864_v11  ;;  %v3954_v11 = vld [vmem:[%s4176_s16 + $0x344] ss:$16 sps:$4 sm:$0xff]  }
  0x9a   : > { %2196 = vmatmul.mubr.bf16.gmra.mrb[56].mxu0 %v3884_v16  ;;  %v3970_v16 = vld [vmem:[%s4176_s16 + $0x3ac] ss:$16 sps:$4 sm:$0xff]  }
  0x9b   : > { %3342 = vmatprep.mubr.msk.bf16.mxu0 %vm1489_vm0, %v3886_v17 }
  0x9e   : > { %1755 = vmatmul.mubr.bf16.gmra.mrb[44].mxu1 %v3867_v14  ;;  %v3968_v14 = vld [vmem:[%s4176_s16 + $0x388] ss:$16 sps:$4 sm:$0xff]  }
  0x9f   : > { %1762 = vmatprep.mubr.bf16.mxu1 %v3870_v15 }
  0xa2   : > { %2204 = vmatmul.mubr.bf16.gmra.mrb[60].mxu0 %v3890_v20 }
  0xa3   : > { %3343 = vmatprep.mubr.msk.bf16.mxu0 %vm1489_vm0, %v3892_v21 }
  0xa6   : > { %1763 = vmatmul.mubr.bf16.gmra.mrb[48].mxu1 %v3873_v18  ;;  %v3957_v18 = vld [vmem:[%s4176_s16 + $0x340] ss:$16 sps:$4 sm:$0xff]  }
  0xa7   : > { %1770 = vmatprep.mubr.bf16.mxu1 %v3876_v19  ;;  %v3960_v19 = vld [vmem:[%s4176_s16 + $0x364] ss:$16 sps:$4 sm:$0xff]  }
  0xaa   : > { %2212 = vmatmul.mubr.bf16.gmra.mrb[64].mxu0 %v3896_v24  ;;  %v3976_v24 = vld [vmem:[%s4176_s16 + $0x3cc] ss:$16 sps:$4 sm:$0xff]  }
  0xab   : > { %3344 = vmatprep.mubr.msk.bf16.mxu0 %vm1489_vm0, %v3898_v25  ;;  %v4383_v25 = vld [vmem:[%s4893_s2] ss:$0 sm:$0xff] }
  0xae   : > { %1771 = vmatmul.mubr.bf16.gmra.mrb[52].mxu1 %v3879_v22  ;;  %v3974_v22 = vld [vmem:[%s4176_s16 + $0x3a8] ss:$16 sps:$4 sm:$0xff]  }
  0xaf   : > { %1778 = vmatprep.mubr.bf16.mxu1 %v3882_v23 }
  0xb2   : > { %2220 = vmatmul.mubr.bf16.gmra.mrb[68].mxu0 %v3902_v28 }
  0xb3   : > { %3345 = vmatprep.mubr.msk.bf16.mxu0 %vm1489_vm0, %v3904_v29 }
  0xb6   : > { %1779 = vmatmul.mubr.bf16.gmra.mrb[56].mxu1 %v3885_v26 }
  0xb7   : > { %1786 = vmatprep.mubr.bf16.mxu1 %v3888_v27 }
  0xba   : > { %2228 = vmatmul.mubr.bf16.gmra.mrb[72].mxu0 %v3908_v32  ;;  %v3966_v32 = vld [vmem:[%s4176_s16 + $0x384] ss:$16 sps:$4 sm:$0xff]  }
  0xbb   : > { %3346 = vmatprep.mubr.msk.bf16.mxu0 %vm1489_vm0, %v3910_v33 }
  0xbe   : > { %1787 = vmatmul.mubr.bf16.gmra.mrb[60].mxu1 %v3891_v30  ;;  %v3963_v30 = vld [vmem:[%s4176_s16 + $0x360] ss:$16 sps:$4 sm:$0xff]  }
  0xbf   : > { %1794 = vmatprep.mubr.bf16.mxu1 %v3894_v31 }
  0xc2   : > { %2236 = vmatmul.mubr.bf16.gmra.mrb[76].mxu0 %v3914_v36 }
  0xc3   : > { %3347 = vmatprep.mubr.msk.bf16.mxu0 %vm1489_vm0, %v3916_v37 }
  0xc6   : > { %1795 = vmatmul.mubr.bf16.gmra.mrb[64].mxu1 %v3897_v34 }
  0xc7   : > { %1802 = vmatprep.mubr.bf16.mxu1 %v3900_v35 }
  0xca   : > { %2244 = vmatmul.mubr.bf16.gmra.mrb[80].mxu0 %v3920_v40 }
  0xcb   : > { %3348 = vmatprep.mubr.msk.bf16.mxu0 %vm1489_vm0, %v3922_v41 }
  0xce   : > { %1803 = vmatmul.mubr.bf16.gmra.mrb[68].mxu1 %v3903_v38  ;;  %v3980_v38 = vld [vmem:[%s4176_s16 + $0x3c8] ss:$16 sps:$4 sm:$0xff]  }
  0xcf   : > { %1810 = vmatprep.mubr.bf16.mxu1 %v3906_v39 }
  0xd2   : > { %2252 = vmatmul.mubr.bf16.gmra.mrb[84].mxu0 %v3926_v44 }
  0xd3   : > { %3349 = vmatprep.mubr.msk.bf16.mxu0 %vm1489_vm0, %v3928_v45 }
  0xd6   : > { %1811 = vmatmul.mubr.bf16.gmra.mrb[72].mxu1 %v3909_v42  ;;  %v3982_v42 = vld [vmem:[%s4176_s16 + $0x3ec] ss:$16 sps:$4 sm:$0xff]  }
  0xd7   : > { %1818 = vmatprep.mubr.bf16.mxu1 %v3912_v43 }
  0xda   : > { %2260 = vmatmul.mubr.bf16.gmra.mrb[88].mxu0 %v3932_v48 }
  0xdb   : > { %3350 = vmatprep.mubr.msk.bf16.mxu0 %vm1489_vm0, %v3934_v49 }
  0xde   : > { %1819 = vmatmul.mubr.bf16.gmra.mrb[76].mxu1 %v3915_v46 }
  0xdf   : > { %1826 = vmatprep.mubr.bf16.mxu1 %v3918_v47 }
  0xe2   : > { %2268 = vmatmul.mubr.bf16.gmra.mrb[92].mxu0 %v3938_v52  ;;  %v3972_v52 = vld [vmem:[%s4176_s16 + $0x3a4] ss:$16 sps:$4 sm:$0xff]  }
  0xe3   : > { %3351 = vmatprep.mubr.msk.bf16.mxu0 %vm1489_vm0, %v3940_v53 }
  0xe6   : > { %1827 = vmatmul.mubr.bf16.gmra.mrb[80].mxu1 %v3921_v50  ;;  %v3969_v50 = vld [vmem:[%s4176_s16 + $0x380] ss:$16 sps:$4 sm:$0xff]  }
  0xe7   : > { %1834 = vmatprep.mubr.bf16.mxu1 %v3924_v51 }
  0xea   : > { %2276 = vmatmul.mubr.bf16.gmra.mrb[96].mxu0 %v3944_v56 }
  0xeb   : > { %3352 = vmatprep.mubr.msk.bf16.mxu0 %vm1489_vm0, %v3946_v57 }
  0xee   : > { %1835 = vmatmul.mubr.bf16.gmra.mrb[84].mxu1 %v3927_v54 }
  0xef   : > { %1842 = vmatprep.mubr.bf16.mxu1 %v3930_v55 }
  0xf2   : > { %2284 = vmatmul.mubr.bf16.gmra.mrb[100].mxu0 %v3950_v60 }
  0xf3   : > { %3353 = vmatprep.mubr.msk.bf16.mxu0 %vm1489_vm0, %v3952_v61 }
  0xf6   : > { %1843 = vmatmul.mubr.bf16.gmra.mrb[88].mxu1 %v3933_v58  ;;  %v3986_v58 = vld [vmem:[%s4176_s16 + $0x3e8] ss:$16 sps:$4 sm:$0xff]  }
  0xf7   : > { %1850 = vmatprep.mubr.bf16.mxu1 %v3936_v59 }
  0xfa   : > { %2292 = vmatmul.mubr.bf16.gmra.mrb[104].mxu0 %v3956_v0 }
  0xfb   : > { %3354 = vmatprep.mubr.msk.bf16.mxu0 %vm1489_vm0, %v3958_v1 }
  0xfd   : > { %v2085_v4 = vpop.f32.mrb[0].mxu0 }
  0xfe   : > { %1851 = vmatmul.mubr.bf16.gmra.mrb[92].mxu1 %v3939_v62  ;;  %v2087_v5 = vpop.f32.mrb[1].mxu0  ;;  %v3988_v62 = vld [vmem:[%s4176_s16 + $0x40c] ss:$16 sps:$4 sm:$0xff]  }
  0xff   : > { %1858 = vmatprep.mubr.bf16.mxu1 %v3942_v63  ;;  %v2088_v7 = vpop.f32.mrb[2].mxu0 }
 0x100   : > { %v2090_v9 = vpop.f32.mrb[3].mxu0 }
 0x102   : > { %2300 = vmatmul.mubr.bf16.gmra.mrb[108].mxu0 %v3962_v6  ;;  %v3975_v6 = vld [vmem:[%s4176_s16 + $0x3a0] ss:$16 sps:$4 sm:$0xff]  }
 0x103   : > { %3355 = vmatprep.mubr.msk.bf16.mxu0 %vm1489_vm0, %v3964_v8  ;;  %v3978_v8 = vld [vmem:[%s4176_s16 + $0x3c4] ss:$16 sps:$4 sm:$0xff]  }
 0x105   : > { %v2093_v12 = vpop.f32.mrb[4].mxu0 }
 0x106   : > { %1859 = vmatmul.mubr.bf16.gmra.mrb[96].mxu1 %v3945_v2  ;;  %v2095_v13 = vpop.f32.mrb[5].mxu0 }
 0x107   : > { %1866 = vmatprep.mubr.bf16.mxu1 %v3948_v3  ;;  %v2096_v15 = vpop.f32.mrb[6].mxu0 }
 0x108   : > { %v2098_v17 = vpop.f32.mrb[7].mxu0 }
 0x10a   : > { %2308 = vmatmul.mubr.bf16.gmra.mrb[112].mxu0 %v3968_v14  ;;  %v3992_v14 = vld [vmem:[%s4176_s16 + $0x408] ss:$16 sps:$4 sm:$0xff]  }
 0x10b   : > { %3356 = vmatprep.mubr.msk.bf16.mxu0 %vm1489_vm0, %v3970_v16 }
 0x10d   : > { %v4374_v20 = vpop.f32.mrb[8].mxu0 }
 0x10e   : > { %1867 = vmatmul.mubr.bf16.gmra.mrb[100].mxu1 %v3951_v10  ;;  %v2103_v21 = vpop.f32.mrb[9].mxu0 }
 0x10f   : > { %1874 = vmatprep.mubr.bf16.mxu1 %v3954_v11  ;;  %v4377_v23 = vpop.f32.mrb[10].mxu0 }
 0x110   : > { %v2106_v26 = vpop.f32.mrb[11].mxu0 }
 0x112   : > { %2316 = vmatmul.mubr.bf16.gmra.mrb[116].mxu0 %v3974_v22 }
 0x113   : > { %3357 = vmatprep.mubr.msk.bf16.mxu0 %vm1489_vm0, %v3976_v24 }
 0x115   : > { %v4391_v36 = vpop.f32.mrb[12].mxu0 }
 0x116   : > { %1875 = vmatmul.mubr.bf16.gmra.mrb[104].mxu1 %v3957_v18  ;;  %v2111_v37 = vpop.f32.mrb[13].mxu0  ;;  %v3994_v18 = vld [vmem:[%s4176_s16 + $0x42c] ss:$16 sps:$4 sm:$0xff]  }
 0x117   : > { %1882 = vmatprep.mubr.bf16.mxu1 %v3960_v19  ;;  %v4394_v41 = vpop.f32.mrb[14].mxu0 }
 0x118   : > { %v2114_v43 = vpop.f32.mrb[15].mxu0 }
 0x119   : > { %v1668_v27 = vpop.f32.mrb[0].mxu1 }
 0x11a   : > { %v1669_v28 = vadd.f32 %v4383_v25, %v1668_v27  ;;  %v1670_v29 = vpop.f32.mrb[1].mxu1  ;;  %2324 = vmatmul.mubr.bf16.gmra.mrb[120].mxu0 %v3980_v38 }
 0x11b   : > { %v1671_v31 = vpop.f32.mrb[2].mxu1  ;;  %3358 = vmatprep.mubr.msk.bf16.mxu0 %vm1489_vm0, %v3982_v42  ;;  %v3984_v29 = vld [vmem:[%s4176_s16 + $0x3e4] ss:$16 sps:$4 sm:$0xff]  }
 0x11c   : > { %v2086_v33 = vadd.f32 %v2085_v4, %v1669_v28  ;;  %v1672_v34 = vadd.f32 %v4383_v25, %v1671_v31  ;;  %v1673_v35 = vpop.f32.mrb[3].mxu1 }
 0x11d   : > { %v4411_v56 = vpop.f32.mrb[16].mxu0  ;;  %v3998_v35 = vld [vmem:[%s4176_s16 + $0x428] ss:$16 sps:$4 sm:$0xff]  }
 0x11e   : > { %v2468_v39 = vmax.f32 %v2086_v33, 0.0  ;;  %v2089_v40 = vadd.f32 %v2088_v7, %v1672_v34  ;;  %1883 = vmatmul.mubr.bf16.gmra.mrb[108].mxu1 %v3963_v30  ;;  %v2119_v57 = vpop.f32.mrb[17].mxu0 }
 0x11f   : > { %1890 = vmatprep.mubr.bf16.mxu1 %v3966_v32  ;;  %v4414_v61 = vpop.f32.mrb[18].mxu0 }
 0x120   : > { %v3474_v44 = vpack.c.bf16 %v2468_v39, %v2468_v39  ;;  %v2469_v45 = vmax.f32 %v2089_v40, 0.0  ;;  %v2122_v63 = vpop.f32.mrb[19].mxu0  ;;  %v4000_v40 = vld [vmem:[%s4176_s16 + $0x44c] ss:$16 sps:$4 sm:$0xff]  }
 0x121   : > { %v1676_v46 = vpop.f32.mrb[4].mxu1 }
 0x122   : > { %2949 = vst.msk [vmem:[%s4400_s22] sm:$0xf] %vm2948_vm1, %v3474_v44  ;;  %v3475_v47 = vpack.c.bf16 %v2469_v45, %v2469_v45  ;;  %v1677_v48 = vadd.f32 %v4383_v25, %v1676_v46  ;;  %v1678_v49 = vpop.f32.mrb[5].mxu1  ;;  %2332 = vmatmul.mubr.bf16.gmra.mrb[124].mxu0 %v3986_v58 }
 0x123   : > { %v1679_v51 = vpop.f32.mrb[6].mxu1  ;;  %3359 = vmatprep.mubr.msk.bf16.mxu0 %vm1489_vm0, %v3988_v62  ;;  %v3990_v49 = vld [vmem:[%s4176_s16 + $0x404] ss:$16 sps:$4 sm:$0xff]  }
 0x124   : > { %2950 = vst.msk [vmem:[%s4400_s22 + $0x4] sm:$0xf] %vm2948_vm1, %v3475_v47  ;;  %v2094_v53 = vadd.f32 %v2093_v12, %v1677_v48  ;;  %v1680_v54 = vadd.f32 %v4383_v25, %v1679_v51  ;;  %v1681_v55 = vpop.f32.mrb[7].mxu1 }
 0x125   : > { %v4427_v12 = vpop.f32.mrb[20].mxu0  ;;  %v4004_v55 = vld [vmem:[%s4176_s16 + $0x448] ss:$16 sps:$4 sm:$0xff]  }
 0x126   : > { %v2470_v59 = vmax.f32 %v2094_v53, 0.0  ;;  %v2097_v60 = vadd.f32 %v2096_v15, %v1680_v54  ;;  %1891 = vmatmul.mubr.bf16.gmra.mrb[112].mxu1 %v3969_v50  ;;  %v2127_v13 = vpop.f32.mrb[21].mxu0 }
 0x127   : > { %1898 = vmatprep.mubr.bf16.mxu1 %v3972_v52  ;;  %v4431_v17 = vpop.f32.mrb[22].mxu0 }
 0x128   : > { %v3476_v0 = vpack.c.bf16 %v2470_v59, %v2470_v59  ;;  %v2471_v1 = vmax.f32 %v2097_v60, 0.0  ;;  %v2130_v19 = vpop.f32.mrb[23].mxu0  ;;  %v4006_v60 = vld [vmem:[%s4176_s16 + $0x46c] ss:$16 sps:$4 sm:$0xff]  }
 0x129   : > { %v1684_v2 = vpop.f32.mrb[8].mxu1 }
 0x12a   : > { %2951 = vst.msk [vmem:[%s4400_s22 + $0x8] sm:$0xf] %vm2948_vm1, %v3476_v0  ;;  %v3477_v3 = vpack.c.bf16 %v2471_v1, %v2471_v1  ;;  %v1685_v4 = vadd.f32 %v4383_v25, %v1684_v2  ;;  %v1686_v5 = vpop.f32.mrb[9].mxu1  ;;  %2340 = vmatmul.mubr.bf16.gmra.mrb[128].mxu0 %v3992_v14 }
 0x12b   : > { %v1687_v7 = vpop.f32.mrb[10].mxu1  ;;  %3360 = vmatprep.mubr.msk.bf16.mxu0 %vm1489_vm0, %v3994_v18  ;;  %v3996_v5 = vld [vmem:[%s4176_s16 + $0x424] ss:$16 sps:$4 sm:$0xff]  }
 0x12c   : > { %2952 = vst.msk [vmem:[%s4400_s22 + $0xc] sm:$0xf] %vm2948_vm1, %v3477_v3  ;;  %v2102_v9 = vadd.f32 %v4374_v20, %v1685_v4  ;;  %v1688_v10 = vadd.f32 %v4383_v25, %v1687_v7  ;;  %v1689_v11 = vpop.f32.mrb[11].mxu1 }
 0x12d   : > { %v4444_v33 = vpop.f32.mrb[24].mxu0  ;;  %v4010_v11 = vld [vmem:[%s4176_s16 + $0x468] ss:$16 sps:$4 sm:$0xff]  }
 0x12e   : > { %v2472_v15 = vmax.f32 %v2102_v9, 0.0  ;;  %v2105_v16 = vadd.f32 %v4377_v23, %v1688_v10  ;;  %1899 = vmatmul.mubr.bf16.gmra.mrb[116].mxu1 %v3975_v6  ;;  %v3981_v23 = vld [vmem:[%s4176_s16 + $0x3c0] ss:$16 sps:$4 sm:$0xff]   ;;  %v2135_v34 = vpop.f32.mrb[25].mxu0 }
 0x12f   : > { %1906 = vmatprep.mubr.bf16.mxu1 %v3978_v8  ;;  %v4448_v39 = vpop.f32.mrb[26].mxu0 }
 0x130   : > { %v3478_v20 = vpack.c.bf16 %v2472_v15, %v2472_v15  ;;  %v2473_v21 = vmax.f32 %v2105_v16, 0.0  ;;  %v4012_v16 = vld [vmem:[%s4176_s16 + $0x48c] ss:$16 sps:$4 sm:$0xff]  }
 0x131   : > { %v1692_v22 = vpop.f32.mrb[12].mxu1 }
 0x132   : > { %2953 = vst.msk [vmem:[%s4400_s22 + $0x10] sm:$0xf] %vm2948_vm1, %v3478_v20  ;;  %v3479_v24 = vpack.c.bf16 %v2473_v21, %v2473_v21  ;;  %v1693_v26 = vadd.f32 %v4383_v25, %v1692_v22  ;;  %v1694_v27 = vpop.f32.mrb[13].mxu1  ;;  %2348 = vmatmul.mubr.bf16.gmra.mrb[132].mxu0 %v3998_v35 }
 0x133   : > { %v1695_v28 = vpop.f32.mrb[14].mxu1  ;;  %3361 = vmatprep.mubr.msk.bf16.mxu0 %vm1489_vm0, %v4000_v40  ;;  %v4002_v27 = vld [vmem:[%s4176_s16 + $0x444] ss:$16 sps:$4 sm:$0xff]  }
 0x134   : > { %2954 = vst.msk [vmem:[%s4400_s22 + $0x14] sm:$0xf] %vm2948_vm1, %v3479_v24  ;;  %v2110_v30 = vadd.f32 %v4391_v36, %v1693_v26  ;;  %v1696_v31 = vadd.f32 %v4383_v25, %v1695_v28  ;;  %v1697_v32 = vpop.f32.mrb[15].mxu1  ;;  %v2138_v36 = vpop.f32.mrb[27].mxu0 }
 0x135   : > { %v4461_v53 = vpop.f32.mrb[28].mxu0  ;;  %v4016_v32 = vld [vmem:[%s4176_s16 + $0x488] ss:$16 sps:$4 sm:$0xff]  }
 0x136   : > { %v2474_v37 = vmax.f32 %v2110_v30, 0.0  ;;  %v2113_v38 = vadd.f32 %v4394_v41, %v1696_v31  ;;  %1907 = vmatmul.mubr.bf16.gmra.mrb[120].mxu1 %v3981_v23  ;;  %v3987_v41 = vld [vmem:[%s4176_s16 + $0x3e0] ss:$16 sps:$4 sm:$0xff]   ;;  %v2143_v54 = vpop.f32.mrb[29].mxu0 }
 0x137   : > { %1914 = vmatprep.mubr.bf16.mxu1 %v3984_v29  ;;  %v4465_v59 = vpop.f32.mrb[30].mxu0 }
 0x138   : > { %v3480_v42 = vpack.c.bf16 %v2474_v37, %v2474_v37  ;;  %v2475_v43 = vmax.f32 %v2113_v38, 0.0  ;;  %v4018_v38 = vld [vmem:[%s4176_s16 + $0x4ac] ss:$16 sps:$4 sm:$0xff]  }
 0x139   : > { %v1700_v44 = vpop.f32.mrb[16].mxu1 }
 0x13a   : > { %2955 = vst.msk [vmem:[%s4400_s22 + $0x18] sm:$0xf] %vm2948_vm1, %v3480_v42  ;;  %v3481_v45 = vpack.c.bf16 %v2475_v43, %v2475_v43  ;;  %v1701_v46 = vadd.f32 %v4383_v25, %v1700_v44  ;;  %v1702_v47 = vpop.f32.mrb[17].mxu1  ;;  %2356 = vmatmul.mubr.bf16.gmra.mrb[136].mxu0 %v4004_v55 }
 0x13b   : > { %v1703_v48 = vpop.f32.mrb[18].mxu1  ;;  %3362 = vmatprep.mubr.msk.bf16.mxu0 %vm1489_vm0, %v4006_v60  ;;  %v4008_v47 = vld [vmem:[%s4176_s16 + $0x464] ss:$16 sps:$4 sm:$0xff]  }
 0x13c   : > { %2956 = vst.msk [vmem:[%s4400_s22 + $0x1c] sm:$0xf] %vm2948_vm1, %v3481_v45  ;;  %v2118_v50 = vadd.f32 %v4411_v56, %v1701_v46  ;;  %v1704_v51 = vadd.f32 %v4383_v25, %v1703_v48  ;;  %v1705_v52 = vpop.f32.mrb[19].mxu1  ;;  %v2146_v56 = vpop.f32.mrb[31].mxu0 }
 0x13d   : > { %v4478_v9 = vpop.f32.mrb[32].mxu0  ;;  %v4022_v52 = vld [vmem:[%s4176_s16 + $0x4a8] ss:$16 sps:$4 sm:$0xff]  }
 0x13e   : > { %v2476_v57 = vmax.f32 %v2118_v50, 0.0  ;;  %v2121_v58 = vadd.f32 %v4414_v61, %v1704_v51  ;;  %1915 = vmatmul.mubr.bf16.gmra.mrb[124].mxu1 %v3987_v41  ;;  %v3993_v61 = vld [vmem:[%s4176_s16 + $0x400] ss:$16 sps:$4 sm:$0xff]   ;;  %v2151_v10 = vpop.f32.mrb[33].mxu0 }
 0x13f   : > { %1922 = vmatprep.mubr.bf16.mxu1 %v3990_v49  ;;  %v4482_v15 = vpop.f32.mrb[34].mxu0 }
 0x140   : > { %v3482_v62 = vpack.c.bf16 %v2476_v57, %v2476_v57  ;;  %v2477_v63 = vmax.f32 %v2121_v58, 0.0  ;;  %v4024_v58 = vld [vmem:[%s4176_s16 + $0x4cc] ss:$16 sps:$4 sm:$0xff]  }
 0x141   : > { %v1708_v0 = vpop.f32.mrb[20].mxu1 }
 0x142   : > { %2957 = vst.msk [vmem:[%s4400_s22 + $0x20] sm:$0xf] %vm2948_vm1, %v3482_v62  ;;  %v3483_v1 = vpack.c.bf16 %v2477_v63, %v2477_v63  ;;  %v1709_v2 = vadd.f32 %v4383_v25, %v1708_v0  ;;  %v1710_v3 = vpop.f32.mrb[21].mxu1  ;;  %2364 = vmatmul.mubr.bf16.gmra.mrb[140].mxu0 %v4010_v11 }
 0x143   : > { %v1711_v4 = vpop.f32.mrb[22].mxu1  ;;  %3363 = vmatprep.mubr.msk.bf16.mxu0 %vm1489_vm0, %v4012_v16  ;;  %v4014_v3 = vld [vmem:[%s4176_s16 + $0x484] ss:$16 sps:$4 sm:$0xff]  }
 0x144   : > { %2958 = vst.msk [vmem:[%s4400_s22 + $0x24] sm:$0xf] %vm2948_vm1, %v3483_v1  ;;  %v2126_v6 = vadd.f32 %v4427_v12, %v1709_v2  ;;  %v1712_v7 = vadd.f32 %v4383_v25, %v1711_v4  ;;  %v1713_v8 = vpop.f32.mrb[23].mxu1  ;;  %v2154_v12 = vpop.f32.mrb[35].mxu0 }
 0x145   : > { %v4495_v30 = vpop.f32.mrb[36].mxu0  ;;  %v4028_v8 = vld [vmem:[%s4176_s16 + $0x4c8] ss:$16 sps:$4 sm:$0xff]  }
 0x146   : > { %v2478_v13 = vmax.f32 %v2126_v6, 0.0  ;;  %v2129_v14 = vadd.f32 %v4431_v17, %v1712_v7  ;;  %1923 = vmatmul.mubr.bf16.gmra.mrb[128].mxu1 %v3993_v61  ;;  %v3999_v17 = vld [vmem:[%s4176_s16 + $0x420] ss:$16 sps:$4 sm:$0xff]   ;;  %v2159_v31 = vpop.f32.mrb[37].mxu0 }
 0x147   : > { %1930 = vmatprep.mubr.bf16.mxu1 %v3996_v5  ;;  %v4499_v37 = vpop.f32.mrb[38].mxu0 }
 0x148   : > { %v3484_v18 = vpack.c.bf16 %v2478_v13, %v2478_v13  ;;  %v2479_v19 = vmax.f32 %v2129_v14, 0.0  ;;  %v4030_v14 = vld [vmem:[%s4176_s16 + $0x4ec] ss:$16 sps:$4 sm:$0xff]  }
 0x149   : > { %v1716_v20 = vpop.f32.mrb[24].mxu1 }
 0x14a   : > { %2959 = vst.msk [vmem:[%s4400_s22 + $0x28] sm:$0xf] %vm2948_vm1, %v3484_v18  ;;  %v3485_v21 = vpack.c.bf16 %v2479_v19, %v2479_v19  ;;  %v1717_v22 = vadd.f32 %v4383_v25, %v1716_v20  ;;  %v1718_v24 = vpop.f32.mrb[25].mxu1  ;;  %2372 = vmatmul.mubr.bf16.gmra.mrb[144].mxu0 %v4016_v32 }
 0x14b   : > { %v1719_v26 = vpop.f32.mrb[26].mxu1  ;;  %3364 = vmatprep.mubr.msk.bf16.mxu0 %vm1489_vm0, %v4018_v38  ;;  %v4020_v24 = vld [vmem:[%s4176_s16 + $0x4a4] ss:$16 sps:$4 sm:$0xff]  }
 0x14c   : > { %2960 = vst.msk [vmem:[%s4400_s22 + $0x2c] sm:$0xf] %vm2948_vm1, %v3485_v21  ;;  %v2134_v23 = vadd.f32 %v4444_v33, %v1717_v22  ;;  %v1720_v28 = vadd.f32 %v4383_v25, %v1719_v26  ;;  %v1721_v29 = vpop.f32.mrb[27].mxu1  ;;  %v2162_v33 = vpop.f32.mrb[39].mxu0 }
 0x14d   : > { %v4512_v50 = vpop.f32.mrb[40].mxu0  ;;  %v4034_v29 = vld [vmem:[%s4176_s16 + $0x4e8] ss:$16 sps:$4 sm:$0xff]  }
 0x14e   : > { %v2480_v34 = vmax.f32 %v2134_v23, 0.0  ;;  %v2137_v35 = vadd.f32 %v4448_v39, %v1720_v28  ;;  %1931 = vmatmul.mubr.bf16.gmra.mrb[132].mxu1 %v3999_v17  ;;  %v4005_v39 = vld [vmem:[%s4176_s16 + $0x440] ss:$16 sps:$4 sm:$0xff]   ;;  %v2167_v51 = vpop.f32.mrb[41].mxu0 }
 0x14f   : > { %1938 = vmatprep.mubr.bf16.mxu1 %v4002_v27  ;;  %v4516_v57 = vpop.f32.mrb[42].mxu0 }
 0x150   : > { %v3486_v40 = vpack.c.bf16 %v2480_v34, %v2480_v34  ;;  %v2481_v36 = vmax.f32 %v2137_v35, 0.0  ;;  %v4036_v35 = vld [vmem:[%s4176_s16 + $0x50c] ss:$16 sps:$4 sm:$0xff]  }
 0x151   : > { %v1724_v42 = vpop.f32.mrb[28].mxu1 }
 0x152   : > { %2961 = vst.msk [vmem:[%s4400_s22 + $0x30] sm:$0xf] %vm2948_vm1, %v3486_v40  ;;  %v3487_v43 = vpack.c.bf16 %v2481_v36, %v2481_v36  ;;  %v1725_v44 = vadd.f32 %v4383_v25, %v1724_v42  ;;  %v1726_v45 = vpop.f32.mrb[29].mxu1  ;;  %2380 = vmatmul.mubr.bf16.gmra.mrb[148].mxu0 %v4022_v52 }
 0x153   : > { %v1727_v46 = vpop.f32.mrb[30].mxu1  ;;  %3365 = vmatprep.mubr.msk.bf16.mxu0 %vm1489_vm0, %v4024_v58  ;;  %v4026_v45 = vld [vmem:[%s4176_s16 + $0x4c4] ss:$16 sps:$4 sm:$0xff]  }
 0x154   : > { %2962 = vst.msk [vmem:[%s4400_s22 + $0x34] sm:$0xf] %vm2948_vm1, %v3487_v43  ;;  %v2142_v41 = vadd.f32 %v4461_v53, %v1725_v44  ;;  %v1728_v48 = vadd.f32 %v4383_v25, %v1727_v46  ;;  %v1729_v49 = vpop.f32.mrb[31].mxu1  ;;  %v2170_v53 = vpop.f32.mrb[43].mxu0 }
 0x155   : > { %v4529_v6 = vpop.f32.mrb[44].mxu0  ;;  %v4040_v49 = vld [vmem:[%s4176_s16 + $0x508] ss:$16 sps:$4 sm:$0xff]  }
 0x156   : > { %v2482_v54 = vmax.f32 %v2142_v41, 0.0  ;;  %v2145_v55 = vadd.f32 %v4465_v59, %v1728_v48  ;;  %1939 = vmatmul.mubr.bf16.gmra.mrb[136].mxu1 %v4005_v39  ;;  %v4011_v59 = vld [vmem:[%s4176_s16 + $0x460] ss:$16 sps:$4 sm:$0xff]   ;;  %v2175_v7 = vpop.f32.mrb[45].mxu0 }
 0x157   : > { %1946 = vmatprep.mubr.bf16.mxu1 %v4008_v47  ;;  %v4533_v13 = vpop.f32.mrb[46].mxu0 }
 0x158   : > { %v3488_v60 = vpack.c.bf16 %v2482_v54, %v2482_v54  ;;  %v2483_v56 = vmax.f32 %v2145_v55, 0.0  ;;  %v4042_v55 = vld [vmem:[%s4176_s16 + $0x52c] ss:$16 sps:$4 sm:$0xff]  }
 0x159   : > { %v1732_v62 = vpop.f32.mrb[32].mxu1 }
 0x15a   : > { %2963 = vst.msk [vmem:[%s4400_s22 + $0x38] sm:$0xf] %vm2948_vm1, %v3488_v60  ;;  %v3489_v63 = vpack.c.bf16 %v2483_v56, %v2483_v56  ;;  %v1733_v0 = vadd.f32 %v4383_v25, %v1732_v62  ;;  %v1734_v1 = vpop.f32.mrb[33].mxu1  ;;  %2388 = vmatmul.mubr.bf16.gmra.mrb[152].mxu0 %v4028_v8 }
 0x15b   : > { %v1735_v2 = vpop.f32.mrb[34].mxu1  ;;  %3366 = vmatprep.mubr.msk.bf16.mxu0 %vm1489_vm0, %v4030_v14  ;;  %v4032_v1 = vld [vmem:[%s4176_s16 + $0x4e4] ss:$16 sps:$4 sm:$0xff]  }
 0x15c   : > { %2964 = vst.msk [vmem:[%s4400_s22 + $0x3c] sm:$0xf] %vm2948_vm1, %v3489_v63  ;;  %v2150_v61 = vadd.f32 %v4478_v9, %v1733_v0  ;;  %v1736_v4 = vadd.f32 %v4383_v25, %v1735_v2  ;;  %v1737_v5 = vpop.f32.mrb[35].mxu1  ;;  %v2178_v9 = vpop.f32.mrb[47].mxu0 }
 0x15d   : > { %v4546_v23 = vpop.f32.mrb[48].mxu0  ;;  %v4046_v5 = vld [vmem:[%s4176_s16 + $0x528] ss:$16 sps:$4 sm:$0xff]  }
 0x15e   : > { %v2484_v10 = vmax.f32 %v2150_v61, 0.0  ;;  %v2153_v11 = vadd.f32 %v4482_v15, %v1736_v4  ;;  %1947 = vmatmul.mubr.bf16.gmra.mrb[140].mxu1 %v4011_v59  ;;  %v4017_v15 = vld [vmem:[%s4176_s16 + $0x480] ss:$16 sps:$4 sm:$0xff]   ;;  %v2183_v28 = vpop.f32.mrb[49].mxu0 }
 0x15f   : > { %1954 = vmatprep.mubr.bf16.mxu1 %v4014_v3  ;;  %v4550_v34 = vpop.f32.mrb[50].mxu0 }
 0x160   : > { %v3490_v16 = vpack.c.bf16 %v2484_v10, %v2484_v10  ;;  %v2485_v12 = vmax.f32 %v2153_v11, 0.0  ;;  %v4048_v11 = vld [vmem:[%s4176_s16 + $0x54c] ss:$16 sps:$4 sm:$0xff]  }
 0x161   : > { %v1740_v18 = vpop.f32.mrb[36].mxu1 }
 0x162   : > { %2965 = vst.msk [vmem:[%s4400_s22 + $0x40] sm:$0xf] %vm2948_vm1, %v3490_v16  ;;  %v3491_v19 = vpack.c.bf16 %v2485_v12, %v2485_v12  ;;  %v1741_v20 = vadd.f32 %v4383_v25, %v1740_v18  ;;  %v1742_v21 = vpop.f32.mrb[37].mxu1  ;;  %2396 = vmatmul.mubr.bf16.gmra.mrb[156].mxu0 %v4034_v29 }
 0x163   : > { %v1743_v22 = vpop.f32.mrb[38].mxu1  ;;  %3367 = vmatprep.mubr.msk.bf16.mxu0 %vm1489_vm0, %v4036_v35  ;;  %v4038_v21 = vld [vmem:[%s4176_s16 + $0x504] ss:$16 sps:$4 sm:$0xff]  }
 0x164   : > { %2966 = vst.msk [vmem:[%s4400_s22 + $0x44] sm:$0xf] %vm2948_vm1, %v3491_v19  ;;  %v2158_v17 = vadd.f32 %v4495_v30, %v1741_v20  ;;  %v1744_v26 = vadd.f32 %v4383_v25, %v1743_v22  ;;  %v1745_v27 = vpop.f32.mrb[39].mxu1  ;;  %v2186_v30 = vpop.f32.mrb[51].mxu0 }
 0x165   : > { %v4563_v41 = vpop.f32.mrb[52].mxu0  ;;  %v4052_v27 = vld [vmem:[%s4176_s16 + $0x548] ss:$16 sps:$4 sm:$0xff]  }
 0x166   : > { %v2486_v31 = vmax.f32 %v2158_v17, 0.0  ;;  %v2161_v32 = vadd.f32 %v4499_v37, %v1744_v26  ;;  %1955 = vmatmul.mubr.bf16.gmra.mrb[144].mxu1 %v4017_v15  ;;  %v4023_v37 = vld [vmem:[%s4176_s16 + $0x4a0] ss:$16 sps:$4 sm:$0xff]   ;;  %v2191_v48 = vpop.f32.mrb[53].mxu0 }
 0x167   : > { %1962 = vmatprep.mubr.bf16.mxu1 %v4020_v24  ;;  %v4567_v54 = vpop.f32.mrb[54].mxu0 }
 0x168   : > { %v3492_v38 = vpack.c.bf16 %v2486_v31, %v2486_v31  ;;  %v2487_v33 = vmax.f32 %v2161_v32, 0.0  ;;  %v4054_v32 = vld [vmem:[%s4176_s16 + $0x56c] ss:$16 sps:$4 sm:$0xff]  }
 0x169   : > { %v1748_v40 = vpop.f32.mrb[40].mxu1 }
 0x16a   : > { %2967 = vst.msk [vmem:[%s4400_s22 + $0x48] sm:$0xf] %vm2948_vm1, %v3492_v38  ;;  %v3493_v36 = vpack.c.bf16 %v2487_v33, %v2487_v33  ;;  %v1749_v42 = vadd.f32 %v4383_v25, %v1748_v40  ;;  %v1750_v43 = vpop.f32.mrb[41].mxu1  ;;  %2404 = vmatmul.mubr.bf16.gmra.mrb[160].mxu0 %v4040_v49 }
 0x16b   : > { %v1751_v44 = vpop.f32.mrb[42].mxu1  ;;  %3368 = vmatprep.mubr.msk.bf16.mxu0 %vm1489_vm0, %v4042_v55  ;;  %v4044_v43 = vld [vmem:[%s4176_s16 + $0x524] ss:$16 sps:$4 sm:$0xff]  }
 0x16c   : > { %2968 = vst.msk [vmem:[%s4400_s22 + $0x4c] sm:$0xf] %vm2948_vm1, %v3493_v36  ;;  %v2166_v39 = vadd.f32 %v4512_v50, %v1749_v42  ;;  %v1752_v46 = vadd.f32 %v4383_v25, %v1751_v44  ;;  %v1753_v47 = vpop.f32.mrb[43].mxu1  ;;  %v2194_v50 = vpop.f32.mrb[55].mxu0 }
 0x16d   : > { %v4580_v61 = vpop.f32.mrb[56].mxu0  ;;  %v4058_v47 = vld [vmem:[%s4176_s16 + $0x568] ss:$16 sps:$4 sm:$0xff]  }
 0x16e   : > { %v2488_v51 = vmax.f32 %v2166_v39, 0.0  ;;  %v2169_v52 = vadd.f32 %v4516_v57, %v1752_v46  ;;  %1963 = vmatmul.mubr.bf16.gmra.mrb[148].mxu1 %v4023_v37  ;;  %v4029_v57 = vld [vmem:[%s4176_s16 + $0x4c0] ss:$16 sps:$4 sm:$0xff]   ;;  %v2199_v4 = vpop.f32.mrb[57].mxu0 }
 0x16f   : > { %1970 = vmatprep.mubr.bf16.mxu1 %v4026_v45  ;;  %v4584_v10 = vpop.f32.mrb[58].mxu0 }
 0x170   : > { %v3494_v58 = vpack.c.bf16 %v2488_v51, %v2488_v51  ;;  %v2489_v53 = vmax.f32 %v2169_v52, 0.0  ;;  %v4060_v52 = vld [vmem:[%s4176_s16 + $0x58c] ss:$16 sps:$4 sm:$0xff]  }
 0x171   : > { %v1756_v60 = vpop.f32.mrb[44].mxu1 }
 0x172   : > { %2969 = vst.msk [vmem:[%s4400_s22 + $0x50] sm:$0xf] %vm2948_vm1, %v3494_v58  ;;  %v3495_v56 = vpack.c.bf16 %v2489_v53, %v2489_v53  ;;  %v1757_v62 = vadd.f32 %v4383_v25, %v1756_v60  ;;  %v1758_v63 = vpop.f32.mrb[45].mxu1  ;;  %2412 = vmatmul.mubr.bf16.gmra.mrb[164].mxu0 %v4046_v5 }
 0x173   : > { %v1759_v0 = vpop.f32.mrb[46].mxu1  ;;  %3369 = vmatprep.mubr.msk.bf16.mxu0 %vm1489_vm0, %v4048_v11  ;;  %v4050_v63 = vld [vmem:[%s4176_s16 + $0x544] ss:$16 sps:$4 sm:$0xff]  }
 0x174   : > { %2970 = vst.msk [vmem:[%s4400_s22 + $0x54] sm:$0xf] %vm2948_vm1, %v3495_v56  ;;  %v2174_v59 = vadd.f32 %v4529_v6, %v1757_v62  ;;  %v1760_v2 = vadd.f32 %v4383_v25, %v1759_v0  ;;  %v1761_v3 = vpop.f32.mrb[47].mxu1  ;;  %v2202_v6 = vpop.f32.mrb[59].mxu0 }
 0x175   : > { %v4597_v17 = vpop.f32.mrb[60].mxu0  ;;  %v4064_v3 = vld [vmem:[%s4176_s16 + $0x588] ss:$16 sps:$4 sm:$0xff]  }
 0x176   : > { %v2490_v7 = vmax.f32 %v2174_v59, 0.0  ;;  %v2177_v8 = vadd.f32 %v4533_v13, %v1760_v2  ;;  %1971 = vmatmul.mubr.bf16.gmra.mrb[152].mxu1 %v4029_v57  ;;  %v4035_v13 = vld [vmem:[%s4176_s16 + $0x4e0] ss:$16 sps:$4 sm:$0xff]   ;;  %v2207_v26 = vpop.f32.mrb[61].mxu0 }
 0x177   : > { %1978 = vmatprep.mubr.bf16.mxu1 %v4032_v1  ;;  %v4601_v31 = vpop.f32.mrb[62].mxu0 }
 0x178   : > { %v3496_v14 = vpack.c.bf16 %v2490_v7, %v2490_v7  ;;  %v2491_v9 = vmax.f32 %v2177_v8, 0.0  ;;  %v4066_v8 = vld [vmem:[%s4176_s16 + $0x5ac] ss:$16 sps:$4 sm:$0xff]  }
 0x179   : > { %v1764_v16 = vpop.f32.mrb[48].mxu1 }
 0x17a   : > { %2971 = vst.msk [vmem:[%s4400_s22 + $0x58] sm:$0xf] %vm2948_vm1, %v3496_v14  ;;  %v3497_v12 = vpack.c.bf16 %v2491_v9, %v2491_v9  ;;  %v1765_v18 = vadd.f32 %v4383_v25, %v1764_v16  ;;  %v1766_v19 = vpop.f32.mrb[49].mxu1  ;;  %2420 = vmatmul.mubr.bf16.gmra.mrb[168].mxu0 %v4052_v27 }
 0x17b   : > { %v1767_v20 = vpop.f32.mrb[50].mxu1  ;;  %3370 = vmatprep.mubr.msk.bf16.mxu0 %vm1489_vm0, %v4054_v32  ;;  %v4056_v19 = vld [vmem:[%s4176_s16 + $0x564] ss:$16 sps:$4 sm:$0xff]  }
 0x17c   : > { %2972 = vst.msk [vmem:[%s4400_s22 + $0x5c] sm:$0xf] %vm2948_vm1, %v3497_v12  ;;  %v2182_v15 = vadd.f32 %v4546_v23, %v1765_v18  ;;  %v1768_v22 = vadd.f32 %v4383_v25, %v1767_v20  ;;  %v1769_v24 = vpop.f32.mrb[51].mxu1  ;;  %v2210_v23 = vpop.f32.mrb[63].mxu0 }
 0x17d   : > { %v4614_v39 = vpop.f32.mrb[64].mxu0  ;;  %v4070_v24 = vld [vmem:[%s4176_s16 + $0x5a8] ss:$16 sps:$4 sm:$0xff]  }
 0x17e   : > { %v2492_v28 = vmax.f32 %v2182_v15, 0.0  ;;  %v2185_v29 = vadd.f32 %v4550_v34, %v1768_v22  ;;  %1979 = vmatmul.mubr.bf16.gmra.mrb[156].mxu1 %v4035_v13  ;;  %v4041_v34 = vld [vmem:[%s4176_s16 + $0x500] ss:$16 sps:$4 sm:$0xff]   ;;  %v2215_v46 = vpop.f32.mrb[65].mxu0 }
 0x17f   : > { %1986 = vmatprep.mubr.bf16.mxu1 %v4038_v21  ;;  %v4618_v51 = vpop.f32.mrb[66].mxu0 }
 0x180   : > { %v3498_v35 = vpack.c.bf16 %v2492_v28, %v2492_v28  ;;  %v2493_v30 = vmax.f32 %v2185_v29, 0.0  ;;  %v4072_v29 = vld [vmem:[%s4176_s16 + $0x5cc] ss:$16 sps:$4 sm:$0xff]  }
 0x181   : > { %v1772_v38 = vpop.f32.mrb[52].mxu1 }
 0x182   : > { %2973 = vst.msk [vmem:[%s4400_s22 + $0x60] sm:$0xf] %vm2948_vm1, %v3498_v35  ;;  %v3499_v33 = vpack.c.bf16 %v2493_v30, %v2493_v30  ;;  %v1773_v40 = vadd.f32 %v4383_v25, %v1772_v38  ;;  %v1774_v36 = vpop.f32.mrb[53].mxu1  ;;  %2428 = vmatmul.mubr.bf16.gmra.mrb[172].mxu0 %v4058_v47 }
 0x183   : > { %v1775_v42 = vpop.f32.mrb[54].mxu1  ;;  %3371 = vmatprep.mubr.msk.bf16.mxu0 %vm1489_vm0, %v4060_v52  ;;  %v4062_v36 = vld [vmem:[%s4176_s16 + $0x584] ss:$16 sps:$4 sm:$0xff]  }
 0x184   : > { %2974 = vst.msk [vmem:[%s4400_s22 + $0x64] sm:$0xf] %vm2948_vm1, %v3499_v33  ;;  %v2190_v37 = vadd.f32 %v4563_v41, %v1773_v40  ;;  %v1776_v44 = vadd.f32 %v4383_v25, %v1775_v42  ;;  %v1777_v45 = vpop.f32.mrb[55].mxu1  ;;  %v2218_v41 = vpop.f32.mrb[67].mxu0 }
 0x185   : > { %v4631_v59 = vpop.f32.mrb[68].mxu0  ;;  %v4076_v45 = vld [vmem:[%s4176_s16 + $0x5c8] ss:$16 sps:$4 sm:$0xff]  }
 0x186   : > { %v2494_v48 = vmax.f32 %v2190_v37, 0.0  ;;  %v2193_v49 = vadd.f32 %v4567_v54, %v1776_v44  ;;  %1987 = vmatmul.mubr.bf16.gmra.mrb[160].mxu1 %v4041_v34  ;;  %v4047_v54 = vld [vmem:[%s4176_s16 + $0x520] ss:$16 sps:$4 sm:$0xff]   ;;  %v2223_v2 = vpop.f32.mrb[69].mxu0 }
 0x187   : > { %1994 = vmatprep.mubr.bf16.mxu1 %v4044_v43  ;;  %v4635_v7 = vpop.f32.mrb[70].mxu0 }
 0x188   : > { %v3500_v55 = vpack.c.bf16 %v2494_v48, %v2494_v48  ;;  %v2495_v50 = vmax.f32 %v2193_v49, 0.0  ;;  %v4078_v49 = vld [vmem:[%s4176_s16 + $0x5ec] ss:$16 sps:$4 sm:$0xff]  }
 0x189   : > { %v1780_v58 = vpop.f32.mrb[56].mxu1 }
 0x18a   : > { %2975 = vst.msk [vmem:[%s4400_s22 + $0x68] sm:$0xf] %vm2948_vm1, %v3500_v55  ;;  %v3501_v53 = vpack.c.bf16 %v2495_v50, %v2495_v50  ;;  %v1781_v60 = vadd.f32 %v4383_v25, %v1780_v58  ;;  %v1782_v56 = vpop.f32.mrb[57].mxu1  ;;  %2436 = vmatmul.mubr.bf16.gmra.mrb[176].mxu0 %v4064_v3 }
 0x18b   : > { %v1783_v62 = vpop.f32.mrb[58].mxu1  ;;  %3372 = vmatprep.mubr.msk.bf16.mxu0 %vm1489_vm0, %v4066_v8  ;;  %v4068_v56 = vld [vmem:[%s4176_s16 + $0x5a4] ss:$16 sps:$4 sm:$0xff]  }
 0x18c   : > { %2976 = vst.msk [vmem:[%s4400_s22 + $0x6c] sm:$0xf] %vm2948_vm1, %v3501_v53  ;;  %v2198_v57 = vadd.f32 %v4580_v61, %v1781_v60  ;;  %v1784_v0 = vadd.f32 %v4383_v25, %v1783_v62  ;;  %v1785_v1 = vpop.f32.mrb[59].mxu1  ;;  %v2226_v61 = vpop.f32.mrb[71].mxu0 }
 0x18d   : > { %v4648_v15 = vpop.f32.mrb[72].mxu0  ;;  %v4082_v1 = vld [vmem:[%s4176_s16 + $0x5e8] ss:$16 sps:$4 sm:$0xff]  }
 0x18e   : > { %v2496_v4 = vmax.f32 %v2198_v57, 0.0  ;;  %v2201_v5 = vadd.f32 %v4584_v10, %v1784_v0  ;;  %1995 = vmatmul.mubr.bf16.gmra.mrb[164].mxu1 %v4047_v54  ;;  %v4053_v10 = vld [vmem:[%s4176_s16 + $0x540] ss:$16 sps:$4 sm:$0xff]   ;;  %v2231_v22 = vpop.f32.mrb[73].mxu0 }
 0x18f   : > { %2002 = vmatprep.mubr.bf16.mxu1 %v4050_v63  ;;  %v4652_v28 = vpop.f32.mrb[74].mxu0 }
 0x190   : > { %v3502_v11 = vpack.c.bf16 %v2496_v4, %v2496_v4  ;;  %v2497_v6 = vmax.f32 %v2201_v5, 0.0 }
 0x191   : > { %v1788_v14 = vpop.f32.mrb[60].mxu1 }
 0x192   : > { %2977 = vst.msk [vmem:[%s4400_s22 + $0x70] sm:$0xf] %vm2948_vm1, %v3502_v11  ;;  %v3503_v9 = vpack.c.bf16 %v2497_v6, %v2497_v6  ;;  %v1789_v16 = vadd.f32 %v4383_v25, %v1788_v14  ;;  %v1790_v12 = vpop.f32.mrb[61].mxu1  ;;  %2444 = vmatmul.mubr.bf16.gmra.mrb[180].mxu0 %v4070_v24 }
 0x193   : > { %v1791_v18 = vpop.f32.mrb[62].mxu1  ;;  %3373 = vmatprep.mubr.msk.bf16.mxu0 %vm1489_vm0, %v4072_v29  ;;  %v4074_v12 = vld [vmem:[%s4176_s16 + $0x5c4] ss:$16 sps:$4 sm:$0xff]  }
 0x194   : > { %2978 = vst.msk [vmem:[%s4400_s22 + $0x74] sm:$0xf] %vm2948_vm1, %v3503_v9  ;;  %v2206_v13 = vadd.f32 %v4597_v17, %v1789_v16  ;;  %v1792_v20 = vadd.f32 %v4383_v25, %v1791_v18  ;;  %v1793_v21 = vpop.f32.mrb[63].mxu1  ;;  %v2234_v17 = vpop.f32.mrb[75].mxu0  ;;  %v4071_v9 = vld [vmem:[%s4176_s16 + $0x5a0] ss:$16 sps:$4 sm:$0xff]  }
 0x195   : > { %v4665_v37 = vpop.f32.mrb[76].mxu0 }
 0x196   : > { %v2498_v26 = vmax.f32 %v2206_v13, 0.0  ;;  %v2209_v27 = vadd.f32 %v4601_v31, %v1792_v20  ;;  %2003 = vmatmul.mubr.bf16.gmra.mrb[168].mxu1 %v4053_v10  ;;  %v4059_v31 = vld [vmem:[%s4176_s16 + $0x560] ss:$16 sps:$4 sm:$0xff]   ;;  %v2239_v44 = vpop.f32.mrb[77].mxu0 }
 0x197   : > { %2010 = vmatprep.mubr.bf16.mxu1 %v4056_v19  ;;  %v4669_v48 = vpop.f32.mrb[78].mxu0 }
 0x198   : > { %v3504_v32 = vpack.c.bf16 %v2498_v26, %v2498_v26  ;;  %v2499_v23 = vmax.f32 %v2209_v27, 0.0 }
 0x199   : > { %v1796_v35 = vpop.f32.mrb[64].mxu1 }
 0x19a   : > { %2979 = vst.msk [vmem:[%s4400_s22 + $0x78] sm:$0xf] %vm2948_vm1, %v3504_v32  ;;  %v3505_v30 = vpack.c.bf16 %v2499_v23, %v2499_v23  ;;  %v1797_v38 = vadd.f32 %v4383_v25, %v1796_v35  ;;  %v1798_v33 = vpop.f32.mrb[65].mxu1  ;;  %2452 = vmatmul.mubr.bf16.gmra.mrb[184].mxu0 %v4076_v45  ;;  %v4077_v23 = vld [vmem:[%s4176_s16 + $0x5c0] ss:$16 sps:$4 sm:$0xff]  }
 0x19b   : > { %v1799_v40 = vpop.f32.mrb[66].mxu1  ;;  %3374 = vmatprep.mubr.msk.bf16.mxu0 %vm1489_vm0, %v4078_v49 }
 0x19c   : > { %2980 = vst.msk [vmem:[%s4400_s22 + $0x7c] sm:$0xf] %vm2948_vm1, %v3505_v30  ;;  %v2214_v34 = vadd.f32 %v4614_v39, %v1797_v38  ;;  %v1800_v42 = vadd.f32 %v4383_v25, %v1799_v40  ;;  %v1801_v43 = vpop.f32.mrb[67].mxu1  ;;  %v2242_v39 = vpop.f32.mrb[79].mxu0  ;;  %v4080_v30 = vld [vmem:[%s4176_s16 + $0x5e4] ss:$16 sps:$4 sm:$0xff]  }
 0x19d   : > { %v4682_v57 = vpop.f32.mrb[80].mxu0  ;;  %v4083_v39 = vld [vmem:[%s4176_s16 + $0x5e0] ss:$16 sps:$4 sm:$0xff]  }
 0x19e   : > { %v2500_v46 = vmax.f32 %v2214_v34, 0.0  ;;  %v2217_v47 = vadd.f32 %v4618_v51, %v1800_v42  ;;  %2011 = vmatmul.mubr.bf16.gmra.mrb[172].mxu1 %v4059_v31  ;;  %v4065_v51 = vld [vmem:[%s4176_s16 + $0x580] ss:$16 sps:$4 sm:$0xff]   ;;  %v2247_v0 = vpop.f32.mrb[81].mxu0 }
 0x19f   : > { %2018 = vmatprep.mubr.bf16.mxu1 %v4062_v36  ;;  %v4686_v4 = vpop.f32.mrb[82].mxu0 }
 0x1a0   : > { %v3506_v52 = vpack.c.bf16 %v2500_v46, %v2500_v46  ;;  %v2501_v41 = vmax.f32 %v2217_v47, 0.0  ;;  %v2250_v5 = vpop.f32.mrb[83].mxu0 }
 0x1a1   : > { %v1804_v55 = vpop.f32.mrb[68].mxu1 }
 0x1a2   : > { %2981 = vst.msk [vmem:[%s4400_s22 + $0x80] sm:$0xf] %vm2948_vm1, %v3506_v52  ;;  %v3507_v50 = vpack.c.bf16 %v2501_v41, %v2501_v41  ;;  %v1805_v58 = vadd.f32 %v4383_v25, %v1804_v55  ;;  %v1806_v53 = vpop.f32.mrb[69].mxu1  ;;  %2460 = vmatmul.mubr.bf16.gmra.mrb[188].mxu0 %v4082_v1 }
 0x1a3   : > { %v1807_v60 = vpop.f32.mrb[70].mxu1 }
 0x1a4   : > { %2982 = vst.msk [vmem:[%s4400_s22 + $0x84] sm:$0xf] %vm2948_vm1, %v3507_v50  ;;  %v2222_v54 = vadd.f32 %v4631_v59, %v1805_v58  ;;  %v1808_v62 = vadd.f32 %v4383_v25, %v1807_v60  ;;  %v1809_v63 = vpop.f32.mrb[71].mxu1 }
 0x1a5   : > { %v2253_v19 = vpop.f32.mrb[84].mxu0 }
 0x1a6   : > { %v2502_v2 = vmax.f32 %v2222_v54, 0.0  ;;  %v2225_v3 = vadd.f32 %v4635_v7, %v1808_v62  ;;  %2019 = vmatmul.mubr.bf16.gmra.mrb[176].mxu1 %v4065_v51  ;;  %v2255_v13 = vpop.f32.mrb[85].mxu0 }
 0x1a7   : > { %2026 = vmatprep.mubr.bf16.mxu1 %v4068_v56  ;;  %v2256_v22 = vpop.f32.mrb[86].mxu0 }
 0x1a8   : > { %v3508_v59 = vpack.c.bf16 %v2502_v2, %v2502_v2  ;;  %v2503_v8 = vmax.f32 %v2225_v3, 0.0  ;;  %v2258_v24 = vpop.f32.mrb[87].mxu0 }
 0x1a9   : > { %v1812_v61 = vpop.f32.mrb[72].mxu1 }
 0x1aa   : > { %2983 = vst.msk [vmem:[%s4400_s22 + $0x88] sm:$0xf] %vm2948_vm1, %v3508_v59  ;;  %v3509_v11 = vpack.c.bf16 %v2503_v8, %v2503_v8  ;;  %v1813_v6 = vadd.f32 %v4383_v25, %v1812_v61  ;;  %v1814_v14 = vpop.f32.mrb[73].mxu1 }
 0x1ab   : > { %v1815_v16 = vpop.f32.mrb[74].mxu1 }
 0x1ac   : > { %2984 = vst.msk [vmem:[%s4400_s22 + $0x8c] sm:$0xf] %vm2948_vm1, %v3509_v11  ;;  %v2230_v7 = vadd.f32 %v4648_v15, %v1813_v6  ;;  %v1816_v10 = vadd.f32 %v4383_v25, %v1815_v16  ;;  %v1817_v18 = vpop.f32.mrb[75].mxu1 }
 0x1ad   : > { %v2261_v31 = vpop.f32.mrb[88].mxu0 }
 0x1ae   : > { %v2504_v20 = vmax.f32 %v2230_v7, 0.0  ;;  %v2233_v21 = vadd.f32 %v4652_v28, %v1816_v10  ;;  %2027 = vmatmul.mubr.bf16.gmra.mrb[180].mxu1 %v4071_v9  ;;  %v2263_v40 = vpop.f32.mrb[89].mxu0 }
 0x1af   : > { %2034 = vmatprep.mubr.bf16.mxu1 %v4074_v12  ;;  %v2264_v42 = vpop.f32.mrb[90].mxu0 }
 0x1b0   : > { %v3510_v26 = vpack.c.bf16 %v2504_v20, %v2504_v20  ;;  %v2505_v27 = vmax.f32 %v2233_v21, 0.0  ;;  %v2266_v43 = vpop.f32.mrb[91].mxu0 }
 0x1b1   : > { %v1820_v29 = vpop.f32.mrb[76].mxu1 }
 0x1b2   : > { %2985 = vst.msk [vmem:[%s4400_s22 + $0x90] sm:$0xf] %vm2948_vm1, %v3510_v26  ;;  %v3511_v15 = vpack.c.bf16 %v2505_v27, %v2505_v27  ;;  %v1821_v17 = vadd.f32 %v4383_v25, %v1820_v29  ;;  %v1822_v32 = vpop.f32.mrb[77].mxu1 }
 0x1b3   : > { %v1823_v35 = vpop.f32.mrb[78].mxu1 }
 0x1b4   : > { %2986 = vst.msk [vmem:[%s4400_s22 + $0x94] sm:$0xf] %vm2948_vm1, %v3511_v15  ;;  %v2238_v28 = vadd.f32 %v4665_v37, %v1821_v17  ;;  %v1824_v38 = vadd.f32 %v4383_v25, %v1823_v35  ;;  %v1825_v33 = vpop.f32.mrb[79].mxu1  ;;  %v4713_v25 = vld [vmem:[%s4893_s2] ss:$0 sm:$0xff] }
 0x1b5   : > { %v2269_v50 = vpop.f32.mrb[92].mxu0 }
 0x1b6   : > { %v2506_v36 = vmax.f32 %v2238_v28, 0.0  ;;  %v2241_v34 = vadd.f32 %v4669_v48, %v1824_v38  ;;  %2035 = vmatmul.mubr.bf16.gmra.mrb[184].mxu1 %v4077_v23  ;;  %v2271_v58 = vpop.f32.mrb[93].mxu0 }
 0x1b7   : > { %2042 = vmatprep.mubr.bf16.mxu1 %v4080_v30  ;;  %v2272_v60 = vpop.f32.mrb[94].mxu0 }
 0x1b8   : > { %v3512_v44 = vpack.c.bf16 %v2506_v36, %v2506_v36  ;;  %v2507_v45 = vmax.f32 %v2241_v34, 0.0  ;;  %v2274_v56 = vpop.f32.mrb[95].mxu0 }
 0x1b9   : > { %v1828_v46 = vpop.f32.mrb[80].mxu1 }
 0x1ba   : > { %2987 = vst.msk [vmem:[%s4400_s22 + $0x98] sm:$0xf] %vm2948_vm1, %v3512_v44  ;;  %v3513_v37 = vpack.c.bf16 %v2507_v45, %v2507_v45  ;;  %v1829_v47 = vadd.f32 %v4713_v25, %v1828_v46  ;;  %v1830_v49 = vpop.f32.mrb[81].mxu1 }
 0x1bb   : > { %v1831_v48 = vpop.f32.mrb[82].mxu1 }
 0x1bc   : > { %2988 = vst.msk [vmem:[%s4400_s22 + $0x9c] sm:$0xf] %vm2948_vm1, %v3513_v37  ;;  %v2246_v52 = vadd.f32 %v4682_v57, %v1829_v47  ;;  %v1832_v41 = vadd.f32 %v4713_v25, %v1831_v48  ;;  %v1833_v55 = vpop.f32.mrb[83].mxu1 }
 0x1bd   : > { %v2277_v59 = vpop.f32.mrb[96].mxu0 }
 0x1be   : > { %v2508_v53 = vmax.f32 %v2246_v52, 0.0  ;;  %v2249_v51 = vadd.f32 %v4686_v4, %v1832_v41  ;;  %2043 = vmatmul.mubr.bf16.gmra.mrb[188].mxu1 %v4083_v39  ;;  %v2279_v8 = vpop.f32.mrb[97].mxu0 }
 0x1bf   : > { %v2280_v6 = vpop.f32.mrb[98].mxu0 }
 0x1c0   : > { %v3514_v54 = vpack.c.bf16 %v2508_v53, %v2508_v53  ;;  %v2509_v62 = vmax.f32 %v2249_v51, 0.0  ;;  %v2282_v14 = vpop.f32.mrb[99].mxu0 }
 0x1c1   : > { %v1836_v63 = vpop.f32.mrb[84].mxu1 }
 0x1c2   : > { %2989 = vst.msk [vmem:[%s4400_s22 + $0xa0] sm:$0xf] %vm2948_vm1, %v3514_v54  ;;  %v3515_v0 = vpack.c.bf16 %v2509_v62, %v2509_v62  ;;  %v1837_v57 = vadd.f32 %v4713_v25, %v1836_v63  ;;  %v1838_v1 = vpop.f32.mrb[85].mxu1 }
 0x1c3   : > { %v1839_v2 = vpop.f32.mrb[86].mxu1 }
 0x1c4   : > { %2990 = vst.msk [vmem:[%s4400_s22 + $0xa4] sm:$0xf] %vm2948_vm1, %v3515_v0  ;;  %v2254_v3 = vadd.f32 %v2253_v19, %v1837_v57  ;;  %v1840_v5 = vadd.f32 %v4713_v25, %v1839_v2  ;;  %v1841_v4 = vpop.f32.mrb[87].mxu1 }
 0x1c6   : > { %v2510_v61 = vmax.f32 %v2254_v3, 0.0  ;;  %v2257_v11 = vadd.f32 %v2256_v22, %v1840_v5  ;;  %v2285_v22 = vpop.f32.mrb[100].mxu0 }
 0x1c7   : > { %v2287_v24 = vpop.f32.mrb[101].mxu0 }
 0x1c8   : > { %v3516_v9 = vpack.c.bf16 %v2510_v61, %v2510_v61  ;;  %v2511_v16 = vmax.f32 %v2257_v11, 0.0  ;;  %v2288_v29 = vpop.f32.mrb[102].mxu0 }
 0x1c9   : > { %v1844_v12 = vpop.f32.mrb[88].mxu1  ;;  %v2290_v15 = vpop.f32.mrb[103].mxu0 }
 0x1ca   : > { %2991 = vst.msk [vmem:[%s4400_s22 + $0xa8] sm:$0xf] %vm2948_vm1, %v3516_v9  ;;  %v3517_v7 = vpack.c.bf16 %v2511_v16, %v2511_v16  ;;  %v1845_v10 = vadd.f32 %v4713_v25, %v1844_v12  ;;  %v1846_v18 = vpop.f32.mrb[89].mxu1 }
 0x1cb   : > { %v1847_v19 = vpop.f32.mrb[90].mxu1 }
 0x1cc   : > { %2992 = vst.msk [vmem:[%s4400_s22 + $0xac] sm:$0xf] %vm2948_vm1, %v3517_v7  ;;  %v2262_v13 = vadd.f32 %v2261_v31, %v1845_v10  ;;  %v1848_v20 = vadd.f32 %v4713_v25, %v1847_v19  ;;  %v1849_v21 = vpop.f32.mrb[91].mxu1 }
 0x1cd   : > { %v2293_v36 = vpop.f32.mrb[104].mxu0 }
 0x1ce   : > { %v2512_v26 = vmax.f32 %v2262_v13, 0.0  ;;  %v2265_v27 = vadd.f32 %v2264_v42, %v1848_v20  ;;  %v2295_v34 = vpop.f32.mrb[105].mxu0 }
 0x1cf   : > { %v2296_v44 = vpop.f32.mrb[106].mxu0 }
 0x1d0   : > { %v3518_v17 = vpack.c.bf16 %v2512_v26, %v2512_v26  ;;  %v2513_v32 = vmax.f32 %v2265_v27, 0.0  ;;  %v2298_v45 = vpop.f32.mrb[107].mxu0 }
 0x1d1   : > { %v1852_v23 = vpop.f32.mrb[92].mxu1 }
 0x1d2   : > { %2993 = vst.msk [vmem:[%s4400_s22 + $0xb0] sm:$0xf] %vm2948_vm1, %v3518_v17  ;;  %v3519_v35 = vpack.c.bf16 %v2513_v32, %v2513_v32  ;;  %v1853_v30 = vadd.f32 %v4713_v25, %v1852_v23  ;;  %v1854_v28 = vpop.f32.mrb[93].mxu1 }
 0x1d3   : > { %v1855_v38 = vpop.f32.mrb[94].mxu1 }
 0x1d4   : > { %2994 = vst.msk [vmem:[%s4400_s22 + $0xb4] sm:$0xf] %vm2948_vm1, %v3519_v35  ;;  %v2270_v33 = vadd.f32 %v2269_v50, %v1853_v30  ;;  %v1856_v31 = vadd.f32 %v4713_v25, %v1855_v38  ;;  %v1857_v40 = vpop.f32.mrb[95].mxu1 }
 0x1d5   : > { %v2301_v58 = vpop.f32.mrb[108].mxu0 }
 0x1d6   : > { %v2514_v42 = vmax.f32 %v2270_v33, 0.0  ;;  %v2273_v43 = vadd.f32 %v2272_v60, %v1856_v31  ;;  %v2303_v53 = vpop.f32.mrb[109].mxu0 }
 0x1d7   : > { %v2304_v56 = vpop.f32.mrb[110].mxu0 }
 0x1d8   : > { %v3520_v46 = vpack.c.bf16 %v2514_v42, %v2514_v42  ;;  %v2515_v37 = vmax.f32 %v2273_v43, 0.0  ;;  %v2306_v54 = vpop.f32.mrb[111].mxu0 }
 0x1d9   : > { %v1860_v47 = vpop.f32.mrb[96].mxu1 }
 0x1da   : > { %2995 = vst.msk [vmem:[%s4400_s22 + $0xb8] sm:$0xf] %vm2948_vm1, %v3520_v46  ;;  %v3521_v49 = vpack.c.bf16 %v2515_v37, %v2515_v37  ;;  %v1861_v39 = vadd.f32 %v4713_v25, %v1860_v47  ;;  %v1862_v48 = vpop.f32.mrb[97].mxu1 }
 0x1db   : > { %v1863_v52 = vpop.f32.mrb[98].mxu1 }
 0x1dc   : > { %2996 = vst.msk [vmem:[%s4400_s22 + $0xbc] sm:$0xf] %vm2948_vm1, %v3521_v49  ;;  %v2278_v41 = vadd.f32 %v2277_v59, %v1861_v39  ;;  %v1864_v55 = vadd.f32 %v4713_v25, %v1863_v52  ;;  %v1865_v50 = vpop.f32.mrb[99].mxu1 }
 0x1dd   : > { %v2309_v8 = vpop.f32.mrb[112].mxu0 }
 0x1de   : > { %v2516_v51 = vmax.f32 %v2278_v41, 0.0  ;;  %v2281_v60 = vadd.f32 %v2280_v6, %v1864_v55  ;;  %v2311_v61 = vpop.f32.mrb[113].mxu0 }
 0x1df   : > { %v2312_v14 = vpop.f32.mrb[114].mxu0 }
 0x1e0   : > { %v3522_v62 = vpack.c.bf16 %v2516_v51, %v2516_v51  ;;  %v2517_v63 = vmax.f32 %v2281_v60, 0.0  ;;  %v2314_v9 = vpop.f32.mrb[115].mxu0 }
 0x1e1   : > { %v1868_v0 = vpop.f32.mrb[100].mxu1 }
 0x1e2   : > { %2997 = vst.msk [vmem:[%s4400_s22 + $0xc0] sm:$0xf] %vm2948_vm1, %v3522_v62  ;;  %v3523_v57 = vpack.c.bf16 %v2517_v63, %v2517_v63  ;;  %v1869_v1 = vadd.f32 %v4713_v25, %v1868_v0  ;;  %v1870_v2 = vpop.f32.mrb[101].mxu1 }
 0x1e3   : > { %v1871_v3 = vpop.f32.mrb[102].mxu1 }
 0x1e4   : > { %2998 = vst.msk [vmem:[%s4400_s22 + $0xc4] sm:$0xf] %vm2948_vm1, %v3523_v57  ;;  %v2286_v5 = vadd.f32 %v2285_v22, %v1869_v1  ;;  %v1872_v4 = vadd.f32 %v4713_v25, %v1871_v3  ;;  %v1873_v59 = vpop.f32.mrb[103].mxu1 }
 0x1e5   : > { %v2317_v24 = vpop.f32.mrb[116].mxu0 }
 0x1e6   : > { %v2518_v11 = vmax.f32 %v2286_v5, 0.0  ;;  %v2289_v6 = vadd.f32 %v2288_v29, %v1872_v4  ;;  %v2319_v26 = vpop.f32.mrb[117].mxu0 }
 0x1e7   : > { %v2320_v15 = vpop.f32.mrb[118].mxu0 }
 0x1e8   : > { %v3524_v16 = vpack.c.bf16 %v2518_v11, %v2518_v11  ;;  %v2519_v12 = vmax.f32 %v2289_v6, 0.0  ;;  %v2322_v17 = vpop.f32.mrb[119].mxu0 }
 0x1e9   : > { %v1876_v7 = vpop.f32.mrb[104].mxu1 }
 0x1ea   : > { %2999 = vst.msk [vmem:[%s4400_s22 + $0xc8] sm:$0xf] %vm2948_vm1, %v3524_v16  ;;  %v3525_v10 = vpack.c.bf16 %v2519_v12, %v2519_v12  ;;  %v1877_v18 = vadd.f32 %v4713_v25, %v1876_v7  ;;  %v1878_v19 = vpop.f32.mrb[105].mxu1 }
 0x1eb   : > { %v1879_v13 = vpop.f32.mrb[106].mxu1 }
 0x1ec   : > { %3000 = vst.msk [vmem:[%s4400_s22 + $0xcc] sm:$0xf] %vm2948_vm1, %v3525_v10  ;;  %v2294_v20 = vadd.f32 %v2293_v36, %v1877_v18  ;;  %v1880_v21 = vadd.f32 %v4713_v25, %v1879_v13  ;;  %v1881_v22 = vpop.f32.mrb[107].mxu1 }
 0x1ed   : > { %v2325_v34 = vpop.f32.mrb[120].mxu0 }
 0x1ee   : > { %v2520_v27 = vmax.f32 %v2294_v20, 0.0  ;;  %v2297_v29 = vadd.f32 %v2296_v44, %v1880_v21  ;;  %v2327_v42 = vpop.f32.mrb[121].mxu0 }
 0x1ef   : > { %v2328_v45 = vpop.f32.mrb[122].mxu0 }
 0x1f0   : > { %v3526_v32 = vpack.c.bf16 %v2520_v27, %v2520_v27  ;;  %v2521_v23 = vmax.f32 %v2297_v29, 0.0  ;;  %v2330_v46 = vpop.f32.mrb[123].mxu0 }
 0x1f1   : > { %v1884_v35 = vpop.f32.mrb[108].mxu1 }
 0x1f2   : > { %3001 = vst.msk [vmem:[%s4400_s22 + $0xd0] sm:$0xf] %vm2948_vm1, %v3526_v32  ;;  %v3527_v30 = vpack.c.bf16 %v2521_v23, %v2521_v23  ;;  %v1885_v28 = vadd.f32 %v4713_v25, %v1884_v35  ;;  %v1886_v38 = vpop.f32.mrb[109].mxu1 }
 0x1f3   : > { %v1887_v33 = vpop.f32.mrb[110].mxu1 }
 0x1f4   : > { %3002 = vst.msk [vmem:[%s4400_s22 + $0xd4] sm:$0xf] %vm2948_vm1, %v3527_v30  ;;  %v2302_v31 = vadd.f32 %v2301_v58, %v1885_v28  ;;  %v1888_v40 = vadd.f32 %v4713_v25, %v1887_v33  ;;  %v1889_v36 = vpop.f32.mrb[111].mxu1 }
 0x1f5   : > { %v2333_v53 = vpop.f32.mrb[124].mxu0 }
 0x1f6   : > { %v2522_v43 = vmax.f32 %v2302_v31, 0.0  ;;  %v2305_v44 = vadd.f32 %v2304_v56, %v1888_v40  ;;  %v2335_v51 = vpop.f32.mrb[125].mxu0 }
 0x1f7   : > { %v2336_v54 = vpop.f32.mrb[126].mxu0 }
 0x1f8   : > { %v3528_v37 = vpack.c.bf16 %v2522_v43, %v2522_v43  ;;  %v2523_v47 = vmax.f32 %v2305_v44, 0.0  ;;  %v2338_v62 = vpop.f32.mrb[127].mxu0 }
 0x1f9   : > { %v1892_v49 = vpop.f32.mrb[112].mxu1 }
 0x1fa   : > { %3003 = vst.msk [vmem:[%s4400_s22 + $0xd8] sm:$0xf] %vm2948_vm1, %v3528_v37  ;;  %v3529_v39 = vpack.c.bf16 %v2523_v47, %v2523_v47  ;;  %v1893_v48 = vadd.f32 %v4713_v25, %v1892_v49  ;;  %v1894_v52 = vpop.f32.mrb[113].mxu1 }
 0x1fb   : > { %v1895_v41 = vpop.f32.mrb[114].mxu1 }
 0x1fc   : > { %3004 = vst.msk [vmem:[%s4400_s22 + $0xdc] sm:$0xf] %vm2948_vm1, %v3529_v39  ;;  %v2310_v55 = vadd.f32 %v2309_v8, %v1893_v48  ;;  %v1896_v50 = vadd.f32 %v4713_v25, %v1895_v41  ;;  %v1897_v58 = vpop.f32.mrb[115].mxu1 }
 0x1fd   : > { %v2341_v61 = vpop.f32.mrb[128].mxu0 }
 0x1fe   : > { %v2524_v60 = vmax.f32 %v2310_v55, 0.0  ;;  %v2313_v56 = vadd.f32 %v2312_v14, %v1896_v50  ;;  %v2343_v11 = vpop.f32.mrb[129].mxu0 }
 0x1ff   : > { %v2344_v9 = vpop.f32.mrb[130].mxu0 }
 0x200   : > { %v3530_v63 = vpack.c.bf16 %v2524_v60, %v2524_v60  ;;  %v2525_v0 = vmax.f32 %v2313_v56, 0.0  ;;  %v2346_v16 = vpop.f32.mrb[131].mxu0 }
 0x201   : > { %v1900_v57 = vpop.f32.mrb[116].mxu1 }
 0x202   : > { %3005 = vst.msk [vmem:[%s4400_s22 + $0xe0] sm:$0xf] %vm2948_vm1, %v3530_v63  ;;  %v3531_v1 = vpack.c.bf16 %v2525_v0, %v2525_v0  ;;  %v1901_v2 = vadd.f32 %v4713_v25, %v1900_v57  ;;  %v1902_v3 = vpop.f32.mrb[117].mxu1 }
 0x203   : > { %v1903_v5 = vpop.f32.mrb[118].mxu1 }
 0x204   : > { %3006 = vst.msk [vmem:[%s4400_s22 + $0xe4] sm:$0xf] %vm2948_vm1, %v3531_v1  ;;  %v2318_v4 = vadd.f32 %v2317_v24, %v1901_v2  ;;  %v1904_v59 = vadd.f32 %v4713_v25, %v1903_v5  ;;  %v1905_v8 = vpop.f32.mrb[119].mxu1 }
 0x205   : > { %v2349_v26 = vpop.f32.mrb[132].mxu0 }
 0x206   : > { %v2526_v6 = vmax.f32 %v2318_v4, 0.0  ;;  %v2321_v14 = vadd.f32 %v2320_v15, %v1904_v59  ;;  %v2351_v27 = vpop.f32.mrb[133].mxu0 }
 0x207   : > { %v2352_v17 = vpop.f32.mrb[134].mxu0 }
 0x208   : > { %v3532_v12 = vpack.c.bf16 %v2526_v6, %v2526_v6  ;;  %v2527_v7 = vmax.f32 %v2321_v14, 0.0  ;;  %v2354_v32 = vpop.f32.mrb[135].mxu0 }
 0x209   : > { %v1908_v10 = vpop.f32.mrb[120].mxu1 }
 0x20a   : > { %3007 = vst.msk [vmem:[%s4400_s22 + $0xe8] sm:$0xf] %vm2948_vm1, %v3532_v12  ;;  %v3533_v18 = vpack.c.bf16 %v2527_v7, %v2527_v7  ;;  %v1909_v19 = vadd.f32 %v4713_v25, %v1908_v10  ;;  %v1910_v13 = vpop.f32.mrb[121].mxu1 }
 0x20b   : > { %v1911_v20 = vpop.f32.mrb[122].mxu1 }
 0x20c   : > { %3008 = vst.msk [vmem:[%s4400_s22 + $0xec] sm:$0xf] %vm2948_vm1, %v3533_v18  ;;  %v2326_v21 = vadd.f32 %v2325_v34, %v1909_v19  ;;  %v1912_v22 = vadd.f32 %v4713_v25, %v1911_v20  ;;  %v1913_v24 = vpop.f32.mrb[123].mxu1 }
 0x20d   : > { %v2357_v42 = vpop.f32.mrb[136].mxu0 }
 0x20e   : > { %v2528_v29 = vmax.f32 %v2326_v21, 0.0  ;;  %v2329_v15 = vadd.f32 %v2328_v45, %v1912_v22  ;;  %v2359_v43 = vpop.f32.mrb[137].mxu0 }
 0x20f   : > { %v2360_v46 = vpop.f32.mrb[138].mxu0 }
 0x210   : > { %v3534_v23 = vpack.c.bf16 %v2528_v29, %v2528_v29  ;;  %v2529_v35 = vmax.f32 %v2329_v15, 0.0  ;;  %v2362_v37 = vpop.f32.mrb[139].mxu0 }
 0x211   : > { %v1916_v30 = vpop.f32.mrb[124].mxu1 }
 0x212   : > { %3009 = vst.msk [vmem:[%s4400_s22 + $0xf0] sm:$0xf] %vm2948_vm1, %v3534_v23  ;;  %v3535_v28 = vpack.c.bf16 %v2529_v35, %v2529_v35  ;;  %v1917_v38 = vadd.f32 %v4713_v25, %v1916_v30  ;;  %v1918_v33 = vpop.f32.mrb[125].mxu1 }
 0x213   : > { %v1919_v31 = vpop.f32.mrb[126].mxu1 }
 0x214   : > { %3010 = vst.msk [vmem:[%s4400_s22 + $0xf4] sm:$0xf] %vm2948_vm1, %v3535_v28  ;;  %v2334_v40 = vadd.f32 %v2333_v53, %v1917_v38  ;;  %v1920_v36 = vadd.f32 %v4713_v25, %v1919_v31  ;;  %v1921_v34 = vpop.f32.mrb[127].mxu1 }
 0x215   : > { %v2365_v51 = vpop.f32.mrb[140].mxu0 }
 0x216   : > { %v2530_v44 = vmax.f32 %v2334_v40, 0.0  ;;  %v2337_v45 = vadd.f32 %v2336_v54, %v1920_v36  ;;  %v2367_v60 = vpop.f32.mrb[141].mxu0 }
 0x217   : > { %v2368_v62 = vpop.f32.mrb[142].mxu0 }
 0x218   : > { %v3536_v47 = vpack.c.bf16 %v2530_v44, %v2530_v44  ;;  %v2531_v49 = vmax.f32 %v2337_v45, 0.0  ;;  %v2370_v63 = vpop.f32.mrb[143].mxu0 }
 0x219   : > { %v1924_v39 = vpop.f32.mrb[128].mxu1 }
 0x21a   : > { %3011 = vst.msk [vmem:[%s4400_s22 + $0xf8] sm:$0xf] %vm2948_vm1, %v3536_v47  ;;  %v3537_v48 = vpack.c.bf16 %v2531_v49, %v2531_v49  ;;  %v1925_v52 = vadd.f32 %v4713_v25, %v1924_v39  ;;  %v1926_v41 = vpop.f32.mrb[129].mxu1 }
 0x21b   : > { %v1927_v55 = vpop.f32.mrb[130].mxu1 }
 0x21c   : > { %3012 = vst.msk [vmem:[%s4400_s22 + $0xfc] sm:$0xf] %vm2948_vm1, %v3537_v48  ;;  %v2342_v50 = vadd.f32 %v2341_v61, %v1925_v52  ;;  %v1928_v58 = vadd.f32 %v4713_v25, %v1927_v55  ;;  %v1929_v53 = vpop.f32.mrb[131].mxu1 }
 0x21d   : > { %v2373_v11 = vpop.f32.mrb[144].mxu0 }
 0x21e   : > { %v2532_v56 = vmax.f32 %v2342_v50, 0.0  ;;  %v2345_v54 = vadd.f32 %v2344_v9, %v1928_v58  ;;  %v2375_v6 = vpop.f32.mrb[145].mxu0 }
 0x21f   : > { %v2376_v16 = vpop.f32.mrb[146].mxu0 }
 0x220   : > { %v3538_v0 = vpack.c.bf16 %v2532_v56, %v2532_v56  ;;  %v2533_v57 = vmax.f32 %v2345_v54, 0.0  ;;  %v2378_v12 = vpop.f32.mrb[147].mxu0 }
 0x221   : > { %v1932_v1 = vpop.f32.mrb[132].mxu1 }
 0x222   : > { %3013 = vst.msk [vmem:[%s4400_s22 + $0x100] sm:$0xf] %vm2948_vm1, %v3538_v0  ;;  %v3539_v2 = vpack.c.bf16 %v2533_v57, %v2533_v57  ;;  %v1933_v3 = vadd.f32 %v4713_v25, %v1932_v1  ;;  %v1934_v5 = vpop.f32.mrb[133].mxu1 }
 0x223   : > { %v1935_v4 = vpop.f32.mrb[134].mxu1 }
 0x224   : > { %3014 = vst.msk [vmem:[%s4400_s22 + $0x104] sm:$0xf] %vm2948_vm1, %v3539_v2  ;;  %v2350_v59 = vadd.f32 %v2349_v26, %v1933_v3  ;;  %v1936_v8 = vadd.f32 %v4713_v25, %v1935_v4  ;;  %v1937_v61 = vpop.f32.mrb[135].mxu1 }
 0x225   : > { %v2381_v27 = vpop.f32.mrb[148].mxu0 }
 0x226   : > { %v2534_v14 = vmax.f32 %v2350_v59, 0.0  ;;  %v2353_v9 = vadd.f32 %v2352_v17, %v1936_v8  ;;  %v2383_v29 = vpop.f32.mrb[149].mxu0 }
 0x227   : > { %v2384_v32 = vpop.f32.mrb[150].mxu0 }
 0x228   : > { %v3540_v7 = vpack.c.bf16 %v2534_v14, %v2534_v14  ;;  %v2535_v10 = vmax.f32 %v2353_v9, 0.0  ;;  %v2386_v23 = vpop.f32.mrb[151].mxu0 }
 0x229   : > { %v1940_v18 = vpop.f32.mrb[136].mxu1 }
 0x22a   : > { %3015 = vst.msk [vmem:[%s4400_s22 + $0x108] sm:$0xf] %vm2948_vm1, %v3540_v7  ;;  %v3541_v19 = vpack.c.bf16 %v2535_v10, %v2535_v10  ;;  %v1941_v13 = vadd.f32 %v4713_v25, %v1940_v18  ;;  %v1942_v20 = vpop.f32.mrb[137].mxu1 }
 0x22b   : > { %v1943_v21 = vpop.f32.mrb[138].mxu1 }
 0x22c   : > { %3016 = vst.msk [vmem:[%s4400_s22 + $0x10c] sm:$0xf] %vm2948_vm1, %v3541_v19  ;;  %v2358_v22 = vadd.f32 %v2357_v42, %v1941_v13  ;;  %v1944_v24 = vadd.f32 %v4713_v25, %v1943_v21  ;;  %v1945_v26 = vpop.f32.mrb[139].mxu1 }
 0x22d   : > { %v2389_v43 = vpop.f32.mrb[152].mxu0 }
 0x22e   : > { %v2536_v15 = vmax.f32 %v2358_v22, 0.0  ;;  %v2361_v17 = vadd.f32 %v2360_v46, %v1944_v24  ;;  %v2391_v44 = vpop.f32.mrb[153].mxu0 }
 0x22f   : > { %v2392_v37 = vpop.f32.mrb[154].mxu0 }
 0x230   : > { %v3542_v35 = vpack.c.bf16 %v2536_v15, %v2536_v15  ;;  %v2537_v30 = vmax.f32 %v2361_v17, 0.0  ;;  %v2394_v47 = vpop.f32.mrb[155].mxu0 }
 0x231   : > { %v1948_v28 = vpop.f32.mrb[140].mxu1 }
 0x232   : > { %3017 = vst.msk [vmem:[%s4400_s22 + $0x110] sm:$0xf] %vm2948_vm1, %v3542_v35  ;;  %v3543_v38 = vpack.c.bf16 %v2537_v30, %v2537_v30  ;;  %v1949_v33 = vadd.f32 %v4713_v25, %v1948_v28  ;;  %v1950_v31 = vpop.f32.mrb[141].mxu1 }
 0x233   : > { %v1951_v40 = vpop.f32.mrb[142].mxu1 }
 0x234   : > { %3018 = vst.msk [vmem:[%s4400_s22 + $0x114] sm:$0xf] %vm2948_vm1, %v3543_v38  ;;  %v2366_v36 = vadd.f32 %v2365_v51, %v1949_v33  ;;  %v1952_v34 = vadd.f32 %v4713_v25, %v1951_v40  ;;  %v1953_v42 = vpop.f32.mrb[143].mxu1 }
 0x235   : > { %v2397_v60 = vpop.f32.mrb[156].mxu0 }
 0x236   : > { %v2538_v45 = vmax.f32 %v2366_v36, 0.0  ;;  %v2369_v46 = vadd.f32 %v2368_v62, %v1952_v34  ;;  %v2399_v56 = vpop.f32.mrb[157].mxu0 }
 0x237   : > { %v2400_v63 = vpop.f32.mrb[158].mxu0 }
 0x238   : > { %v3544_v49 = vpack.c.bf16 %v2538_v45, %v2538_v45  ;;  %v2539_v39 = vmax.f32 %v2369_v46, 0.0  ;;  %v2402_v0 = vpop.f32.mrb[159].mxu0 }
 0x239   : > { %v1956_v48 = vpop.f32.mrb[144].mxu1 }
 0x23a   : > { %3019 = vst.msk [vmem:[%s4400_s22 + $0x118] sm:$0xf] %vm2948_vm1, %v3544_v49  ;;  %v3545_v52 = vpack.c.bf16 %v2539_v39, %v2539_v39  ;;  %v1957_v41 = vadd.f32 %v4713_v25, %v1956_v48  ;;  %v1958_v55 = vpop.f32.mrb[145].mxu1 }
 0x23b   : > { %v1959_v50 = vpop.f32.mrb[146].mxu1 }
 0x23c   : > { %3020 = vst.msk [vmem:[%s4400_s22 + $0x11c] sm:$0xf] %vm2948_vm1, %v3545_v52  ;;  %v2374_v58 = vadd.f32 %v2373_v11, %v1957_v41  ;;  %v1960_v53 = vadd.f32 %v4713_v25, %v1959_v50  ;;  %v1961_v51 = vpop.f32.mrb[147].mxu1 }
 0x23d   : > { %v2405_v6 = vpop.f32.mrb[160].mxu0 }
 0x23e   : > { %v2540_v54 = vmax.f32 %v2374_v58, 0.0  ;;  %v2377_v62 = vadd.f32 %v2376_v16, %v1960_v53  ;;  %v2407_v14 = vpop.f32.mrb[161].mxu0 }
 0x23f   : > { %v2408_v12 = vpop.f32.mrb[162].mxu0 }
 0x240   : > { %v3546_v57 = vpack.c.bf16 %v2540_v54, %v2540_v54  ;;  %v2541_v1 = vmax.f32 %v2377_v62, 0.0  ;;  %v2410_v7 = vpop.f32.mrb[163].mxu0 }
 0x241   : > { %v1964_v2 = vpop.f32.mrb[148].mxu1 }
 0x242   : > { %3021 = vst.msk [vmem:[%s4400_s22 + $0x120] sm:$0xf] %vm2948_vm1, %v3546_v57  ;;  %v3547_v3 = vpack.c.bf16 %v2541_v1, %v2541_v1  ;;  %v1965_v5 = vadd.f32 %v4713_v25, %v1964_v2  ;;  %v1966_v4 = vpop.f32.mrb[149].mxu1 }
 0x243   : > { %v1967_v59 = vpop.f32.mrb[150].mxu1 }
 0x244   : > { %3022 = vst.msk [vmem:[%s4400_s22 + $0x124] sm:$0xf] %vm2948_vm1, %v3547_v3  ;;  %v2382_v8 = vadd.f32 %v2381_v27, %v1965_v5  ;;  %v1968_v61 = vadd.f32 %v4713_v25, %v1967_v59  ;;  %v1969_v11 = vpop.f32.mrb[151].mxu1 }
 0x245   : > { %v2413_v29 = vpop.f32.mrb[164].mxu0 }
 0x246   : > { %v2542_v9 = vmax.f32 %v2382_v8, 0.0  ;;  %v2385_v16 = vadd.f32 %v2384_v32, %v1968_v61  ;;  %v2415_v15 = vpop.f32.mrb[165].mxu0 }
 0x247   : > { %v2416_v23 = vpop.f32.mrb[166].mxu0 }
 0x248   : > { %v3548_v10 = vpack.c.bf16 %v2542_v9, %v2542_v9  ;;  %v2543_v18 = vmax.f32 %v2385_v16, 0.0  ;;  %v2418_v35 = vpop.f32.mrb[167].mxu0 }
 0x249   : > { %v1972_v19 = vpop.f32.mrb[152].mxu1 }
 0x24a   : > { %3023 = vst.msk [vmem:[%s4400_s22 + $0x128] sm:$0xf] %vm2948_vm1, %v3548_v10  ;;  %v3549_v13 = vpack.c.bf16 %v2543_v18, %v2543_v18  ;;  %v1973_v20 = vadd.f32 %v4713_v25, %v1972_v19  ;;  %v1974_v21 = vpop.f32.mrb[153].mxu1 }
 0x24b   : > { %v1975_v22 = vpop.f32.mrb[154].mxu1 }
 0x24c   : > { %3024 = vst.msk [vmem:[%s4400_s22 + $0x12c] sm:$0xf] %vm2948_vm1, %v3549_v13  ;;  %v2390_v24 = vadd.f32 %v2389_v43, %v1973_v20  ;;  %v1976_v26 = vadd.f32 %v4713_v25, %v1975_v22  ;;  %v1977_v27 = vpop.f32.mrb[155].mxu1 }
 0x24d   : > { %v2421_v44 = vpop.f32.mrb[168].mxu0 }
 0x24e   : > { %v2544_v17 = vmax.f32 %v2390_v24, 0.0  ;;  %v2393_v32 = vadd.f32 %v2392_v37, %v1976_v26  ;;  %v2423_v45 = vpop.f32.mrb[169].mxu0 }
 0x24f   : > { %v2424_v47 = vpop.f32.mrb[170].mxu0 }
 0x250   : > { %v3550_v30 = vpack.c.bf16 %v2544_v17, %v2544_v17  ;;  %v2545_v28 = vmax.f32 %v2393_v32, 0.0  ;;  %v2426_v49 = vpop.f32.mrb[171].mxu0 }
 0x251   : > { %v1980_v38 = vpop.f32.mrb[156].mxu1 }
 0x252   : > { %3025 = vst.msk [vmem:[%s4400_s22 + $0x130] sm:$0xf] %vm2948_vm1, %v3550_v30  ;;  %v3551_v33 = vpack.c.bf16 %v2545_v28, %v2545_v28  ;;  %v1981_v31 = vadd.f32 %v4713_v25, %v1980_v38  ;;  %v1982_v40 = vpop.f32.mrb[157].mxu1 }
 0x253   : > { %v1983_v36 = vpop.f32.mrb[158].mxu1 }
 0x254   : > { %3026 = vst.msk [vmem:[%s4400_s22 + $0x134] sm:$0xf] %vm2948_vm1, %v3551_v33  ;;  %v2398_v34 = vadd.f32 %v2397_v60, %v1981_v31  ;;  %v1984_v42 = vadd.f32 %v4713_v25, %v1983_v36  ;;  %v1985_v43 = vpop.f32.mrb[159].mxu1 }
 0x255   : > { %v2429_v56 = vpop.f32.mrb[172].mxu0 }
 0x256   : > { %v2546_v46 = vmax.f32 %v2398_v34, 0.0  ;;  %v2401_v37 = vadd.f32 %v2400_v63, %v1984_v42  ;;  %v2431_v54 = vpop.f32.mrb[173].mxu0 }
 0x257   : > { %v2432_v0 = vpop.f32.mrb[174].mxu0 }
 0x258   : > { %v3552_v39 = vpack.c.bf16 %v2546_v46, %v2546_v46  ;;  %v2547_v48 = vmax.f32 %v2401_v37, 0.0  ;;  %v2434_v57 = vpop.f32.mrb[175].mxu0 }
 0x259   : > { %v1988_v52 = vpop.f32.mrb[160].mxu1 }
 0x25a   : > { %3027 = vst.msk [vmem:[%s4400_s22 + $0x138] sm:$0xf] %vm2948_vm1, %v3552_v39  ;;  %v3553_v41 = vpack.c.bf16 %v2547_v48, %v2547_v48  ;;  %v1989_v55 = vadd.f32 %v4713_v25, %v1988_v52  ;;  %v1990_v50 = vpop.f32.mrb[161].mxu1 }
 0x25b   : > { %v1991_v58 = vpop.f32.mrb[162].mxu1 }
 0x25c   : > { %3028 = vst.msk [vmem:[%s4400_s22 + $0x13c] sm:$0xf] %vm2948_vm1, %v3553_v41  ;;  %v2406_v53 = vadd.f32 %v2405_v6, %v1989_v55  ;;  %v1992_v51 = vadd.f32 %v4713_v25, %v1991_v58  ;;  %v1993_v60 = vpop.f32.mrb[163].mxu1 }
 0x25d   : > { %v2437_v14 = vpop.f32.mrb[176].mxu0 }
 0x25e   : > { %v2548_v62 = vmax.f32 %v2406_v53, 0.0  ;;  %v2409_v63 = vadd.f32 %v2408_v12, %v1992_v51  ;;  %v2439_v9 = vpop.f32.mrb[177].mxu0 }
 0x25f   : > { %v2440_v7 = vpop.f32.mrb[178].mxu0 }
 0x260   : > { %v3554_v1 = vpack.c.bf16 %v2548_v62, %v2548_v62  ;;  %v2549_v2 = vmax.f32 %v2409_v63, 0.0  ;;  %v2442_v10 = vpop.f32.mrb[179].mxu0 }
 0x261   : > { %v1996_v3 = vpop.f32.mrb[164].mxu1 }
 0x262   : > { %3029 = vst.msk [vmem:[%s4400_s22 + $0x140] sm:$0xf] %vm2948_vm1, %v3554_v1  ;;  %v3555_v5 = vpack.c.bf16 %v2549_v2, %v2549_v2  ;;  %v1997_v4 = vadd.f32 %v4713_v25, %v1996_v3  ;;  %v1998_v59 = vpop.f32.mrb[165].mxu1 }
 0x263   : > { %v1999_v8 = vpop.f32.mrb[166].mxu1 }
 0x264   : > { %3030 = vst.msk [vmem:[%s4400_s22 + $0x144] sm:$0xf] %vm2948_vm1, %v3555_v5  ;;  %v2414_v61 = vadd.f32 %v2413_v29, %v1997_v4  ;;  %v2000_v11 = vadd.f32 %v4713_v25, %v1999_v8  ;;  %v2001_v6 = vpop.f32.mrb[167].mxu1 }
 0x265   : > { %v2445_v15 = vpop.f32.mrb[180].mxu0 }
 0x266   : > { %v2550_v16 = vmax.f32 %v2414_v61, 0.0  ;;  %v2417_v12 = vadd.f32 %v2416_v23, %v2000_v11  ;;  %v2447_v17 = vpop.f32.mrb[181].mxu0 }
 0x267   : > { %v2448_v35 = vpop.f32.mrb[182].mxu0 }
 0x268   : > { %v3556_v18 = vpack.c.bf16 %v2550_v16, %v2550_v16  ;;  %v2551_v19 = vmax.f32 %v2417_v12, 0.0  ;;  %v2450_v30 = vpop.f32.mrb[183].mxu0 }
 0x269   : > { %v2004_v13 = vpop.f32.mrb[168].mxu1 }
 0x26a   : > { %3031 = vst.msk [vmem:[%s4400_s22 + $0x148] sm:$0xf] %vm2948_vm1, %v3556_v18  ;;  %v3557_v20 = vpack.c.bf16 %v2551_v19, %v2551_v19  ;;  %v2005_v21 = vadd.f32 %v4713_v25, %v2004_v13  ;;  %v2006_v22 = vpop.f32.mrb[169].mxu1 }
 0x26b   : > { %v2007_v24 = vpop.f32.mrb[170].mxu1 }
 0x26c   : > { %3032 = vst.msk [vmem:[%s4400_s22 + $0x14c] sm:$0xf] %vm2948_vm1, %v3557_v20  ;;  %v2422_v26 = vadd.f32 %v2421_v44, %v2005_v21  ;;  %v2008_v27 = vadd.f32 %v4713_v25, %v2007_v24  ;;  %v2009_v29 = vpop.f32.mrb[171].mxu1 }
 0x26d   : > { %v2453_v45 = vpop.f32.mrb[184].mxu0 }
 0x26e   : > { %v2552_v32 = vmax.f32 %v2422_v26, 0.0  ;;  %v2425_v23 = vadd.f32 %v2424_v47, %v2008_v27  ;;  %v2455_v46 = vpop.f32.mrb[185].mxu0 }
 0x26f   : > { %v2456_v49 = vpop.f32.mrb[186].mxu0 }
 0x270   : > { %v3558_v28 = vpack.c.bf16 %v2552_v32, %v2552_v32  ;;  %v2553_v38 = vmax.f32 %v2425_v23, 0.0  ;;  %v2458_v39 = vpop.f32.mrb[187].mxu0 }
 0x271   : > { %v2012_v33 = vpop.f32.mrb[172].mxu1 }
 0x272   : > { %3033 = vst.msk [vmem:[%s4400_s22 + $0x150] sm:$0xf] %vm2948_vm1, %v3558_v28  ;;  %v3559_v31 = vpack.c.bf16 %v2553_v38, %v2553_v38  ;;  %v2013_v40 = vadd.f32 %v4713_v25, %v2012_v33  ;;  %v2014_v36 = vpop.f32.mrb[173].mxu1 }
 0x273   : > { %v2015_v34 = vpop.f32.mrb[174].mxu1 }
 0x274   : > { %3034 = vst.msk [vmem:[%s4400_s22 + $0x154] sm:$0xf] %vm2948_vm1, %v3559_v31  ;;  %v2430_v42 = vadd.f32 %v2429_v56, %v2013_v40  ;;  %v2016_v43 = vadd.f32 %v4713_v25, %v2015_v34  ;;  %v2017_v44 = vpop.f32.mrb[175].mxu1 }
 0x275   : > { %v2461_v54 = vpop.f32.mrb[188].mxu0 }
 0x276   : > { %v2554_v37 = vmax.f32 %v2430_v42, 0.0  ;;  %v2433_v47 = vadd.f32 %v2432_v0, %v2016_v43  ;;  %v2463_v62 = vpop.f32.mrb[189].mxu0 }
 0x277   : > { %v2464_v57 = vpop.f32.mrb[190].mxu0 }
 0x278   : > { %v3560_v48 = vpack.c.bf16 %v2554_v37, %v2554_v37  ;;  %v2555_v52 = vmax.f32 %v2433_v47, 0.0  ;;  %v2466_v1 = vpop.f32.mrb[191].mxu0 }
 0x279   : > { %v2020_v41 = vpop.f32.mrb[176].mxu1 }
 0x27a   : > { %3035 = vst.msk [vmem:[%s4400_s22 + $0x158] sm:$0xf] %vm2948_vm1, %v3560_v48  ;;  %v3561_v55 = vpack.c.bf16 %v2555_v52, %v2555_v52  ;;  %v2021_v50 = vadd.f32 %v4713_v25, %v2020_v41  ;;  %v2022_v58 = vpop.f32.mrb[177].mxu1 }
 0x27b   : > { %v2023_v53 = vpop.f32.mrb[178].mxu1 }
 0x27c   : > { %3036 = vst.msk [vmem:[%s4400_s22 + $0x15c] sm:$0xf] %vm2948_vm1, %v3561_v55  ;;  %v2438_v51 = vadd.f32 %v2437_v14, %v2021_v50  ;;  %v2024_v60 = vadd.f32 %v4713_v25, %v2023_v53  ;;  %v2025_v56 = vpop.f32.mrb[179].mxu1 }
 0x27e   : > { %v2556_v63 = vmax.f32 %v2438_v51, 0.0  ;;  %v2441_v0 = vadd.f32 %v2440_v7, %v2024_v60 }
 0x280   : > { %v3562_v2 = vpack.c.bf16 %v2556_v63, %v2556_v63  ;;  %v2557_v3 = vmax.f32 %v2441_v0, 0.0 }
 0x281   : > { %v2028_v5 = vpop.f32.mrb[180].mxu1 }
 0x282   : > { %3037 = vst.msk [vmem:[%s4400_s22 + $0x160] sm:$0xf] %vm2948_vm1, %v3562_v2  ;;  %v3563_v4 = vpack.c.bf16 %v2557_v3, %v2557_v3  ;;  %v2029_v59 = vadd.f32 %v4713_v25, %v2028_v5  ;;  %v2030_v8 = vpop.f32.mrb[181].mxu1 }
 0x283   : > { %v2031_v61 = vpop.f32.mrb[182].mxu1 }
 0x284   : > { %3038 = vst.msk [vmem:[%s4400_s22 + $0x164] sm:$0xf] %vm2948_vm1, %v3563_v4  ;;  %v2446_v11 = vadd.f32 %v2445_v15, %v2029_v59  ;;  %v2032_v6 = vadd.f32 %v4713_v25, %v2031_v61  ;;  %v2033_v14 = vpop.f32.mrb[183].mxu1 }
 0x286   : > { %v2558_v9 = vmax.f32 %v2446_v11, 0.0  ;;  %v2449_v16 = vadd.f32 %v2448_v35, %v2032_v6 }
 0x288   : > { %v3564_v12 = vpack.c.bf16 %v2558_v9, %v2558_v9  ;;  %v2559_v7 = vmax.f32 %v2449_v16, 0.0 }
 0x289   : > { %v2036_v10 = vpop.f32.mrb[184].mxu1 }
 0x28a   : > { %3039 = vst.msk [vmem:[%s4400_s22 + $0x168] sm:$0xf] %vm2948_vm1, %v3564_v12  ;;  %v3565_v18 = vpack.c.bf16 %v2559_v7, %v2559_v7  ;;  %v2037_v19 = vadd.f32 %v4713_v25, %v2036_v10  ;;  %v2038_v13 = vpop.f32.mrb[185].mxu1 }
 0x28b   : > { %v2039_v20 = vpop.f32.mrb[186].mxu1 }
 0x28c   : > { %3040 = vst.msk [vmem:[%s4400_s22 + $0x16c] sm:$0xf] %vm2948_vm1, %v3565_v18  ;;  %v2454_v21 = vadd.f32 %v2453_v45, %v2037_v19  ;;  %v2040_v22 = vadd.f32 %v4713_v25, %v2039_v20  ;;  %v2041_v24 = vpop.f32.mrb[187].mxu1 }
 0x28e   : > { %v2560_v26 = vmax.f32 %v2454_v21, 0.0  ;;  %v2457_v27 = vadd.f32 %v2456_v49, %v2040_v22 }
 0x290   : > { %v3566_v29 = vpack.c.bf16 %v2560_v26, %v2560_v26  ;;  %v2561_v15 = vmax.f32 %v2457_v27, 0.0 }
 0x291   : > { %v2044_v17 = vpop.f32.mrb[188].mxu1 }
 0x292   : > { %3041 = vst.msk [vmem:[%s4400_s22 + $0x170] sm:$0xf] %vm2948_vm1, %v3566_v29  ;;  %v3567_v32 = vpack.c.bf16 %v2561_v15, %v2561_v15  ;;  %v2045_v23 = vadd.f32 %v4713_v25, %v2044_v17  ;;  %v2046_v35 = vpop.f32.mrb[189].mxu1 }
 0x293   : > { %v2047_v30 = vpop.f32.mrb[190].mxu1 }
 0x294   : > { %3042 = vst.msk [vmem:[%s4400_s22 + $0x174] sm:$0xf] %vm2948_vm1, %v3567_v32  ;;  %v2462_v28 = vadd.f32 %v2461_v54, %v2045_v23  ;;  %v2048_v38 = vadd.f32 %v4713_v25, %v2047_v30  ;;  %v2049_v33 = vpop.f32.mrb[191].mxu1 }
 0x296   : > { %v2562_v31 = vmax.f32 %v2462_v28, 0.0  ;;  %v2465_v40 = vadd.f32 %v2464_v57, %v2048_v38 }
 0x298   : > { %v3568_v36 = vpack.c.bf16 %v2562_v31, %v2562_v31  ;;  %v2563_v34 = vmax.f32 %v2465_v40, 0.0 }
 0x29a   : > { %3043 = vst.msk [vmem:[%s4400_s22 + $0x178] sm:$0xf] %vm2948_vm1, %v3568_v36  ;;  %v3569_v42 = vpack.c.bf16 %v2563_v34, %v2563_v34 }
 0x29c   : > { %3044 = vst.msk [vmem:[%s4400_s22 + $0x17c] sm:$0xf] %vm2948_vm1, %v3569_v42 }
 0x29d PF: > { %s13_s12 = sadd.s32 1, %s4091_s12  }
 0x29e   : > { %p10_p4 = scmp.ge.s32.totalorder %s13_s12, 4  }
 0x2a0   :  { %12 = sbr.rel (!%p10_p4) target bundleno = 1 (0x1), region = 62 }

// kernel: _lambda_.7
= control target key start
LH: loop header
LB: loop body
LE: loop exit
PB: predicated region body
PF: predicated region fallthrough
CT: control target
= control target key end

     0   :  { %s2588_s12 = smov 0   ;;  %s3010_s0 = inlined_call_operand.vmem [shape: bf16[384,800], index: 0, kind: input, shape index: {}]   ;;  %s3011_s1 = inlined_call_operand.vmem [shape: bf16[800,64], index: 1, kind: input, shape index: {}]   ;;  %s3012_s2 = inlined_call_operand.vmem [shape: f32[1,64], index: 2, kind: input, shape index: {}]   ;;  %s3013_s3 = inlined_call_operand.vmem [shape: bf16[384,64], index: 3, kind: output, shape index: {}]  }
   0x1 LB: > { %s1855_s13 = sadd.s32 4294967295, %s2566_s12   ;;  %p1859_p0 = scmp.ge.s32.totalorder %s2566_s12, 1  ;;  %s2566_s12 = sphi %s2588_s12, %s13_s12  }
   0x2   : > { %p139_p1 = scmp.lt.s32.totalorder %s2566_s12, 3 }
   0x4   : > { %p140_p2 = pnand %p1859_p0, %p139_p1 }
   0x5   : > { %v2390_v0 = vld [vmem:[%s3011_s1 + $0x40] sm:$0xff] (!%p140_p2)   ;;  %v2394_v4 = vld [vmem:[%s3011_s1 + $0x48] sm:$0xff] (!%p140_p2)   ;;  %v2398_v8 = vld [vmem:[%s3011_s1 + $0x50] sm:$0xff] (!%p140_p2)   ;;  %s164_s17 = smul.u32 (!%p140_p2), 24, %s1855_s13  ;;  %vm1101_vm0 = vcmask (!%p140_p2), 261120   ;;  %vm1774_vm1 = vcmask (!%p140_p2), 519168  }
   0x6   : > { %143 = sbr.rel (%p140_p2) target bundleno = 425 (0x1a9), region = 32  ;;  %v2391_v1 = vld [vmem:[%s3011_s1 + $0xc0] sm:$0xff] (!%p140_p2)   ;;  %2059 = vmatprep.subr.bf16.mxu0 (!%p140_p2), %v2390_v0  ;;  %v2395_v5 = vld [vmem:[%s3011_s1 + $0xc8] sm:$0xff] (!%p140_p2)   ;;  %v2399_v9 = vld [vmem:[%s3011_s1 + $0xd0] sm:$0xff] (!%p140_p2)  }
   0x7   : > { %v2392_v2 = vld [vmem:[%s3011_s1] sm:$0xff] (!%p140_p2)   ;;  %2147 = vmatprep.subr.bf16.mxu1 (!%p140_p2), %v2391_v1  ;;  %v2396_v6 = vld [vmem:[%s3011_s1 + $0x8] sm:$0xff] (!%p140_p2)   ;;  %v2400_v10 = vld [vmem:[%s3011_s1 + $0x10] sm:$0xff] (!%p140_p2)   ;;  %p165_p3 = scmp.lt.s32.totalorder (!%p140_p2), %s164_s17, 47 }
   0x8   : > { %v2393_v3 = vld [vmem:[%s3011_s1 + $0x80] sm:$0xff] (!%p140_p2)   ;;  %2060 = vmatpush3.bf16.msra.mxu0 (!%p140_p2), %v2392_v2  ;;  %v2397_v7 = vld [vmem:[%s3011_s1 + $0x88] sm:$0xff] (!%p140_p2)   ;;  %v2401_v11 = vld [vmem:[%s3011_s1 + $0x90] sm:$0xff] (!%p140_p2)  }
   0x9   : > { %2148 = vmatpush3.bf16.msra.mxu1 (!%p140_p2), %v2393_v3  ;;  %2061 = vmatprep.subr.bf16.mxu0 (!%p140_p2), %v2394_v4  ;;  %v2402_v12 = vld [vmem:[%s3011_s1 + $0x58] sm:$0xff] (!%p140_p2)   ;;  %v2406_v16 = vld [vmem:[%s3011_s1 + $0x60] sm:$0xff] (!%p140_p2)   ;;  %v2410_v20 = vld [vmem:[%s3011_s1 + $0x68] sm:$0xff] (!%p140_p2)  }
   0xa   : > { %2149 = vmatprep.subr.bf16.mxu1 (!%p140_p2), %v2395_v5  ;;  %v2403_v13 = vld [vmem:[%s3011_s1 + $0xd8] sm:$0xff] (!%p140_p2)   ;;  %v2407_v17 = vld [vmem:[%s3011_s1 + $0xe0] sm:$0xff] (!%p140_p2)   ;;  %v2411_v21 = vld [vmem:[%s3011_s1 + $0xe8] sm:$0xff] (!%p140_p2)  }
   0xb   : > { %v2404_v14 = vld [vmem:[%s3011_s1 + $0x18] sm:$0xff] (!%p140_p2)   ;;  %v2408_v18 = vld [vmem:[%s3011_s1 + $0x20] sm:$0xff] (!%p140_p2)   ;;  %v2412_v22 = vld [vmem:[%s3011_s1 + $0x28] sm:$0xff] (!%p140_p2)  }
   0xc   : > { %2062 = vmatpush3.bf16.msra.mxu0 (!%p140_p2), %v2396_v6  ;;  %v2405_v15 = vld [vmem:[%s3011_s1 + $0x98] sm:$0xff] (!%p140_p2)   ;;  %v2409_v19 = vld [vmem:[%s3011_s1 + $0xa0] sm:$0xff] (!%p140_p2)   ;;  %v2413_v23 = vld [vmem:[%s3011_s1 + $0xa8] sm:$0xff] (!%p140_p2)  }
   0xd   : > { %2150 = vmatpush3.bf16.msra.mxu1 %v2397_v7  ;;  %2063 = vmatprep.subr.bf16.mxu0 %v2398_v8  ;;  %s3015_s17 = smov (!%p165_p3, %s164_s17), 47  ;;  %v2414_v24 = vld [vmem:[%s3011_s1 + $0x70] sm:$0xff]   ;;  %v2418_v28 = vld [vmem:[%s3011_s1 + $0x78] sm:$0xff]   ;;  %v2428_v36 = vld [vmem:[%s3011_s1 + $0x140] sm:$0xff]  }
   0xe   : > { %2151 = vmatprep.subr.bf16.mxu1 %v2399_v9  ;;  %v2415_v25 = vld [vmem:[%s3011_s1 + $0xf0] sm:$0xff]   ;;  %s2381_s16 = smul.u32 28, %s3015_s17  ;;  %v2419_v29 = vld [vmem:[%s3011_s1 + $0xf8] sm:$0xff]   ;;  %v2429_v37 = vld [vmem:[%s3011_s1 + $0x100] sm:$0xff]  }
   0xf   : > { %v2416_v26 = vld [vmem:[%s3011_s1 + $0x30] sm:$0xff]   ;;  %v2420_v30 = vld [vmem:[%s3011_s1 + $0x38] sm:$0xff]   ;;  %v2436_v42 = vld [vmem:[%s3011_s1 + $0x148] sm:$0xff]  }
  0x10   : > { %2064 = vmatpush3.bf16.msra.mxu0 %v2400_v10  ;;  %v2417_v27 = vld [vmem:[%s3011_s1 + $0xb0] sm:$0xff]   ;;  %s2694_s27 = scalar_lea.vmem %s3010_s0, %s2381_s16  ;;  %v2421_v31 = vld [vmem:[%s3011_s1 + $0xb8] sm:$0xff]   ;;  %v2437_v43 = vld [vmem:[%s3011_s1 + $0x108] sm:$0xff]  }
  0x11   : > { %2152 = vmatpush3.bf16.msra.mxu1 %v2401_v11  ;;  %2065 = vmatprep.subr.bf16.mxu0 %v2402_v12  ;;  %v2422_v32 = vld [vmem:[%s2694_s27] ss:$28 sps:$4 sm:$0xff]   ;;  %v2425_v34 = vld [vmem:[%s2694_s27 + $0x8] ss:$28 sps:$4 sm:$0xff]   ;;  %v2434_v40 = vld [vmem:[%s2694_s27 + $0x38] ss:$28 sps:$4 sm:$0xff]  }
  0x12   : > { %2153 = vmatprep.subr.bf16.mxu1 %v2403_v13  ;;  %v2424_v33 = vld [vmem:[%s2694_s27 + $0x4] ss:$28 sps:$4 sm:$0xff]   ;;  %v2427_v35 = vld [vmem:[%s2694_s27 + $0xc] ss:$28 sps:$4 sm:$0xff]   ;;  %v2430_v38 = vld [vmem:[%s2694_s27 + $0x3c] ss:$28 sps:$4 sm:$0xff]  }
  0x13   : > { %1170 = vmatprep.mubr.bf16.mxu0 %v2424_v33  ;;  %1299 = vmatprep.mubr.bf16.mxu1 %v2427_v35  ;;  %v2432_v39 = vld [vmem:[%s2694_s27 + $0x44] ss:$28 sps:$4 sm:$0xff]   ;;  %v2438_v44 = vld [vmem:[%s2694_s27 + $0x74] ss:$28 sps:$4 sm:$0xff]   ;;  %v2440_v45 = vld [vmem:[%s2694_s27 + $0x7c] ss:$28 sps:$4 sm:$0xff]  }
  0x14   : > { %2066 = vmatpush3.bf16.msra.mxu0 %v2404_v14  ;;  %v2435_v41 = vld [vmem:[%s2694_s27 + $0x40] ss:$28 sps:$4 sm:$0xff]   ;;  %v2442_v46 = vld [vmem:[%s2694_s27 + $0x70] ss:$28 sps:$4 sm:$0xff]   ;;  %v2443_v47 = vld [vmem:[%s2694_s27 + $0x78] ss:$28 sps:$4 sm:$0xff]  }
  0x15   : > { %2154 = vmatpush3.bf16.msra.mxu1 %v2405_v15  ;;  %2067 = vmatprep.subr.bf16.mxu0 %v2406_v16  ;;  %v2450_v48 = vld [vmem:[%s3011_s1 + $0x150] sm:$0xff]   ;;  %v2444_v50 = vld [vmem:[%s2694_s27 + $0xac] ss:$28 sps:$4 sm:$0xff]   ;;  %v2458_v52 = vld [vmem:[%s3011_s1 + $0x158] sm:$0xff]  }
  0x16   : > { %2155 = vmatprep.subr.bf16.mxu1 %v2407_v17  ;;  %v2451_v49 = vld [vmem:[%s3011_s1 + $0x110] sm:$0xff]   ;;  %v2459_v53 = vld [vmem:[%s3011_s1 + $0x118] sm:$0xff]   ;;  %v2448_v54 = vld [vmem:[%s2694_s27 + $0xa8] ss:$28 sps:$4 sm:$0xff]  }
  0x17   : > { %v2446_v51 = vld [vmem:[%s2694_s27 + $0xb4] ss:$28 sps:$4 sm:$0xff]   ;;  %v2452_v56 = vld [vmem:[%s2694_s27 + $0xe4] ss:$28 sps:$4 sm:$0xff]   ;;  %v2454_v57 = vld [vmem:[%s2694_s27 + $0xec] ss:$28 sps:$4 sm:$0xff]  }
  0x18   : > { %2068 = vmatpush3.bf16.msra.mxu0 %v2408_v18  ;;  %v2449_v55 = vld [vmem:[%s2694_s27 + $0xb0] ss:$28 sps:$4 sm:$0xff]   ;;  %v2472_v58 = vld [vmem:[%s3011_s1 + $0x160] sm:$0xff]   ;;  %v2460_v62 = vld [vmem:[%s2694_s27 + $0x11c] ss:$28 sps:$4 sm:$0xff]  }
  0x19   : > { %2156 = vmatpush3.bf16.msra.mxu1 %v2409_v19  ;;  %2069 = vmatprep.subr.bf16.mxu0 %v2410_v20  ;;  %v2473_v59 = vld [vmem:[%s3011_s1 + $0x120] sm:$0xff]   ;;  %v2480_v63 = vld [vmem:[%s3011_s1 + $0x168] sm:$0xff]   ;;  %v2464_v2 = vld [vmem:[%s2694_s27 + $0x118] ss:$28 sps:$4 sm:$0xff]  }
  0x1a   : > { %2157 = vmatprep.subr.bf16.mxu1 %v2411_v21  ;;  %v2456_v60 = vld [vmem:[%s2694_s27 + $0xe0] ss:$28 sps:$4 sm:$0xff]   ;;  %v2457_v61 = vld [vmem:[%s2694_s27 + $0xe8] ss:$28 sps:$4 sm:$0xff]   ;;  %v2494_v4 = vld [vmem:[%s3011_s1 + $0x170] sm:$0xff]  }
  0x1b   : > { %v2481_v0 = vld [vmem:[%s3011_s1 + $0x128] sm:$0xff]   ;;  %v2462_v1 = vld [vmem:[%s2694_s27 + $0x124] ss:$28 sps:$4 sm:$0xff]   ;;  %v2495_v5 = vld [vmem:[%s3011_s1 + $0x130] sm:$0xff]  }
  0x1c   : > { %2070 = vmatpush3.bf16.msra.mxu0 %v2412_v22  ;;  %v2465_v3 = vld [vmem:[%s2694_s27 + $0x120] ss:$28 sps:$4 sm:$0xff]   ;;  %v2466_v6 = vld [vmem:[%s2694_s27 + $0x154] ss:$28 sps:$4 sm:$0xff]   ;;  %v2474_v12 = vld [vmem:[%s2694_s27 + $0x18c] ss:$28 sps:$4 sm:$0xff]  }
  0x1d   : > { %2158 = vmatpush3.bf16.msra.mxu1 %v2413_v23  ;;  %2071 = vmatprep.subr.bf16.mxu0 %v2414_v24  ;;  %v2468_v7 = vld [vmem:[%s2694_s27 + $0x15c] ss:$28 sps:$4 sm:$0xff]   ;;  %v2470_v10 = vld [vmem:[%s2694_s27 + $0x150] ss:$28 sps:$4 sm:$0xff]   ;;  %v2516_v14 = vld [vmem:[%s3011_s1 + $0x180] sm:$0xff]  }
  0x1e   : > { %2159 = vmatprep.subr.bf16.mxu1 %v2415_v25  ;;  %v2502_v8 = vld [vmem:[%s3011_s1 + $0x178] sm:$0xff]   ;;  %v2476_v13 = vld [vmem:[%s2694_s27 + $0x194] ss:$28 sps:$4 sm:$0xff]   ;;  %v2478_v15 = vld [vmem:[%s2694_s27 + $0x188] ss:$28 sps:$4 sm:$0xff]  }
  0x1f   : > { %v2503_v9 = vld [vmem:[%s3011_s1 + $0x138] sm:$0xff]   ;;  %v2479_v16 = vld [vmem:[%s2694_s27 + $0x190] ss:$28 sps:$4 sm:$0xff]   ;;  %v2482_v17 = vld [vmem:[%s2694_s27 + $0x1c4] ss:$28 sps:$4 sm:$0xff]  }
  0x20   : > { %2072 = vmatpush3.bf16.msra.mxu0 %v2416_v26  ;;  %v2471_v11 = vld [vmem:[%s2694_s27 + $0x158] ss:$28 sps:$4 sm:$0xff]   ;;  %v2484_v18 = vld [vmem:[%s2694_s27 + $0x1cc] ss:$28 sps:$4 sm:$0xff]   ;;  %v2486_v19 = vld [vmem:[%s2694_s27 + $0x1c0] ss:$28 sps:$4 sm:$0xff]  }
  0x21   : > { %2160 = vmatpush3.bf16.msra.mxu1 %v2417_v27  ;;  %2073 = vmatprep.subr.bf16.mxu0 %v2418_v28  ;;  %v2487_v20 = vld [vmem:[%s2694_s27 + $0x1c8] ss:$28 sps:$4 sm:$0xff]   ;;  %v2488_v21 = vld [vmem:[%s2694_s27 + $0x1fc] ss:$28 sps:$4 sm:$0xff]   ;;  %v2496_v25 = vld [vmem:[%s2694_s27 + $0x234] ss:$28 sps:$4 sm:$0xff]  }
  0x22   : > { %2161 = vmatprep.subr.bf16.mxu1 %v2419_v29  ;;  %v2490_v22 = vld [vmem:[%s2694_s27 + $0x204] ss:$28 sps:$4 sm:$0xff]   ;;  %v2492_v23 = vld [vmem:[%s2694_s27 + $0x1f8] ss:$28 sps:$4 sm:$0xff]   ;;  %v2500_v27 = vld [vmem:[%s2694_s27 + $0x230] ss:$28 sps:$4 sm:$0xff]  }
  0x23   : > { %v2493_v24 = vld [vmem:[%s2694_s27 + $0x200] ss:$28 sps:$4 sm:$0xff]   ;;  %v2501_v28 = vld [vmem:[%s2694_s27 + $0x238] ss:$28 sps:$4 sm:$0xff]   ;;  %v2504_v29 = vld [vmem:[%s2694_s27 + $0x26c] ss:$28 sps:$4 sm:$0xff]  }
  0x24   : > { %2074 = vmatpush3.bf16.msra.mxu0 %v2420_v30  ;;  %v2498_v26 = vld [vmem:[%s2694_s27 + $0x23c] ss:$28 sps:$4 sm:$0xff]   ;;  %v2506_v30 = vld [vmem:[%s2694_s27 + $0x274] ss:$28 sps:$4 sm:$0xff]  }
  0x25   : > { %2162 = vmatpush3.bf16.msra.mxu1 %v2421_v31  ;;  %2235 = vmatprep.subr.bf16.mxu0 %v2428_v36  ;;  %v2508_v31 = vld [vmem:[%s2694_s27 + $0x268] ss:$28 sps:$4 sm:$0xff]   ;;  %v2512_v33 = vld [vmem:[%s2694_s27 + $0x14] ss:$28 sps:$4 sm:$0xff]  }
  0x26   : > { %2365 = vmatprep.subr.bf16.mxu1 %v2428_v36  ;;  %v2510_v35 = vld [vmem:[%s2694_s27 + $0x10] ss:$28 sps:$4 sm:$0xff]   ;;  %v2513_v36 = vld [vmem:[%s2694_s27 + $0x208] ss:$28 sps:$4 sm:$0xff]  }
  0x27   : > { %1171 = vmatmul.mubr.bf16.vlgmr.msra.gmra.mrb[0].mxu0 %v2422_v32  ;;  %v2509_v32 = vld [vmem:[%s2694_s27 + $0x270] ss:$28 sps:$4 sm:$0xff]  }
  0x28   : > { %1300 = vmatmul.mubr.bf16.vlgmr.msra.gmra.mrb[0].mxu1 %v2425_v34  ;;  %2236 = vmatpush3.bf16.msra.mxu0 %v2429_v37  ;;  %v2515_v34 = vld [vmem:[%s2694_s27 + $0x20c] ss:$28 sps:$4 sm:$0xff]  }
  0x29   : > { %2373 = vmatpush3.bf16.msra.mxu1 %v2429_v37  ;;  %1178 = vmatprep.mubr.bf16.mxu0 %v2430_v38  ;;  %v2517_v37 = vld [vmem:[%s2694_s27 + $0x4c] ss:$28 sps:$4 sm:$0xff]   ;;  %v2519_v38 = vld [vmem:[%s2694_s27 + $0x244] ss:$28 sps:$4 sm:$0xff]  }
  0x2a   : > { %1307 = vmatprep.mubr.bf16.mxu1 %v2432_v39  ;;  %2237 = vmatprep.subr.bf16.mxu0 %v2436_v42  ;;  %v2529_v39 = vld [vmem:[%s3011_s1 + $0x188] sm:$0xff]  }
  0x2b   : > { %2366 = vmatprep.subr.bf16.mxu1 %v2436_v42  ;;  %v2523_v42 = vld [vmem:[%s2694_s27 + $0x84] ss:$28 sps:$4 sm:$0xff]  }
  0x2c   : > { %2238 = vmatpush3.bf16.msra.mxu0 %v2437_v43 }
  0x2d   : > { %2374 = vmatpush3.bf16.msra.mxu1 %v2437_v43  ;;  %2239 = vmatprep.subr.bf16.mxu0 %v2450_v48  ;;  %v2525_v43 = vld [vmem:[%s2694_s27 + $0x27c] ss:$28 sps:$4 sm:$0xff]  }
  0x2e   : > { %2367 = vmatprep.subr.bf16.mxu1 %v2450_v48  ;;  %v2533_v48 = vld [vmem:[%s2694_s27 + $0xb8] ss:$28 sps:$4 sm:$0xff]  }
  0x2f   : > { %1179 = vmatmul.mubr.bf16.gmra.mrb[4].mxu0 %v2434_v40  ;;  %v2521_v40 = vld [vmem:[%s2694_s27 + $0x48] ss:$28 sps:$4 sm:$0xff]  }
  0x30   : > { %1308 = vmatmul.mubr.bf16.gmra.mrb[4].mxu1 %v2435_v41  ;;  %1186 = vmatprep.mubr.bf16.mxu0 %v2438_v44  ;;  %v2522_v41 = vld [vmem:[%s2694_s27 + $0x240] ss:$28 sps:$4 sm:$0xff]  }
  0x31   : > { %1315 = vmatprep.mubr.bf16.mxu1 %v2440_v45  ;;  %2240 = vmatpush3.bf16.msra.mxu0 %v2451_v49  ;;  %v2527_v44 = vld [vmem:[%s2694_s27 + $0x80] ss:$28 sps:$4 sm:$0xff]   ;;  %v2528_v45 = vld [vmem:[%s2694_s27 + $0x278] ss:$28 sps:$4 sm:$0xff]  }
  0x32   : > { %2375 = vmatpush3.bf16.msra.mxu1 %v2451_v49  ;;  %2241 = vmatprep.subr.bf16.mxu0 %v2458_v52  ;;  %v2534_v49 = vld [vmem:[%s2694_s27 + $0x50] ss:$28 sps:$4 sm:$0xff]  }
  0x33   : > { %2368 = vmatprep.subr.bf16.mxu1 %v2458_v52  ;;  %v2538_v52 = vld [vmem:[%s2694_s27 + $0xf0] ss:$28 sps:$4 sm:$0xff]  }
  0x35   : > { %2242 = vmatpush3.bf16.msra.mxu0 %v2459_v53 }
  0x36   : > { %2376 = vmatpush3.bf16.msra.mxu1 %v2459_v53  ;;  %2243 = vmatprep.subr.bf16.mxu0 %v2472_v58  ;;  %v2539_v53 = vld [vmem:[%s2694_s27 + $0xc0] ss:$28 sps:$4 sm:$0xff]  }
  0x37   : > { %1187 = vmatmul.mubr.bf16.gmra.mrb[8].mxu0 %v2442_v46  ;;  %2369 = vmatprep.subr.bf16.mxu1 %v2472_v58  ;;  %v2530_v46 = vld [vmem:[%s2694_s27 + $0xbc] ss:$28 sps:$4 sm:$0xff]   ;;  %v2545_v58 = vld [vmem:[%s2694_s27 + $0x164] ss:$28 sps:$4 sm:$0xff]  }
  0x38   : > { %1316 = vmatmul.mubr.bf16.gmra.mrb[8].mxu1 %v2443_v47  ;;  %1194 = vmatprep.mubr.bf16.mxu0 %v2444_v50  ;;  %v2532_v47 = vld [vmem:[%s2694_s27 + $0x18] ss:$28 sps:$4 sm:$0xff]  }
  0x39   : > { %1323 = vmatprep.mubr.bf16.mxu1 %v2446_v51  ;;  %2244 = vmatpush3.bf16.msra.mxu0 %v2473_v59  ;;  %v2535_v50 = vld [vmem:[%s2694_s27 + $0xf4] ss:$28 sps:$4 sm:$0xff]   ;;  %v2537_v51 = vld [vmem:[%s2694_s27 + $0x88] ss:$28 sps:$4 sm:$0xff]  }
  0x3a   : > { %2377 = vmatpush3.bf16.msra.mxu1 %v2473_v59  ;;  %2245 = vmatprep.subr.bf16.mxu0 %v2480_v63  ;;  %v2547_v59 = vld [vmem:[%s2694_s27 + $0x168] ss:$28 sps:$4 sm:$0xff]  }
  0x3b   : > { %2370 = vmatprep.subr.bf16.mxu1 %v2480_v63  ;;  %v2552_v63 = vld [vmem:[%s2694_s27 + $0x1d8] ss:$28 sps:$4 sm:$0xff]  }
  0x3d   : > { %2246 = vmatpush3.bf16.msra.mxu0 %v2481_v0 }
  0x3e   : > { %2378 = vmatpush3.bf16.msra.mxu1 %v2481_v0  ;;  %2247 = vmatprep.subr.bf16.mxu0 %v2494_v4  ;;  %v2553_v0 = vld [vmem:[%s2694_s27 + $0x198] ss:$28 sps:$4 sm:$0xff]  }
  0x3f   : > { %1195 = vmatmul.mubr.bf16.gmra.mrb[12].mxu0 %v2448_v54  ;;  %2371 = vmatprep.subr.bf16.mxu1 %v2494_v4  ;;  %v2540_v54 = vld [vmem:[%s2694_s27 + $0x12c] ss:$28 sps:$4 sm:$0xff]  }
  0x40   : > { %1324 = vmatmul.mubr.bf16.gmra.mrb[12].mxu1 %v2449_v55  ;;  %1202 = vmatprep.mubr.bf16.mxu0 %v2452_v56  ;;  %v2542_v55 = vld [vmem:[%s2694_s27 + $0xf8] ss:$28 sps:$4 sm:$0xff]   ;;  %v2543_v56 = vld [vmem:[%s2694_s27 + $0x128] ss:$28 sps:$4 sm:$0xff]   ;;  %v2558_v4 = vld [vmem:[%s2694_s27 + $0x1d0] ss:$28 sps:$4 sm:$0xff]  }
  0x41   : > { %1331 = vmatprep.mubr.bf16.mxu1 %v2454_v57  ;;  %2248 = vmatpush3.bf16.msra.mxu0 %v2495_v5  ;;  %v2544_v57 = vld [vmem:[%s2694_s27 + $0x130] ss:$28 sps:$4 sm:$0xff]  }
  0x42   : > { %2379 = vmatpush3.bf16.msra.mxu1 %v2495_v5  ;;  %2249 = vmatprep.subr.bf16.mxu0 %v2502_v8  ;;  %v2559_v5 = vld [vmem:[%s2694_s27 + $0x280] ss:$28 sps:$4 sm:$0xff]  }
  0x43   : > { %2372 = vmatprep.subr.bf16.mxu1 %v2502_v8 }
  0x45   : > { %2250 = vmatpush3.bf16.msra.mxu0 %v2503_v9 }
  0x46   : > { %2380 = vmatpush3.bf16.msra.mxu1 %v2503_v9 }
  0x47   : > { %1203 = vmatmul.mubr.bf16.gmra.mrb[16].mxu0 %v2456_v60  ;;  %2337 = vmatprep.subr.bf16.mxu1 %v2516_v14  ;;  %v2548_v60 = vld [vmem:[%s2694_s27 + $0x160] ss:$28 sps:$4 sm:$0xff]  }
  0x48   : > { %1332 = vmatmul.mubr.bf16.gmra.mrb[16].mxu1 %v2457_v61  ;;  %1210 = vmatprep.mubr.bf16.mxu0 %v2460_v62  ;;  %v2549_v61 = vld [vmem:[%s2694_s27 + $0x1a0] ss:$28 sps:$4 sm:$0xff]  }
  0x49   : > { %1339 = vmatprep.mubr.bf16.mxu1 %v2462_v1  ;;  %v2550_v62 = vld [vmem:[%s2694_s27 + $0x19c] ss:$28 sps:$4 sm:$0xff]   ;;  %v2554_v1 = vld [vmem:[%s2694_s27 + $0x210] ss:$28 sps:$4 sm:$0xff]  }
  0x4f   : > { %1211 = vmatmul.mubr.bf16.gmra.mrb[20].mxu0 %v2464_v2  ;;  %v2555_v2 = vld [vmem:[%s2694_s27 + $0x1d4] ss:$28 sps:$4 sm:$0xff]  }
  0x50   : > { %1340 = vmatmul.mubr.bf16.gmra.mrb[20].mxu1 %v2465_v3  ;;  %1218 = vmatprep.mubr.bf16.mxu0 %v2466_v6  ;;  %v2557_v3 = vld [vmem:[%s2694_s27 + $0x248] ss:$28 sps:$4 sm:$0xff]   ;;  %s1861_s27 = sshll.u32 %s3015_s17, 2 }
  0x51   : > { %1347 = vmatprep.mubr.bf16.mxu1 %v2468_v7  ;;  %v2855_v7 = vld [vmem:[%s3012_s2] ss:$0 sm:$0xff]  ;;  %s2940_s24 = scalar_lea.vmem %s3013_s3, %s1861_s27 }
  0x57   : > { %1219 = vmatmul.mubr.bf16.gmra.mrb[24].mxu0 %v2470_v10 }
  0x58   : > { %1348 = vmatmul.mubr.bf16.gmra.mrb[24].mxu1 %v2471_v11  ;;  %1226 = vmatprep.mubr.bf16.mxu0 %v2474_v12 }
  0x59   : > { %1355 = vmatprep.mubr.bf16.mxu1 %v2476_v13 }
  0x5f   : > { %1227 = vmatmul.mubr.bf16.gmra.mrb[28].mxu0 %v2478_v15 }
  0x60   : > { %1356 = vmatmul.mubr.bf16.gmra.mrb[28].mxu1 %v2479_v16  ;;  %1234 = vmatprep.mubr.bf16.mxu0 %v2482_v17 }
  0x61   : > { %1363 = vmatprep.mubr.bf16.mxu1 %v2484_v18 }
  0x67   : > { %1235 = vmatmul.mubr.bf16.gmra.mrb[32].mxu0 %v2486_v19 }
  0x68   : > { %1364 = vmatmul.mubr.bf16.gmra.mrb[32].mxu1 %v2487_v20  ;;  %1242 = vmatprep.mubr.bf16.mxu0 %v2488_v21 }
  0x69   : > { %1371 = vmatprep.mubr.bf16.mxu1 %v2490_v22 }
  0x6f   : > { %1243 = vmatmul.mubr.bf16.gmra.mrb[36].mxu0 %v2492_v23 }
  0x70   : > { %1372 = vmatmul.mubr.bf16.gmra.mrb[36].mxu1 %v2493_v24  ;;  %1250 = vmatprep.mubr.bf16.mxu0 %v2496_v25 }
  0x71   : > { %1379 = vmatprep.mubr.bf16.mxu1 %v2498_v26 }
  0x77   : > { %1251 = vmatmul.mubr.bf16.gmra.mrb[40].mxu0 %v2500_v27 }
  0x78   : > { %1380 = vmatmul.mubr.bf16.gmra.mrb[40].mxu1 %v2501_v28  ;;  %1258 = vmatprep.mubr.bf16.mxu0 %v2504_v29 }
  0x79   : > { %1387 = vmatprep.mubr.bf16.mxu1 %v2506_v30 }
  0x7f   : > { %1259 = vmatmul.mubr.bf16.gmra.mrb[44].mxu0 %v2508_v31 }
  0x80   : > { %1388 = vmatmul.mubr.bf16.gmra.mrb[44].mxu1 %v2509_v32  ;;  %1428 = vmatprep.mubr.bf16.mxu0 %v2512_v33 }
  0x81   : > { %1500 = vmatprep.mubr.bf16.mxu1 %v2515_v34 }
  0x87   : > { %1429 = vmatmul.mubr.bf16.vlgmr.msra.gmra.mrb[48].mxu0 %v2510_v35 }
  0x88   : > { %1501 = vmatmul.mubr.bf16.vlgmr.msra.gmra.mrb[48].mxu1 %v2513_v36  ;;  %1436 = vmatprep.mubr.bf16.mxu0 %v2517_v37 }
  0x89   : > { %2338 = vmatpush3.bf16.msra.mxu1 %v2516_v14  ;;  %1508 = vmatprep.mubr.bf16.mxu1 %v2519_v38 }
  0x8a   : > { %2339 = vmatprep.subr.bf16.mxu1 %v2529_v39 }
  0x8d   : > { %2340 = vmatpush3.bf16.msra.mxu1 %v2529_v39 }
  0x8f   : > { %1437 = vmatmul.mubr.bf16.gmra.mrb[52].mxu0 %v2521_v40 }
  0x90   : > { %1509 = vmatmul.mubr.bf16.gmra.mrb[52].mxu1 %v2522_v41  ;;  %1444 = vmatprep.mubr.bf16.mxu0 %v2523_v42 }
  0x91   : > { %1516 = vmatprep.mubr.bf16.mxu1 %v2525_v43 }
  0x97   : > { %1445 = vmatmul.mubr.bf16.gmra.mrb[56].mxu0 %v2527_v44 }
  0x98   : > { %1517 = vmatmul.mubr.bf16.gmra.mrb[56].mxu1 %v2528_v45  ;;  %1452 = vmatprep.mubr.bf16.mxu0 %v2530_v46 }
  0x99   : > { %2341 = vmatprep.mubr.msk.bf16.mxu1 %vm1101_vm0, %v2532_v47 }
  0x9f   : > { %1453 = vmatmul.mubr.bf16.gmra.mrb[60].mxu0 %v2533_v48 }
  0xa0   : > { %2342 = vmatmul.mubr.msk.bf16.vlgmr.msra.gmra.mrb[60].mxu1 %vm1101_vm0, %v2534_v49  ;;  %1460 = vmatprep.mubr.bf16.mxu0 %v2535_v50 }
  0xa1   : > { %2345 = vmatprep.mubr.msk.bf16.mxu1 %vm1101_vm0, %v2537_v51 }
  0xa7   : > { %1461 = vmatmul.mubr.bf16.gmra.mrb[64].mxu0 %v2538_v52 }
  0xa8   : > { %2346 = vmatmul.mubr.msk.bf16.gmra.mrb[64].mxu1 %vm1101_vm0, %v2539_v53  ;;  %1468 = vmatprep.mubr.bf16.mxu0 %v2540_v54 }
  0xa9   : > { %2349 = vmatprep.mubr.msk.bf16.mxu1 %vm1101_vm0, %v2542_v55 }
  0xaf   : > { %1469 = vmatmul.mubr.bf16.gmra.mrb[68].mxu0 %v2543_v56 }
  0xb0   : > { %2350 = vmatmul.mubr.msk.bf16.gmra.mrb[68].mxu1 %vm1101_vm0, %v2544_v57  ;;  %1476 = vmatprep.mubr.bf16.mxu0 %v2545_v58 }
  0xb1   : > { %2353 = vmatprep.mubr.msk.bf16.mxu1 %vm1101_vm0, %v2547_v59 }
  0xb7   : > { %1477 = vmatmul.mubr.bf16.gmra.mrb[72].mxu0 %v2548_v60 }
  0xb8   : > { %2354 = vmatmul.mubr.msk.bf16.gmra.mrb[72].mxu1 %vm1101_vm0, %v2549_v61  ;;  %1484 = vmatprep.mubr.bf16.mxu0 %v2550_v62 }
  0xb9   : > { %2357 = vmatprep.mubr.msk.bf16.mxu1 %vm1101_vm0, %v2552_v63 }
  0xbf   : > { %1485 = vmatmul.mubr.bf16.gmra.mrb[76].mxu0 %v2553_v0 }
  0xc0   : > { %2358 = vmatmul.mubr.msk.bf16.gmra.mrb[76].mxu1 %vm1101_vm0, %v2554_v1  ;;  %1492 = vmatprep.mubr.bf16.mxu0 %v2555_v2 }
  0xc1   : > { %2361 = vmatprep.mubr.msk.bf16.mxu1 %vm1101_vm0, %v2557_v3 }
  0xc7   : > { %1493 = vmatmul.mubr.bf16.gmra.mrb[80].mxu0 %v2558_v4 }
  0xc8   : > { %2362 = vmatmul.mubr.msk.bf16.gmra.mrb[80].mxu1 %vm1101_vm0, %v2559_v5 }
  0xfa   : > { %v2075_v6 = vpop.f32.mrb[0].mxu0 }
  0xfb   : > { %v2076_v8 = vpop.f32.mrb[1].mxu0  ;;  %v2163_v9 = vpop.f32.mrb[0].mxu1 }
  0xfc   : > { %v2077_v10 = vadd.f32 %v2076_v8, %v2075_v6  ;;  %v2078_v11 = vpop.f32.mrb[2].mxu0  ;;  %v2164_v12 = vpop.f32.mrb[1].mxu1 }
  0xfd   : > { %v2079_v13 = vpop.f32.mrb[3].mxu0  ;;  %v2165_v14 = vadd.f32 %v2164_v12, %v2163_v9  ;;  %v2166_v15 = vpop.f32.mrb[2].mxu1 }
  0xfe   : > { %v1173_v16 = vadd.f32 %v2077_v10, %v2855_v7  ;;  %v2080_v17 = vadd.f32 %v2079_v13, %v2078_v11  ;;  %v2167_v18 = vpop.f32.mrb[3].mxu1 }
  0xff   : > { %v2168_v19 = vadd.f32 %v2167_v18, %v2166_v15 }
 0x100   : > { %v1176_v20 = vadd.f32 %v2080_v17, %v2855_v7  ;;  %v2859_v21 = vadd.f32 %v2165_v14, %v1173_v16 }
 0x102   : > { %v2861_v22 = vadd.f32 %v2168_v19, %v1176_v20  ;;  %v2081_v23 = vpop.f32.mrb[4].mxu0 }
 0x103   : > { %v2082_v24 = vpop.f32.mrb[5].mxu0  ;;  %v2169_v25 = vpop.f32.mrb[4].mxu1 }
 0x104   : > { %v2083_v26 = vadd.f32 %v2082_v24, %v2081_v23  ;;  %v2084_v27 = vpop.f32.mrb[6].mxu0  ;;  %v2170_v28 = vpop.f32.mrb[5].mxu1 }
 0x105   : > { %v2085_v29 = vpop.f32.mrb[7].mxu0  ;;  %v2171_v30 = vadd.f32 %v2170_v28, %v2169_v25  ;;  %v2172_v31 = vpop.f32.mrb[6].mxu1 }
 0x106   : > { %v1181_v32 = vadd.f32 %v2083_v26, %v2855_v7  ;;  %v2086_v33 = vadd.f32 %v2085_v29, %v2084_v27  ;;  %v2173_v34 = vpop.f32.mrb[7].mxu1 }
 0x107   : > { %v2174_v35 = vadd.f32 %v2173_v34, %v2172_v31 }
 0x108   : > { %v1184_v36 = vadd.f32 %v2086_v33, %v2855_v7  ;;  %v2865_v37 = vadd.f32 %v2171_v30, %v1181_v32 }
 0x10a   : > { %v2867_v38 = vadd.f32 %v2174_v35, %v1184_v36  ;;  %v2087_v39 = vpop.f32.mrb[8].mxu0 }
 0x10b   : > { %v2088_v40 = vpop.f32.mrb[9].mxu0  ;;  %v2175_v41 = vpop.f32.mrb[8].mxu1 }
 0x10c   : > { %v2089_v42 = vadd.f32 %v2088_v40, %v2087_v39  ;;  %v2090_v43 = vpop.f32.mrb[10].mxu0  ;;  %v2176_v44 = vpop.f32.mrb[9].mxu1 }
 0x10d   : > { %v2091_v45 = vpop.f32.mrb[11].mxu0  ;;  %v2177_v46 = vadd.f32 %v2176_v44, %v2175_v41  ;;  %v2178_v47 = vpop.f32.mrb[10].mxu1 }
 0x10e   : > { %v1189_v48 = vadd.f32 %v2089_v42, %v2855_v7  ;;  %v2092_v49 = vadd.f32 %v2091_v45, %v2090_v43  ;;  %v2179_v50 = vpop.f32.mrb[11].mxu1 }
 0x10f   : > { %v2180_v51 = vadd.f32 %v2179_v50, %v2178_v47 }
 0x110   : > { %v1192_v52 = vadd.f32 %v2092_v49, %v2855_v7  ;;  %v2871_v53 = vadd.f32 %v2177_v46, %v1189_v48 }
 0x112   : > { %v2873_v54 = vadd.f32 %v2180_v51, %v1192_v52  ;;  %v2093_v55 = vpop.f32.mrb[12].mxu0 }
 0x113   : > { %v2094_v56 = vpop.f32.mrb[13].mxu0  ;;  %v2181_v57 = vpop.f32.mrb[12].mxu1 }
 0x114   : > { %v2095_v58 = vadd.f32 %v2094_v56, %v2093_v55  ;;  %v2096_v59 = vpop.f32.mrb[14].mxu0  ;;  %v2182_v60 = vpop.f32.mrb[13].mxu1 }
 0x115   : > { %v2097_v61 = vpop.f32.mrb[15].mxu0  ;;  %v2183_v62 = vadd.f32 %v2182_v60, %v2181_v57  ;;  %v2184_v63 = vpop.f32.mrb[14].mxu1 }
 0x116   : > { %v1197_v0 = vadd.f32 %v2095_v58, %v2855_v7  ;;  %v2098_v1 = vadd.f32 %v2097_v61, %v2096_v59  ;;  %v2185_v2 = vpop.f32.mrb[15].mxu1 }
 0x117   : > { %v2186_v3 = vadd.f32 %v2185_v2, %v2184_v63 }
 0x118   : > { %v1200_v4 = vadd.f32 %v2098_v1, %v2855_v7  ;;  %v2877_v5 = vadd.f32 %v2183_v62, %v1197_v0 }
 0x11a   : > { %v2879_v6 = vadd.f32 %v2186_v3, %v1200_v4  ;;  %v2099_v8 = vpop.f32.mrb[16].mxu0 }
 0x11b   : > { %v2100_v9 = vpop.f32.mrb[17].mxu0  ;;  %v2187_v10 = vpop.f32.mrb[16].mxu1 }
 0x11c   : > { %v2101_v11 = vadd.f32 %v2100_v9, %v2099_v8  ;;  %v2102_v12 = vpop.f32.mrb[18].mxu0  ;;  %v2188_v13 = vpop.f32.mrb[17].mxu1 }
 0x11d   : > { %v2103_v14 = vpop.f32.mrb[19].mxu0  ;;  %v2189_v15 = vadd.f32 %v2188_v13, %v2187_v10  ;;  %v2190_v16 = vpop.f32.mrb[18].mxu1 }
 0x11e   : > { %v1205_v17 = vadd.f32 %v2101_v11, %v2855_v7  ;;  %v2104_v18 = vadd.f32 %v2103_v14, %v2102_v12  ;;  %v2191_v19 = vpop.f32.mrb[19].mxu1 }
 0x11f   : > { %v2192_v20 = vadd.f32 %v2191_v19, %v2190_v16 }
 0x120   : > { %v1208_v23 = vadd.f32 %v2104_v18, %v2855_v7  ;;  %v2883_v24 = vadd.f32 %v2189_v15, %v1205_v17 }
 0x122   : > { %v2885_v25 = vadd.f32 %v2192_v20, %v1208_v23  ;;  %v2105_v26 = vpop.f32.mrb[20].mxu0 }
 0x123   : > { %v2106_v27 = vpop.f32.mrb[21].mxu0  ;;  %v2193_v28 = vpop.f32.mrb[20].mxu1 }
 0x124   : > { %v2107_v29 = vadd.f32 %v2106_v27, %v2105_v26  ;;  %v2108_v30 = vpop.f32.mrb[22].mxu0  ;;  %v2194_v31 = vpop.f32.mrb[21].mxu1 }
 0x125   : > { %v2109_v32 = vpop.f32.mrb[23].mxu0  ;;  %v2195_v33 = vadd.f32 %v2194_v31, %v2193_v28  ;;  %v2196_v34 = vpop.f32.mrb[22].mxu1 }
 0x126   : > { %v1213_v35 = vadd.f32 %v2107_v29, %v2855_v7  ;;  %v2110_v36 = vadd.f32 %v2109_v32, %v2108_v30  ;;  %v2197_v39 = vpop.f32.mrb[23].mxu1 }
 0x127   : > { %v2198_v40 = vadd.f32 %v2197_v39, %v2196_v34 }
 0x128   : > { %v1216_v41 = vadd.f32 %v2110_v36, %v2855_v7  ;;  %v2889_v42 = vadd.f32 %v2195_v33, %v1213_v35 }
 0x12a   : > { %v2891_v43 = vadd.f32 %v2198_v40, %v1216_v41  ;;  %v2111_v44 = vpop.f32.mrb[24].mxu0 }
 0x12b   : > { %v2112_v45 = vpop.f32.mrb[25].mxu0  ;;  %v2199_v46 = vpop.f32.mrb[24].mxu1 }
 0x12c   : > { %v2113_v47 = vadd.f32 %v2112_v45, %v2111_v44  ;;  %v2114_v48 = vpop.f32.mrb[26].mxu0  ;;  %v2200_v49 = vpop.f32.mrb[25].mxu1 }
 0x12d   : > { %v2115_v50 = vpop.f32.mrb[27].mxu0  ;;  %v2201_v51 = vadd.f32 %v2200_v49, %v2199_v46  ;;  %v2202_v52 = vpop.f32.mrb[26].mxu1 }
 0x12e   : > { %v1221_v55 = vadd.f32 %v2113_v47, %v2855_v7  ;;  %v2116_v56 = vadd.f32 %v2115_v50, %v2114_v48  ;;  %v2203_v57 = vpop.f32.mrb[27].mxu1 }
 0x12f   : > { %v2204_v58 = vadd.f32 %v2203_v57, %v2202_v52 }
 0x130   : > { %v1224_v59 = vadd.f32 %v2116_v56, %v2855_v7  ;;  %v2895_v60 = vadd.f32 %v2201_v51, %v1221_v55 }
 0x132   : > { %v2897_v61 = vadd.f32 %v2204_v58, %v1224_v59  ;;  %v2117_v62 = vpop.f32.mrb[28].mxu0 }
 0x133   : > { %v2118_v63 = vpop.f32.mrb[29].mxu0  ;;  %v2205_v0 = vpop.f32.mrb[28].mxu1 }
 0x134   : > { %v2119_v1 = vadd.f32 %v2118_v63, %v2117_v62  ;;  %v2120_v2 = vpop.f32.mrb[30].mxu0  ;;  %v2206_v3 = vpop.f32.mrb[29].mxu1 }
 0x135   : > { %v2121_v4 = vpop.f32.mrb[31].mxu0  ;;  %v2207_v8 = vadd.f32 %v2206_v3, %v2205_v0  ;;  %v2208_v9 = vpop.f32.mrb[30].mxu1 }
 0x136   : > { %v1229_v10 = vadd.f32 %v2119_v1, %v2855_v7  ;;  %v2122_v11 = vadd.f32 %v2121_v4, %v2120_v2  ;;  %v2209_v12 = vpop.f32.mrb[31].mxu1 }
 0x137   : > { %v2210_v13 = vadd.f32 %v2209_v12, %v2208_v9 }
 0x138   : > { %v1232_v14 = vadd.f32 %v2122_v11, %v2855_v7  ;;  %v2901_v15 = vadd.f32 %v2207_v8, %v1229_v10 }
 0x13a   : > { %v2903_v16 = vadd.f32 %v2210_v13, %v1232_v14  ;;  %v2123_v17 = vpop.f32.mrb[32].mxu0 }
 0x13b   : > { %v2124_v18 = vpop.f32.mrb[33].mxu0  ;;  %v2211_v19 = vpop.f32.mrb[32].mxu1 }
 0x13c   : > { %v2125_v20 = vadd.f32 %v2124_v18, %v2123_v17  ;;  %v2126_v23 = vpop.f32.mrb[34].mxu0  ;;  %v2212_v26 = vpop.f32.mrb[33].mxu1 }
 0x13d   : > { %v2127_v27 = vpop.f32.mrb[35].mxu0  ;;  %v2213_v28 = vadd.f32 %v2212_v26, %v2211_v19  ;;  %v2214_v29 = vpop.f32.mrb[34].mxu1 }
 0x13e   : > { %v1237_v30 = vadd.f32 %v2125_v20, %v2855_v7  ;;  %v2128_v31 = vadd.f32 %v2127_v27, %v2126_v23  ;;  %v2215_v32 = vpop.f32.mrb[35].mxu1 }
 0x13f   : > { %v2216_v33 = vadd.f32 %v2215_v32, %v2214_v29 }
 0x140   : > { %v1240_v34 = vadd.f32 %v2128_v31, %v2855_v7  ;;  %v2907_v35 = vadd.f32 %v2213_v28, %v1237_v30 }
 0x142   : > { %v2909_v36 = vadd.f32 %v2216_v33, %v1240_v34  ;;  %v2129_v39 = vpop.f32.mrb[36].mxu0 }
 0x143   : > { %v2130_v40 = vpop.f32.mrb[37].mxu0  ;;  %v2217_v41 = vpop.f32.mrb[36].mxu1 }
 0x144   : > { %v2131_v44 = vadd.f32 %v2130_v40, %v2129_v39  ;;  %v2132_v45 = vpop.f32.mrb[38].mxu0  ;;  %v2218_v46 = vpop.f32.mrb[37].mxu1 }
 0x145   : > { %v2133_v47 = vpop.f32.mrb[39].mxu0  ;;  %v2219_v48 = vadd.f32 %v2218_v46, %v2217_v41  ;;  %v2220_v49 = vpop.f32.mrb[38].mxu1 }
 0x146   : > { %v1245_v50 = vadd.f32 %v2131_v44, %v2855_v7  ;;  %v2134_v51 = vadd.f32 %v2133_v47, %v2132_v45  ;;  %v2221_v52 = vpop.f32.mrb[39].mxu1 }
 0x147   : > { %v2222_v55 = vadd.f32 %v2221_v52, %v2220_v49 }
 0x148   : > { %v1248_v56 = vadd.f32 %v2134_v51, %v2855_v7  ;;  %v1374_v57 = vadd.f32 %v2219_v48, %v1245_v50 }
 0x14a   : > { %v1377_v58 = vadd.f32 %v2222_v55, %v1248_v56  ;;  %v2135_v59 = vpop.f32.mrb[40].mxu0 }
 0x14b   : > { %v2136_v62 = vpop.f32.mrb[41].mxu0  ;;  %v2223_v63 = vpop.f32.mrb[40].mxu1 }
 0x14c   : > { %v2137_v0 = vadd.f32 %v2136_v62, %v2135_v59  ;;  %v2138_v1 = vpop.f32.mrb[42].mxu0  ;;  %v2224_v2 = vpop.f32.mrb[41].mxu1 }
 0x14d   : > { %v2139_v3 = vpop.f32.mrb[43].mxu0  ;;  %v2225_v4 = vadd.f32 %v2224_v2, %v2223_v63  ;;  %v2226_v8 = vpop.f32.mrb[42].mxu1 }
 0x14e   : > { %v1253_v9 = vadd.f32 %v2137_v0, %v2855_v7  ;;  %v2140_v10 = vadd.f32 %v2139_v3, %v2138_v1  ;;  %v2227_v11 = vpop.f32.mrb[43].mxu1 }
 0x14f   : > { %v2228_v12 = vadd.f32 %v2227_v11, %v2226_v8 }
 0x150   : > { %v1256_v13 = vadd.f32 %v2140_v10, %v2855_v7  ;;  %v1382_v14 = vadd.f32 %v2225_v4, %v1253_v9 }
 0x152   : > { %v1385_v17 = vadd.f32 %v2228_v12, %v1256_v13  ;;  %v2141_v18 = vpop.f32.mrb[44].mxu0 }
 0x153   : > { %v2142_v19 = vpop.f32.mrb[45].mxu0  ;;  %v2229_v20 = vpop.f32.mrb[44].mxu1 }
 0x154   : > { %v2143_v23 = vadd.f32 %v2142_v19, %v2141_v18  ;;  %v2144_v26 = vpop.f32.mrb[46].mxu0  ;;  %v2230_v27 = vpop.f32.mrb[45].mxu1 }
 0x155   : > { %v2145_v28 = vpop.f32.mrb[47].mxu0  ;;  %v2231_v29 = vadd.f32 %v2230_v27, %v2229_v20  ;;  %v2232_v30 = vpop.f32.mrb[46].mxu1 }
 0x156   : > { %v1261_v31 = vadd.f32 %v2143_v23, %v2855_v7  ;;  %v2146_v32 = vadd.f32 %v2145_v28, %v2144_v26  ;;  %v2233_v33 = vpop.f32.mrb[47].mxu1 }
 0x157   : > { %v2234_v34 = vadd.f32 %v2233_v33, %v2232_v30 }
 0x158   : > { %v1264_v39 = vadd.f32 %v2146_v32, %v2855_v7  ;;  %v1390_v40 = vadd.f32 %v2231_v29, %v1261_v31 }
 0x15a   : > { %v1393_v41 = vadd.f32 %v2234_v34, %v1264_v39  ;;  %v2251_v44 = vpop.f32.mrb[48].mxu0 }
 0x15b   : > { %v2305_v45 = vpop.f32.mrb[48].mxu1  ;;  %v2252_v46 = vpop.f32.mrb[49].mxu0 }
 0x15c   : > { %v2253_v47 = vadd.f32 %v2252_v46, %v2251_v44  ;;  %v2306_v48 = vpop.f32.mrb[49].mxu1  ;;  %v2254_v49 = vpop.f32.mrb[50].mxu0 }
 0x15d   : > { %v2307_v50 = vadd.f32 %v2306_v48, %v2305_v45  ;;  %v2308_v51 = vpop.f32.mrb[50].mxu1  ;;  %v2255_v52 = vpop.f32.mrb[51].mxu0 }
 0x15e   : > { %v2256_v55 = vadd.f32 %v2255_v52, %v2254_v49  ;;  %v2309_v56 = vpop.f32.mrb[51].mxu1  ;;  %v1431_v59 = vadd.f32 %v2253_v47, %v2859_v21 }
 0x15f   : > { %v2310_v62 = vadd.f32 %v2309_v56, %v2308_v51  ;;  %v2918_v63 = vadd.f32 %v2307_v50, %v1374_v57 }
 0x160   : > { %v1434_v7 = vadd.f32 %v2256_v55, %v2861_v22 }
 0x161   : > { %v2921_v0 = vadd.f32 %v2310_v62, %v1377_v58 }
 0x162   : > { %v2257_v1 = vpop.f32.mrb[52].mxu0 }
 0x163   : > { %v2311_v2 = vpop.f32.mrb[52].mxu1  ;;  %v2258_v3 = vpop.f32.mrb[53].mxu0 }
 0x164   : > { %v2259_v4 = vadd.f32 %v2258_v3, %v2257_v1  ;;  %v2312_v8 = vpop.f32.mrb[53].mxu1  ;;  %v2260_v9 = vpop.f32.mrb[54].mxu0 }
 0x165   : > { %v2313_v10 = vadd.f32 %v2312_v8, %v2311_v2  ;;  %v2314_v11 = vpop.f32.mrb[54].mxu1  ;;  %v2261_v12 = vpop.f32.mrb[55].mxu0 }
 0x166   : > { %v2262_v13 = vadd.f32 %v2261_v12, %v2260_v9  ;;  %v2315_v18 = vpop.f32.mrb[55].mxu1  ;;  %v1439_v21 = vadd.f32 %v2259_v4, %v2865_v37 }
 0x167   : > { %v2316_v19 = vadd.f32 %v2315_v18, %v2314_v11  ;;  %v2924_v57 = vadd.f32 %v2313_v10, %v1382_v14 }
 0x168   : > { %v1442_v22 = vadd.f32 %v2262_v13, %v2867_v38 }
 0x169   : > { %v2927_v58 = vadd.f32 %v2316_v19, %v1385_v17 }
 0x16a   : > { %v2263_v20 = vpop.f32.mrb[56].mxu0 }
 0x16b   : > { %v2317_v23 = vpop.f32.mrb[56].mxu1  ;;  %v2264_v26 = vpop.f32.mrb[57].mxu0 }
 0x16c   : > { %v2265_v27 = vadd.f32 %v2264_v26, %v2263_v20  ;;  %v2318_v28 = vpop.f32.mrb[57].mxu1  ;;  %v2266_v29 = vpop.f32.mrb[58].mxu0 }
 0x16d   : > { %v2319_v30 = vadd.f32 %v2318_v28, %v2317_v23  ;;  %v2320_v31 = vpop.f32.mrb[58].mxu1  ;;  %v2267_v32 = vpop.f32.mrb[59].mxu0 }
 0x16e   : > { %v2268_v33 = vadd.f32 %v2267_v32, %v2266_v29  ;;  %v2321_v34 = vpop.f32.mrb[59].mxu1  ;;  %v1447_v37 = vadd.f32 %v2265_v27, %v2871_v53 }
 0x16f   : > { %v2322_v14 = vadd.f32 %v2321_v34, %v2320_v31  ;;  %v2930_v39 = vadd.f32 %v2319_v30, %v1390_v40 }
 0x170   : > { %v1450_v38 = vadd.f32 %v2268_v33, %v2873_v54 }
 0x171   : > { %v2933_v17 = vadd.f32 %v2322_v14, %v1393_v41 }
 0x172   : > { %v2269_v44 = vpop.f32.mrb[60].mxu0 }
 0x173   : > { %v2343_v45 = vpop.f32.mrb[60].mxu1  ;;  %v2270_v46 = vpop.f32.mrb[61].mxu0 }
 0x174   : > { %v1568_v47 = vadd.f32 %v2343_v45, %v1439_v21  ;;  %v2271_v48 = vadd.f32 %v2270_v46, %v2269_v44  ;;  %v1559_v49 = vpop.f32.mrb[61].mxu1  ;;  %v2272_v50 = vpop.f32.mrb[62].mxu0 }
 0x175   : > { %v1560_v51 = vadd.f32 %v1559_v49, %v1431_v59  ;;  %v2344_v52 = vpop.f32.mrb[62].mxu1  ;;  %v2273_v55 = vpop.f32.mrb[63].mxu0 }
 0x176   : > { %v1656_v56 = vmax.f32 %v1568_v47, 0.0  ;;  %v1571_v53 = vadd.f32 %v2344_v52, %v1442_v22  ;;  %v2274_v62 = vadd.f32 %v2273_v55, %v2272_v50  ;;  %v1562_v40 = vpop.f32.mrb[63].mxu1  ;;  %v1455_v1 = vadd.f32 %v2271_v48, %v2877_v5 }
 0x177   : > { %v1654_v54 = vmax.f32 %v1560_v51, 0.0  ;;  %v1563_v41 = vadd.f32 %v1562_v40, %v1434_v7 }
 0x178   : > { %v2037_v59 = vpack.c.bf16 %v1656_v56, %v1656_v56  ;;  %v1657_v2 = vmax.f32 %v1571_v53, 0.0  ;;  %v1458_v3 = vadd.f32 %v2274_v62, %v2879_v6 }
 0x179   : > { %v2035_v4 = vpack.c.bf16 %v1654_v54, %v1654_v54  ;;  %v1655_v8 = vmax.f32 %v1563_v41, 0.0 }
 0x17a   : > { %1777 = vst.msk [vmem:[%s2940_s24 + $0x8] sm:$0xf] %vm1774_vm1, %v2037_v59  ;;  %v2038_v5 = vpack.c.bf16 %v1657_v2, %v1657_v2  ;;  %v2275_v9 = vpop.f32.mrb[64].mxu0 }
 0x17b   : > { %1775 = vst.msk [vmem:[%s2940_s24] sm:$0xf] %vm1774_vm1, %v2035_v4  ;;  %v2036_v10 = vpack.c.bf16 %v1655_v8, %v1655_v8  ;;  %v2347_v11 = vpop.f32.mrb[64].mxu1  ;;  %v2276_v12 = vpop.f32.mrb[65].mxu0 }
 0x17c   : > { %1778 = vst.msk [vmem:[%s2940_s24 + $0xc] sm:$0xf] %vm1774_vm1, %v2038_v5  ;;  %v1584_v13 = vadd.f32 %v2347_v11, %v1455_v1  ;;  %v2277_v7 = vadd.f32 %v2276_v12, %v2275_v9  ;;  %v1575_v18 = vpop.f32.mrb[65].mxu1  ;;  %v2278_v21 = vpop.f32.mrb[66].mxu0 }
 0x17d   : > { %1776 = vst.msk [vmem:[%s2940_s24 + $0x4] sm:$0xf] %vm1774_vm1, %v2036_v10  ;;  %v1576_v6 = vadd.f32 %v1575_v18, %v1447_v37  ;;  %v2348_v19 = vpop.f32.mrb[66].mxu1  ;;  %v2279_v22 = vpop.f32.mrb[67].mxu0 }
 0x17e   : > { %v1660_v20 = vmax.f32 %v1584_v13, 0.0  ;;  %v1587_v23 = vadd.f32 %v2348_v19, %v1458_v3  ;;  %v2280_v26 = vadd.f32 %v2279_v22, %v2278_v21  ;;  %v1578_v27 = vpop.f32.mrb[67].mxu1  ;;  %v1463_v28 = vadd.f32 %v2277_v7, %v2883_v24 }
 0x17f   : > { %v1658_v29 = vmax.f32 %v1576_v6, 0.0  ;;  %v1579_v30 = vadd.f32 %v1578_v27, %v1450_v38 }
 0x180   : > { %v2041_v31 = vpack.c.bf16 %v1660_v20, %v1660_v20  ;;  %v1661_v32 = vmax.f32 %v1587_v23, 0.0  ;;  %v1466_v33 = vadd.f32 %v2280_v26, %v2885_v25 }
 0x181   : > { %v2039_v34 = vpack.c.bf16 %v1658_v29, %v1658_v29  ;;  %v1659_v14 = vmax.f32 %v1579_v30, 0.0 }
 0x182   : > { %1781 = vst.msk [vmem:[%s2940_s24 + $0x18] sm:$0xf] %vm1774_vm1, %v2041_v31  ;;  %v2042_v37 = vpack.c.bf16 %v1661_v32, %v1661_v32  ;;  %v2281_v44 = vpop.f32.mrb[68].mxu0 }
 0x183   : > { %1779 = vst.msk [vmem:[%s2940_s24 + $0x10] sm:$0xf] %vm1774_vm1, %v2039_v34  ;;  %v2040_v45 = vpack.c.bf16 %v1659_v14, %v1659_v14  ;;  %v2351_v46 = vpop.f32.mrb[68].mxu1  ;;  %v2282_v47 = vpop.f32.mrb[69].mxu0 }
 0x184   : > { %1782 = vst.msk [vmem:[%s2940_s24 + $0x1c] sm:$0xf] %vm1774_vm1, %v2042_v37  ;;  %v2283_v24 = vadd.f32 %v2282_v47, %v2281_v44  ;;  %v1591_v38 = vpop.f32.mrb[69].mxu1  ;;  %v2284_v48 = vpop.f32.mrb[70].mxu0 }
 0x185   : > { %1780 = vst.msk [vmem:[%s2940_s24 + $0x14] sm:$0xf] %vm1774_vm1, %v2040_v45  ;;  %v1592_v25 = vadd.f32 %v1591_v38, %v1463_v28  ;;  %v2352_v49 = vpop.f32.mrb[70].mxu1  ;;  %v2285_v50 = vpop.f32.mrb[71].mxu0 }
 0x186   : > { %v1471_v51 = vadd.f32 %v2283_v24, %v2889_v42  ;;  %v2286_v52 = vadd.f32 %v2285_v50, %v2284_v48  ;;  %v1594_v55 = vpop.f32.mrb[71].mxu1 }
 0x187   : > { %v1662_v56 = vmax.f32 %v1592_v25, 0.0  ;;  %v1595_v53 = vadd.f32 %v1594_v55, %v1466_v33 }
 0x188   : > { %v1600_v62 = vadd.f32 %v2351_v46, %v1471_v51  ;;  %v1474_v40 = vadd.f32 %v2286_v52, %v2891_v43 }
 0x189   : > { %v2043_v1 = vpack.c.bf16 %v1662_v56, %v1662_v56  ;;  %v1663_v54 = vmax.f32 %v1595_v53, 0.0 }
 0x18a   : > { %v1664_v41 = vmax.f32 %v1600_v62, 0.0  ;;  %v1603_v59 = vadd.f32 %v2352_v49, %v1474_v40  ;;  %v2287_v2 = vpop.f32.mrb[72].mxu0 }
 0x18b   : > { %1783 = vst.msk [vmem:[%s2940_s24 + $0x20] sm:$0xf] %vm1774_vm1, %v2043_v1  ;;  %v2044_v3 = vpack.c.bf16 %v1663_v54, %v1663_v54  ;;  %v2288_v4 = vpop.f32.mrb[73].mxu0  ;;  %v2355_v42 = vpop.f32.mrb[72].mxu1 }
 0x18c   : > { %v2045_v8 = vpack.c.bf16 %v1664_v41, %v1664_v41  ;;  %v1665_v5 = vmax.f32 %v1603_v59, 0.0  ;;  %v2289_v9 = vadd.f32 %v2288_v4, %v2287_v2  ;;  %v2290_v10 = vpop.f32.mrb[74].mxu0  ;;  %v1607_v11 = vpop.f32.mrb[73].mxu1 }
 0x18d   : > { %1784 = vst.msk [vmem:[%s2940_s24 + $0x24] sm:$0xf] %vm1774_vm1, %v2044_v3  ;;  %v2291_v43 = vpop.f32.mrb[75].mxu0  ;;  %v2356_v12 = vpop.f32.mrb[74].mxu1 }
 0x18e   : > { %1785 = vst.msk [vmem:[%s2940_s24 + $0x28] sm:$0xf] %vm1774_vm1, %v2045_v8  ;;  %v2046_v13 = vpack.c.bf16 %v1665_v5, %v1665_v5  ;;  %v2292_v7 = vadd.f32 %v2291_v43, %v2290_v10  ;;  %v1479_v18 = vadd.f32 %v2289_v9, %v2895_v60  ;;  %v1610_v21 = vpop.f32.mrb[75].mxu1 }
 0x190   : > { %1786 = vst.msk [vmem:[%s2940_s24 + $0x2c] sm:$0xf] %vm1774_vm1, %v2046_v13  ;;  %v1608_v6 = vadd.f32 %v1607_v11, %v1479_v18  ;;  %v1482_v19 = vadd.f32 %v2292_v7, %v2897_v61 }
 0x192   : > { %v1666_v22 = vmax.f32 %v1608_v6, 0.0  ;;  %v1611_v20 = vadd.f32 %v1610_v21, %v1482_v19  ;;  %v2293_v23 = vpop.f32.mrb[76].mxu0 }
 0x193   : > { %v2359_v26 = vpop.f32.mrb[76].mxu1  ;;  %v2294_v27 = vpop.f32.mrb[77].mxu0 }
 0x194   : > { %v2047_v28 = vpack.c.bf16 %v1666_v22, %v1666_v22  ;;  %v1667_v29 = vmax.f32 %v1611_v20, 0.0  ;;  %v1632_v30 = vadd.f32 %v2359_v26, %v2918_v63  ;;  %v2295_v31 = vadd.f32 %v2294_v27, %v2293_v23  ;;  %v1623_v32 = vpop.f32.mrb[77].mxu1  ;;  %v2296_v60 = vpop.f32.mrb[78].mxu0 }
 0x195   : > { %v2360_v33 = vpop.f32.mrb[78].mxu1  ;;  %v2297_v34 = vpop.f32.mrb[79].mxu0 }
 0x196   : > { %1787 = vst.msk [vmem:[%s2940_s24 + $0x30] sm:$0xf] %vm1774_vm1, %v2047_v28  ;;  %v2048_v14 = vpack.c.bf16 %v1667_v29, %v1667_v29  ;;  %v1672_v61 = vmax.f32 %v1632_v30, 0.0  ;;  %v1487_v37 = vadd.f32 %v2295_v31, %v2901_v15  ;;  %v1635_v44 = vadd.f32 %v2360_v33, %v2921_v0  ;;  %v1626_v45 = vpop.f32.mrb[79].mxu1 }
 0x197   : > { %v2298_v46 = vadd.f32 %v2297_v34, %v2296_v60 }
 0x198   : > { %1788 = vst.msk [vmem:[%s2940_s24 + $0x34] sm:$0xf] %vm1774_vm1, %v2048_v14  ;;  %v2053_v63 = vpack.c.bf16 %v1672_v61, %v1672_v61  ;;  %v1616_v47 = vadd.f32 %v2355_v42, %v1487_v37  ;;  %v1673_v24 = vmax.f32 %v1635_v44, 0.0 }
 0x199   : > { %v1490_v38 = vadd.f32 %v2298_v46, %v2903_v16 }
 0x19a   : > { %1793 = vst.msk [vmem:[%s2940_s24 + $0x48] sm:$0xf] %vm1774_vm1, %v2053_v63  ;;  %v1668_v48 = vmax.f32 %v1616_v47, 0.0  ;;  %v2054_v25 = vpack.c.bf16 %v1673_v24, %v1673_v24  ;;  %v2299_v49 = vpop.f32.mrb[80].mxu0 }
 0x19b   : > { %v1619_v50 = vadd.f32 %v2356_v12, %v1490_v38  ;;  %v2363_v15 = vpop.f32.mrb[80].mxu1  ;;  %v2300_v51 = vpop.f32.mrb[81].mxu0 }
 0x19c   : > { %v2049_v0 = vpack.c.bf16 %v1668_v48, %v1668_v48  ;;  %1794 = vst.msk [vmem:[%s2940_s24 + $0x4c] sm:$0xf] %vm1774_vm1, %v2054_v25  ;;  %v1648_v52 = vadd.f32 %v2363_v15, %v2930_v39  ;;  %v2301_v55 = vadd.f32 %v2300_v51, %v2299_v49  ;;  %v1639_v56 = vpop.f32.mrb[81].mxu1  ;;  %v2302_v53 = vpop.f32.mrb[82].mxu0 }
 0x19d   : > { %v1669_v62 = vmax.f32 %v1619_v50, 0.0  ;;  %v1640_v16 = vadd.f32 %v1639_v56, %v2924_v57  ;;  %v2364_v40 = vpop.f32.mrb[82].mxu1  ;;  %v2303_v1 = vpop.f32.mrb[83].mxu0 }
 0x19e   : > { %1789 = vst.msk [vmem:[%s2940_s24 + $0x38] sm:$0xf] %vm1774_vm1, %v2049_v0  ;;  %v1676_v54 = vmax.f32 %v1648_v52, 0.0  ;;  %v1495_v41 = vadd.f32 %v2301_v55, %v2907_v35  ;;  %v1651_v59 = vadd.f32 %v2364_v40, %v2933_v17  ;;  %v2304_v2 = vadd.f32 %v2303_v1, %v2302_v53  ;;  %v1642_v39 = vpop.f32.mrb[83].mxu1 }
 0x19f   : > { %v2050_v3 = vpack.c.bf16 %v1669_v62, %v1669_v62  ;;  %v1674_v4 = vmax.f32 %v1640_v16, 0.0  ;;  %v1643_v42 = vadd.f32 %v1642_v39, %v2927_v58 }
 0x1a0   : > { %v2057_v57 = vpack.c.bf16 %v1676_v54, %v1676_v54  ;;  %v1624_v8 = vadd.f32 %v1623_v32, %v1495_v41  ;;  %v1677_v5 = vmax.f32 %v1651_v59, 0.0  ;;  %v1498_v9 = vadd.f32 %v2304_v2, %v2909_v36 }
 0x1a1   : > { %1790 = vst.msk [vmem:[%s2940_s24 + $0x3c] sm:$0xf] %vm1774_vm1, %v2050_v3  ;;  %v2055_v35 = vpack.c.bf16 %v1674_v4, %v1674_v4  ;;  %v1675_v17 = vmax.f32 %v1643_v42, 0.0 }
 0x1a2   : > { %1797 = vst.msk [vmem:[%s2940_s24 + $0x58] sm:$0xf] %vm1774_vm1, %v2057_v57  ;;  %v1670_v10 = vmax.f32 %v1624_v8, 0.0  ;;  %v2058_v11 = vpack.c.bf16 %v1677_v5, %v1677_v5  ;;  %v1627_v43 = vadd.f32 %v1626_v45, %v1498_v9 }
 0x1a3   : > { %1795 = vst.msk [vmem:[%s2940_s24 + $0x50] sm:$0xf] %vm1774_vm1, %v2055_v35  ;;  %v2056_v58 = vpack.c.bf16 %v1675_v17, %v1675_v17 }
 0x1a4   : > { %v2051_v12 = vpack.c.bf16 %v1670_v10, %v1670_v10  ;;  %1798 = vst.msk [vmem:[%s2940_s24 + $0x5c] sm:$0xf] %vm1774_vm1, %v2058_v11  ;;  %v1671_v13 = vmax.f32 %v1627_v43, 0.0 }
 0x1a5   : > { %1796 = vst.msk [vmem:[%s2940_s24 + $0x54] sm:$0xf] %vm1774_vm1, %v2056_v58 }
 0x1a6   : > { %1791 = vst.msk [vmem:[%s2940_s24 + $0x40] sm:$0xf] %vm1774_vm1, %v2051_v12  ;;  %v2052_v36 = vpack.c.bf16 %v1671_v13, %v1671_v13 }
 0x1a8   : > { %1792 = vst.msk [vmem:[%s2940_s24 + $0x44] sm:$0xf] %vm1774_vm1, %v2052_v36 }
 0x1a9 PF: > { %s13_s12 = sadd.s32 1, %s2566_s12  }
 0x1aa   : > { %p10_p4 = scmp.ge.s32.totalorder %s13_s12, 4  }
 0x1ac   :  { %12 = sbr.rel (!%p10_p4) target bundleno = 1 (0x1), region = 62 }

// kernel: _lambda_.8
= control target key start
LH: loop header
LB: loop body
LE: loop exit
PB: predicated region body
PF: predicated region fallthrough
CT: control target
= control target key end

     0   :  { %s2341_s12 = smov 0   ;;  %s2708_s0 = inlined_call_operand.vmem [shape: bf16[96,1600], index: 0, kind: input, shape index: {}]   ;;  %s2709_s1 = inlined_call_operand.vmem [shape: bf16[1600,128], index: 1, kind: input, shape index: {}]   ;;  %s2710_s2 = inlined_call_operand.vmem [shape: f32[1,128], index: 2, kind: input, shape index: {}]   ;;  %s2711_s3 = inlined_call_operand.vmem [shape: bf16[96,128], index: 3, kind: output, shape index: {}]  }
   0x1 LB: > { %s1723_s13 = sadd.s32 4294967295, %s2317_s12   ;;  %p1727_p0 = scmp.ge.s32.totalorder %s2317_s12, 1  ;;  %s2317_s12 = sphi %s2341_s12, %s13_s12  }
   0x2   : > { %p139_p1 = scmp.lt.s32.totalorder %s2317_s12, 3 }
   0x4   : > { %p140_p2 = pnand %p1727_p0, %p139_p1 }
   0x5   : > { %v2154_v0 = vld [vmem:[%s2709_s1 + $0x40] sm:$0xff] (!%p140_p2)   ;;  %v2158_v4 = vld [vmem:[%s2709_s1 + $0x48] sm:$0xff] (!%p140_p2)   ;;  %v2162_v8 = vld [vmem:[%s2709_s1 + $0x50] sm:$0xff] (!%p140_p2)   ;;  %s164_s17 = smul.u32 (!%p140_p2), 6, %s1723_s13  ;;  %vm2320_vm0 = vmmov (!%p140_p2), 0   ;;  %vm1222_vm1 = vcmask (!%p140_p2), 523264  }
   0x6   : > { %143 = sbr.rel (%p140_p2) target bundleno = 357 (0x165), region = 32  ;;  %v2155_v1 = vld [vmem:[%s2709_s1 + $0xc0] sm:$0xff] (!%p140_p2)   ;;  %1904 = vmatprep.subr.bf16.mxu0 (!%p140_p2), %v2154_v0  ;;  %v2159_v5 = vld [vmem:[%s2709_s1 + $0xc8] sm:$0xff] (!%p140_p2)   ;;  %v2163_v9 = vld [vmem:[%s2709_s1 + $0xd0] sm:$0xff] (!%p140_p2)  }
   0x7   : > { %v2156_v2 = vld [vmem:[%s2709_s1] sm:$0xff] (!%p140_p2)   ;;  %1938 = vmatprep.subr.bf16.mxu1 (!%p140_p2), %v2155_v1  ;;  %v2160_v6 = vld [vmem:[%s2709_s1 + $0x8] sm:$0xff] (!%p140_p2)   ;;  %v2164_v10 = vld [vmem:[%s2709_s1 + $0x10] sm:$0xff] (!%p140_p2)   ;;  %p165_p3 = scmp.lt.s32.totalorder (!%p140_p2), %s164_s17, 11 }
   0x8   : > { %v2157_v3 = vld [vmem:[%s2709_s1 + $0x80] sm:$0xff] (!%p140_p2)   ;;  %1905 = vmatpush3.bf16.msra.mxu0 (!%p140_p2), %v2156_v2  ;;  %v2161_v7 = vld [vmem:[%s2709_s1 + $0x88] sm:$0xff] (!%p140_p2)   ;;  %v2165_v11 = vld [vmem:[%s2709_s1 + $0x90] sm:$0xff] (!%p140_p2)  }
   0x9   : > { %1939 = vmatpush3.bf16.msra.mxu1 (!%p140_p2), %v2157_v3  ;;  %1906 = vmatprep.subr.bf16.mxu0 (!%p140_p2), %v2158_v4  ;;  %v2166_v12 = vld [vmem:[%s2709_s1 + $0x58] sm:$0xff] (!%p140_p2)   ;;  %v2170_v16 = vld [vmem:[%s2709_s1 + $0x60] sm:$0xff] (!%p140_p2)   ;;  %v2174_v20 = vld [vmem:[%s2709_s1 + $0x68] sm:$0xff] (!%p140_p2)  }
   0xa   : > { %1940 = vmatprep.subr.bf16.mxu1 (!%p140_p2), %v2159_v5  ;;  %v2167_v13 = vld [vmem:[%s2709_s1 + $0xd8] sm:$0xff] (!%p140_p2)   ;;  %v2171_v17 = vld [vmem:[%s2709_s1 + $0xe0] sm:$0xff] (!%p140_p2)   ;;  %v2175_v21 = vld [vmem:[%s2709_s1 + $0xe8] sm:$0xff] (!%p140_p2)  }
   0xb   : > { %v2168_v14 = vld [vmem:[%s2709_s1 + $0x18] sm:$0xff] (!%p140_p2)   ;;  %v2172_v18 = vld [vmem:[%s2709_s1 + $0x20] sm:$0xff] (!%p140_p2)   ;;  %v2176_v22 = vld [vmem:[%s2709_s1 + $0x28] sm:$0xff] (!%p140_p2)  }
   0xc   : > { %1907 = vmatpush3.bf16.msra.mxu0 (!%p140_p2), %v2160_v6  ;;  %v2169_v15 = vld [vmem:[%s2709_s1 + $0x98] sm:$0xff] (!%p140_p2)   ;;  %v2173_v19 = vld [vmem:[%s2709_s1 + $0xa0] sm:$0xff] (!%p140_p2)   ;;  %v2177_v23 = vld [vmem:[%s2709_s1 + $0xa8] sm:$0xff] (!%p140_p2)  }
   0xd   : > { %1941 = vmatpush3.bf16.msra.mxu1 %v2161_v7  ;;  %1908 = vmatprep.subr.bf16.mxu0 %v2162_v8  ;;  %s2713_s17 = smov (!%p165_p3, %s164_s17), 11  ;;  %v2178_v24 = vld [vmem:[%s2709_s1 + $0x70] sm:$0xff]   ;;  %v2182_v28 = vld [vmem:[%s2709_s1 + $0x78] sm:$0xff]   ;;  %v2192_v36 = vld [vmem:[%s2709_s1 + $0x140] sm:$0xff]  }
   0xe   : > { %1942 = vmatprep.subr.bf16.mxu1 %v2163_v9  ;;  %v2179_v25 = vld [vmem:[%s2709_s1 + $0xf0] sm:$0xff]   ;;  %s2143_s16 = smul.u32 52, %s2713_s17  ;;  %v2183_v29 = vld [vmem:[%s2709_s1 + $0xf8] sm:$0xff]   ;;  %v2193_v37 = vld [vmem:[%s2709_s1 + $0x1c0] sm:$0xff]  }
   0xf   : > { %v2180_v26 = vld [vmem:[%s2709_s1 + $0x30] sm:$0xff]   ;;  %v2184_v30 = vld [vmem:[%s2709_s1 + $0x38] sm:$0xff]   ;;  %v2194_v38 = vld [vmem:[%s2709_s1 + $0x100] sm:$0xff]  }
  0x10   : > { %1909 = vmatpush3.bf16.msra.mxu0 %v2164_v10  ;;  %v2181_v27 = vld [vmem:[%s2709_s1 + $0xb0] sm:$0xff]   ;;  %s2447_s27 = scalar_lea.vmem %s2708_s0, %s2143_s16  ;;  %v2185_v31 = vld [vmem:[%s2709_s1 + $0xb8] sm:$0xff]   ;;  %v2195_v39 = vld [vmem:[%s2709_s1 + $0x180] sm:$0xff]  }
  0x11   : > { %1943 = vmatpush3.bf16.msra.mxu1 %v2165_v11  ;;  %1910 = vmatprep.subr.bf16.mxu0 %v2166_v12  ;;  %v2186_v32 = vld [vmem:[%s2447_s27] ss:$52 sps:$4 sm:$0xff]   ;;  %v2188_v33 = vld [vmem:[%s2447_s27 + $0x4] ss:$52 sps:$4 sm:$0xff]   ;;  %v2189_v34 = vld [vmem:[%s2447_s27 + $0x8] ss:$52 sps:$4 sm:$0xff]  }
  0x12   : > { %1944 = vmatprep.subr.bf16.mxu1 %v2167_v13  ;;  %v2191_v35 = vld [vmem:[%s2447_s27 + $0xc] ss:$52 sps:$4 sm:$0xff]   ;;  %1264 = vmatprep.mubr.bf16.mxu0 %v2188_v33  ;;  %v2200_v44 = vld [vmem:[%s2709_s1 + $0x150] sm:$0xff]   ;;  %v2206_v49 = vld [vmem:[%s2447_s27 + $0x68] ss:$52 sps:$4 sm:$0xff]  }
  0x13   : > { %1321 = vmatprep.mubr.bf16.mxu1 %v2191_v35  ;;  %v2196_v40 = vld [vmem:[%s2709_s1 + $0x148] sm:$0xff]   ;;  %v2201_v45 = vld [vmem:[%s2709_s1 + $0x1d0] sm:$0xff]   ;;  %v2207_v50 = vld [vmem:[%s2709_s1 + $0x158] sm:$0xff]  }
  0x14   : > { %1911 = vmatpush3.bf16.msra.mxu0 %v2168_v14  ;;  %v2197_v41 = vld [vmem:[%s2709_s1 + $0x1c8] sm:$0xff]   ;;  %v2202_v46 = vld [vmem:[%s2709_s1 + $0x110] sm:$0xff]   ;;  %v2208_v51 = vld [vmem:[%s2709_s1 + $0x1d8] sm:$0xff]  }
  0x15   : > { %1945 = vmatpush3.bf16.msra.mxu1 %v2169_v15  ;;  %1912 = vmatprep.subr.bf16.mxu0 %v2170_v16  ;;  %v2198_v42 = vld [vmem:[%s2709_s1 + $0x108] sm:$0xff]   ;;  %v2203_v47 = vld [vmem:[%s2709_s1 + $0x190] sm:$0xff]   ;;  %v2211_v53 = vld [vmem:[%s2709_s1 + $0x118] sm:$0xff]  }
  0x16   : > { %1946 = vmatprep.subr.bf16.mxu1 %v2171_v17  ;;  %v2199_v43 = vld [vmem:[%s2709_s1 + $0x188] sm:$0xff]   ;;  %v2212_v54 = vld [vmem:[%s2709_s1 + $0x198] sm:$0xff]   ;;  %v2213_v55 = vld [vmem:[%s2447_s27 + $0x70] ss:$52 sps:$4 sm:$0xff]  }
  0x17   : > { %v2204_v48 = vld [vmem:[%s2447_s27 + $0x6c] ss:$52 sps:$4 sm:$0xff]   ;;  %v2209_v52 = vld [vmem:[%s2447_s27 + $0x74] ss:$52 sps:$4 sm:$0xff]   ;;  %v2220_v61 = vld [vmem:[%s2447_s27 + $0xd0] ss:$52 sps:$4 sm:$0xff]  }
  0x18   : > { %1913 = vmatpush3.bf16.msra.mxu0 %v2172_v18  ;;  %v2214_v56 = vld [vmem:[%s2709_s1 + $0x160] sm:$0xff]   ;;  %v2218_v60 = vld [vmem:[%s2447_s27 + $0xd4] ss:$52 sps:$4 sm:$0xff]   ;;  %v2223_v0 = vld [vmem:[%s2447_s27 + $0xdc] ss:$52 sps:$4 sm:$0xff]  }
  0x19   : > { %1947 = vmatpush3.bf16.msra.mxu1 %v2173_v19  ;;  %1914 = vmatprep.subr.bf16.mxu0 %v2174_v20  ;;  %v2215_v57 = vld [vmem:[%s2709_s1 + $0x1e0] sm:$0xff]   ;;  %v2221_v62 = vld [vmem:[%s2709_s1 + $0x168] sm:$0xff]   ;;  %v2228_v4 = vld [vmem:[%s2709_s1 + $0x170] sm:$0xff]  }
  0x1a   : > { %1948 = vmatprep.subr.bf16.mxu1 %v2175_v21  ;;  %v2216_v58 = vld [vmem:[%s2709_s1 + $0x120] sm:$0xff]   ;;  %v2222_v63 = vld [vmem:[%s2709_s1 + $0x1e8] sm:$0xff]   ;;  %v2229_v5 = vld [vmem:[%s2709_s1 + $0x1f0] sm:$0xff]  }
  0x1b   : > { %v2217_v59 = vld [vmem:[%s2709_s1 + $0x1a0] sm:$0xff]   ;;  %v2225_v1 = vld [vmem:[%s2709_s1 + $0x128] sm:$0xff]   ;;  %v2230_v6 = vld [vmem:[%s2709_s1 + $0x130] sm:$0xff]  }
  0x1c   : > { %1915 = vmatpush3.bf16.msra.mxu0 %v2176_v22  ;;  %v2226_v2 = vld [vmem:[%s2709_s1 + $0x1a8] sm:$0xff]   ;;  %v2231_v7 = vld [vmem:[%s2709_s1 + $0x1b0] sm:$0xff]   ;;  %v2232_v8 = vld [vmem:[%s2709_s1 + $0x178] sm:$0xff]  }
  0x1d   : > { %1949 = vmatpush3.bf16.msra.mxu1 %v2177_v23  ;;  %1916 = vmatprep.subr.bf16.mxu0 %v2178_v24  ;;  %v2227_v3 = vld [vmem:[%s2447_s27 + $0xd8] ss:$52 sps:$4 sm:$0xff]   ;;  %v2236_v12 = vld [vmem:[%s2447_s27 + $0x10] ss:$52 sps:$4 sm:$0xff]   ;;  %v2238_v13 = vld [vmem:[%s2447_s27 + $0x14] ss:$52 sps:$4 sm:$0xff]  }
  0x1e   : > { %1950 = vmatprep.subr.bf16.mxu1 %v2179_v25  ;;  %v2233_v9 = vld [vmem:[%s2709_s1 + $0x1f8] sm:$0xff]   ;;  %v2242_v16 = vld [vmem:[%s2709_s1 + $0x240] sm:$0xff]   ;;  %v2246_v20 = vld [vmem:[%s2709_s1 + $0x248] sm:$0xff]  }
  0x1f   : > { %v2234_v10 = vld [vmem:[%s2709_s1 + $0x138] sm:$0xff]   ;;  %v2243_v17 = vld [vmem:[%s2709_s1 + $0x2c0] sm:$0xff]   ;;  %v2247_v21 = vld [vmem:[%s2709_s1 + $0x2c8] sm:$0xff]  }
  0x20   : > { %1917 = vmatpush3.bf16.msra.mxu0 %v2180_v26  ;;  %v2235_v11 = vld [vmem:[%s2709_s1 + $0x1b8] sm:$0xff]   ;;  %v2244_v18 = vld [vmem:[%s2709_s1 + $0x200] sm:$0xff]   ;;  %v2248_v22 = vld [vmem:[%s2709_s1 + $0x208] sm:$0xff]  }
  0x21   : > { %1951 = vmatpush3.bf16.msra.mxu1 %v2181_v27  ;;  %1918 = vmatprep.subr.bf16.mxu0 %v2182_v28  ;;  %v2239_v14 = vld [vmem:[%s2447_s27 + $0x18] ss:$52 sps:$4 sm:$0xff]   ;;  %v2241_v15 = vld [vmem:[%s2447_s27 + $0x1c] ss:$52 sps:$4 sm:$0xff]   ;;  %v2245_v19 = vld [vmem:[%s2709_s1 + $0x280] sm:$0xff]  }
  0x22   : > { %1952 = vmatprep.subr.bf16.mxu1 %v2183_v29  ;;  %v2249_v23 = vld [vmem:[%s2709_s1 + $0x288] sm:$0xff]   ;;  %v2250_v24 = vld [vmem:[%s2447_s27 + $0x7c] ss:$52 sps:$4 sm:$0xff]   ;;  %v2255_v28 = vld [vmem:[%s2447_s27 + $0x84] ss:$52 sps:$4 sm:$0xff]  }
  0x23   : > { %v2252_v25 = vld [vmem:[%s2447_s27 + $0x78] ss:$52 sps:$4 sm:$0xff]   ;;  %v2253_v26 = vld [vmem:[%s2709_s1 + $0x250] sm:$0xff]  }
  0x24   : > { %1919 = vmatpush3.bf16.msra.mxu0 %v2184_v30  ;;  %v2254_v27 = vld [vmem:[%s2709_s1 + $0x2d0] sm:$0xff]   ;;  %v2261_v33 = vld [vmem:[%s2709_s1 + $0x2d8] sm:$0xff]  }
  0x25   : > { %1953 = vmatpush3.bf16.msra.mxu1 %v2185_v31  ;;  %1972 = vmatprep.subr.bf16.mxu0 %v2192_v36  ;;  %v2257_v29 = vld [vmem:[%s2709_s1 + $0x210] sm:$0xff]   ;;  %v2263_v35 = vld [vmem:[%s2709_s1 + $0x298] sm:$0xff]  }
  0x26   : > { %2006 = vmatprep.subr.bf16.mxu1 %v2193_v37  ;;  %v2258_v30 = vld [vmem:[%s2709_s1 + $0x290] sm:$0xff]   ;;  %v2264_v36 = vld [vmem:[%s2447_s27 + $0xe4] ss:$52 sps:$4 sm:$0xff]  }
  0x27   : > { %1265 = vmatmul.mubr.bf16.vlgmr.msra.gmra.mrb[0].mxu0 %v2186_v32  ;;  %v2259_v31 = vld [vmem:[%s2447_s27 + $0x80] ss:$52 sps:$4 sm:$0xff]   ;;  %v2260_v32 = vld [vmem:[%s2709_s1 + $0x258] sm:$0xff]  }
  0x28   : > { %1322 = vmatmul.mubr.bf16.vlgmr.msra.gmra.mrb[0].mxu1 %v2189_v34  ;;  %1973 = vmatpush3.bf16.msra.mxu0 %v2194_v38  ;;  %v2262_v34 = vld [vmem:[%s2709_s1 + $0x218] sm:$0xff]   ;;  %v2266_v37 = vld [vmem:[%s2447_s27 + $0xe0] ss:$52 sps:$4 sm:$0xff]  }
  0x29   : > { %2007 = vmatpush3.bf16.msra.mxu1 %v2195_v39  ;;  %1974 = vmatprep.subr.bf16.mxu0 %v2196_v40  ;;  %v2267_v38 = vld [vmem:[%s2709_s1 + $0x260] sm:$0xff]  }
  0x2a   : > { %2008 = vmatprep.subr.bf16.mxu1 %v2197_v41  ;;  %1272 = vmatprep.mubr.bf16.mxu0 %v2204_v48  ;;  %v2268_v39 = vld [vmem:[%s2709_s1 + $0x2e0] sm:$0xff]   ;;  %v2278_v48 = vld [vmem:[%s2709_s1 + $0x270] sm:$0xff]  }
  0x2b   : > { %1329 = vmatprep.mubr.bf16.mxu1 %v2209_v52  ;;  %v2269_v40 = vld [vmem:[%s2447_s27 + $0xec] ss:$52 sps:$4 sm:$0xff]   ;;  %v2282_v52 = vld [vmem:[%s2709_s1 + $0x278] sm:$0xff]  }
  0x2c   : > { %1975 = vmatpush3.bf16.msra.mxu0 %v2198_v42  ;;  %v2271_v41 = vld [vmem:[%s2709_s1 + $0x220] sm:$0xff]  }
  0x2d   : > { %2009 = vmatpush3.bf16.msra.mxu1 %v2199_v43  ;;  %1976 = vmatprep.subr.bf16.mxu0 %v2200_v44  ;;  %v2272_v42 = vld [vmem:[%s2709_s1 + $0x2a0] sm:$0xff]   ;;  %v2273_v43 = vld [vmem:[%s2447_s27 + $0xe8] ss:$52 sps:$4 sm:$0xff]  }
  0x2e   : > { %2010 = vmatprep.subr.bf16.mxu1 %v2201_v45  ;;  %v2274_v44 = vld [vmem:[%s2709_s1 + $0x268] sm:$0xff]  }
  0x2f   : > { %1273 = vmatmul.mubr.bf16.gmra.mrb[4].mxu0 %v2206_v49  ;;  %v2275_v45 = vld [vmem:[%s2709_s1 + $0x2e8] sm:$0xff]   ;;  %v2279_v49 = vld [vmem:[%s2709_s1 + $0x2f0] sm:$0xff]  }
  0x30   : > { %1977 = vmatpush3.bf16.msra.mxu0 %v2202_v46  ;;  %1330 = vmatmul.mubr.bf16.gmra.mrb[4].mxu1 %v2213_v55  ;;  %v2276_v46 = vld [vmem:[%s2709_s1 + $0x228] sm:$0xff]   ;;  %v2285_v55 = vld [vmem:[%s2709_s1 + $0x2b8] sm:$0xff]  }
  0x31   : > { %2011 = vmatpush3.bf16.msra.mxu1 %v2203_v47  ;;  %1978 = vmatprep.subr.bf16.mxu0 %v2207_v50  ;;  %v2277_v47 = vld [vmem:[%s2709_s1 + $0x2a8] sm:$0xff]   ;;  %v2280_v50 = vld [vmem:[%s2709_s1 + $0x230] sm:$0xff]  }
  0x32   : > { %2012 = vmatprep.subr.bf16.mxu1 %v2208_v51  ;;  %1280 = vmatprep.mubr.bf16.mxu0 %v2218_v60  ;;  %v2281_v51 = vld [vmem:[%s2709_s1 + $0x2b0] sm:$0xff]   ;;  %v2291_v60 = vld [vmem:[%s2447_s27 + $0x2c] ss:$52 sps:$4 sm:$0xff]  }
  0x33   : > { %1337 = vmatprep.mubr.bf16.mxu1 %v2223_v0  ;;  %v2297_v0 = vld [vmem:[%s2709_s1 + $0x308] sm:$0xff]  }
  0x34   : > { %1979 = vmatpush3.bf16.msra.mxu0 %v2211_v53  ;;  %v2283_v53 = vld [vmem:[%s2709_s1 + $0x2f8] sm:$0xff]  }
  0x35   : > { %2013 = vmatpush3.bf16.msra.mxu1 %v2212_v54  ;;  %1980 = vmatprep.subr.bf16.mxu0 %v2214_v56  ;;  %v2284_v54 = vld [vmem:[%s2709_s1 + $0x238] sm:$0xff]   ;;  %v2286_v56 = vld [vmem:[%s2447_s27 + $0x20] ss:$52 sps:$4 sm:$0xff]  }
  0x36   : > { %2014 = vmatprep.subr.bf16.mxu1 %v2215_v57  ;;  %v2288_v57 = vld [vmem:[%s2447_s27 + $0x24] ss:$52 sps:$4 sm:$0xff]  }
  0x37   : > { %1281 = vmatmul.mubr.bf16.gmra.mrb[8].mxu0 %v2220_v61  ;;  %v2292_v61 = vld [vmem:[%s2709_s1 + $0x300] sm:$0xff]  }
  0x38   : > { %1981 = vmatpush3.bf16.msra.mxu0 %v2216_v58  ;;  %1338 = vmatmul.mubr.bf16.gmra.mrb[8].mxu1 %v2227_v3  ;;  %v2319_v58 = vmov 0.0   ;;  %v2301_v3 = vld [vmem:[%s2447_s27 + $0xf4] ss:$52 sps:$4 sm:$0xff]  }
  0x39   : > { %2015 = vmatpush3.bf16.msra.mxu1 %v2217_v59  ;;  %1982 = vmatprep.subr.bf16.mxu0 %v2221_v62  ;;  %v2289_v59 = vld [vmem:[%s2447_s27 + $0x28] ss:$52 sps:$4 sm:$0xff]   ;;  %v2293_v62 = vld [vmem:[%s2447_s27 + $0x8c] ss:$52 sps:$4 sm:$0xff]  }
  0x3a   : > { %2016 = vmatprep.subr.bf16.mxu1 %v2222_v63  ;;  %1378 = vmatprep.mubr.bf16.mxu0 %v2238_v13  ;;  %v2295_v63 = vld [vmem:[%s2447_s27 + $0x94] ss:$52 sps:$4 sm:$0xff]  }
  0x3b   : > { %1435 = vmatprep.mubr.bf16.mxu1 %v2241_v15 }
  0x3c   : > { %1983 = vmatpush3.bf16.msra.mxu0 %v2225_v1  ;;  %v2298_v1 = vld [vmem:[%s2447_s27 + $0x88] ss:$52 sps:$4 sm:$0xff]  }
  0x3d   : > { %2017 = vmatpush3.bf16.msra.mxu1 %v2226_v2  ;;  %1984 = vmatprep.subr.bf16.mxu0 %v2228_v4  ;;  %v2299_v2 = vld [vmem:[%s2447_s27 + $0x90] ss:$52 sps:$4 sm:$0xff]  }
  0x3e   : > { %2018 = vmatprep.subr.bf16.mxu1 %v2229_v5  ;;  %v2300_v4 = vld [vmem:[%s2709_s1 + $0x310] sm:$0xff]  }
  0x3f   : > { %v2303_v5 = vld [vmem:[%s2447_s27 + $0xfc] ss:$52 sps:$4 sm:$0xff]  }
  0x40   : > { %1985 = vmatpush3.bf16.msra.mxu0 %v2230_v6  ;;  %v2307_v6 = vld [vmem:[%s2709_s1 + $0x318] sm:$0xff]  }
  0x41   : > { %2019 = vmatpush3.bf16.msra.mxu1 %v2231_v7  ;;  %1986 = vmatprep.subr.bf16.mxu0 %v2232_v8  ;;  %v2305_v7 = vld [vmem:[%s2447_s27 + $0xf0] ss:$52 sps:$4 sm:$0xff]   ;;  %v2306_v8 = vld [vmem:[%s2447_s27 + $0xf8] ss:$52 sps:$4 sm:$0xff]  }
  0x42   : > { %2020 = vmatprep.subr.bf16.mxu1 %v2233_v9  ;;  %v2308_v9 = vld [vmem:[%s2447_s27 + $0x30] ss:$52 sps:$4 sm:$0xff]  }
  0x44   : > { %1987 = vmatpush3.bf16.msra.mxu0 %v2234_v10  ;;  %v2309_v10 = vld [vmem:[%s2447_s27 + $0x98] ss:$52 sps:$4 sm:$0xff]  }
  0x45   : > { %2021 = vmatpush3.bf16.msra.mxu1 %v2235_v11  ;;  %2040 = vmatprep.subr.bf16.mxu0 %v2242_v16  ;;  %v2310_v11 = vld [vmem:[%s2447_s27 + $0x100] ss:$52 sps:$4 sm:$0xff]   ;;  %s1729_s27 = sshll.u32 %s2713_s17, 2 }
  0x46   : > { %2074 = vmatprep.subr.bf16.mxu1 %v2243_v17  ;;  %s175_s28 = scalar_lea.vmem %s2711_s3, %s1729_s27 }
  0x47   : > { %1379 = vmatmul.mubr.bf16.vlgmr.msra.gmra.mrb[12].mxu0 %v2236_v12 }
  0x48   : > { %1436 = vmatmul.mubr.bf16.vlgmr.msra.gmra.mrb[12].mxu1 %v2239_v14  ;;  %2041 = vmatpush3.bf16.msra.mxu0 %v2244_v18  ;;  %v1730_v14 = vld [vmem:[%s2710_s2] ss:$0 sm:$0xff] }
  0x49   : > { %2075 = vmatpush3.bf16.msra.mxu1 %v2245_v19  ;;  %2042 = vmatprep.subr.bf16.mxu0 %v2246_v20 }
  0x4a   : > { %2076 = vmatprep.subr.bf16.mxu1 %v2247_v21  ;;  %1386 = vmatprep.mubr.bf16.mxu0 %v2250_v24 }
  0x4b   : > { %1443 = vmatprep.mubr.bf16.mxu1 %v2255_v28 }
  0x4c   : > { %2043 = vmatpush3.bf16.msra.mxu0 %v2248_v22 }
  0x4d   : > { %2077 = vmatpush3.bf16.msra.mxu1 %v2249_v23  ;;  %2044 = vmatprep.subr.bf16.mxu0 %v2253_v26 }
  0x4e   : > { %2078 = vmatprep.subr.bf16.mxu1 %v2254_v27 }
  0x4f   : > { %1387 = vmatmul.mubr.bf16.gmra.mrb[16].mxu0 %v2252_v25 }
  0x50   : > { %2045 = vmatpush3.bf16.msra.mxu0 %v2257_v29  ;;  %1444 = vmatmul.mubr.bf16.gmra.mrb[16].mxu1 %v2259_v31 }
  0x51   : > { %2079 = vmatpush3.bf16.msra.mxu1 %v2258_v30  ;;  %2046 = vmatprep.subr.bf16.mxu0 %v2260_v32 }
  0x52   : > { %2080 = vmatprep.subr.bf16.mxu1 %v2261_v33  ;;  %1394 = vmatprep.mubr.bf16.mxu0 %v2264_v36 }
  0x53   : > { %1451 = vmatprep.mubr.bf16.mxu1 %v2269_v40 }
  0x54   : > { %2047 = vmatpush3.bf16.msra.mxu0 %v2262_v34 }
  0x55   : > { %2081 = vmatpush3.bf16.msra.mxu1 %v2263_v35  ;;  %2048 = vmatprep.subr.bf16.mxu0 %v2267_v38 }
  0x56   : > { %2082 = vmatprep.subr.bf16.mxu1 %v2268_v39 }
  0x57   : > { %1395 = vmatmul.mubr.bf16.gmra.mrb[20].mxu0 %v2266_v37 }
  0x58   : > { %2049 = vmatpush3.bf16.msra.mxu0 %v2271_v41  ;;  %1452 = vmatmul.mubr.bf16.gmra.mrb[20].mxu1 %v2273_v43 }
  0x59   : > { %2083 = vmatpush3.bf16.msra.mxu1 %v2272_v42  ;;  %2050 = vmatprep.subr.bf16.mxu0 %v2274_v44 }
  0x5a   : > { %2084 = vmatprep.subr.bf16.mxu1 %v2275_v45  ;;  %1492 = vmatprep.mubr.bf16.mxu0 %v2288_v57 }
  0x5b   : > { %1549 = vmatprep.mubr.bf16.mxu1 %v2291_v60 }
  0x5c   : > { %2051 = vmatpush3.bf16.msra.mxu0 %v2276_v46 }
  0x5d   : > { %2085 = vmatpush3.bf16.msra.mxu1 %v2277_v47  ;;  %2052 = vmatprep.subr.bf16.mxu0 %v2278_v48 }
  0x5e   : > { %2086 = vmatprep.subr.bf16.mxu1 %v2279_v49 }
  0x60   : > { %2053 = vmatpush3.bf16.msra.mxu0 %v2280_v50 }
  0x61   : > { %2087 = vmatpush3.bf16.msra.mxu1 %v2281_v51  ;;  %2054 = vmatprep.subr.bf16.mxu0 %v2282_v52 }
  0x62   : > { %2088 = vmatprep.subr.bf16.mxu1 %v2283_v53 }
  0x64   : > { %2055 = vmatpush3.bf16.msra.mxu0 %v2284_v54 }
  0x65   : > { %2089 = vmatpush3.bf16.msra.mxu1 %v2285_v55  ;;  %2115 = vmatprep.subr.bf16.mxu0 %v2319_v58 }
  0x66   : > { %2135 = vmatprep.subr.bf16.mxu1 %v2319_v58 }
  0x67   : > { %1493 = vmatmul.mubr.bf16.vlgmr.msra.gmra.mrb[24].mxu0 %v2286_v56 }
  0x68   : > { %1550 = vmatmul.mubr.bf16.vlgmr.msra.gmra.mrb[24].mxu1 %v2289_v59  ;;  %2116 = vmatpush3.bf16.msra.mxu0 %v2292_v61 }
  0x69   : > { %2139 = vmatpush3.bf16.msra.mxu1 %v2292_v61  ;;  %1500 = vmatprep.mubr.bf16.mxu0 %v2293_v62 }
  0x6a   : > { %2136 = vmatprep.subr.bf16.mxu1 %v2319_v58  ;;  %1557 = vmatprep.mubr.bf16.mxu1 %v2295_v63 }
  0x6b   : > { %2117 = vmatprep.subr.bf16.mxu0 %v2319_v58 }
  0x6c   : > { %2118 = vmatpush3.bf16.msra.mxu0 %v2297_v0 }
  0x6d   : > { %2140 = vmatpush3.bf16.msra.mxu1 %v2297_v0  ;;  %2119 = vmatprep.subr.bf16.mxu0 %v2319_v58 }
  0x6e   : > { %2137 = vmatprep.subr.bf16.mxu1 %v2319_v58 }
  0x6f   : > { %1501 = vmatmul.mubr.bf16.gmra.mrb[28].mxu0 %v2298_v1 }
  0x70   : > { %1558 = vmatmul.mubr.bf16.gmra.mrb[28].mxu1 %v2299_v2  ;;  %1508 = vmatprep.mubr.bf16.mxu0 %v2301_v3 }
  0x71   : > { %2141 = vmatpush3.bf16.msra.mxu1 %v2300_v4  ;;  %1565 = vmatprep.mubr.bf16.mxu1 %v2303_v5 }
  0x72   : > { %2120 = vmatpush3.bf16.msra.mxu0 %v2300_v4  ;;  %2138 = vmatprep.subr.bf16.mxu1 %v2319_v58 }
  0x73   : > { %2121 = vmatprep.subr.bf16.mxu0 %v2319_v58 }
  0x75   : > { %2142 = vmatpush3.bf16.msra.mxu1 %v2307_v6 }
  0x76   : > { %2122 = vmatpush3.bf16.msra.mxu0 %v2307_v6 }
  0x77   : > { %1509 = vmatmul.mubr.bf16.gmra.mrb[32].mxu0 %v2305_v7 }
  0x78   : > { %1566 = vmatmul.mubr.bf16.gmra.mrb[32].mxu1 %v2306_v8  ;;  %2123 = vmatprep.mubr.msk.bf16.mxu0 %vm2320_vm0, %v2319_v58 }
  0x79   : > { %2127 = vmatprep.mubr.msk.bf16.mxu1 %vm2320_vm0, %v2319_v58 }
  0x7f   : > { %2124 = vmatmul.mubr.msk.bf16.vlgmr.msra.gmra.mrb[36].mxu0 %vm1222_vm1, %v2308_v9 }
  0x80   : > { %2128 = vmatmul.mubr.msk.bf16.vlgmr.msra.gmra.mrb[36].mxu1 %vm1222_vm1, %v2309_v10 }
  0x81   : > { %2131 = vmatprep.mubr.msk.bf16.mxu1 %vm2320_vm0, %v2319_v58 }
  0x88   : > { %2132 = vmatmul.mubr.msk.bf16.gmra.mrb[40].mxu1 %vm1222_vm1, %v2310_v11 }
  0xfa   : > { %v1920_v12 = vpop.f32.mrb[0].mxu0 }
  0xfb   : > { %v1954_v13 = vpop.f32.mrb[0].mxu1  ;;  %v1921_v15 = vpop.f32.mrb[1].mxu0 }
  0xfc   : > { %v1922_v16 = vadd.f32 %v1921_v15, %v1920_v12  ;;  %v1955_v17 = vpop.f32.mrb[1].mxu1  ;;  %v1923_v18 = vpop.f32.mrb[2].mxu0 }
  0xfd   : > { %v1956_v19 = vadd.f32 %v1955_v17, %v1954_v13  ;;  %v1957_v20 = vpop.f32.mrb[2].mxu1  ;;  %v1924_v21 = vpop.f32.mrb[3].mxu0 }
  0xfe   : > { %v1267_v22 = vadd.f32 %v1922_v16, %v1730_v14  ;;  %v1925_v23 = vadd.f32 %v1924_v21, %v1923_v18  ;;  %v1958_v24 = vpop.f32.mrb[3].mxu1 }
  0xff   : > { %v1959_v25 = vadd.f32 %v1958_v24, %v1957_v20 }
 0x100   : > { %v1324_v26 = vadd.f32 %v1956_v19, %v1267_v22  ;;  %v1270_v27 = vadd.f32 %v1925_v23, %v1730_v14 }
 0x102   : > { %v1327_v28 = vadd.f32 %v1959_v25, %v1270_v27  ;;  %v1926_v29 = vpop.f32.mrb[4].mxu0 }
 0x103   : > { %v1927_v30 = vpop.f32.mrb[5].mxu0  ;;  %v1960_v36 = vpop.f32.mrb[4].mxu1 }
 0x104   : > { %v1928_v31 = vadd.f32 %v1927_v30, %v1926_v29  ;;  %v1929_v32 = vpop.f32.mrb[6].mxu0  ;;  %v1961_v37 = vpop.f32.mrb[5].mxu1 }
 0x105   : > { %v1930_v33 = vpop.f32.mrb[7].mxu0  ;;  %v1962_v39 = vadd.f32 %v1961_v37, %v1960_v36  ;;  %v1963_v40 = vpop.f32.mrb[6].mxu1 }
 0x106   : > { %v1931_v34 = vadd.f32 %v1930_v33, %v1929_v32  ;;  %v1275_v35 = vadd.f32 %v1928_v31, %v1730_v14  ;;  %v1964_v41 = vpop.f32.mrb[7].mxu1 }
 0x107   : > { %v1965_v43 = vadd.f32 %v1964_v41, %v1963_v40 }
 0x108   : > { %v1278_v38 = vadd.f32 %v1931_v34, %v1730_v14  ;;  %v1332_v42 = vadd.f32 %v1962_v39, %v1275_v35 }
 0x10a   : > { %v1335_v44 = vadd.f32 %v1965_v43, %v1278_v38  ;;  %v1932_v45 = vpop.f32.mrb[8].mxu0 }
 0x10b   : > { %v1933_v46 = vpop.f32.mrb[9].mxu0  ;;  %v1966_v52 = vpop.f32.mrb[8].mxu1 }
 0x10c   : > { %v1934_v47 = vadd.f32 %v1933_v46, %v1932_v45  ;;  %v1935_v48 = vpop.f32.mrb[10].mxu0  ;;  %v1967_v53 = vpop.f32.mrb[9].mxu1 }
 0x10d   : > { %v1936_v49 = vpop.f32.mrb[11].mxu0  ;;  %v1968_v55 = vadd.f32 %v1967_v53, %v1966_v52  ;;  %v1969_v56 = vpop.f32.mrb[10].mxu1 }
 0x10e   : > { %v1937_v50 = vadd.f32 %v1936_v49, %v1935_v48  ;;  %v1283_v51 = vadd.f32 %v1934_v47, %v1730_v14  ;;  %v1970_v57 = vpop.f32.mrb[11].mxu1 }
 0x10f   : > { %v1971_v59 = vadd.f32 %v1970_v57, %v1969_v56 }
 0x110   : > { %v1286_v54 = vadd.f32 %v1937_v50, %v1730_v14  ;;  %v1340_v58 = vadd.f32 %v1968_v55, %v1283_v51 }
 0x112   : > { %v1343_v60 = vadd.f32 %v1971_v59, %v1286_v54 }
 0x11a   : > { %v1988_v61 = vpop.f32.mrb[12].mxu0 }
 0x11b   : > { %v2022_v62 = vpop.f32.mrb[12].mxu1  ;;  %v1989_v63 = vpop.f32.mrb[13].mxu0 }
 0x11c   : > { %v1990_v0 = vadd.f32 %v1989_v63, %v1988_v61  ;;  %v2023_v1 = vpop.f32.mrb[13].mxu1  ;;  %v1991_v2 = vpop.f32.mrb[14].mxu0 }
 0x11d   : > { %v2024_v3 = vadd.f32 %v2023_v1, %v2022_v62  ;;  %v2025_v4 = vpop.f32.mrb[14].mxu1  ;;  %v1992_v5 = vpop.f32.mrb[15].mxu0 }
 0x11e   : > { %v1381_v6 = vadd.f32 %v1990_v0, %v1324_v26  ;;  %v1993_v7 = vadd.f32 %v1992_v5, %v1991_v2  ;;  %v2026_v8 = vpop.f32.mrb[15].mxu1 }
 0x11f   : > { %v2027_v9 = vadd.f32 %v2026_v8, %v2025_v4 }
 0x120   : > { %v1438_v10 = vadd.f32 %v2024_v3, %v1381_v6  ;;  %v1384_v11 = vadd.f32 %v1993_v7, %v1327_v28 }
 0x122   : > { %v1441_v12 = vadd.f32 %v2027_v9, %v1384_v11  ;;  %v1994_v13 = vpop.f32.mrb[16].mxu0 }
 0x123   : > { %v1995_v14 = vpop.f32.mrb[17].mxu0  ;;  %v2028_v20 = vpop.f32.mrb[16].mxu1 }
 0x124   : > { %v1996_v15 = vadd.f32 %v1995_v14, %v1994_v13  ;;  %v1997_v16 = vpop.f32.mrb[18].mxu0  ;;  %v2029_v22 = vpop.f32.mrb[17].mxu1 }
 0x125   : > { %v1998_v17 = vpop.f32.mrb[19].mxu0  ;;  %v2030_v23 = vadd.f32 %v2029_v22, %v2028_v20  ;;  %v2031_v24 = vpop.f32.mrb[18].mxu1 }
 0x126   : > { %v1389_v18 = vadd.f32 %v1996_v15, %v1332_v42  ;;  %v1999_v19 = vadd.f32 %v1998_v17, %v1997_v16  ;;  %v2032_v25 = vpop.f32.mrb[19].mxu1 }
 0x127   : > { %v2033_v27 = vadd.f32 %v2032_v25, %v2031_v24 }
 0x128   : > { %v1392_v21 = vadd.f32 %v1999_v19, %v1335_v44  ;;  %v1446_v26 = vadd.f32 %v2030_v23, %v1389_v18 }
 0x12a   : > { %v1449_v29 = vadd.f32 %v2033_v27, %v1392_v21  ;;  %v2000_v30 = vpop.f32.mrb[20].mxu0 }
 0x12b   : > { %v2001_v31 = vpop.f32.mrb[21].mxu0  ;;  %v2034_v36 = vpop.f32.mrb[20].mxu1 }
 0x12c   : > { %v2002_v28 = vadd.f32 %v2001_v31, %v2000_v30  ;;  %v2003_v32 = vpop.f32.mrb[22].mxu0  ;;  %v2035_v38 = vpop.f32.mrb[21].mxu1 }
 0x12d   : > { %v2004_v33 = vpop.f32.mrb[23].mxu0  ;;  %v2036_v39 = vadd.f32 %v2035_v38, %v2034_v36  ;;  %v2037_v40 = vpop.f32.mrb[22].mxu1 }
 0x12e   : > { %v1397_v34 = vadd.f32 %v2002_v28, %v1340_v58  ;;  %v2005_v35 = vadd.f32 %v2004_v33, %v2003_v32  ;;  %v2038_v41 = vpop.f32.mrb[23].mxu1 }
 0x12f   : > { %v2039_v43 = vadd.f32 %v2038_v41, %v2037_v40 }
 0x130   : > { %v1400_v37 = vadd.f32 %v2005_v35, %v1343_v60  ;;  %v1454_v42 = vadd.f32 %v2036_v39, %v1397_v34 }
 0x132   : > { %v1457_v44 = vadd.f32 %v2039_v43, %v1400_v37 }
 0x13a   : > { %v2056_v45 = vpop.f32.mrb[24].mxu0 }
 0x13b   : > { %v2090_v46 = vpop.f32.mrb[24].mxu1  ;;  %v2057_v47 = vpop.f32.mrb[25].mxu0 }
 0x13c   : > { %v2058_v48 = vadd.f32 %v2057_v47, %v2056_v45  ;;  %v2091_v49 = vpop.f32.mrb[25].mxu1  ;;  %v2059_v50 = vpop.f32.mrb[26].mxu0 }
 0x13d   : > { %v2092_v51 = vadd.f32 %v2091_v49, %v2090_v46  ;;  %v2093_v52 = vpop.f32.mrb[26].mxu1  ;;  %v2060_v53 = vpop.f32.mrb[27].mxu0 }
 0x13e   : > { %v1495_v54 = vadd.f32 %v2058_v48, %v1438_v10  ;;  %v2061_v55 = vadd.f32 %v2060_v53, %v2059_v50  ;;  %v2094_v56 = vpop.f32.mrb[27].mxu1 }
 0x13f   : > { %v2095_v57 = vadd.f32 %v2094_v56, %v2093_v52 }
 0x140   : > { %v1498_v58 = vadd.f32 %v2061_v55, %v1441_v12  ;;  %v1552_v59 = vadd.f32 %v2092_v51, %v1495_v54 }
 0x142   : > { %v2062_v60 = vpop.f32.mrb[28].mxu0  ;;  %v1555_v61 = vadd.f32 %v2095_v57, %v1498_v58 }
 0x143   : > { %v2096_v62 = vpop.f32.mrb[28].mxu1  ;;  %v2063_v63 = vpop.f32.mrb[29].mxu0 }
 0x144   : > { %v2064_v0 = vadd.f32 %v2063_v63, %v2062_v60  ;;  %v2097_v1 = vpop.f32.mrb[29].mxu1  ;;  %v2065_v2 = vpop.f32.mrb[30].mxu0 }
 0x145   : > { %v2098_v3 = vadd.f32 %v2097_v1, %v2096_v62  ;;  %v2099_v4 = vpop.f32.mrb[30].mxu1  ;;  %v2066_v5 = vpop.f32.mrb[31].mxu0 }
 0x146   : > { %v1503_v6 = vadd.f32 %v2064_v0, %v1446_v26  ;;  %v2067_v7 = vadd.f32 %v2066_v5, %v2065_v2  ;;  %v2100_v8 = vpop.f32.mrb[31].mxu1 }
 0x147   : > { %v2101_v9 = vadd.f32 %v2100_v8, %v2099_v4 }
 0x148   : > { %v1506_v10 = vadd.f32 %v2067_v7, %v1449_v29  ;;  %v1560_v11 = vadd.f32 %v2098_v3, %v1503_v6 }
 0x14a   : > { %v2068_v13 = vpop.f32.mrb[32].mxu0  ;;  %v1563_v14 = vadd.f32 %v2101_v9, %v1506_v10 }
 0x14b   : > { %v2102_v12 = vpop.f32.mrb[32].mxu1  ;;  %v2069_v15 = vpop.f32.mrb[33].mxu0 }
 0x14c   : > { %v2070_v16 = vadd.f32 %v2069_v15, %v2068_v13  ;;  %v2103_v17 = vpop.f32.mrb[33].mxu1  ;;  %v2071_v18 = vpop.f32.mrb[34].mxu0 }
 0x14d   : > { %v2104_v19 = vadd.f32 %v2103_v17, %v2102_v12  ;;  %v2105_v20 = vpop.f32.mrb[34].mxu1  ;;  %v2072_v21 = vpop.f32.mrb[35].mxu0 }
 0x14e   : > { %v1511_v22 = vadd.f32 %v2070_v16, %v1454_v42  ;;  %v2073_v23 = vadd.f32 %v2072_v21, %v2071_v18  ;;  %v2106_v24 = vpop.f32.mrb[35].mxu1 }
 0x14f   : > { %v2107_v25 = vadd.f32 %v2106_v24, %v2105_v20 }
 0x150   : > { %v1514_v26 = vadd.f32 %v2073_v23, %v1457_v44  ;;  %v1568_v27 = vadd.f32 %v2104_v19, %v1511_v22 }
 0x152   : > { %v1608_v30 = vpop.f32.mrb[36].mxu0  ;;  %v1571_v29 = vadd.f32 %v2107_v25, %v1514_v26 }
 0x153   : > { %v1609_v31 = vadd.f32 %v1608_v30, %v1552_v59  ;;  %v1616_v28 = vpop.f32.mrb[36].mxu1  ;;  %v2125_v32 = vpop.f32.mrb[37].mxu0 }
 0x154   : > { %v1617_v33 = vadd.f32 %v1616_v28, %v1560_v11  ;;  %v2129_v34 = vpop.f32.mrb[37].mxu1  ;;  %v1611_v35 = vpop.f32.mrb[38].mxu0 }
 0x155   : > { %v1612_v36 = vadd.f32 %v1611_v35, %v1555_v61  ;;  %v1619_v37 = vpop.f32.mrb[38].mxu1  ;;  %v2126_v38 = vpop.f32.mrb[39].mxu0  ;;  %v1631_v41 = vmax.f32 %v1609_v31, 0.0 }
 0x156   : > { %v1620_v39 = vadd.f32 %v1619_v37, %v1563_v14  ;;  %v2130_v40 = vpop.f32.mrb[39].mxu1  ;;  %v1633_v43 = vmax.f32 %v1617_v33, 0.0 }
 0x157   : > { %v1632_v42 = vmax.f32 %v1612_v36, 0.0 }
 0x158   : > { %v1634_v44 = vmax.f32 %v1620_v39, 0.0 }
 0x159   : > { %v1890_v45 = vpack.c.bf16 %v1632_v42, %v1631_v41 }
 0x15a   : > { %v1895_v46 = vpack.c.bf16 %v1634_v44, %v1633_v43 }
 0x15b   : > { %1891 = vst [vmem:[%s175_s28] sm:$0xff] %v1890_v45   ;;  %v1624_v47 = vpop.f32.mrb[40].mxu1 }
 0x15c   : > { %1902 = vst [vmem:[%s175_s28 + $0x8] sm:$0xff] %v1895_v46   ;;  %v1625_v48 = vadd.f32 %v1624_v47, %v1568_v27  ;;  %v2133_v49 = vpop.f32.mrb[41].mxu1 }
 0x15d   : > { %v1627_v50 = vpop.f32.mrb[42].mxu1 }
 0x15e   : > { %v1628_v51 = vadd.f32 %v1627_v50, %v1571_v29  ;;  %v2134_v52 = vpop.f32.mrb[43].mxu1  ;;  %v1635_v53 = vmax.f32 %v1625_v48, 0.0 }
 0x160   : > { %v1636_v54 = vmax.f32 %v1628_v51, 0.0 }
 0x162   : > { %v1900_v55 = vpack.c.bf16 %v1636_v54, %v1635_v53 }
 0x164   : > { %1903 = vst [vmem:[%s175_s28 + $0x10] sm:$0xff] %v1900_v55  }
 0x165 PF: > { %s13_s12 = sadd.s32 1, %s2317_s12  }
 0x166   : > { %p10_p4 = scmp.ge.s32.totalorder %s13_s12, 4  }
 0x168   :  { %12 = sbr.rel (!%p10_p4) target bundleno = 1 (0x1), region = 62 }

// kernel: _lambda_.9
= control target key start
LH: loop header
LB: loop body
LE: loop exit
PB: predicated region body
PF: predicated region fallthrough
CT: control target
= control target key end

     0   :  { %s1063_s0 = inlined_call_operand.vmem [shape: bf16[2,6,8,128], index: 0, kind: input, shape index: {}]   ;;  %s1064_s1 = inlined_call_operand.vmem [shape: f32[1,128], index: 1, kind: input, shape index: {}]   ;;  %s1065_s2 = inlined_call_operand.<no memory space> [shape: f32[1,1], index: 2, kind: input, shape index: {}]   ;;  %s1066_s3 = inlined_call_operand.hbm [shape: f32[2,2], index: 3, kind: output, shape index: {}]  }
   0x1   :  { %v8_v0 = vstv %s1065_s2 }
   0x2   :  { %9 = vst [vmem:[#allocation2] sm:$0x1] %v8_v0 }
   0x3   :  { %v706_v1 = vld [vmem:[%s1064_s1] ss:$0 sm:$0xff]  ;;  %v741_v2 = vld [vmem:[%s1063_s0 + $0x18] sm:$0xff]   ;;  %v800_v8 = vmov 0   ;;  %v739_v10 = vld [vmem:[%s1063_s0 + $0x8] sm:$0xff]  }
   0x4   :  { %v716_v3 = vld [vmem:[%s1063_s0] sm:$0xff]   ;;  %v729_v4 = vunpack.c.l.bf16 %v741_v2  ;;  %v730_v6 = vunpack.c.h.bf16 %v741_v2  ;;  %747 = vset.pattern.permute.xlu1 %v800_v8  ;;  %746 = vset.pattern.permute.xlu0 %v800_v8 }
   0x5   :  { %v717_v5 = vunpack.c.l.bf16 %v716_v3  ;;  %v718_v7 = vunpack.c.h.bf16 %v716_v3  ;;  %v742_v9 = vld [vmem:[%s1063_s0 + $0x20] sm:$0xff]  }
   0x6   :  { %10 = vsyncpa [#allocation4], 0  ;;  %v397_v11 = vmul.f32 %v729_v4, %v706_v1  ;;  %v398_v13 = vmul.f32 %v730_v6, %v706_v1  ;;  %v733_v15 = vunpack.c.l.bf16 %v742_v9  ;;  %v721_v16 = vunpack.c.l.bf16 %v739_v10  ;;  %v743_v21 = vld [vmem:[%s1063_s0 + $0x28] sm:$0xff]   ;;  %v740_v22 = vld [vmem:[%s1063_s0 + $0x10] sm:$0xff]   ;;  %s801_s0 = smov [#allocation3]  }
   0x7   :  { %v46_v12 = vmul.f32 %v717_v5, %v706_v1  ;;  %v47_v14 = vmul.f32 %v718_v7, %v706_v1  ;;  %v734_v19 = vunpack.c.h.bf16 %v742_v9  ;;  %v722_v20 = vunpack.c.h.bf16 %v739_v10  ;;  %s696_s26 = sshll.u32 %s801_s0, 4  ;;  %s697_s26 = int_to_ptr.vmem [resolvable:$true] %s696_s26 }
   0x8   :  { %403 = vadd.xlane.f32.xlu1 %v397_v11  ;;  %v399_v17 = vmul.f32 %v733_v15, %v706_v1  ;;  %v48_v18 = vmul.f32 %v721_v16, %v706_v1  ;;  %v737_v25 = vunpack.c.l.bf16 %v743_v21  ;;  %v725_v26 = vunpack.c.l.bf16 %v740_v22  ;;  %s776_s27 = scalar_lea.vmem %s697_s26, 32  ;;  %p781_p1 = scmp.lt.s32.totalorder %s697_s26, %s697_s26 }
   0x9   :  { %52 = vadd.xlane.f32.xlu0 %v46_v12  ;;  %v400_v23 = vmul.f32 %v734_v19, %v706_v1  ;;  %v49_v24 = vmul.f32 %v722_v20, %v706_v1  ;;  %v738_v29 = vunpack.c.h.bf16 %v743_v21  ;;  %v726_v30 = vunpack.c.h.bf16 %v740_v22  ;;  %v714_v33 = vld [vmem:[#allocation2] ss:$0 sm:$0xff]  ;;  %p777_p0 = scmp.ne.s32.totalorder %s697_s26, %s776_s27  ;;  %p782_p2 = scmp.lt.s32.totalorder %s776_s27, %s776_s27 }
   0xa   :  { %v401_v27 = vmul.f32 %v737_v25, %v706_v1  ;;  %v50_v28 = vmul.f32 %v725_v26, %v706_v1  ;;  %v18_v42 = vlaneseq  ;;  %vm110_vm0 = vcmask 1041409  }
   0xb   :  { %v402_v31 = vmul.f32 %v738_v29, %v706_v1  ;;  %v51_v32 = vmul.f32 %v726_v30, %v706_v1  ;;  %vm112_vm1 = vcmask 1042434   ;;  %vm114_vm2 = vcmask 1043459   ;;  %p783_p3 = por %p782_p2, %p781_p1 }
   0xc   :  { %405 = vadd.xlane.f32.xlu1 %v398_v13  ;;  %v846_v45 = vand.u32 127, %v18_v42  ;;  %v848_v46 = vshrl.u32 %v18_v42, 7  ;;  %vm116_vm3 = vcmask 1044484   ;;  %vm118_vm4 = vcmask 1045509  }
   0xd   :  { %54 = vadd.xlane.f32.xlu0 %v47_v14  ;;  %vm121_vm5 = vcmask 62464   ;;  %vm125_vm6 = vcmask 1045504   ;;  %vm382_vm8 = vcmask 8192   ;;  %p784_p4 = pnand %p783_p3, %p777_p0 }
   0xe   :  { %v852_v48 = vsub.s32 %v846_v45, %v848_v46  ;;  %vm380_vm7 = vcmp.eq.s32.totalorder %v846_v45, 0 }
  0x10   :  { %407 = vadd.xlane.f32.xlu1 %v399_v17 }
  0x11   :  { %56 = vadd.xlane.f32.xlu0 %v48_v18 }
  0x14   :  { %409 = vadd.xlane.f32.xlu1 %v400_v23 }
  0x15   :  { %58 = vadd.xlane.f32.xlu0 %v49_v24 }
  0x18   :  { %411 = vadd.xlane.f32.xlu1 %v401_v27 }
  0x19   :  { %60 = vadd.xlane.f32.xlu0 %v50_v28 }
  0x1c   :  { %413 = vadd.xlane.f32.xlu1 %v402_v31 }
  0x1d   :  { %62 = vadd.xlane.f32.xlu0 %v51_v32 }
  0x2d   :  { %422 = vperm.xlu1 %747, %v714_v33  }
  0x33   :  { %71 = vperm.xlu0 %746, %v714_v33  }
  0x95   :  { %v404_v34 = vpop.xlane.xlu1 %403 }
  0x96   :  { %v53_v35 = vpop.xlane.xlu0 %52 }
  0x99   :  { %v406_v36 = vpop.xlane.xlu1 %405 }
  0x9a   :  { %v55_v37 = vpop.xlane.xlu0 %54 }
  0x9d   :  { %v408_v38 = vpop.xlane.xlu1 %407 }
  0x9e   :  { %v57_v39 = vpop.xlane.xlu0 %56 }
  0xa1   :  { %v410_v40 = vpop.xlane.xlu1 %409 }
  0xa2   :  { %v59_v41 = vpop.xlane.xlu0 %58 }
  0xa5   :  { %v412_v43 = vpop.xlane.xlu1 %411 }
  0xa6   :  { %v61_v44 = vpop.xlane.xlu0 %60 }
  0xa9   :  { %v414_v47 = vpop.xlane.xlu1 %413 }
  0xaa   :  { %v63_v49 = vpop.xlane.xlu0 %62 }
  0xad   :  { %v423_v50 = vpop.permute.xlu1 %422 }
  0xae   :  { %v854_v51 = vadd.f32 %v423_v50, %v404_v34  ;;  %v856_v52 = vadd.f32 %v423_v50, %v406_v36  ;;  %v858_v53 = vadd.f32 %v423_v50, %v408_v38  ;;  %v860_v54 = vadd.f32 %v423_v50, %v410_v40 }
  0xaf   :  { %v862_v55 = vadd.f32 %v423_v50, %v412_v43  ;;  %v864_v56 = vadd.f32 %v423_v50, %v414_v47 }
  0xb0   :  { %v440_v57 = vrot.slane %v854_v51, %v852_v48  ;;  %v444_v58 = vrot.slane %v856_v52, %v852_v48  ;;  %v448_v59 = vrot.slane %v858_v53, %v852_v48  ;;  %v452_v61 = vrot.slane %v860_v54, %v852_v48 }
  0xb1   :  { %v456_v62 = vrot.slane %v862_v55, %v852_v48  ;;  %v460_v3 = vrot.slane %v864_v56, %v852_v48 }
  0xb2   :  { %v72_v60 = vpop.permute.xlu0 %71  ;;  %v461_v4 = vsel %vm110_vm0, %v444_v58, %v440_v57 }
  0xb3   :  { %v74_v63 = vadd.f32 %v72_v60, %v53_v35  ;;  %v75_v0 = vadd.f32 %v72_v60, %v55_v37  ;;  %v76_v1 = vadd.f32 %v72_v60, %v57_v39  ;;  %v77_v2 = vadd.f32 %v72_v60, %v59_v41 }
  0xb4   :  { %v78_v5 = vadd.f32 %v72_v60, %v61_v44  ;;  %v879_v6 = vadd.f32 %v72_v60, %v63_v49  ;;  %v462_v9 = vsel %vm112_vm1, %v448_v59, %v461_v4 }
  0xb5   :  { %v89_v7 = vrot.slane %v74_v63, %v852_v48  ;;  %v93_v8 = vrot.slane %v75_v0, %v852_v48  ;;  %v97_v10 = vrot.slane %v76_v1, %v852_v48  ;;  %v463_v11 = vsel %vm114_vm2, %v452_v61, %v462_v9 }
  0xb6   :  { %v464_v12 = vsel %vm116_vm3, %v456_v62, %v463_v11  ;;  %v101_v13 = vrot.slane %v77_v2, %v852_v48  ;;  %v105_v16 = vrot.slane %v78_v5, %v852_v48  ;;  %v109_v19 = vrot.slane %v879_v6, %v852_v48 }
  0xb7   :  { %v111_v14 = vsel %vm110_vm0, %v93_v8, %v89_v7  ;;  %v465_v15 = vsel %vm118_vm4, %v460_v3, %v464_v12 }
  0xb8   :  { %v113_v17 = vsel %vm112_vm1, %v97_v10, %v111_v14  ;;  %v467_v18 = vsel %vm121_vm5, %v465_v15, -inf }
  0xb9   :  { %v115_v20 = vsel %vm114_vm2, %v101_v13, %v113_v17  ;;  %468 = vmax.xlane.f32.xlu0 %v467_v18 }
  0xba   :  { %v117_v21 = vsel %vm116_vm3, %v105_v16, %v115_v20 }
  0xbb   :  { %v119_v22 = vsel %vm118_vm4, %v109_v19, %v117_v21 }
  0xbc   :  { %v122_v23 = vsel %vm121_vm5, %v119_v22, -inf }
  0xbd   :  { %123 = vmax.xlane.f32.xlu1 %v122_v23 }
 0x146   :  { %v469_v24 = vpop.xlane.xlu0 %468 }
 0x147   :  { %v470_v25 = vsel %vm125_vm6, %v469_v24, -inf }
 0x148   :  { %v471_v26 = vrot.slane %v470_v25, 4 }
 0x14a   :  { %v124_v27 = vpop.xlane.xlu1 %123  ;;  %v472_v28 = vmax.f32 %v470_v25, %v471_v26 }
 0x14b   :  { %v126_v29 = vsel %vm125_vm6, %v124_v27, -inf }
 0x14c   :  { %v127_v30 = vrot.slane %v126_v29, 4  ;;  %v473_v31 = vrot.slane %v472_v28, 2 }
 0x14e   :  { %v128_v32 = vmax.f32 %v126_v29, %v127_v30  ;;  %v474_v33 = vmax.f32 %v472_v28, %v473_v31 }
 0x150   :  { %v129_v34 = vrot.slane %v128_v32, 2  ;;  %v475_v35 = vrot.slane %v474_v33, 1 }
 0x152   :  { %v130_v36 = vmax.f32 %v128_v32, %v129_v34  ;;  %v476_v37 = vmax.f32 %v474_v33, %v475_v35 }
 0x154   :  { %v131_v38 = vrot.slane %v130_v36, 1  ;;  %v477_v39 = vsub.f32 %v854_v51, %v476_v37  ;;  %v478_v40 = vsub.f32 %v856_v52, %v476_v37  ;;  %v479_v41 = vsub.f32 %v858_v53, %v476_v37 }
 0x155   :  { %v480_v61 = vsub.f32 %v860_v54, %v476_v37  ;;  %v481_v53 = vsub.f32 %v862_v55, %v476_v37 }
 0x156   :  { %v132_v42 = vmax.f32 %v130_v36, %v131_v38  ;;  %v483_v43 = vmul.f32 1.442695, %v477_v39  ;;  %v485_v44 = vmul.f32 1.442695, %v478_v40  ;;  %v487_v47 = vmul.f32 1.442695, %v479_v41 }
 0x157   :  { %v20_v39 = vcvt.s32.f32 %v846_v45 }
 0x158   :  { %v133_v49 = vsub.f32 %v74_v63, %v132_v42  ;;  %v134_v50 = vsub.f32 %v75_v0, %v132_v42  ;;  %v135_v57 = vsub.f32 %v76_v1, %v132_v42  ;;  %v136_v58 = vsub.f32 %v77_v2, %v132_v42 }
 0x159   :  { %748 = vpow2.f32 %v483_v43  ;;  %v137_v59 = vsub.f32 %v78_v5, %v132_v42  ;;  %v138_v60 = vsub.f32 %v879_v6, %v132_v42  ;;  %v482_v63 = vsub.f32 %v864_v56, %v476_v37 }
 0x15a   :  { %750 = vpow2.f32 %v485_v44  ;;  %v139_v51 = vmul.f32 1.442695, %v133_v49  ;;  %v141_v62 = vmul.f32 1.442695, %v134_v50  ;;  %v143_v52 = vmul.f32 1.442695, %v135_v57 }
 0x15b   :  { %v145_v3 = vmul.f32 1.442695, %v136_v58  ;;  %752 = vpow2.f32 %v487_v47  ;;  %v147_v4 = vmul.f32 1.442695, %v137_v59  ;;  %v149_v0 = vmul.f32 1.442695, %v138_v60 }
 0x15c   :  { %754 = vpow2.f32 %v139_v51  ;;  %v489_v1 = vmul.f32 1.442695, %v480_v61  ;;  %v491_v2 = vmul.f32 1.442695, %v481_v53  ;;  %v493_v54 = vmul.f32 1.442695, %v482_v63 }
 0x15d   :  { %756 = vpow2.f32 %v141_v62  ;;  %v21_v40 = vmul.f32 0.2857143, %v20_v39 }
 0x15e   :  { %758 = vpow2.f32 %v143_v52 }
 0x15f   :  { %760 = vpow2.f32 %v145_v3  ;;  %v704_v41 = vadd.f32 -1.0, %v21_v40 }
 0x160   :  { %762 = vpow2.f32 %v147_v4 }
 0x161   :  { %764 = vpow2.f32 %v149_v0 }
 0x162   :  { %766 = vpow2.f32 %v489_v1 }
 0x163   :  { %v908_v5 = vpop.eup %748  ;;  %768 = vpow2.f32 %v491_v2  ;;  %v25_v2 = vcvt.s32.f32 %v848_v46 }
 0x164   :  { %v910_v6 = vpop.eup %750  ;;  %770 = vpow2.f32 %v493_v54  ;;  %v504_v56 = vrot.slane %v908_v5, %v852_v48 }
 0x165   :  { %v912_v55 = vpop.eup %752  ;;  %v508_v7 = vrot.slane %v910_v6, %v852_v48 }
 0x166   :  { %v755_v8 = vpop.eup %754  ;;  %v512_v13 = vrot.slane %v912_v55, %v852_v48 }
 0x167   :  { %v757_v9 = vpop.eup %756  ;;  %v160_v10 = vrot.slane %v755_v8, %v852_v48  ;;  %v525_v16 = vsel %vm110_vm0, %v508_v7, %v504_v56 }
 0x168   :  { %v759_v11 = vpop.eup %758  ;;  %v164_v12 = vrot.slane %v757_v9, %v852_v48  ;;  %v526_v26 = vsel %vm112_vm1, %v512_v13, %v525_v16  ;;  %v26_v13 = vmul.f32 0.4, %v25_v2 }
 0x169   :  { %v922_v14 = vpop.eup %760  ;;  %v168_v15 = vrot.slane %v759_v11, %v852_v48 }
 0x16a   :  { %v926_v17 = vpop.eup %762  ;;  %v172_v18 = vrot.slane %v922_v14, %v852_v48  ;;  %v181_v19 = vsel %vm110_vm0, %v164_v12, %v160_v10 }
 0x16b   :  { %v931_v20 = vpop.eup %764  ;;  %v176_v21 = vrot.slane %v926_v17, %v852_v48  ;;  %v182_v22 = vsel %vm112_vm1, %v168_v15, %v181_v19  ;;  %v282_v19 = vsub.s32 0, %v848_v46 }
 0x16c   :  { %v936_v23 = vpop.eup %766  ;;  %v180_v24 = vrot.slane %v931_v20, %v852_v48  ;;  %v183_v25 = vsel %vm114_vm2, %v172_v18, %v182_v22  ;;  %v705_v18 = vadd.f32 -1.0, %v26_v13 }
 0x16d   :  { %v942_v27 = vpop.eup %768  ;;  %v184_v28 = vsel %vm116_vm3, %v176_v21, %v183_v25  ;;  %v516_v29 = vrot.slane %v936_v23, %v852_v48 }
 0x16e   :  { %v947_v30 = vpop.eup %770  ;;  %v185_v31 = vsel %vm118_vm4, %v180_v24, %v184_v28  ;;  %v520_v32 = vrot.slane %v942_v27, %v852_v48  ;;  %v283_v22 = vrot.slane %v705_v18, %v282_v19  ;;  %v286_v24 = vsub.s32 1, %v848_v46 }
 0x16f   :  { %v187_v33 = vsel %vm121_vm5, %v185_v31, 0.0  ;;  %v524_v34 = vrot.slane %v947_v30, %v852_v48  ;;  %v527_v35 = vsel %vm114_vm2, %v516_v29, %v526_v26  ;;  %v290_v28 = vsub.s32 2, %v848_v46 }
 0x170   :  { %188 = vadd.xlane.f32.xlu1 %v187_v33  ;;  %v528_v36 = vsel %vm116_vm3, %v520_v32, %v527_v35  ;;  %v287_v26 = vrot.slane %v705_v18, %v286_v24 }
 0x171   :  { %v529_v37 = vsel %vm118_vm4, %v524_v34, %v528_v36  ;;  %v291_v32 = vrot.slane %v705_v18, %v290_v28 }
 0x172   :  { %v531_v38 = vsel %vm121_vm5, %v529_v37, 0.0 }
 0x174   :  { %532 = vadd.xlane.f32.xlu1 %v531_v38 }
 0x185   :  { %206 = vbcast.lane.b32.xlu1 %v704_v41, 256  ;;  %v298_v41 = vsub.s32 4, %v848_v46 }
 0x1fd   :  { %v189_v42 = vpop.xlane.xlu1 %188 }
 0x1fe   :  { %v190_v43 = vsel %vm125_vm6, %v189_v42, 0.0 }
 0x1ff   :  { %v191_v44 = vrot.slane %v190_v43, 4 }
 0x201   :  { %v192_v47 = vadd.f32 %v191_v44, %v190_v43  ;;  %v533_v49 = vpop.xlane.xlu1 %532  ;;  %v299_v44 = vrot.slane %v705_v18, %v298_v41 }
 0x202   :  { %v534_v50 = vsel %vm125_vm6, %v533_v49, 0.0 }
 0x203   :  { %v193_v57 = vrot.slane %v192_v47, 2  ;;  %v535_v58 = vrot.slane %v534_v50, 4 }
 0x205   :  { %v194_v59 = vadd.f32 %v193_v57, %v192_v47  ;;  %v536_v60 = vadd.f32 %v535_v58, %v534_v50  ;;  %v962_v63 = vpop.permute.xlu1 %206 }
 0x207   :  { %v195_v61 = vrot.slane %v194_v59, 1  ;;  %v537_v51 = vrot.slane %v536_v60, 2 }
 0x209   :  { %v196_v62 = vadd.f32 %v195_v61, %v194_v59  ;;  %v538_v52 = vadd.f32 %v537_v51, %v536_v60 }
 0x20b   :  { %772 = vrcp.f32 %v196_v62  ;;  %v539_v3 = vrot.slane %v538_v52, 1 }
 0x20d   :  { %v540_v53 = vadd.f32 %v539_v3, %v538_v52 }
 0x20f   :  { %774 = vrcp.f32 %v540_v53 }
 0x215   :  { %v773_v4 = vpop.eup %772 }
 0x216   :  { %v199_v0 = vmul.f32 %v773_v4, %v757_v9  ;;  %v198_v1 = vmul.f32 %v773_v4, %v755_v8  ;;  %v200_v7 = vmul.f32 %v773_v4, %v759_v11  ;;  %v201_v9 = vmul.f32 %v773_v4, %v922_v14 }
 0x218   :  { %v210_v54 = vmul.f32 %v962_v63, %v199_v0  ;;  %v209_v56 = vmul.f32 %v962_v63, %v198_v1  ;;  %v211_v15 = vmul.f32 %v962_v63, %v200_v7  ;;  %v212_v11 = vmul.f32 %v962_v63, %v201_v9 }
 0x219   :  { %v775_v10 = vpop.eup %774  ;;  %v310_v33 = vmul.f32 %v283_v22, %v198_v1  ;;  %v311_v36 = vmul.f32 %v287_v26, %v199_v0  ;;  %v312_v39 = vmul.f32 %v291_v32, %v200_v7 }
 0x21a   :  { %225 = vperm.xlu1 %747, %v210_v54   ;;  %222 = vperm.xlu0 %746, %v209_v56   ;;  %v542_v12 = vmul.f32 %v775_v10, %v908_v5  ;;  %v543_v8 = vmul.f32 %v775_v10, %v910_v6  ;;  %v202_v5 = vmul.f32 %v773_v4, %v926_v17 }
 0x21b   :  { %v203_v6 = vmul.f32 %v773_v4, %v931_v20  ;;  %v544_v17 = vmul.f32 %v775_v10, %v912_v55  ;;  %v545_v35 = vmul.f32 %v775_v10, %v936_v23  ;;  %v294_v20 = vsub.s32 3, %v848_v46 }
 0x21c   :  { %v548_v16 = vmul.f32 %v542_v12, %v962_v63  ;;  %v549_v21 = vmul.f32 %v543_v8, %v962_v63  ;;  %v213_v14 = vmul.f32 %v962_v63, %v202_v5  ;;  %v618_v25 = vmul.f32 %v542_v12, %v283_v22 }
 0x21d   :  { %v214_v29 = vmul.f32 %v962_v63, %v203_v6  ;;  %v619_v31 = vmul.f32 %v543_v8, %v287_v26  ;;  %v620_v34 = vmul.f32 %v544_v17, %v291_v32  ;;  %v551_v37 = vmul.f32 %v545_v35, %v962_v63 }
 0x21e   :  { %228 = vperm.xlu1 %747, %v211_v15   ;;  %561 = vperm.xlu0 %746, %v548_v16   ;;  %v295_v38 = vrot.slane %v705_v18, %v294_v20  ;;  %v546_v55 = vmul.f32 %v775_v10, %v942_v27  ;;  %v302_v23 = vsub.s32 5, %v848_v46  ;;  %v547_v47 = vmul.f32 %v775_v10, %v947_v30 }
 0x21f   :  { %v314_v49 = vmul.f32 %v299_v44, %v202_v5  ;;  %v550_v58 = vmul.f32 %v544_v17, %v962_v63 }
 0x220   :  { %v621_v40 = vmul.f32 %v545_v35, %v295_v38  ;;  %v313_v42 = vmul.f32 %v295_v38, %v201_v9  ;;  %v552_v43 = vmul.f32 %v546_v55, %v962_v63  ;;  %v553_v50 = vmul.f32 %v547_v47, %v962_v63 }
 0x221   :  { %v303_v57 = vrot.slane %v705_v18, %v302_v23  ;;  %v622_v46 = vmul.f32 %v546_v55, %v299_v44 }
 0x222   :  { %231 = vperm.xlu1 %747, %v212_v11   ;;  %564 = vperm.xlu0 %746, %v549_v21  }
 0x223   :  { %v315_v27 = vmul.f32 %v303_v57, %v203_v6  ;;  %v623_v59 = vmul.f32 %v547_v47, %v303_v57 }
 0x226   :  { %234 = vperm.xlu1 %747, %v213_v14   ;;  %631 = vperm.xlu0 %746, %v618_v25  }
 0x22a   :  { %237 = vperm.xlu1 %747, %v214_v29   ;;  %634 = vperm.xlu0 %746, %v619_v31  }
 0x22e   :  { %323 = vperm.xlu1 %747, %v310_v33   ;;  %637 = vperm.xlu0 %746, %v620_v34  }
 0x232   :  { %326 = vperm.xlu1 %747, %v311_v36   ;;  %570 = vperm.xlu0 %746, %v551_v37  }
 0x236   :  { %329 = vperm.xlu1 %747, %v312_v39   ;;  %640 = vperm.xlu0 %746, %v621_v40  }
 0x23a   :  { %332 = vperm.xlu1 %747, %v313_v42   ;;  %573 = vperm.xlu0 %746, %v552_v43  }
 0x23e   :  { %335 = vperm.xlu1 %747, %v314_v49   ;;  %576 = vperm.xlu0 %746, %v553_v50  }
 0x242   :  { %338 = vperm.xlu1 %747, %v315_v27  }
 0x246   :  { %567 = vperm.xlu1 %747, %v550_v58  }
 0x24a   :  { %643 = vperm.xlu1 %747, %v622_v46  }
 0x24e   :  { %646 = vperm.xlu1 %747, %v623_v59  }
 0x299   :  { %v226_v60 = vpop.permute.xlu1 %225  ;;  %v223_v61 = vpop.permute.xlu0 %222 }
 0x29a   :  { %v246_v3 = vrot.slane %v226_v60, %v852_v48  ;;  %v242_v53 = vrot.slane %v223_v61, %v852_v48 }
 0x29c   :  { %v263_v54 = vsel %vm110_vm0, %v246_v3, %v242_v53 }
 0x29d   :  { %v229_v30 = vpop.permute.xlu1 %228  ;;  %v562_v51 = vpop.permute.xlu0 %561 }
 0x29e   :  { %v250_v4 = vrot.slane %v229_v30, %v852_v48  ;;  %v581_v37 = vrot.slane %v562_v51, %v852_v48 }
 0x2a0   :  { %v264_v56 = vsel %vm112_vm1, %v250_v4, %v263_v54 }
 0x2a1   :  { %v232_v62 = vpop.permute.xlu1 %231  ;;  %v565_v52 = vpop.permute.xlu0 %564 }
 0x2a2   :  { %v254_v63 = vrot.slane %v232_v62, %v852_v48  ;;  %v585_v35 = vrot.slane %v565_v52, %v852_v48 }
 0x2a4   :  { %v265_v12 = vsel %vm114_vm2, %v254_v63, %v264_v56  ;;  %v602_v41 = vsel %vm110_vm0, %v585_v35, %v581_v37 }
 0x2a5   :  { %v235_v0 = vpop.permute.xlu1 %234  ;;  %v632_v1 = vpop.permute.xlu0 %631 }
 0x2a6   :  { %v258_v2 = vrot.slane %v235_v0, %v852_v48  ;;  %v651_v27 = vrot.slane %v632_v1, %v852_v48 }
 0x2a8   :  { %v266_v15 = vsel %vm116_vm3, %v258_v2, %v265_v12 }
 0x2a9   :  { %v238_v7 = vpop.permute.xlu1 %237  ;;  %v635_v10 = vpop.permute.xlu0 %634 }
 0x2aa   :  { %v262_v13 = vrot.slane %v238_v7, %v852_v48  ;;  %v655_v42 = vrot.slane %v635_v10, %v852_v48 }
 0x2ac   :  { %v267_v16 = vsel %vm118_vm4, %v262_v13, %v266_v15  ;;  %v672_v61 = vsel %vm110_vm0, %v655_v42, %v651_v27 }
 0x2ad   :  { %v324_v9 = vpop.permute.xlu1 %323  ;;  %v269_v8 = vsel %vm121_vm5, %v267_v16, 0.0  ;;  %v638_v18 = vpop.permute.xlu0 %637 }
 0x2ae   :  { %270 = vadd.xlane.f32.xlu0 %v269_v8  ;;  %v343_v6 = vrot.slane %v324_v9, %v852_v48  ;;  %v659_v47 = vrot.slane %v638_v18, %v852_v48 }
 0x2b0   :  { %v673_v51 = vsel %vm112_vm1, %v659_v47, %v672_v61 }
 0x2b1   :  { %v327_v19 = vpop.permute.xlu1 %326  ;;  %v571_v11 = vpop.permute.xlu0 %570 }
 0x2b2   :  { %v347_v24 = vrot.slane %v327_v19, %v852_v48  ;;  %v593_v23 = vrot.slane %v571_v11, %v852_v48 }
 0x2b4   :  { %v364_v29 = vsel %vm110_vm0, %v347_v24, %v343_v6 }
 0x2b5   :  { %v330_v21 = vpop.permute.xlu1 %329  ;;  %v641_v22 = vpop.permute.xlu0 %640 }
 0x2b6   :  { %v351_v14 = vrot.slane %v330_v21, %v852_v48  ;;  %v663_v58 = vrot.slane %v641_v22, %v852_v48 }
 0x2b8   :  { %v365_v17 = vsel %vm112_vm1, %v351_v14, %v364_v29  ;;  %v674_v52 = vsel %vm114_vm2, %v663_v58, %v673_v51 }
 0x2b9   :  { %v333_v5 = vpop.permute.xlu1 %332  ;;  %v574_v31 = vpop.permute.xlu0 %573 }
 0x2ba   :  { %v355_v26 = vrot.slane %v333_v5, %v852_v48  ;;  %v597_v43 = vrot.slane %v574_v31, %v852_v48 }
 0x2bc   :  { %v366_v33 = vsel %vm114_vm2, %v355_v26, %v365_v17 }
 0x2bd   :  { %v336_v25 = vpop.permute.xlu1 %335  ;;  %v577_v40 = vpop.permute.xlu0 %576 }
 0x2be   :  { %v359_v28 = vrot.slane %v336_v25, %v852_v48  ;;  %v601_v49 = vrot.slane %v577_v40, %v852_v48 }
 0x2c0   :  { %v367_v20 = vsel %vm116_vm3, %v359_v28, %v366_v33 }
 0x2c1   :  { %v339_v32 = vpop.permute.xlu1 %338 }
 0x2c2   :  { %v363_v34 = vrot.slane %v339_v32, %v852_v48 }
 0x2c4   :  { %v368_v36 = vsel %vm118_vm4, %v363_v34, %v367_v20 }
 0x2c5   :  { %v568_v38 = vpop.permute.xlu1 %567  ;;  %v370_v39 = vsel %vm121_vm5, %v368_v36, 0.0 }
 0x2c6   :  { %v589_v55 = vrot.slane %v568_v38, %v852_v48  ;;  %371 = vadd.xlane.f32.xlu1 %v370_v39 }
 0x2c8   :  { %v603_v44 = vsel %vm112_vm1, %v589_v55, %v602_v41 }
 0x2c9   :  { %v644_v50 = vpop.permute.xlu1 %643  ;;  %v604_v57 = vsel %vm114_vm2, %v593_v23, %v603_v44 }
 0x2ca   :  { %v605_v46 = vsel %vm116_vm3, %v597_v43, %v604_v57  ;;  %v667_v59 = vrot.slane %v644_v50, %v852_v48 }
 0x2cb   :  { %v606_v60 = vsel %vm118_vm4, %v601_v49, %v605_v46 }
 0x2cc   :  { %v608_v30 = vsel %vm121_vm5, %v606_v60, 0.0  ;;  %v675_v53 = vsel %vm116_vm3, %v667_v59, %v674_v52 }
 0x2cd   :  { %v647_v62 = vpop.permute.xlu1 %646  ;;  %609 = vadd.xlane.f32.xlu0 %v608_v30 }
 0x2ce   :  { %v671_v3 = vrot.slane %v647_v62, %v852_v48 }
 0x2d0   :  { %v676_v4 = vsel %vm118_vm4, %v671_v3, %v675_v53 }
 0x2d1   :  { %v678_v0 = vsel %vm121_vm5, %v676_v4, 0.0 }
 0x2d2   :  { %679 = vadd.xlane.f32.xlu1 %v678_v0 }
 0x33b   :  { %v271_v1 = vpop.xlane.xlu0 %270 }
 0x33c   :  { %v272_v63 = vsel %vm125_vm6, %v271_v1, 0.0 }
 0x33d   :  { %v273_v2 = vrot.slane %v272_v63, 4 }
 0x33f   :  { %v274_v54 = vadd.f32 %v273_v2, %v272_v63 }
 0x341   :  { %v275_v56 = vrot.slane %v274_v54, 2 }
 0x343   :  { %v276_v13 = vadd.f32 %v275_v56, %v274_v54 }
 0x345   :  { %v277_v9 = vrot.slane %v276_v13, 1 }
 0x347   :  { %v278_v5 = vadd.f32 %v277_v9, %v276_v13 }
 0x353   :  { %v372_v7 = vpop.xlane.xlu1 %371 }
 0x354   :  { %v373_v10 = vsel %vm125_vm6, %v372_v7, 0.0 }
 0x355   :  { %v374_v12 = vrot.slane %v373_v10, 4 }
 0x357   :  { %v375_v15 = vadd.f32 %v374_v12, %v373_v10 }
 0x359   :  { %v376_v48 = vrot.slane %v375_v15, 2 }
 0x35a   :  { %v610_v16 = vpop.xlane.xlu0 %609 }
 0x35b   :  { %v377_v8 = vadd.f32 %v376_v48, %v375_v15  ;;  %v611_v18 = vsel %vm125_vm6, %v610_v16, 0.0 }
 0x35c   :  { %v612_v19 = vrot.slane %v611_v18, 4 }
 0x35d   :  { %v378_v11 = vrot.slane %v377_v8, 1 }
 0x35e   :  { %v613_v21 = vadd.f32 %v612_v19, %v611_v18 }
 0x35f   :  { %v379_v22 = vadd.f32 %v378_v11, %v377_v8  ;;  %v680_v24 = vpop.xlane.xlu1 %679 }
 0x360   :  { %v614_v14 = vrot.slane %v613_v21, 2  ;;  %v681_v25 = vsel %vm125_vm6, %v680_v24, 0.0 }
 0x361   :  { %v682_v6 = vrot.slane %v681_v25, 4  ;;  %v381_v26 = vsel %vm380_vm7, %v278_v5, %v379_v22 }
 0x362   :  { %383 = vst.msk [vmem:[#allocation3] sm:$0x1] %vm382_vm8, %v381_v26  ;;  %v615_v28 = vadd.f32 %v614_v14, %v613_v21 }
 0x363   :  { %v683_v29 = vadd.f32 %v682_v6, %v681_v25 }
 0x364   :  { %v616_v17 = vrot.slane %v615_v28, 1 }
 0x365   :  { %v684_v31 = vrot.slane %v683_v29, 2 }
 0x366   :  { %v617_v34 = vadd.f32 %v616_v17, %v615_v28 }
 0x367   :  { %v685_v32 = vadd.f32 %v684_v31, %v683_v29 }
 0x369   :  { %v686_v33 = vrot.slane %v685_v32, 1 }
 0x36b   :  { %v687_v35 = vadd.f32 %v686_v33, %v685_v32 }
 0x36d   :  { %v688_v20 = vsel %vm380_vm7, %v617_v34, %v687_v35 }
 0x36e   :  { %689 = vst.msk [vmem:[#allocation3 + $0x1] sm:$0x1] %vm382_vm8, %v688_v20 }
 0x36f   :  { %787 = shalt.err (!%p784_p4)
}
 0x370   :  { %s788_s30 = scalar_lea.hbm %s1066_s3, 32 }
 0x371   :  { %p789_p5 = scmp.ne.s32.totalorder %s1066_s3, %s788_s30  ;;  %p792_p6 = scmp.lt.u32.totalorder %s788_s30, %s1066_s3 }
 0x373   :  { %p794_p7 = pnand %p792_p6, %p789_p5 }
 0x375   :  { %797 = shalt.err (!%p794_p7)
}
 0x376   :  { %699 = dma.vmem_to_hbm [thread:$0]  %s697_s26, 32, %s1066_s3, [#allocation4]  }
 0x377   :  { %798 = dma.done.wait [#allocation4], 32  }
 0x378   :  { %799 = vsyncadd [#allocation4], 4294967264 }
 0x379   :  { %703 = vsyncpa [#allocation4], 1 }

</bundles_post_ra>
